<compile_context>
chip_gen: v5e
topology: v5e:2x2
jax: 0.10.0
libtpu: 0.0.40
codegen_flags: <defaults>
</compile_context>

<pallas_src>
import jax
import jax.numpy as jnp
from jax import lax
from jax.experimental import pallas as pl
from jax.experimental.pallas import tpu as pltpu

# ----------------------------- synthetic config -----------------------------
# (Replaces the yaml config file of the PyTorch module.)
CONFIG = {
    "num_classes": 8,
    "backbone": [
        {"type": "conv", "filters": 8,  "kernel_size": 3, "stride": 1},
        {"type": "conv", "filters": 16, "kernel_size": 3, "stride": 2},
        {"type": "conv", "filters": 32, "kernel_size": 3, "stride": 2},
    ],
}

BN_EPS = 1e-5
LEAKY_SLOPE = 0.1   # the module explicitly uses nn.LeakyReLU(0.1) (not the 0.01 default)


# ------------------------------ static shape helpers ------------------------------
def _layer_dims(config, in_shape):
    """in_shape is NCHW.  Returns per-conv-layer static dims and the final grid."""
    b, c, h, w = in_shape
    layers = []
    cin = c
    for lc in config["backbone"]:
        assert lc["type"] == "conv" and lc["kernel_size"] == 3
        s = lc.get("stride", 1)
        assert s in (1, 2)
        pad = lc["kernel_size"] // 2
        ho = (h + 2 * pad - lc["kernel_size"]) // s + 1
        wo = (w + 2 * pad - lc["kernel_size"]) // s + 1
        layers.append(dict(cin=cin, cout=lc["filters"], stride=s,
                           hi=h, wi=w, ho=ho, wo=wo))
        cin, h, w = lc["filters"], ho, wo
    return layers, (b, h, w, cin)


def _selection_matrix(b, hi, wi, ho, wo, stride):
    """(b*ho*wo, b*hi*wi) 0/1 matrix that picks stride-1 conv outputs at strided
    spatial positions.  Rows/cols are (batch, y, x) row-major."""
    bi = jnp.arange(b)[:, None, None]
    yi = jnp.arange(ho)[None, :, None] * stride
    xi = jnp.arange(wo)[None, None, :] * stride
    tgt = ((bi * hi + yi) * wi + xi).reshape(-1)
    cols = jnp.arange(b * hi * wi)[None, :]
    return (tgt[:, None] == cols).astype(jnp.float32)


# ------------------------------ parameters ------------------------------
def init_params(key, config, in_channels=3):
    params = {"backbone": []}
    cin = in_channels
    keys = jax.random.split(key, len(config["backbone"]) + 4)
    for i, lc in enumerate(config["backbone"]):
        ks, cout = lc["kernel_size"], lc["filters"]
        kw, kg, kb, km, kv = jax.random.split(keys[i], 5)
        # weight stored (kH, kW, Cin, Cout)
        w = jax.random.normal(kw, (ks, ks, cin, cout), jnp.float32) / (ks * ks * cin) ** 0.5
        params["backbone"].append({
            "w": w,
            "gamma": 1.0 + 0.1 * jax.random.normal(kg, (cout,), jnp.float32),
            "beta": 0.1 * jax.random.normal(kb, (cout,), jnp.float32),
            "mean": 0.1 * jax.random.normal(km, (cout,), jnp.float32),
            "var": 1.0 + 0.5 * jax.random.uniform(kv, (cout,), jnp.float32),
        })
        cin = cout
    ncls = config["num_classes"]
    kc, kcb, kbb, kbbb = keys[-4], keys[-3], keys[-2], keys[-1]
    params["cls_w"] = jax.random.normal(kc, (cin, ncls), jnp.float32) / cin ** 0.5
    params["cls_b"] = 0.1 * jax.random.normal(kcb, (ncls,), jnp.float32)
    params["bbox_w"] = jax.random.normal(kbb, (cin, 4), jnp.float32) / cin ** 0.5
    params["bbox_b"] = 0.1 * jax.random.normal(kbbb, (4,), jnp.float32)
    return params


def fold_params(params, config, in_shape):
    """Fold the (inference-mode) BatchNorm scale into conv weights, reshape weights
    to (9, Cin, Cout) tap order, fuse the two head matmuls, and build the stride-2
    selection matrices.  Done once, outside the jitted forward."""
    layers, _ = _layer_dims(config, in_shape)
    b = in_shape[0]
    folded = {"w": [], "shift": [], "sel": []}
    for lp, L in zip(params["backbone"], layers):
        cout = L["cout"]
        scale = lp["gamma"] / jnp.sqrt(lp["var"] + BN_EPS)
        shift = (lp["beta"] - lp["mean"] * scale).reshape(1, cout).astype(jnp.float32)
        w = (lp["w"] * scale).reshape(9, L["cin"], cout).astype(jnp.float32)
        folded["w"].append(w)
        folded["shift"].append(shift)
        if L["stride"] > 1:
            folded["sel"].append(
                _selection_matrix(b, L["hi"], L["wi"], L["ho"], L["wo"], L["stride"]))
    folded["head_w"] = jnp.concatenate(
        [params["cls_w"], params["bbox_w"]], axis=1).astype(jnp.float32)   # (Cb, ncls+4)
    folded["head_b"] = jnp.concatenate(
        [params["cls_b"], params["bbox_b"]]).reshape(1, -1).astype(jnp.float32)
    return folded


# ------------------------------ fused Pallas forward ------------------------------
def build_forward(config, in_shape):
    layers, (b, gh, gw, cb) = _layer_dims(config, in_shape)
    ncls = config["num_classes"]
    n_head = ncls + 4
    n_layers = len(layers)
    n_sel = sum(1 for L in layers if L["stride"] > 1)
    m_out = b * gh * gw

    def kernel(*refs):
        x_ref = refs[0]
        w_refs = refs[1:1 + n_layers]
        s_refs = refs[1 + n_layers:1 + 2 * n_layers]
        sel_refs = refs[1 + 2 * n_layers:1 + 2 * n_layers + n_sel]
        hw_ref = refs[1 + 2 * n_layers + n_sel]
        hb_ref = refs[2 + 2 * n_layers + n_sel]
        out_ref = refs[3 + 2 * n_layers + n_sel]
        pad_refs = refs[4 + 2 * n_layers + n_sel:]          # one padded scratch per layer

        cur = x_ref[...]                                     # (B, Hi, Wi, Cin) f32
        sel_i = 0
        feats = None
        for li, L in enumerate(layers):                      # statically unrolled
            hi, wi, ho, wo = L["hi"], L["wi"], L["ho"], L["wo"]
            cin, cout, stride = L["cin"], L["cout"], L["stride"]
            p = pad_refs[li]                                 # (B, Hi+2, Wi+2, Cin) VMEM
            p[...] = jnp.zeros_like(p)                       # zero halo (Conv2d padding=1)
            p[:, 1:1 + hi, 1:1 + wi, :] = cur                # interior = previous activation

            # In-kernel im2col: 9 accumulating taps over shifted contiguous views,
            # evaluated at stride-1 resolution.
            m_full = b * hi * wi
            acc = None
            for ky in range(3):
                for kx in range(3):
                    tap = p[:, ky:ky + hi, kx:kx + wi, :]    # (B, Hi, Wi, Cin)
                    d = jnp.dot(tap.reshape(m_full, cin),
                                w_refs[li][ky * 3 + kx],     # (Cin, Cout), BN-scale folded
                                preferred_element_type=jnp.float32)
                    acc = d if acc is None else acc + d

            if stride > 1:
                # Spatial subsampling as a tiny 0/1 selection matmul (MXU); keeps
                # every tap a contiguous slice.  ~1 MFLOP of redundant work total.
                acc = jnp.dot(sel_refs[sel_i][...], acc,
                              preferred_element_type=jnp.float32)
                sel_i += 1

            y = acc + s_refs[li][...]                        # folded BatchNorm shift
            y = jnp.maximum(y, LEAKY_SLOPE * y)              # LeakyReLU(0.1): single vmax
            if li + 1 < n_layers:
                cur = y.reshape(b, ho, wo, cout)             # feed next layer (VMEM only)
            else:
                feats = y                                    # (B*Gh*Gw, Cb)

        # Fused cls + bbox 1x1-conv heads as one matmul in the same kernel's epilogue.
        head = jnp.dot(feats, hw_ref[...],
                       preferred_element_type=jnp.float32) + hb_ref[...]
        out_ref[...] = head.astype(out_ref.dtype)

    def _full(shape):
        return pl.BlockSpec(shape, lambda i, _z=(0,) * len(shape): _z)

    x_shape = (b, layers[0]["hi"], layers[0]["wi"], layers[0]["cin"])
    in_specs = [_full(x_shape)]
    in_specs += [_full((9, L["cin"], L["cout"])) for L in layers]
    in_specs += [_full((1, L["cout"])) for L in layers]
    in_specs += [_full((b * L["ho"] * L["wo"], b * L["hi"] * L["wi"]))
                 for L in layers if L["stride"] > 1]
    in_specs += [_full((cb, n_head)), _full((1, n_head))]

    scratch_shapes = [pltpu.VMEM((b, L["hi"] + 2, L["wi"] + 2, L["cin"]), jnp.float32)
                      for L in layers]

    # Advisory cost estimate so XLA schedules the surrounding glue sensibly.
    flops = 2 * m_out * cb * n_head
    bytes_accessed = 4 * (b * layers[0]["hi"] * layers[0]["wi"] * layers[0]["cin"]
                          + cb * n_head + n_head + m_out * n_head)
    for L in layers:
        flops += 2 * (b * L["hi"] * L["wi"]) * 9 * L["cin"] * L["cout"]
        bytes_accessed += 4 * (9 * L["cin"] * L["cout"] + L["cout"])
        if L["stride"] > 1:
            flops += 2 * (b * L["ho"] * L["wo"]) * (b * L["hi"] * L["wi"]) * L["cout"]
            bytes_accessed += 4 * (b * L["ho"] * L["wo"]) * (b * L["hi"] * L["wi"])

    fused_call = pl.pallas_call(
        kernel,
        out_shape=jax.ShapeDtypeStruct((m_out, n_head), jnp.float32),
        grid=(1,),                                  # whole network = one block, one step
        in_specs=in_specs,
        out_specs=_full((m_out, n_head)),
        scratch_shapes=scratch_shapes,
        compiler_params=pltpu.CompilerParams(dimension_semantics=("arbitrary",)),
        cost_estimate=pl.CostEstimate(flops=flops, transcendentals=0,
                                      bytes_accessed=bytes_accessed),
    )

    def forward(folded, x_nchw):
        x = jnp.transpose(x_nchw, (0, 2, 3, 1)).astype(jnp.float32)   # NCHW -> NHWC
        args = ([x] + list(folded["w"]) + list(folded["shift"]) + list(folded["sel"])
                + [folded["head_w"], folded["head_b"]])
        out = fused_call(*args)                                        # (B*G*G, ncls+4)
        cls = out[:, :ncls].reshape(b, gh * gw, ncls)
        bbox = out[:, ncls:ncls + 4].reshape(b, gh * gw, 4)
        return cls, bbox

    return jax.jit(forward)


# ------------------------------ pure-JAX reference ------------------------------
def reference_forward(params, config, x_nchw):
    x = x_nchw
    for lp, lc in zip(params["backbone"], config["backbone"]):
        s = lc.get("stride", 1)
        w_oihw = jnp.transpose(lp["w"], (3, 2, 0, 1))
        x = lax.conv_general_dilated(x, w_oihw, (s, s), [(1, 1), (1, 1)],
                                     dimension_numbers=("NCHW", "OIHW", "NCHW"))
        scale = lp["gamma"] / jnp.sqrt(lp["var"] + BN_EPS)
        shift = lp["beta"] - lp["mean"] * scale
        x = x * scale[None, :, None, None] + shift[None, :, None, None]
        x = jnp.maximum(x, LEAKY_SLOPE * x)
    bsz, c, gh, gw = x.shape
    feats = jnp.transpose(x, (0, 2, 3, 1)).reshape(bsz, gh * gw, c)
    cls = feats @ params["cls_w"] + params["cls_b"]
    bbox = feats @ params["bbox_w"] + params["bbox_b"]
    return cls, bbox


# ------------------------------ main ------------------------------
if __name__ == "__main__":
    key = jax.random.PRNGKey(0)
    kp, kx = jax.random.split(key)
    params = init_params(kp, CONFIG)

    in_shape = (2, 3, 16, 16)   # NCHW, 3 input channels like the PyTorch module
    folded = fold_params(params, CONFIG, in_shape)
    forward = build_forward(CONFIG, in_shape)

    x = jax.random.normal(kx, in_shape, jnp.float32)
    cls_out, bbox_out = forward(folded, x)
    cls_out = jax.block_until_ready(cls_out)
    bbox_out = jax.block_until_ready(bbox_out)

    # grid: 16 -> 16 -> 8 -> 4 through strides (1, 2, 2) => 4x4 = 16 cells
    assert cls_out.shape == (2, 16, CONFIG["num_classes"])
    assert bbox_out.shape == (2, 16, 4)
    assert bool(jnp.all(jnp.isfinite(cls_out))) and bool(jnp.all(jnp.isfinite(bbox_out)))

    # numerical check against a pure-JAX (inference-mode BN) reference
    cls_ref, bbox_ref = reference_forward(params, CONFIG, x)
    assert bool(jnp.allclose(cls_out, cls_ref, rtol=3e-2, atol=3e-2))
    assert bool(jnp.allclose(bbox_out, bbox_ref, rtol=3e-2, atol=3e-2))

    print("KERNEL_OK")
</pallas_src>

<mosaic_0001>
module attributes {stable_mosaic.version = 11 : i64} {
  func.func @kernel(%arg0: i32, %arg1: memref<2x16x16x3xf32, #tpu.memory_space<vmem>>, %arg2: memref<9x3x8xf32, #tpu.memory_space<vmem>>, %arg3: memref<9x8x16xf32, #tpu.memory_space<vmem>>, %arg4: memref<9x16x32xf32, #tpu.memory_space<vmem>>, %arg5: memref<1x8xf32, #tpu.memory_space<vmem>>, %arg6: memref<1x16xf32, #tpu.memory_space<vmem>>, %arg7: memref<1x32xf32, #tpu.memory_space<vmem>>, %arg8: memref<128x512xf32, #tpu.memory_space<vmem>>, %arg9: memref<32x128xf32, #tpu.memory_space<vmem>>, %arg10: memref<32x12xf32, #tpu.memory_space<vmem>>, %arg11: memref<1x12xf32, #tpu.memory_space<vmem>>, %arg12: memref<32x12xf32, #tpu.memory_space<vmem>>, %arg13: memref<2x18x18x3xf32, #tpu.memory_space<vmem>>, %arg14: memref<2x18x18x8xf32, #tpu.memory_space<vmem>>, %arg15: memref<2x10x10x16xf32, #tpu.memory_space<vmem>>) attributes {dimension_semantics = [#tpu.dimension_semantics<arbitrary>], iteration_bounds = array<i64: 1>, scalar_prefetch = 0 : i64, scratch_operands = 3 : i64, tpu.core_type = #tpu.core_type<tc>, window_params = [{pipeline_mode = #tpu.pipeline_mode<synchronous>, transform_indices = @transform_0, window_bounds = array<i64: 2, 16, 16, 3>}, {pipeline_mode = #tpu.pipeline_mode<synchronous>, transform_indices = @transform_1, window_bounds = array<i64: 9, 3, 8>}, {pipeline_mode = #tpu.pipeline_mode<synchronous>, transform_indices = @transform_2, window_bounds = array<i64: 9, 8, 16>}, {pipeline_mode = #tpu.pipeline_mode<synchronous>, transform_indices = @transform_3, window_bounds = array<i64: 9, 16, 32>}, {pipeline_mode = #tpu.pipeline_mode<synchronous>, transform_indices = @transform_4, window_bounds = array<i64: 1, 8>}, {pipeline_mode = #tpu.pipeline_mode<synchronous>, transform_indices = @transform_5, window_bounds = array<i64: 1, 16>}, {pipeline_mode = #tpu.pipeline_mode<synchronous>, transform_indices = @transform_6, window_bounds = array<i64: 1, 32>}, {pipeline_mode = #tpu.pipeline_mode<synchronous>, transform_indices = @transform_7, window_bounds = array<i64: 128, 512>}, {pipeline_mode = #tpu.pipeline_mode<synchronous>, transform_indices = @transform_8, window_bounds = array<i64: 32, 128>}, {pipeline_mode = #tpu.pipeline_mode<synchronous>, transform_indices = @transform_9, window_bounds = array<i64: 32, 12>}, {pipeline_mode = #tpu.pipeline_mode<synchronous>, transform_indices = @transform_10, window_bounds = array<i64: 1, 12>}, {pipeline_mode = #tpu.pipeline_mode<synchronous>, transform_indices = @transform_11, window_bounds = array<i64: 32, 12>}]} {
    %c0 = arith.constant 0 : index
    %c0_0 = arith.constant 0 : index
    %c0_1 = arith.constant 0 : index
    %c0_2 = arith.constant 0 : index
    %0 = vector.load %arg1[%c0, %c0_0, %c0_1, %c0_2] : memref<2x16x16x3xf32, #tpu.memory_space<vmem>>, vector<2x16x16x3xf32>
    %cst = arith.constant 0.000000e+00 : f32
    %1 = vector.broadcast %cst : f32 to vector<2x18x18x3xf32>
    %c0_3 = arith.constant 0 : index
    %c0_4 = arith.constant 0 : index
    %c0_5 = arith.constant 0 : index
    %c0_6 = arith.constant 0 : index
    %2 = vector.load %arg13[%c0_3, %c0_4, %c0_5, %c0_6] : memref<2x18x18x3xf32, #tpu.memory_space<vmem>>, vector<2x18x18x3xf32>
    tpu.vector_store %arg13[%c0_3, %c0_4, %c0_5, %c0_6], %1 {strides = array<i32>} : memref<2x18x18x3xf32, #tpu.memory_space<vmem>>, vector<2x18x18x3xf32>,
    %c0_7 = arith.constant 0 : index
    %c1 = arith.constant 1 : index
    %c1_8 = arith.constant 1 : index
    %c0_9 = arith.constant 0 : index
    %3 = vector.load %arg13[%c0_7, %c1, %c1_8, %c0_9] : memref<2x18x18x3xf32, #tpu.memory_space<vmem>>, vector<2x16x16x3xf32>
    tpu.vector_store %arg13[%c0_7, %c1, %c1_8, %c0_9], %0 {strides = array<i32>} : memref<2x18x18x3xf32, #tpu.memory_space<vmem>>, vector<2x16x16x3xf32>,
    %c0_10 = arith.constant 0 : index
    %c0_11 = arith.constant 0 : index
    %c0_12 = arith.constant 0 : index
    %c0_13 = arith.constant 0 : index
    %4 = vector.load %arg13[%c0_10, %c0_11, %c0_12, %c0_13] : memref<2x18x18x3xf32, #tpu.memory_space<vmem>>, vector<2x16x16x3xf32>
    %5 = vector.shape_cast %4 : vector<2x16x16x3xf32> to vector<512x3xf32>
    %c0_14 = arith.constant 0 : index
    %c0_15 = arith.constant 0 : index
    %c0_16 = arith.constant 0 : index
    %6 = vector.load %arg2[%c0_14, %c0_15, %c0_16] : memref<9x3x8xf32, #tpu.memory_space<vmem>>, vector<1x3x8xf32>
    %7 = vector.shape_cast %6 : vector<1x3x8xf32> to vector<3x8xf32>
    %cst_17 = arith.constant dense<0.000000e+00> : vector<512x8xf32>
    %8 = tpu.matmul %5, %7, %cst_17 {dimension_numbers = #tpu.dot_dimension_numbers<[1], [0], [0], [1], [0, 0, 1, 1], [], []>} : vector<512x3xf32>, vector<3x8xf32>, vector<512x8xf32> -> vector<512x8xf32>
    %c0_18 = arith.constant 0 : index
    %c0_19 = arith.constant 0 : index
    %c1_20 = arith.constant 1 : index
    %c0_21 = arith.constant 0 : index
    %9 = vector.load %arg13[%c0_18, %c0_19, %c1_20, %c0_21] : memref<2x18x18x3xf32, #tpu.memory_space<vmem>>, vector<2x16x16x3xf32>
    %10 = vector.shape_cast %9 : vector<2x16x16x3xf32> to vector<512x3xf32>
    %c1_22 = arith.constant 1 : index
    %c0_23 = arith.constant 0 : index
    %c0_24 = arith.constant 0 : index
    %11 = vector.load %arg2[%c1_22, %c0_23, %c0_24] : memref<9x3x8xf32, #tpu.memory_space<vmem>>, vector<1x3x8xf32>
    %12 = vector.shape_cast %11 : vector<1x3x8xf32> to vector<3x8xf32>
    %cst_25 = arith.constant dense<0.000000e+00> : vector<512x8xf32>
    %13 = tpu.matmul %10, %12, %cst_25 {dimension_numbers = #tpu.dot_dimension_numbers<[1], [0], [0], [1], [0, 0, 1, 1], [], []>} : vector<512x3xf32>, vector<3x8xf32>, vector<512x8xf32> -> vector<512x8xf32>
    %14 = arith.addf %8, %13 : vector<512x8xf32>
    %c0_26 = arith.constant 0 : index
    %c0_27 = arith.constant 0 : index
    %c2 = arith.constant 2 : index
    %c0_28 = arith.constant 0 : index
    %15 = vector.load %arg13[%c0_26, %c0_27, %c2, %c0_28] : memref<2x18x18x3xf32, #tpu.memory_space<vmem>>, vector<2x16x16x3xf32>
    %16 = vector.shape_cast %15 : vector<2x16x16x3xf32> to vector<512x3xf32>
    %c2_29 = arith.constant 2 : index
    %c0_30 = arith.constant 0 : index
    %c0_31 = arith.constant 0 : index
    %17 = vector.load %arg2[%c2_29, %c0_30, %c0_31] : memref<9x3x8xf32, #tpu.memory_space<vmem>>, vector<1x3x8xf32>
    %18 = vector.shape_cast %17 : vector<1x3x8xf32> to vector<3x8xf32>
    %cst_32 = arith.constant dense<0.000000e+00> : vector<512x8xf32>
    %19 = tpu.matmul %16, %18, %cst_32 {dimension_numbers = #tpu.dot_dimension_numbers<[1], [0], [0], [1], [0, 0, 1, 1], [], []>} : vector<512x3xf32>, vector<3x8xf32>, vector<512x8xf32> -> vector<512x8xf32>
    %20 = arith.addf %14, %19 : vector<512x8xf32>
    %c0_33 = arith.constant 0 : index
    %c1_34 = arith.constant 1 : index
    %c0_35 = arith.constant 0 : index
    %c0_36 = arith.constant 0 : index
    %21 = vector.load %arg13[%c0_33, %c1_34, %c0_35, %c0_36] : memref<2x18x18x3xf32, #tpu.memory_space<vmem>>, vector<2x16x16x3xf32>
    %22 = vector.shape_cast %21 : vector<2x16x16x3xf32> to vector<512x3xf32>
    %c3 = arith.constant 3 : index
    %c0_37 = arith.constant 0 : index
    %c0_38 = arith.constant 0 : index
    %23 = vector.load %arg2[%c3, %c0_37, %c0_38] : memref<9x3x8xf32, #tpu.memory_space<vmem>>, vector<1x3x8xf32>
    %24 = vector.shape_cast %23 : vector<1x3x8xf32> to vector<3x8xf32>
    %cst_39 = arith.constant dense<0.000000e+00> : vector<512x8xf32>
    %25 = tpu.matmul %22, %24, %cst_39 {dimension_numbers = #tpu.dot_dimension_numbers<[1], [0], [0], [1], [0, 0, 1, 1], [], []>} : vector<512x3xf32>, vector<3x8xf32>, vector<512x8xf32> -> vector<512x8xf32>
    %26 = arith.addf %20, %25 : vector<512x8xf32>
    %c0_40 = arith.constant 0 : index
    %c1_41 = arith.constant 1 : index
    %c1_42 = arith.constant 1 : index
    %c0_43 = arith.constant 0 : index
    %27 = vector.load %arg13[%c0_40, %c1_41, %c1_42, %c0_43] : memref<2x18x18x3xf32, #tpu.memory_space<vmem>>, vector<2x16x16x3xf32>
    %28 = vector.shape_cast %27 : vector<2x16x16x3xf32> to vector<512x3xf32>
    %c4 = arith.constant 4 : index
    %c0_44 = arith.constant 0 : index
    %c0_45 = arith.constant 0 : index
    %29 = vector.load %arg2[%c4, %c0_44, %c0_45] : memref<9x3x8xf32, #tpu.memory_space<vmem>>, vector<1x3x8xf32>
    %30 = vector.shape_cast %29 : vector<1x3x8xf32> to vector<3x8xf32>
    %cst_46 = arith.constant dense<0.000000e+00> : vector<512x8xf32>
    %31 = tpu.matmul %28, %30, %cst_46 {dimension_numbers = #tpu.dot_dimension_numbers<[1], [0], [0], [1], [0, 0, 1, 1], [], []>} : vector<512x3xf32>, vector<3x8xf32>, vector<512x8xf32> -> vector<512x8xf32>
    %32 = arith.addf %26, %31 : vector<512x8xf32>
    %c0_47 = arith.constant 0 : index
    %c1_48 = arith.constant 1 : index
    %c2_49 = arith.constant 2 : index
    %c0_50 = arith.constant 0 : index
    %33 = vector.load %arg13[%c0_47, %c1_48, %c2_49, %c0_50] : memref<2x18x18x3xf32, #tpu.memory_space<vmem>>, vector<2x16x16x3xf32>
    %34 = vector.shape_cast %33 : vector<2x16x16x3xf32> to vector<512x3xf32>
    %c5 = arith.constant 5 : index
    %c0_51 = arith.constant 0 : index
    %c0_52 = arith.constant 0 : index
    %35 = vector.load %arg2[%c5, %c0_51, %c0_52] : memref<9x3x8xf32, #tpu.memory_space<vmem>>, vector<1x3x8xf32>
    %36 = vector.shape_cast %35 : vector<1x3x8xf32> to vector<3x8xf32>
    %cst_53 = arith.constant dense<0.000000e+00> : vector<512x8xf32>
    %37 = tpu.matmul %34, %36, %cst_53 {dimension_numbers = #tpu.dot_dimension_numbers<[1], [0], [0], [1], [0, 0, 1, 1], [], []>} : vector<512x3xf32>, vector<3x8xf32>, vector<512x8xf32> -> vector<512x8xf32>
    %38 = arith.addf %32, %37 : vector<512x8xf32>
    %c0_54 = arith.constant 0 : index
    %c2_55 = arith.constant 2 : index
    %c0_56 = arith.constant 0 : index
    %c0_57 = arith.constant 0 : index
    %39 = vector.load %arg13[%c0_54, %c2_55, %c0_56, %c0_57] : memref<2x18x18x3xf32, #tpu.memory_space<vmem>>, vector<2x16x16x3xf32>
    %40 = vector.shape_cast %39 : vector<2x16x16x3xf32> to vector<512x3xf32>
    %c6 = arith.constant 6 : index
    %c0_58 = arith.constant 0 : index
    %c0_59 = arith.constant 0 : index
    %41 = vector.load %arg2[%c6, %c0_58, %c0_59] : memref<9x3x8xf32, #tpu.memory_space<vmem>>, vector<1x3x8xf32>
    %42 = vector.shape_cast %41 : vector<1x3x8xf32> to vector<3x8xf32>
    %cst_60 = arith.constant dense<0.000000e+00> : vector<512x8xf32>
    %43 = tpu.matmul %40, %42, %cst_60 {dimension_numbers = #tpu.dot_dimension_numbers<[1], [0], [0], [1], [0, 0, 1, 1], [], []>} : vector<512x3xf32>, vector<3x8xf32>, vector<512x8xf32> -> vector<512x8xf32>
    %44 = arith.addf %38, %43 : vector<512x8xf32>
    %c0_61 = arith.constant 0 : index
    %c2_62 = arith.constant 2 : index
    %c1_63 = arith.constant 1 : index
    %c0_64 = arith.constant 0 : index
    %45 = vector.load %arg13[%c0_61, %c2_62, %c1_63, %c0_64] : memref<2x18x18x3xf32, #tpu.memory_space<vmem>>, vector<2x16x16x3xf32>
    %46 = vector.shape_cast %45 : vector<2x16x16x3xf32> to vector<512x3xf32>
    %c7 = arith.constant 7 : index
    %c0_65 = arith.constant 0 : index
    %c0_66 = arith.constant 0 : index
    %47 = vector.load %arg2[%c7, %c0_65, %c0_66] : memref<9x3x8xf32, #tpu.memory_space<vmem>>, vector<1x3x8xf32>
    %48 = vector.shape_cast %47 : vector<1x3x8xf32> to vector<3x8xf32>
    %cst_67 = arith.constant dense<0.000000e+00> : vector<512x8xf32>
    %49 = tpu.matmul %46, %48, %cst_67 {dimension_numbers = #tpu.dot_dimension_numbers<[1], [0], [0], [1], [0, 0, 1, 1], [], []>} : vector<512x3xf32>, vector<3x8xf32>, vector<512x8xf32> -> vector<512x8xf32>
    %50 = arith.addf %44, %49 : vector<512x8xf32>
    %c0_68 = arith.constant 0 : index
    %c2_69 = arith.constant 2 : index
    %c2_70 = arith.constant 2 : index
    %c0_71 = arith.constant 0 : index
    %51 = vector.load %arg13[%c0_68, %c2_69, %c2_70, %c0_71] : memref<2x18x18x3xf32, #tpu.memory_space<vmem>>, vector<2x16x16x3xf32>
    %52 = vector.shape_cast %51 : vector<2x16x16x3xf32> to vector<512x3xf32>
    %c8 = arith.constant 8 : index
    %c0_72 = arith.constant 0 : index
    %c0_73 = arith.constant 0 : index
    %53 = vector.load %arg2[%c8, %c0_72, %c0_73] : memref<9x3x8xf32, #tpu.memory_space<vmem>>, vector<1x3x8xf32>
    %54 = vector.shape_cast %53 : vector<1x3x8xf32> to vector<3x8xf32>
    %cst_74 = arith.constant dense<0.000000e+00> : vector<512x8xf32>
    %55 = tpu.matmul %52, %54, %cst_74 {dimension_numbers = #tpu.dot_dimension_numbers<[1], [0], [0], [1], [0, 0, 1, 1], [], []>} : vector<512x3xf32>, vector<3x8xf32>, vector<512x8xf32> -> vector<512x8xf32>
    %56 = arith.addf %50, %55 : vector<512x8xf32>
    %c0_75 = arith.constant 0 : index
    %c0_76 = arith.constant 0 : index
    %57 = vector.load %arg5[%c0_75, %c0_76] : memref<1x8xf32, #tpu.memory_space<vmem>>, vector<1x8xf32>
    %58 = vector.broadcast %57 : vector<1x8xf32> to vector<512x8xf32>
    %59 = arith.addf %56, %58 : vector<512x8xf32>
    %cst_77 = arith.constant 1.000000e-01 : f32
    %60 = vector.broadcast %cst_77 : f32 to vector<512x8xf32>
    %61 = arith.mulf %60, %59 : vector<512x8xf32>
    %62 = arith.maximumf %59, %61 : vector<512x8xf32>
    %63 = vector.shape_cast %62 : vector<512x8xf32> to vector<2x16x16x8xf32>
    %cst_78 = arith.constant 0.000000e+00 : f32
    %64 = vector.broadcast %cst_78 : f32 to vector<2x18x18x8xf32>
    %c0_79 = arith.constant 0 : index
    %c0_80 = arith.constant 0 : index
    %c0_81 = arith.constant 0 : index
    %c0_82 = arith.constant 0 : index
    %65 = vector.load %arg14[%c0_79, %c0_80, %c0_81, %c0_82] : memref<2x18x18x8xf32, #tpu.memory_space<vmem>>, vector<2x18x18x8xf32>
    tpu.vector_store %arg14[%c0_79, %c0_80, %c0_81, %c0_82], %64 {strides = array<i32>} : memref<2x18x18x8xf32, #tpu.memory_space<vmem>>, vector<2x18x18x8xf32>,
    %c0_83 = arith.constant 0 : index
    %c1_84 = arith.constant 1 : index
    %c1_85 = arith.constant 1 : index
    %c0_86 = arith.constant 0 : index
    %66 = vector.load %arg14[%c0_83, %c1_84, %c1_85, %c0_86] : memref<2x18x18x8xf32, #tpu.memory_space<vmem>>, vector<2x16x16x8xf32>
    tpu.vector_store %arg14[%c0_83, %c1_84, %c1_85, %c0_86], %63 {strides = array<i32>} : memref<2x18x18x8xf32, #tpu.memory_space<vmem>>, vector<2x16x16x8xf32>,
    %c0_87 = arith.constant 0 : index
    %c0_88 = arith.constant 0 : index
    %c0_89 = arith.constant 0 : index
    %c0_90 = arith.constant 0 : index
    %67 = vector.load %arg14[%c0_87, %c0_88, %c0_89, %c0_90] : memref<2x18x18x8xf32, #tpu.memory_space<vmem>>, vector<2x16x16x8xf32>
    %68 = vector.shape_cast %67 : vector<2x16x16x8xf32> to vector<512x8xf32>
    %c0_91 = arith.constant 0 : index
    %c0_92 = arith.constant 0 : index
    %c0_93 = arith.constant 0 : index
    %69 = vector.load %arg3[%c0_91, %c0_92, %c0_93] : memref<9x8x16xf32, #tpu.memory_space<vmem>>, vector<1x8x16xf32>
    %70 = vector.shape_cast %69 : vector<1x8x16xf32> to vector<8x16xf32>
    %cst_94 = arith.constant dense<0.000000e+00> : vector<512x16xf32>
    %71 = tpu.matmul %68, %70, %cst_94 {dimension_numbers = #tpu.dot_dimension_numbers<[1], [0], [0], [1], [0, 0, 1, 1], [], []>} : vector<512x8xf32>, vector<8x16xf32>, vector<512x16xf32> -> vector<512x16xf32>
    %c0_95 = arith.constant 0 : index
    %c0_96 = arith.constant 0 : index
    %c1_97 = arith.constant 1 : index
    %c0_98 = arith.constant 0 : index
    %72 = vector.load %arg14[%c0_95, %c0_96, %c1_97, %c0_98] : memref<2x18x18x8xf32, #tpu.memory_space<vmem>>, vector<2x16x16x8xf32>
    %73 = vector.shape_cast %72 : vector<2x16x16x8xf32> to vector<512x8xf32>
    %c1_99 = arith.constant 1 : index
    %c0_100 = arith.constant 0 : index
    %c0_101 = arith.constant 0 : index
    %74 = vector.load %arg3[%c1_99, %c0_100, %c0_101] : memref<9x8x16xf32, #tpu.memory_space<vmem>>, vector<1x8x16xf32>
    %75 = vector.shape_cast %74 : vector<1x8x16xf32> to vector<8x16xf32>
    %cst_102 = arith.constant dense<0.000000e+00> : vector<512x16xf32>
    %76 = tpu.matmul %73, %75, %cst_102 {dimension_numbers = #tpu.dot_dimension_numbers<[1], [0], [0], [1], [0, 0, 1, 1], [], []>} : vector<512x8xf32>, vector<8x16xf32>, vector<512x16xf32> -> vector<512x16xf32>
    %77 = arith.addf %71, %76 : vector<512x16xf32>
    %c0_103 = arith.constant 0 : index
    %c0_104 = arith.constant 0 : index
    %c2_105 = arith.constant 2 : index
    %c0_106 = arith.constant 0 : index
    %78 = vector.load %arg14[%c0_103, %c0_104, %c2_105, %c0_106] : memref<2x18x18x8xf32, #tpu.memory_space<vmem>>, vector<2x16x16x8xf32>
    %79 = vector.shape_cast %78 : vector<2x16x16x8xf32> to vector<512x8xf32>
    %c2_107 = arith.constant 2 : index
    %c0_108 = arith.constant 0 : index
    %c0_109 = arith.constant 0 : index
    %80 = vector.load %arg3[%c2_107, %c0_108, %c0_109] : memref<9x8x16xf32, #tpu.memory_space<vmem>>, vector<1x8x16xf32>
    %81 = vector.shape_cast %80 : vector<1x8x16xf32> to vector<8x16xf32>
    %cst_110 = arith.constant dense<0.000000e+00> : vector<512x16xf32>
    %82 = tpu.matmul %79, %81, %cst_110 {dimension_numbers = #tpu.dot_dimension_numbers<[1], [0], [0], [1], [0, 0, 1, 1], [], []>} : vector<512x8xf32>, vector<8x16xf32>, vector<512x16xf32> -> vector<512x16xf32>
    %83 = arith.addf %77, %82 : vector<512x16xf32>
    %c0_111 = arith.constant 0 : index
    %c1_112 = arith.constant 1 : index
    %c0_113 = arith.constant 0 : index
    %c0_114 = arith.constant 0 : index
    %84 = vector.load %arg14[%c0_111, %c1_112, %c0_113, %c0_114] : memref<2x18x18x8xf32, #tpu.memory_space<vmem>>, vector<2x16x16x8xf32>
    %85 = vector.shape_cast %84 : vector<2x16x16x8xf32> to vector<512x8xf32>
    %c3_115 = arith.constant 3 : index
    %c0_116 = arith.constant 0 : index
    %c0_117 = arith.constant 0 : index
    %86 = vector.load %arg3[%c3_115, %c0_116, %c0_117] : memref<9x8x16xf32, #tpu.memory_space<vmem>>, vector<1x8x16xf32>
    %87 = vector.shape_cast %86 : vector<1x8x16xf32> to vector<8x16xf32>
    %cst_118 = arith.constant dense<0.000000e+00> : vector<512x16xf32>
    %88 = tpu.matmul %85, %87, %cst_118 {dimension_numbers = #tpu.dot_dimension_numbers<[1], [0], [0], [1], [0, 0, 1, 1], [], []>} : vector<512x8xf32>, vector<8x16xf32>, vector<512x16xf32> -> vector<512x16xf32>
    %89 = arith.addf %83, %88 : vector<512x16xf32>
    %c0_119 = arith.constant 0 : index
    %c1_120 = arith.constant 1 : index
    %c1_121 = arith.constant 1 : index
    %c0_122 = arith.constant 0 : index
    %90 = vector.load %arg14[%c0_119, %c1_120, %c1_121, %c0_122] : memref<2x18x18x8xf32, #tpu.memory_space<vmem>>, vector<2x16x16x8xf32>
    %91 = vector.shape_cast %90 : vector<2x16x16x8xf32> to vector<512x8xf32>
    %c4_123 = arith.constant 4 : index
    %c0_124 = arith.constant 0 : index
    %c0_125 = arith.constant 0 : index
    %92 = vector.load %arg3[%c4_123, %c0_124, %c0_125] : memref<9x8x16xf32, #tpu.memory_space<vmem>>, vector<1x8x16xf32>
    %93 = vector.shape_cast %92 : vector<1x8x16xf32> to vector<8x16xf32>
    %cst_126 = arith.constant dense<0.000000e+00> : vector<512x16xf32>
    %94 = tpu.matmul %91, %93, %cst_126 {dimension_numbers = #tpu.dot_dimension_numbers<[1], [0], [0], [1], [0, 0, 1, 1], [], []>} : vector<512x8xf32>, vector<8x16xf32>, vector<512x16xf32> -> vector<512x16xf32>
    %95 = arith.addf %89, %94 : vector<512x16xf32>
    %c0_127 = arith.constant 0 : index
    %c1_128 = arith.constant 1 : index
    %c2_129 = arith.constant 2 : index
    %c0_130 = arith.constant 0 : index
    %96 = vector.load %arg14[%c0_127, %c1_128, %c2_129, %c0_130] : memref<2x18x18x8xf32, #tpu.memory_space<vmem>>, vector<2x16x16x8xf32>
    %97 = vector.shape_cast %96 : vector<2x16x16x8xf32> to vector<512x8xf32>
    %c5_131 = arith.constant 5 : index
    %c0_132 = arith.constant 0 : index
    %c0_133 = arith.constant 0 : index
    %98 = vector.load %arg3[%c5_131, %c0_132, %c0_133] : memref<9x8x16xf32, #tpu.memory_space<vmem>>, vector<1x8x16xf32>
    %99 = vector.shape_cast %98 : vector<1x8x16xf32> to vector<8x16xf32>
    %cst_134 = arith.constant dense<0.000000e+00> : vector<512x16xf32>
    %100 = tpu.matmul %97, %99, %cst_134 {dimension_numbers = #tpu.dot_dimension_numbers<[1], [0], [0], [1], [0, 0, 1, 1], [], []>} : vector<512x8xf32>, vector<8x16xf32>, vector<512x16xf32> -> vector<512x16xf32>
    %101 = arith.addf %95, %100 : vector<512x16xf32>
    %c0_135 = arith.constant 0 : index
    %c2_136 = arith.constant 2 : index
    %c0_137 = arith.constant 0 : index
    %c0_138 = arith.constant 0 : index
    %102 = vector.load %arg14[%c0_135, %c2_136, %c0_137, %c0_138] : memref<2x18x18x8xf32, #tpu.memory_space<vmem>>, vector<2x16x16x8xf32>
    %103 = vector.shape_cast %102 : vector<2x16x16x8xf32> to vector<512x8xf32>
    %c6_139 = arith.constant 6 : index
    %c0_140 = arith.constant 0 : index
    %c0_141 = arith.constant 0 : index
    %104 = vector.load %arg3[%c6_139, %c0_140, %c0_141] : memref<9x8x16xf32, #tpu.memory_space<vmem>>, vector<1x8x16xf32>
    %105 = vector.shape_cast %104 : vector<1x8x16xf32> to vector<8x16xf32>
    %cst_142 = arith.constant dense<0.000000e+00> : vector<512x16xf32>
    %106 = tpu.matmul %103, %105, %cst_142 {dimension_numbers = #tpu.dot_dimension_numbers<[1], [0], [0], [1], [0, 0, 1, 1], [], []>} : vector<512x8xf32>, vector<8x16xf32>, vector<512x16xf32> -> vector<512x16xf32>
    %107 = arith.addf %101, %106 : vector<512x16xf32>
    %c0_143 = arith.constant 0 : index
    %c2_144 = arith.constant 2 : index
    %c1_145 = arith.constant 1 : index
    %c0_146 = arith.constant 0 : index
    %108 = vector.load %arg14[%c0_143, %c2_144, %c1_145, %c0_146] : memref<2x18x18x8xf32, #tpu.memory_space<vmem>>, vector<2x16x16x8xf32>
    %109 = vector.shape_cast %108 : vector<2x16x16x8xf32> to vector<512x8xf32>
    %c7_147 = arith.constant 7 : index
    %c0_148 = arith.constant 0 : index
    %c0_149 = arith.constant 0 : index
    %110 = vector.load %arg3[%c7_147, %c0_148, %c0_149] : memref<9x8x16xf32, #tpu.memory_space<vmem>>, vector<1x8x16xf32>
    %111 = vector.shape_cast %110 : vector<1x8x16xf32> to vector<8x16xf32>
    %cst_150 = arith.constant dense<0.000000e+00> : vector<512x16xf32>
    %112 = tpu.matmul %109, %111, %cst_150 {dimension_numbers = #tpu.dot_dimension_numbers<[1], [0], [0], [1], [0, 0, 1, 1], [], []>} : vector<512x8xf32>, vector<8x16xf32>, vector<512x16xf32> -> vector<512x16xf32>
    %113 = arith.addf %107, %112 : vector<512x16xf32>
    %c0_151 = arith.constant 0 : index
    %c2_152 = arith.constant 2 : index
    %c2_153 = arith.constant 2 : index
    %c0_154 = arith.constant 0 : index
    %114 = vector.load %arg14[%c0_151, %c2_152, %c2_153, %c0_154] : memref<2x18x18x8xf32, #tpu.memory_space<vmem>>, vector<2x16x16x8xf32>
    %115 = vector.shape_cast %114 : vector<2x16x16x8xf32> to vector<512x8xf32>
    %c8_155 = arith.constant 8 : index
    %c0_156 = arith.constant 0 : index
    %c0_157 = arith.constant 0 : index
    %116 = vector.load %arg3[%c8_155, %c0_156, %c0_157] : memref<9x8x16xf32, #tpu.memory_space<vmem>>, vector<1x8x16xf32>
    %117 = vector.shape_cast %116 : vector<1x8x16xf32> to vector<8x16xf32>
    %cst_158 = arith.constant dense<0.000000e+00> : vector<512x16xf32>
    %118 = tpu.matmul %115, %117, %cst_158 {dimension_numbers = #tpu.dot_dimension_numbers<[1], [0], [0], [1], [0, 0, 1, 1], [], []>} : vector<512x8xf32>, vector<8x16xf32>, vector<512x16xf32> -> vector<512x16xf32>
    %119 = arith.addf %113, %118 : vector<512x16xf32>
    %c0_159 = arith.constant 0 : index
    %c0_160 = arith.constant 0 : index
    %120 = vector.load %arg8[%c0_159, %c0_160] : memref<128x512xf32, #tpu.memory_space<vmem>>, vector<128x512xf32>
    %cst_161 = arith.constant dense<0.000000e+00> : vector<128x16xf32>
    %121 = tpu.matmul %120, %119, %cst_161 {dimension_numbers = #tpu.dot_dimension_numbers<[1], [0], [0], [1], [0, 0, 1, 1], [], []>} : vector<128x512xf32>, vector<512x16xf32>, vector<128x16xf32> -> vector<128x16xf32>
    %c0_162 = arith.constant 0 : index
    %c0_163 = arith.constant 0 : index
    %122 = vector.load %arg6[%c0_162, %c0_163] : memref<1x16xf32, #tpu.memory_space<vmem>>, vector<1x16xf32>
    %123 = vector.broadcast %122 : vector<1x16xf32> to vector<128x16xf32>
    %124 = arith.addf %121, %123 : vector<128x16xf32>
    %cst_164 = arith.constant 1.000000e-01 : f32
    %125 = vector.broadcast %cst_164 : f32 to vector<128x16xf32>
    %126 = arith.mulf %125, %124 : vector<128x16xf32>
    %127 = arith.maximumf %124, %126 : vector<128x16xf32>
    %128 = vector.shape_cast %127 : vector<128x16xf32> to vector<2x8x8x16xf32>
    %cst_165 = arith.constant 0.000000e+00 : f32
    %129 = vector.broadcast %cst_165 : f32 to vector<2x10x10x16xf32>
    %c0_166 = arith.constant 0 : index
    %c0_167 = arith.constant 0 : index
    %c0_168 = arith.constant 0 : index
    %c0_169 = arith.constant 0 : index
    %130 = vector.load %arg15[%c0_166, %c0_167, %c0_168, %c0_169] : memref<2x10x10x16xf32, #tpu.memory_space<vmem>>, vector<2x10x10x16xf32>
    tpu.vector_store %arg15[%c0_166, %c0_167, %c0_168, %c0_169], %129 {strides = array<i32>} : memref<2x10x10x16xf32, #tpu.memory_space<vmem>>, vector<2x10x10x16xf32>,
    %c0_170 = arith.constant 0 : index
    %c1_171 = arith.constant 1 : index
    %c1_172 = arith.constant 1 : index
    %c0_173 = arith.constant 0 : index
    %131 = vector.load %arg15[%c0_170, %c1_171, %c1_172, %c0_173] : memref<2x10x10x16xf32, #tpu.memory_space<vmem>>, vector<2x8x8x16xf32>
    tpu.vector_store %arg15[%c0_170, %c1_171, %c1_172, %c0_173], %128 {strides = array<i32>} : memref<2x10x10x16xf32, #tpu.memory_space<vmem>>, vector<2x8x8x16xf32>,
    %c0_174 = arith.constant 0 : index
    %c0_175 = arith.constant 0 : index
    %c0_176 = arith.constant 0 : index
    %c0_177 = arith.constant 0 : index
    %132 = vector.load %arg15[%c0_174, %c0_175, %c0_176, %c0_177] : memref<2x10x10x16xf32, #tpu.memory_space<vmem>>, vector<2x8x8x16xf32>
    %133 = vector.shape_cast %132 : vector<2x8x8x16xf32> to vector<128x16xf32>
    %c0_178 = arith.constant 0 : index
    %c0_179 = arith.constant 0 : index
    %c0_180 = arith.constant 0 : index
    %134 = vector.load %arg4[%c0_178, %c0_179, %c0_180] : memref<9x16x32xf32, #tpu.memory_space<vmem>>, vector<1x16x32xf32>
    %135 = vector.shape_cast %134 : vector<1x16x32xf32> to vector<16x32xf32>
    %cst_181 = arith.constant dense<0.000000e+00> : vector<128x32xf32>
    %136 = tpu.matmul %133, %135, %cst_181 {dimension_numbers = #tpu.dot_dimension_numbers<[1], [0], [0], [1], [0, 0, 1, 1], [], []>} : vector<128x16xf32>, vector<16x32xf32>, vector<128x32xf32> -> vector<128x32xf32>
    %c0_182 = arith.constant 0 : index
    %c0_183 = arith.constant 0 : index
    %c1_184 = arith.constant 1 : index
    %c0_185 = arith.constant 0 : index
    %137 = vector.load %arg15[%c0_182, %c0_183, %c1_184, %c0_185] : memref<2x10x10x16xf32, #tpu.memory_space<vmem>>, vector<2x8x8x16xf32>
    %138 = vector.shape_cast %137 : vector<2x8x8x16xf32> to vector<128x16xf32>
    %c1_186 = arith.constant 1 : index
    %c0_187 = arith.constant 0 : index
    %c0_188 = arith.constant 0 : index
    %139 = vector.load %arg4[%c1_186, %c0_187, %c0_188] : memref<9x16x32xf32, #tpu.memory_space<vmem>>, vector<1x16x32xf32>
    %140 = vector.shape_cast %139 : vector<1x16x32xf32> to vector<16x32xf32>
    %cst_189 = arith.constant dense<0.000000e+00> : vector<128x32xf32>
    %141 = tpu.matmul %138, %140, %cst_189 {dimension_numbers = #tpu.dot_dimension_numbers<[1], [0], [0], [1], [0, 0, 1, 1], [], []>} : vector<128x16xf32>, vector<16x32xf32>, vector<128x32xf32> -> vector<128x32xf32>
    %142 = arith.addf %136, %141 : vector<128x32xf32>
    %c0_190 = arith.constant 0 : index
    %c0_191 = arith.constant 0 : index
    %c2_192 = arith.constant 2 : index
    %c0_193 = arith.constant 0 : index
    %143 = vector.load %arg15[%c0_190, %c0_191, %c2_192, %c0_193] : memref<2x10x10x16xf32, #tpu.memory_space<vmem>>, vector<2x8x8x16xf32>
    %144 = vector.shape_cast %143 : vector<2x8x8x16xf32> to vector<128x16xf32>
    %c2_194 = arith.constant 2 : index
    %c0_195 = arith.constant 0 : index
    %c0_196 = arith.constant 0 : index
    %145 = vector.load %arg4[%c2_194, %c0_195, %c0_196] : memref<9x16x32xf32, #tpu.memory_space<vmem>>, vector<1x16x32xf32>
    %146 = vector.shape_cast %145 : vector<1x16x32xf32> to vector<16x32xf32>
    %cst_197 = arith.constant dense<0.000000e+00> : vector<128x32xf32>
    %147 = tpu.matmul %144, %146, %cst_197 {dimension_numbers = #tpu.dot_dimension_numbers<[1], [0], [0], [1], [0, 0, 1, 1], [], []>} : vector<128x16xf32>, vector<16x32xf32>, vector<128x32xf32> -> vector<128x32xf32>
    %148 = arith.addf %142, %147 : vector<128x32xf32>
    %c0_198 = arith.constant 0 : index
    %c1_199 = arith.constant 1 : index
    %c0_200 = arith.constant 0 : index
    %c0_201 = arith.constant 0 : index
    %149 = vector.load %arg15[%c0_198, %c1_199, %c0_200, %c0_201] : memref<2x10x10x16xf32, #tpu.memory_space<vmem>>, vector<2x8x8x16xf32>
    %150 = vector.shape_cast %149 : vector<2x8x8x16xf32> to vector<128x16xf32>
    %c3_202 = arith.constant 3 : index
    %c0_203 = arith.constant 0 : index
    %c0_204 = arith.constant 0 : index
    %151 = vector.load %arg4[%c3_202, %c0_203, %c0_204] : memref<9x16x32xf32, #tpu.memory_space<vmem>>, vector<1x16x32xf32>
    %152 = vector.shape_cast %151 : vector<1x16x32xf32> to vector<16x32xf32>
    %cst_205 = arith.constant dense<0.000000e+00> : vector<128x32xf32>
    %153 = tpu.matmul %150, %152, %cst_205 {dimension_numbers = #tpu.dot_dimension_numbers<[1], [0], [0], [1], [0, 0, 1, 1], [], []>} : vector<128x16xf32>, vector<16x32xf32>, vector<128x32xf32> -> vector<128x32xf32>
    %154 = arith.addf %148, %153 : vector<128x32xf32>
    %c0_206 = arith.constant 0 : index
    %c1_207 = arith.constant 1 : index
    %c1_208 = arith.constant 1 : index
    %c0_209 = arith.constant 0 : index
    %155 = vector.load %arg15[%c0_206, %c1_207, %c1_208, %c0_209] : memref<2x10x10x16xf32, #tpu.memory_space<vmem>>, vector<2x8x8x16xf32>
    %156 = vector.shape_cast %155 : vector<2x8x8x16xf32> to vector<128x16xf32>
    %c4_210 = arith.constant 4 : index
    %c0_211 = arith.constant 0 : index
    %c0_212 = arith.constant 0 : index
    %157 = vector.load %arg4[%c4_210, %c0_211, %c0_212] : memref<9x16x32xf32, #tpu.memory_space<vmem>>, vector<1x16x32xf32>
    %158 = vector.shape_cast %157 : vector<1x16x32xf32> to vector<16x32xf32>
    %cst_213 = arith.constant dense<0.000000e+00> : vector<128x32xf32>
    %159 = tpu.matmul %156, %158, %cst_213 {dimension_numbers = #tpu.dot_dimension_numbers<[1], [0], [0], [1], [0, 0, 1, 1], [], []>} : vector<128x16xf32>, vector<16x32xf32>, vector<128x32xf32> -> vector<128x32xf32>
    %160 = arith.addf %154, %159 : vector<128x32xf32>
    %c0_214 = arith.constant 0 : index
    %c1_215 = arith.constant 1 : index
    %c2_216 = arith.constant 2 : index
    %c0_217 = arith.constant 0 : index
    %161 = vector.load %arg15[%c0_214, %c1_215, %c2_216, %c0_217] : memref<2x10x10x16xf32, #tpu.memory_space<vmem>>, vector<2x8x8x16xf32>
    %162 = vector.shape_cast %161 : vector<2x8x8x16xf32> to vector<128x16xf32>
    %c5_218 = arith.constant 5 : index
    %c0_219 = arith.constant 0 : index
    %c0_220 = arith.constant 0 : index
    %163 = vector.load %arg4[%c5_218, %c0_219, %c0_220] : memref<9x16x32xf32, #tpu.memory_space<vmem>>, vector<1x16x32xf32>
    %164 = vector.shape_cast %163 : vector<1x16x32xf32> to vector<16x32xf32>
    %cst_221 = arith.constant dense<0.000000e+00> : vector<128x32xf32>
    %165 = tpu.matmul %162, %164, %cst_221 {dimension_numbers = #tpu.dot_dimension_numbers<[1], [0], [0], [1], [0, 0, 1, 1], [], []>} : vector<128x16xf32>, vector<16x32xf32>, vector<128x32xf32> -> vector<128x32xf32>
    %166 = arith.addf %160, %165 : vector<128x32xf32>
    %c0_222 = arith.constant 0 : index
    %c2_223 = arith.constant 2 : index
    %c0_224 = arith.constant 0 : index
    %c0_225 = arith.constant 0 : index
    %167 = vector.load %arg15[%c0_222, %c2_223, %c0_224, %c0_225] : memref<2x10x10x16xf32, #tpu.memory_space<vmem>>, vector<2x8x8x16xf32>
    %168 = vector.shape_cast %167 : vector<2x8x8x16xf32> to vector<128x16xf32>
    %c6_226 = arith.constant 6 : index
    %c0_227 = arith.constant 0 : index
    %c0_228 = arith.constant 0 : index
    %169 = vector.load %arg4[%c6_226, %c0_227, %c0_228] : memref<9x16x32xf32, #tpu.memory_space<vmem>>, vector<1x16x32xf32>
    %170 = vector.shape_cast %169 : vector<1x16x32xf32> to vector<16x32xf32>
    %cst_229 = arith.constant dense<0.000000e+00> : vector<128x32xf32>
    %171 = tpu.matmul %168, %170, %cst_229 {dimension_numbers = #tpu.dot_dimension_numbers<[1], [0], [0], [1], [0, 0, 1, 1], [], []>} : vector<128x16xf32>, vector<16x32xf32>, vector<128x32xf32> -> vector<128x32xf32>
    %172 = arith.addf %166, %171 : vector<128x32xf32>
    %c0_230 = arith.constant 0 : index
    %c2_231 = arith.constant 2 : index
    %c1_232 = arith.constant 1 : index
    %c0_233 = arith.constant 0 : index
    %173 = vector.load %arg15[%c0_230, %c2_231, %c1_232, %c0_233] : memref<2x10x10x16xf32, #tpu.memory_space<vmem>>, vector<2x8x8x16xf32>
    %174 = vector.shape_cast %173 : vector<2x8x8x16xf32> to vector<128x16xf32>
    %c7_234 = arith.constant 7 : index
    %c0_235 = arith.constant 0 : index
    %c0_236 = arith.constant 0 : index
    %175 = vector.load %arg4[%c7_234, %c0_235, %c0_236] : memref<9x16x32xf32, #tpu.memory_space<vmem>>, vector<1x16x32xf32>
    %176 = vector.shape_cast %175 : vector<1x16x32xf32> to vector<16x32xf32>
    %cst_237 = arith.constant dense<0.000000e+00> : vector<128x32xf32>
    %177 = tpu.matmul %174, %176, %cst_237 {dimension_numbers = #tpu.dot_dimension_numbers<[1], [0], [0], [1], [0, 0, 1, 1], [], []>} : vector<128x16xf32>, vector<16x32xf32>, vector<128x32xf32> -> vector<128x32xf32>
    %178 = arith.addf %172, %177 : vector<128x32xf32>
    %c0_238 = arith.constant 0 : index
    %c2_239 = arith.constant 2 : index
    %c2_240 = arith.constant 2 : index
    %c0_241 = arith.constant 0 : index
    %179 = vector.load %arg15[%c0_238, %c2_239, %c2_240, %c0_241] : memref<2x10x10x16xf32, #tpu.memory_space<vmem>>, vector<2x8x8x16xf32>
    %180 = vector.shape_cast %179 : vector<2x8x8x16xf32> to vector<128x16xf32>
    %c8_242 = arith.constant 8 : index
    %c0_243 = arith.constant 0 : index
    %c0_244 = arith.constant 0 : index
    %181 = vector.load %arg4[%c8_242, %c0_243, %c0_244] : memref<9x16x32xf32, #tpu.memory_space<vmem>>, vector<1x16x32xf32>
    %182 = vector.shape_cast %181 : vector<1x16x32xf32> to vector<16x32xf32>
    %cst_245 = arith.constant dense<0.000000e+00> : vector<128x32xf32>
    %183 = tpu.matmul %180, %182, %cst_245 {dimension_numbers = #tpu.dot_dimension_numbers<[1], [0], [0], [1], [0, 0, 1, 1], [], []>} : vector<128x16xf32>, vector<16x32xf32>, vector<128x32xf32> -> vector<128x32xf32>
    %184 = arith.addf %178, %183 : vector<128x32xf32>
    %c0_246 = arith.constant 0 : index
    %c0_247 = arith.constant 0 : index
    %185 = vector.load %arg9[%c0_246, %c0_247] : memref<32x128xf32, #tpu.memory_space<vmem>>, vector<32x128xf32>
    %cst_248 = arith.constant dense<0.000000e+00> : vector<32x32xf32>
    %186 = tpu.matmul %185, %184, %cst_248 {dimension_numbers = #tpu.dot_dimension_numbers<[1], [0], [0], [1], [0, 0, 1, 1], [], []>} : vector<32x128xf32>, vector<128x32xf32>, vector<32x32xf32> -> vector<32x32xf32>
    %c0_249 = arith.constant 0 : index
    %c0_250 = arith.constant 0 : index
    %187 = vector.load %arg7[%c0_249, %c0_250] : memref<1x32xf32, #tpu.memory_space<vmem>>, vector<1x32xf32>
    %188 = vector.broadcast %187 : vector<1x32xf32> to vector<32x32xf32>
    %189 = arith.addf %186, %188 : vector<32x32xf32>
    %cst_251 = arith.constant 1.000000e-01 : f32
    %190 = vector.broadcast %cst_251 : f32 to vector<32x32xf32>
    %191 = arith.mulf %190, %189 : vector<32x32xf32>
    %192 = arith.maximumf %189, %191 : vector<32x32xf32>
    %c0_252 = arith.constant 0 : index
    %c0_253 = arith.constant 0 : index
    %193 = vector.load %arg10[%c0_252, %c0_253] : memref<32x12xf32, #tpu.memory_space<vmem>>, vector<32x12xf32>
    %cst_254 = arith.constant dense<0.000000e+00> : vector<32x12xf32>
    %194 = tpu.matmul %192, %193, %cst_254 {dimension_numbers = #tpu.dot_dimension_numbers<[1], [0], [0], [1], [0, 0, 1, 1], [], []>} : vector<32x32xf32>, vector<32x12xf32>, vector<32x12xf32> -> vector<32x12xf32>
    %c0_255 = arith.constant 0 : index
    %c0_256 = arith.constant 0 : index
    %195 = vector.load %arg11[%c0_255, %c0_256] : memref<1x12xf32, #tpu.memory_space<vmem>>, vector<1x12xf32>
    %196 = vector.broadcast %195 : vector<1x12xf32> to vector<32x12xf32>
    %197 = arith.addf %194, %196 : vector<32x12xf32>
    %c0_257 = arith.constant 0 : index
    %c0_258 = arith.constant 0 : index
    %198 = vector.load %arg12[%c0_257, %c0_258] : memref<32x12xf32, #tpu.memory_space<vmem>>, vector<32x12xf32>
    tpu.vector_store %arg12[%c0_257, %c0_258], %197 {strides = array<i32>} : memref<32x12xf32, #tpu.memory_space<vmem>>, vector<32x12xf32>,
    return
  }
  func.func @transform_0(%arg0: i32) -> (i32, i32, i32, i32) {
    %c0_i32 = arith.constant 0 : i32
    %c0_i32_0 = arith.constant 0 : i32
    %c0_i32_1 = arith.constant 0 : i32
    %c0_i32_2 = arith.constant 0 : i32
    %c0_i32_3 = arith.constant 0 : i32
    return %c0_i32, %c0_i32_0, %c0_i32_1, %c0_i32_2 : i32, i32, i32, i32
  }
  func.func @transform_1(%arg0: i32) -> (i32, i32, i32) {
    %c0_i32 = arith.constant 0 : i32
    %c0_i32_0 = arith.constant 0 : i32
    %c0_i32_1 = arith.constant 0 : i32
    %c0_i32_2 = arith.constant 0 : i32
    return %c0_i32, %c0_i32_0, %c0_i32_1 : i32, i32, i32
  }
  func.func @transform_2(%arg0: i32) -> (i32, i32, i32) {
    %c0_i32 = arith.constant 0 : i32
    %c0_i32_0 = arith.constant 0 : i32
    %c0_i32_1 = arith.constant 0 : i32
    %c0_i32_2 = arith.constant 0 : i32
    return %c0_i32, %c0_i32_0, %c0_i32_1 : i32, i32, i32
  }
  func.func @transform_3(%arg0: i32) -> (i32, i32, i32) {
    %c0_i32 = arith.constant 0 : i32
    %c0_i32_0 = arith.constant 0 : i32
    %c0_i32_1 = arith.constant 0 : i32
    %c0_i32_2 = arith.constant 0 : i32
    return %c0_i32, %c0_i32_0, %c0_i32_1 : i32, i32, i32
  }
  func.func @transform_4(%arg0: i32) -> (i32, i32) {
    %c0_i32 = arith.constant 0 : i32
    %c0_i32_0 = arith.constant 0 : i32
    %c0_i32_1 = arith.constant 0 : i32
    return %c0_i32, %c0_i32_0 : i32, i32
  }
  func.func @transform_5(%arg0: i32) -> (i32, i32) {
    %c0_i32 = arith.constant 0 : i32
    %c0_i32_0 = arith.constant 0 : i32
    %c0_i32_1 = arith.constant 0 : i32
    return %c0_i32, %c0_i32_0 : i32, i32
  }
  func.func @transform_6(%arg0: i32) -> (i32, i32) {
    %c0_i32 = arith.constant 0 : i32
    %c0_i32_0 = arith.constant 0 : i32
    %c0_i32_1 = arith.constant 0 : i32
    return %c0_i32, %c0_i32_0 : i32, i32
  }
  func.func @transform_7(%arg0: i32) -> (i32, i32) {
    %c0_i32 = arith.constant 0 : i32
    %c0_i32_0 = arith.constant 0 : i32
    %c0_i32_1 = arith.constant 0 : i32
    return %c0_i32, %c0_i32_0 : i32, i32
  }
  func.func @transform_8(%arg0: i32) -> (i32, i32) {
    %c0_i32 = arith.constant 0 : i32
    %c0_i32_0 = arith.constant 0 : i32
    %c0_i32_1 = arith.constant 0 : i32
    return %c0_i32, %c0_i32_0 : i32, i32
  }
  func.func @transform_9(%arg0: i32) -> (i32, i32) {
    %c0_i32 = arith.constant 0 : i32
    %c0_i32_0 = arith.constant 0 : i32
    %c0_i32_1 = arith.constant 0 : i32
    return %c0_i32, %c0_i32_0 : i32, i32
  }
  func.func @transform_10(%arg0: i32) -> (i32, i32) {
    %c0_i32 = arith.constant 0 : i32
    %c0_i32_0 = arith.constant 0 : i32
    %c0_i32_1 = arith.constant 0 : i32
    return %c0_i32, %c0_i32_0 : i32, i32
  }
  func.func @transform_11(%arg0: i32) -> (i32, i32) {
    %c0_i32 = arith.constant 0 : i32
    %c0_i32_0 = arith.constant 0 : i32
    %c0_i32_1 = arith.constant 0 : i32
    return %c0_i32, %c0_i32_0 : i32, i32
  }
}

</mosaic_0001>

<bundles_post_ra>
// kernel: forward.1
= control target key start
LH: loop header
LB: loop body
LE: loop exit
PB: predicated region body
PF: predicated region fallthrough
CT: control target
= control target key end

     0   :  { %16 = vsyncpa [#allocation6], 0  ;;  %s13190_s20 = smov [#allocation5]   ;;  %s13191_s22 = smov 128   ;;  %s18903_s0 = inlined_call_operand.vmem [shape: f32[2,16,16,3], index: 0, kind: input, shape index: {}]   ;;  %s18904_s1 = inlined_call_operand.vmem [shape: f32[9,3,8], index: 1, kind: input, shape index: {}]   ;;  %s18905_s2 = inlined_call_operand.hbm [shape: f32[9,8,16], index: 2, kind: input, shape index: {}]   ;;  %s18906_s3 = inlined_call_operand.vmem [shape: f32[9,16,32], index: 3, kind: input, shape index: {}]   ;;  %s18907_s4 = inlined_call_operand.vmem [shape: f32[1,8], index: 4, kind: input, shape index: {}]   ;;  %s18908_s5 = inlined_call_operand.vmem [shape: f32[1,16], index: 5, kind: input, shape index: {}]   ;;  %s18909_s6 = inlined_call_operand.vmem [shape: f32[1,32], index: 6, kind: input, shape index: {}]   ;;  %s18910_s7 = inlined_call_operand.vmem [shape: f32[128,512], index: 7, kind: input, shape index: {}]   ;;  %s18911_s8 = inlined_call_operand.vmem [shape: f32[32,128], index: 8, kind: input, shape index: {}]   ;;  %s18912_s9 = inlined_call_operand.vmem [shape: f32[32,12], index: 9, kind: input, shape index: {}]   ;;  %s18913_s10 = inlined_call_operand.vmem [shape: f32[1,12], index: 10, kind: input, shape index: {}]   ;;  %s18914_s11 = inlined_call_operand.vmem [shape: f32[32,12], index: 11, kind: output, shape index: {}]  }
   0x1   :  { %s25_s19 = sshll.u32 %s18905_s2, 4  ;;  %s27_s21 = sshll.u32 %s13190_s20, 4  ;;  %s26_s19 = int_to_ptr.hbm [resolvable:$true] %s25_s19  ;;  %s28_s21 = int_to_ptr.vmem [resolvable:$true] %s27_s21 }
   0x2   :  { %s13192_s23 = smov 8  }
   0x3   :  { %33 = dma.hbm_to_vmem [thread:$0]  %s26_s19, 1152, %s28_s21, [#allocation6], %s13191_s22, %s13191_s22, %s13192_s23  }
   0x4   :  { %13188 = dma.done.wait [#allocation6], 1152  }
   0x5   :  { %13189 = vsyncadd [#allocation6], 4294966144  ;;  %vm118_vm0 = vcmask 23552   ;;  %v18915_v0 = vmov 0.0   ;;  %vm616_vm1 = vcmask 1042432   ;;  %v106_v3 = vld [vmem:[%s18903_s0 + $0x1a0] sm:$0xff] }
   0x6   :  { %119 = vst.msk [vmem:[#allocation2] sm:$0xff] %vm118_vm0, %v18915_v0  ;;  %v11818_v1 = vld [vmem:[%s18904_s1 + $0x4] sm:$0x7]  ;;  %v108_v4 = vld [vmem:[%s18903_s0 + $0x1b0] sm:$0xff]  ;;  %vm121_vm2 = vcmask 17408   ;;  %v107_v12 = vld [vmem:[%s18903_s0 + $0x1a8] sm:$0xff] }
   0x7   :  { %120 = vst.msk [vmem:[#allocation2 + $0x8] sm:$0xff] %vm118_vm0, %v18915_v0  ;;  %11819 = vmatpush.msk.msra.mxu0 %vm616_vm1, %v11818_v1  ;;  %13151 = vmatpush.msk.msra.mxu1 %vm616_vm1, %v11818_v1  ;;  %v110_v5 = vld [vmem:[%s18903_s0 + $0x1c0] sm:$0xff]  ;;  %v11949_v11 = vld [vmem:[%s18904_s1 + $0x8] sm:$0x7]  ;;  %v109_v13 = vld [vmem:[%s18903_s0 + $0x1b8] sm:$0xff]  ;;  %vm5168_vm3 = vcmask 64512  }
   0x8   :  { %123 = vst.msk [vmem:[#allocation2 + $0x18] sm:$0xff] %vm118_vm0, %v18915_v0  ;;  %13152 = vmatpush.msk.msra.mxu2 %vm616_vm1, %v11818_v1  ;;  %13153 = vmatpush.msk.msra.mxu3 %vm616_vm1, %v11818_v1  ;;  %v357_v10 = vld [vmem:[%s18904_s1] sm:$0x7]  ;;  %v111_v14 = vld [vmem:[%s18903_s0 + $0x1c8] sm:$0xff]  ;;  %v112_v16 = vld [vmem:[%s18903_s0 + $0x1d0] sm:$0xff]  ;;  %vm5171_vm4 = vcmask 58368  }
   0x9   :  { %124 = vst.msk [vmem:[#allocation2 + $0x20] sm:$0xff] %vm118_vm0, %v18915_v0  ;;  %11884 = vmatpush.msk.msrb.mxu1 %vm616_vm1, %v357_v10  ;;  %v54_v15 = vld [vmem:[%s18903_s0] sm:$0xff]  ;;  %v55_v17 = vld [vmem:[%s18903_s0 + $0x8] sm:$0xff]  ;;  %v113_v18 = vld [vmem:[%s18903_s0 + $0x1d8] sm:$0xff]  ;;  %vm10354_vm5 = vcmask 130048   ;;  %vm10356_vm6 = vcmask 123904  }
   0xa   :  { %126 = vst.msk [vmem:[#allocation2 + $0x30] sm:$0xff] %vm118_vm0, %v18915_v0  ;;  %11950 = vmatpush.msk.msrb.mxu2 %vm616_vm1, %v11949_v11  ;;  %v56_v19 = vld [vmem:[%s18903_s0 + $0x10] sm:$0xff]  ;;  %v114_v20 = vld [vmem:[%s18903_s0 + $0x1e0] sm:$0xff]  ;;  %v57_v21 = vld [vmem:[%s18903_s0 + $0x18] sm:$0xff]  ;;  %vm11766_vm7 = vcmask 261120   ;;  %vm11808_vm8 = vcmask 97280  }
   0xb   :  { %127 = vst.msk [vmem:[#allocation2 + $0x38] sm:$0xff] %vm118_vm0, %v18915_v0  ;;  %v115_v23 = vld [vmem:[%s18903_s0 + $0x1e8] sm:$0xff]  ;;  %v58_v25 = vld [vmem:[%s18903_s0 + $0x20] sm:$0xff]  ;;  %v60_v34 = vld [vmem:[%s18903_s0 + $0x30] sm:$0xff] }
   0xc   :  { %129 = vst.msk [vmem:[#allocation2 + $0x48] sm:$0xff] %vm118_vm0, %v18915_v0  ;;  %v59_v28 = vld [vmem:[%s18903_s0 + $0x28] sm:$0xff]  ;;  %v61_v39 = vld [vmem:[%s18903_s0 + $0x38] sm:$0xff]  ;;  %v62_v44 = vld [vmem:[%s18903_s0 + $0x40] sm:$0xff] }
   0xd   :  { %130 = vst.msk [vmem:[#allocation2 + $0x50] sm:$0xff] %vm118_vm0, %v18915_v0  ;;  %v12015_v29 = vld [vmem:[%s18904_s1 + $0xc] sm:$0x7]  ;;  %v293_v30 = vld [vmem:[#allocation2] sm:$0xff]  ;;  %v64_v53 = vld [vmem:[%s18903_s0 + $0x50] sm:$0xff] }
   0xe   :  { %v358_v2 = vld [vmem:[#allocation2 + $0x1] sm:$0xff]  ;;  %132 = vst.msk [vmem:[#allocation2 + $0x60] sm:$0xff] %vm118_vm0, %v18915_v0  ;;  %12016 = vmatpush.msk.msrb.mxu3 %vm616_vm1, %v12015_v29  ;;  %v65_v57 = vld [vmem:[%s18903_s0 + $0x58] sm:$0xff] }
   0xf   :  { %11820 = vmatmul.msk.f32.vlgmr.msra.gmra.mxu0 %vm118_vm0, %v358_v2  ;;  %133 = vst.msk [vmem:[#allocation2 + $0x68] sm:$0xff] %vm118_vm0, %v18915_v0  ;;  %v1233_v31 = vld [vmem:[#allocation2 + $0x2] sm:$0xff]  ;;  %v69_v10 = vld [vmem:[%s18903_s0 + $0x78] sm:$0xff] }
  0x10   :  { %135 = vst.msk [vmem:[#allocation2 + $0x78] sm:$0xff] %vm118_vm0, %v18915_v0  ;;  %v294_v35 = vld [vmem:[#allocation2 + $0x8] sm:$0xff]  ;;  %v66_v61 = vld [vmem:[%s18903_s0 + $0x60] sm:$0xff] }
  0x11   :  { %136 = vst.msk [vmem:[#allocation2 + $0x80] sm:$0xff] %vm118_vm0, %v18915_v0  ;;  %v63_v49 = vld [vmem:[%s18903_s0 + $0x48] sm:$0xff] }
  0x12   :  { %138 = vst.msk [vmem:[#allocation2 + $0x90] sm:$0xff] %vm118_vm0, %v18915_v0  ;;  %v67_v2 = vld [vmem:[%s18903_s0 + $0x68] sm:$0xff] }
  0x13   :  { %139 = vst.msk [vmem:[#allocation2 + $0x98] sm:$0xff] %vm118_vm0, %v18915_v0 }
  0x14   :  { %141 = vst.msk [vmem:[#allocation2 + $0xa8] sm:$0xff] %vm118_vm0, %v18915_v0 }
  0x15   :  { %142 = vst.msk [vmem:[#allocation2 + $0xb0] sm:$0xff] %vm118_vm0, %v18915_v0 }
  0x16   :  { %144 = vst.msk [vmem:[#allocation2 + $0xc0] sm:$0xff] %vm118_vm0, %v18915_v0 }
  0x17   :  { %145 = vst.msk [vmem:[#allocation2 + $0xc8] sm:$0xff] %vm118_vm0, %v18915_v0 }
  0x18   :  { %147 = vst.msk [vmem:[#allocation2 + $0xd8] sm:$0xff] %vm118_vm0, %v18915_v0 }
  0x19   :  { %148 = vst.msk [vmem:[#allocation2 + $0xe0] sm:$0xff] %vm118_vm0, %v18915_v0 }
  0x1a   :  { %150 = vst.msk [vmem:[#allocation2 + $0xf0] sm:$0xff] %vm118_vm0, %v18915_v0 }
  0x1b   :  { %151 = vst.msk [vmem:[#allocation2 + $0xf8] sm:$0xff] %vm118_vm0, %v18915_v0 }
  0x1c   :  { %153 = vst.msk [vmem:[#allocation2 + $0x108] sm:$0xff] %vm118_vm0, %v18915_v0 }
  0x1d   :  { %154 = vst.msk [vmem:[#allocation2 + $0x110] sm:$0xff] %vm118_vm0, %v18915_v0 }
  0x1e   :  { %156 = vst.msk [vmem:[#allocation2 + $0x120] sm:$0xff] %vm118_vm0, %v18915_v0 }
  0x1f   :  { %157 = vst.msk [vmem:[#allocation2 + $0x128] sm:$0xff] %vm118_vm0, %v18915_v0 }
  0x20   :  { %159 = vst.msk [vmem:[#allocation2 + $0x138] sm:$0xff] %vm118_vm0, %v18915_v0 }
  0x21   :  { %160 = vst.msk [vmem:[#allocation2 + $0x140] sm:$0xff] %vm118_vm0, %v18915_v0 }
  0x22   :  { %162 = vst.msk [vmem:[#allocation2 + $0x150] sm:$0xff] %vm118_vm0, %v18915_v0 }
  0x23   :  { %163 = vst.msk [vmem:[#allocation2 + $0x158] sm:$0xff] %vm118_vm0, %v18915_v0 }
  0x24   :  { %165 = vst.msk [vmem:[#allocation2 + $0x168] sm:$0xff] %vm118_vm0, %v18915_v0 }
  0x25   :  { %166 = vst.msk [vmem:[#allocation2 + $0x170] sm:$0xff] %vm118_vm0, %v18915_v0 }
  0x26   :  { %168 = vst.msk [vmem:[#allocation2 + $0x180] sm:$0xff] %vm118_vm0, %v18915_v0 }
  0x27   :  { %169 = vst.msk [vmem:[#allocation2 + $0x188] sm:$0xff] %vm118_vm0, %v18915_v0 }
  0x28   :  { %171 = vst.msk [vmem:[#allocation2 + $0x198] sm:$0xff] %vm118_vm0, %v18915_v0 }
  0x29   :  { %172 = vst.msk [vmem:[#allocation2 + $0x1a0] sm:$0xff] %vm118_vm0, %v18915_v0 }
  0x2a   :  { %174 = vst.msk [vmem:[#allocation2 + $0x1b0] sm:$0xff] %vm118_vm0, %v18915_v0 }
  0x2b   :  { %175 = vst.msk [vmem:[#allocation2 + $0x1b8] sm:$0xff] %vm118_vm0, %v18915_v0 }
  0x2c   :  { %177 = vst.msk [vmem:[#allocation2 + $0x1c8] sm:$0xff] %vm118_vm0, %v18915_v0 }
  0x2d   :  { %178 = vst.msk [vmem:[#allocation2 + $0x1d0] sm:$0xff] %vm118_vm0, %v18915_v0 }
  0x2e   :  { %180 = vst.msk [vmem:[#allocation2 + $0x1e0] sm:$0xff] %vm118_vm0, %v18915_v0 }
  0x2f   :  { %181 = vst.msk [vmem:[#allocation2 + $0x1e8] sm:$0xff] %vm118_vm0, %v18915_v0 }
  0x30   :  { %183 = vst.msk [vmem:[#allocation2 + $0x1f8] sm:$0xff] %vm118_vm0, %v18915_v0 }
  0x31   :  { %184 = vst.msk [vmem:[#allocation2 + $0x200] sm:$0xff] %vm118_vm0, %v18915_v0 }
  0x32   :  { %186 = vst.msk [vmem:[#allocation2 + $0x210] sm:$0xff] %vm118_vm0, %v18915_v0 }
  0x33   :  { %187 = vst.msk [vmem:[#allocation2 + $0x218] sm:$0xff] %vm118_vm0, %v18915_v0 }
  0x34   :  { %189 = vst.msk [vmem:[#allocation2 + $0x228] sm:$0xff] %vm118_vm0, %v18915_v0 }
  0x35   :  { %190 = vst.msk [vmem:[#allocation2 + $0x230] sm:$0xff] %vm118_vm0, %v18915_v0 }
  0x36   :  { %192 = vst.msk [vmem:[#allocation2 + $0x240] sm:$0xff] %vm118_vm0, %v18915_v0 }
  0x37   :  { %193 = vst.msk [vmem:[#allocation2 + $0x248] sm:$0xff] %vm118_vm0, %v18915_v0 }
  0x38   :  { %195 = vst.msk [vmem:[#allocation2 + $0x258] sm:$0xff] %vm118_vm0, %v18915_v0 }
  0x39   :  { %196 = vst.msk [vmem:[#allocation2 + $0x260] sm:$0xff] %vm118_vm0, %v18915_v0 }
  0x3a   :  { %198 = vst.msk [vmem:[#allocation2 + $0x270] sm:$0xff] %vm118_vm0, %v18915_v0 }
  0x3b   :  { %199 = vst.msk [vmem:[#allocation2 + $0x278] sm:$0xff] %vm118_vm0, %v18915_v0 }
  0x3c   :  { %201 = vst.msk [vmem:[#allocation2 + $0x288] sm:$0xff] %vm118_vm0, %v18915_v0 }
  0x3d   :  { %202 = vst.msk [vmem:[#allocation2 + $0x290] sm:$0xff] %vm118_vm0, %v18915_v0 }
  0x3e   :  { %204 = vst.msk [vmem:[#allocation2 + $0x2a0] sm:$0xff] %vm118_vm0, %v18915_v0 }
  0x3f   :  { %205 = vst.msk [vmem:[#allocation2 + $0x2a8] sm:$0xff] %vm118_vm0, %v18915_v0 }
  0x40   :  { %207 = vst.msk [vmem:[#allocation2 + $0x2b8] sm:$0xff] %vm118_vm0, %v18915_v0 }
  0x41   :  { %208 = vst.msk [vmem:[#allocation2 + $0x2c0] sm:$0xff] %vm118_vm0, %v18915_v0 }
  0x42   :  { %210 = vst.msk [vmem:[#allocation2 + $0x2d0] sm:$0xff] %vm118_vm0, %v18915_v0 }
  0x43   :  { %211 = vst.msk [vmem:[#allocation2 + $0x2d8] sm:$0xff] %vm118_vm0, %v18915_v0 }
  0x44   :  { %213 = vst.msk [vmem:[#allocation2 + $0x2e8] sm:$0xff] %vm118_vm0, %v18915_v0 }
  0x45   :  { %214 = vst.msk [vmem:[#allocation2 + $0x2f0] sm:$0xff] %vm118_vm0, %v18915_v0 }
  0x46   :  { %216 = vst.msk [vmem:[#allocation2 + $0x300] sm:$0xff] %vm118_vm0, %v18915_v0 }
  0x47   :  { %217 = vst.msk [vmem:[#allocation2 + $0x308] sm:$0xff] %vm118_vm0, %v18915_v0 }
  0x48   :  { %219 = vst.msk [vmem:[#allocation2 + $0x318] sm:$0xff] %vm118_vm0, %v18915_v0 }
  0x49   :  { %220 = vst.msk [vmem:[#allocation2 + $0x320] sm:$0xff] %vm118_vm0, %v18915_v0 }
  0x4a   :  { %222 = vst.msk [vmem:[#allocation2 + $0x330] sm:$0xff] %vm118_vm0, %v18915_v0 }
  0x4b   :  { %223 = vst.msk [vmem:[#allocation2 + $0x338] sm:$0xff] %vm118_vm0, %v18915_v0 }
  0x4c   :  { %225 = vst.msk [vmem:[#allocation2 + $0x348] sm:$0xff] %vm118_vm0, %v18915_v0 }
  0x4d   :  { %226 = vst.msk [vmem:[#allocation2 + $0x350] sm:$0xff] %vm118_vm0, %v18915_v0 }
  0x4e   :  { %281 = vst.msk [vmem:[#allocation2 + $0x2b9] sm:$0xff] %vm118_vm0, %v106_v3 }
  0x4f   :  { %283 = vst.msk [vmem:[#allocation2 + $0x2d1] sm:$0xff] %vm118_vm0, %v108_v4 }
  0x50   :  { %285 = vst.msk [vmem:[#allocation2 + $0x2e9] sm:$0xff] %vm118_vm0, %v110_v5 }
  0x51   :  { %122 = vst.msk [vmem:[#allocation2 + $0x10] sm:$0x3] %vm121_vm2, %v18915_v0 }
  0x52   :  { %125 = vst.msk [vmem:[#allocation2 + $0x28] sm:$0x3] %vm121_vm2, %v18915_v0 }
  0x53   :  { %128 = vst.msk [vmem:[#allocation2 + $0x40] sm:$0x3] %vm121_vm2, %v18915_v0 }
  0x54   :  { %131 = vst.msk [vmem:[#allocation2 + $0x58] sm:$0x3] %vm121_vm2, %v18915_v0 }
  0x55   :  { %v412_v6 = vld [vmem:[#allocation2 + $0x2b9] sm:$0xff]  ;;  %134 = vst.msk [vmem:[#allocation2 + $0x70] sm:$0x3] %vm121_vm2, %v18915_v0 }
  0x56   :  { %11874 = vmatmul.msk.f32.vlgmr.msra.gmra.mxu1 %vm118_vm0, %v412_v6  ;;  %v414_v7 = vld [vmem:[#allocation2 + $0x2d1] sm:$0xff]  ;;  %137 = vst.msk [vmem:[#allocation2 + $0x88] sm:$0x3] %vm121_vm2, %v18915_v0 }
  0x57   :  { %11876 = vmatmul.msk.f32.vlgmr.msra.gmra.mxu2 %vm118_vm0, %v414_v7  ;;  %v416_v8 = vld [vmem:[#allocation2 + $0x2e9] sm:$0xff]  ;;  %140 = vst.msk [vmem:[#allocation2 + $0xa0] sm:$0x3] %vm121_vm2, %v18915_v0 }
  0x58   :  { %11878 = vmatmul.msk.f32.vlgmr.msra.gmra.mxu3 %vm118_vm0, %v416_v8  ;;  %v359_v9 = vld [vmem:[#allocation2 + $0x9] sm:$0xff]  ;;  %143 = vst.msk [vmem:[#allocation2 + $0xb8] sm:$0x3] %vm121_vm2, %v18915_v0 }
  0x59   :  { %11821 = vmatmul.msk.f32.gmra.mxu0 %vm118_vm0, %v359_v9  ;;  %146 = vst.msk [vmem:[#allocation2 + $0xd0] sm:$0x3] %vm121_vm2, %v18915_v0  ;;  %v1234_v36 = vld [vmem:[#allocation2 + $0xa] sm:$0xff] }
  0x5a   :  { %149 = vst.msk [vmem:[#allocation2 + $0xe8] sm:$0x3] %vm121_vm2, %v18915_v0  ;;  %v68_v6 = vld [vmem:[%s18903_s0 + $0x70] sm:$0xff] }
  0x5b   :  { %152 = vst.msk [vmem:[#allocation2 + $0x100] sm:$0x3] %vm121_vm2, %v18915_v0 }
  0x5c   :  { %155 = vst.msk [vmem:[#allocation2 + $0x118] sm:$0x3] %vm121_vm2, %v18915_v0 }
  0x5d   :  { %158 = vst.msk [vmem:[#allocation2 + $0x130] sm:$0x3] %vm121_vm2, %v18915_v0 }
  0x5e   :  { %161 = vst.msk [vmem:[#allocation2 + $0x148] sm:$0x3] %vm121_vm2, %v18915_v0 }
  0x5f   :  { %164 = vst.msk [vmem:[#allocation2 + $0x160] sm:$0x3] %vm121_vm2, %v18915_v0 }
  0x60   :  { %167 = vst.msk [vmem:[#allocation2 + $0x178] sm:$0x3] %vm121_vm2, %v18915_v0 }
  0x61   :  { %170 = vst.msk [vmem:[#allocation2 + $0x190] sm:$0x3] %vm121_vm2, %v18915_v0 }
  0x62   :  { %173 = vst.msk [vmem:[#allocation2 + $0x1a8] sm:$0x3] %vm121_vm2, %v18915_v0 }
  0x63   :  { %176 = vst.msk [vmem:[#allocation2 + $0x1c0] sm:$0x3] %vm121_vm2, %v18915_v0 }
  0x64   :  { %179 = vst.msk [vmem:[#allocation2 + $0x1d8] sm:$0x3] %vm121_vm2, %v18915_v0 }
  0x65   :  { %182 = vst.msk [vmem:[#allocation2 + $0x1f0] sm:$0x3] %vm121_vm2, %v18915_v0 }
  0x66   :  { %185 = vst.msk [vmem:[#allocation2 + $0x208] sm:$0x3] %vm121_vm2, %v18915_v0 }
  0x67   :  { %188 = vst.msk [vmem:[#allocation2 + $0x220] sm:$0x3] %vm121_vm2, %v18915_v0 }
  0x68   :  { %191 = vst.msk [vmem:[#allocation2 + $0x238] sm:$0x3] %vm121_vm2, %v18915_v0 }
  0x69   :  { %194 = vst.msk [vmem:[#allocation2 + $0x250] sm:$0x3] %vm121_vm2, %v18915_v0 }
  0x6a   :  { %197 = vst.msk [vmem:[#allocation2 + $0x268] sm:$0x3] %vm121_vm2, %v18915_v0 }
  0x6b   :  { %200 = vst.msk [vmem:[#allocation2 + $0x280] sm:$0x3] %vm121_vm2, %v18915_v0 }
  0x6c   :  { %203 = vst.msk [vmem:[#allocation2 + $0x298] sm:$0x3] %vm121_vm2, %v18915_v0 }
  0x6d   :  { %206 = vst.msk [vmem:[#allocation2 + $0x2b0] sm:$0x3] %vm121_vm2, %v18915_v0 }
  0x6e   :  { %209 = vst.msk [vmem:[#allocation2 + $0x2c8] sm:$0x3] %vm121_vm2, %v18915_v0 }
  0x6f   :  { %212 = vst.msk [vmem:[#allocation2 + $0x2e0] sm:$0x3] %vm121_vm2, %v18915_v0 }
  0x70   :  { %215 = vst.msk [vmem:[#allocation2 + $0x2f8] sm:$0x3] %vm121_vm2, %v18915_v0 }
  0x71   :  { %218 = vst.msk [vmem:[#allocation2 + $0x310] sm:$0x3] %vm121_vm2, %v18915_v0 }
  0x72   :  { %221 = vst.msk [vmem:[#allocation2 + $0x328] sm:$0x3] %vm121_vm2, %v18915_v0 }
  0x73   :  { %224 = vst.msk [vmem:[#allocation2 + $0x340] sm:$0x3] %vm121_vm2, %v18915_v0 }
  0x74   :  { %227 = vst.msk [vmem:[#allocation2 + $0x358] sm:$0x3] %vm121_vm2, %v18915_v0 }
  0x75   :  { %282 = vst.msk [vmem:[#allocation2 + $0x2c1] sm:$0xff] %vm118_vm0, %v107_v12 }
  0x76   :  { %284 = vst.msk [vmem:[#allocation2 + $0x2d9] sm:$0xff] %vm118_vm0, %v109_v13 }
  0x77   :  { %286 = vst.msk [vmem:[#allocation2 + $0x2f1] sm:$0xff] %vm118_vm0, %v111_v14  ;;  %v70_v14 = vld [vmem:[%s18903_s0 + $0x80] sm:$0xff] }
  0x78   :  { %229 = vst.msk [vmem:[#allocation2 + $0x19] sm:$0xff] %vm118_vm0, %v54_v15 }
  0x79   :  { %287 = vst.msk [vmem:[#allocation2 + $0x301] sm:$0xff] %vm118_vm0, %v112_v16 }
  0x7a   :  { %230 = vst.msk [vmem:[#allocation2 + $0x21] sm:$0xff] %vm118_vm0, %v55_v17 }
  0x7b   :  { %288 = vst.msk [vmem:[#allocation2 + $0x309] sm:$0xff] %vm118_vm0, %v113_v18  ;;  %v71_v18 = vld [vmem:[%s18903_s0 + $0x88] sm:$0xff] }
  0x7c   :  { %v413_v22 = vld [vmem:[#allocation2 + $0x2c1] sm:$0xff]  ;;  %231 = vst.msk [vmem:[#allocation2 + $0x31] sm:$0xff] %vm118_vm0, %v56_v19 }
  0x7d   :  { %11875 = vmatmul.msk.f32.gmra.mxu1 %vm118_vm0, %v413_v22  ;;  %v415_v24 = vld [vmem:[#allocation2 + $0x2d9] sm:$0xff]  ;;  %289 = vst.msk [vmem:[#allocation2 + $0x319] sm:$0xff] %vm118_vm0, %v114_v20  ;;  %v72_v22 = vld [vmem:[%s18903_s0 + $0x90] sm:$0xff] }
  0x7e   :  { %11877 = vmatmul.msk.f32.gmra.mxu2 %vm118_vm0, %v415_v24  ;;  %v417_v26 = vld [vmem:[#allocation2 + $0x2f1] sm:$0xff]  ;;  %232 = vst.msk [vmem:[#allocation2 + $0x39] sm:$0xff] %vm118_vm0, %v57_v21 }
  0x7f   :  { %11879 = vmatmul.msk.f32.gmra.mxu3 %vm118_vm0, %v417_v26  ;;  %v360_v27 = vld [vmem:[#allocation2 + $0x19] sm:$0xff]  ;;  %290 = vst.msk [vmem:[#allocation2 + $0x321] sm:$0xff] %vm118_vm0, %v115_v23 }
  0x80   :  { %11822 = vmatmul.msk.f32.gmra.mxu0 %vm118_vm0, %v360_v27  ;;  %233 = vst.msk [vmem:[#allocation2 + $0x49] sm:$0xff] %vm118_vm0, %v58_v25  ;;  %v418_v32 = vld [vmem:[#allocation2 + $0x301] sm:$0xff]  ;;  %v295_v40 = vld [vmem:[#allocation2 + $0x18] sm:$0xff] }
  0x81   :  { %234 = vst.msk [vmem:[#allocation2 + $0x51] sm:$0xff] %vm118_vm0, %v59_v28  ;;  %v361_v33 = vld [vmem:[#allocation2 + $0x21] sm:$0xff]  ;;  %v73_v27 = vld [vmem:[%s18903_s0 + $0x98] sm:$0xff] }
  0x82   :  { %235 = vst.msk [vmem:[#allocation2 + $0x61] sm:$0xff] %vm118_vm0, %v60_v34  ;;  %v419_v37 = vld [vmem:[#allocation2 + $0x309] sm:$0xff]  ;;  %v1235_v41 = vld [vmem:[#allocation2 + $0x1a] sm:$0xff] }
  0x83   :  { %v362_v38 = vld [vmem:[#allocation2 + $0x31] sm:$0xff]  ;;  %236 = vst.msk [vmem:[#allocation2 + $0x69] sm:$0xff] %vm118_vm0, %v61_v39  ;;  %v296_v45 = vld [vmem:[#allocation2 + $0x20] sm:$0xff] }
  0x84   :  { %v420_v42 = vld [vmem:[#allocation2 + $0x319] sm:$0xff]  ;;  %237 = vst.msk [vmem:[#allocation2 + $0x79] sm:$0xff] %vm118_vm0, %v62_v44  ;;  %v1236_v46 = vld [vmem:[#allocation2 + $0x22] sm:$0xff]  ;;  %v297_v50 = vld [vmem:[#allocation2 + $0x30] sm:$0xff] }
  0x85   :  { %11885 = vmatmul.msk.f32.vlgmr.msrb.gmra.mxu1 %vm118_vm0, %v293_v30  ;;  %v363_v43 = vld [vmem:[#allocation2 + $0x39] sm:$0xff]  ;;  %238 = vst.msk [vmem:[#allocation2 + $0x81] sm:$0xff] %vm118_vm0, %v63_v49  ;;  %v76_v49 = vld [vmem:[%s18903_s0 + $0xb0] sm:$0xff] }
  0x86   :  { %11951 = vmatmul.msk.f32.vlgmr.msrb.gmra.mxu2 %vm118_vm0, %v1233_v31  ;;  %v421_v47 = vld [vmem:[#allocation2 + $0x321] sm:$0xff]  ;;  %v1237_v51 = vld [vmem:[#allocation2 + $0x32] sm:$0xff]  ;;  %239 = vst.msk [vmem:[#allocation2 + $0x91] sm:$0xff] %vm118_vm0, %v64_v53 }
  0x87   :  { %11880 = vmatmul.msk.f32.gmra.mxu3 %vm118_vm0, %v418_v32  ;;  %v364_v48 = vld [vmem:[#allocation2 + $0x49] sm:$0xff]  ;;  %v298_v54 = vld [vmem:[#allocation2 + $0x38] sm:$0xff]  ;;  %240 = vst.msk [vmem:[#allocation2 + $0x99] sm:$0xff] %vm118_vm0, %v65_v57  ;;  %v74_v34 = vld [vmem:[%s18903_s0 + $0xa0] sm:$0xff] }
  0x88   :  { %11823 = vmatmul.msk.f32.gmra.mxu0 %vm118_vm0, %v361_v33  ;;  %v365_v52 = vld [vmem:[#allocation2 + $0x51] sm:$0xff]  ;;  %v1238_v55 = vld [vmem:[#allocation2 + $0x3a] sm:$0xff]  ;;  %v299_v58 = vld [vmem:[#allocation2 + $0x48] sm:$0xff]  ;;  %241 = vst.msk [vmem:[#allocation2 + $0xa9] sm:$0xff] %vm118_vm0, %v66_v61 }
  0x89   :  { %v366_v56 = vld [vmem:[#allocation2 + $0x61] sm:$0xff]  ;;  %v1239_v59 = vld [vmem:[#allocation2 + $0x4a] sm:$0xff]  ;;  %v1240_v63 = vld [vmem:[#allocation2 + $0x52] sm:$0xff]  ;;  %242 = vst.msk [vmem:[#allocation2 + $0xb1] sm:$0xff] %vm118_vm0, %v67_v2 }
  0x8a   :  { %v367_v60 = vld [vmem:[#allocation2 + $0x69] sm:$0xff]  ;;  %v301_v3 = vld [vmem:[#allocation2 + $0x60] sm:$0xff]  ;;  %243 = vst.msk [vmem:[#allocation2 + $0xc1] sm:$0xff] %vm118_vm0, %v68_v6  ;;  %v77_v57 = vld [vmem:[%s18903_s0 + $0xb8] sm:$0xff] }
  0x8b   :  { %v300_v62 = vld [vmem:[#allocation2 + $0x50] sm:$0xff]  ;;  %v368_v1 = vld [vmem:[#allocation2 + $0x79] sm:$0xff]  ;;  %v1241_v4 = vld [vmem:[#allocation2 + $0x62] sm:$0xff]  ;;  %244 = vst.msk [vmem:[#allocation2 + $0xc9] sm:$0xff] %vm118_vm0, %v69_v10 }
  0x8c   :  { %v369_v5 = vld [vmem:[#allocation2 + $0x81] sm:$0xff]  ;;  %v1242_v8 = vld [vmem:[#allocation2 + $0x6a] sm:$0xff]  ;;  %v303_v11 = vld [vmem:[#allocation2 + $0x78] sm:$0xff]  ;;  %245 = vst.msk [vmem:[#allocation2 + $0xd9] sm:$0xff] %vm118_vm0, %v70_v14  ;;  %v13669_v23 = vpop.f32.mrf.mxu0 }
  0x8d   :  { %11886 = vmatmul.msk.f32.gmra.mxu1 %vm118_vm0, %v294_v35  ;;  %v302_v7 = vld [vmem:[#allocation2 + $0x68] sm:$0xff]  ;;  %v370_v9 = vld [vmem:[#allocation2 + $0x91] sm:$0xff]  ;;  %v1243_v12 = vld [vmem:[#allocation2 + $0x7a] sm:$0xff]  ;;  %246 = vst.msk [vmem:[#allocation2 + $0xe1] sm:$0xff] %vm118_vm0, %v71_v18 }
  0x8e   :  { %11952 = vmatmul.msk.f32.gmra.mxu2 %vm118_vm0, %v1234_v36  ;;  %v371_v13 = vld [vmem:[#allocation2 + $0x99] sm:$0xff]  ;;  %v1244_v16 = vld [vmem:[#allocation2 + $0x82] sm:$0xff]  ;;  %v305_v19 = vld [vmem:[#allocation2 + $0x90] sm:$0xff]  ;;  %247 = vst.msk [vmem:[#allocation2 + $0xf1] sm:$0xff] %vm118_vm0, %v72_v22 }
  0x8f   :  { %11881 = vmatmul.msk.f32.gmra.mxu3 %vm118_vm0, %v419_v37  ;;  %v304_v15 = vld [vmem:[#allocation2 + $0x80] sm:$0xff]  ;;  %v372_v17 = vld [vmem:[#allocation2 + $0xa9] sm:$0xff]  ;;  %v1245_v20 = vld [vmem:[#allocation2 + $0x92] sm:$0xff]  ;;  %248 = vst.msk [vmem:[#allocation2 + $0xf9] sm:$0xff] %vm118_vm0, %v73_v27 }
  0x90   :  { %11824 = vmatmul.msk.f32.gmra.mxu0 %vm118_vm0, %v362_v38  ;;  %v373_v21 = vld [vmem:[#allocation2 + $0xb1] sm:$0xff]  ;;  %v1246_v25 = vld [vmem:[#allocation2 + $0x9a] sm:$0xff]  ;;  %v307_v29 = vld [vmem:[#allocation2 + $0xa8] sm:$0xff]  ;;  %249 = vst.msk [vmem:[#allocation2 + $0x109] sm:$0xff] %vm118_vm0, %v74_v34 }
  0x91   :  { %v306_v24 = vld [vmem:[#allocation2 + $0x98] sm:$0xff]  ;;  %v374_v26 = vld [vmem:[#allocation2 + $0xc1] sm:$0xff]  ;;  %v1247_v31 = vld [vmem:[#allocation2 + $0xaa] sm:$0xff]  ;;  %251 = vst.msk [vmem:[#allocation2 + $0x121] sm:$0xff] %vm118_vm0, %v76_v49 }
  0x92   :  { %v375_v32 = vld [vmem:[#allocation2 + $0xc9] sm:$0xff]  ;;  %v1248_v38 = vld [vmem:[#allocation2 + $0xb2] sm:$0xff]  ;;  %252 = vst.msk [vmem:[#allocation2 + $0x129] sm:$0xff] %vm118_vm0, %v77_v57 }
  0x93   :  { %v308_v37 = vld [vmem:[#allocation2 + $0xb0] sm:$0xff]  ;;  %v310_v53 = vld [vmem:[#allocation2 + $0xc8] sm:$0xff]  ;;  %v2301_v0 = vld [vmem:[#allocation2 + $0x19] sm:$0xff] }
  0x94   :  { %v312_v10 = vld [vmem:[#allocation2 + $0xe0] sm:$0xff]  ;;  %v79_v14 = vld [vmem:[%s18903_s0 + $0xc8] sm:$0xff] }
  0x95   :  { %11887 = vmatmul.msk.f32.gmra.mxu1 %vm118_vm0, %v295_v40  ;;  %254 = vst.msk [vmem:[#allocation2 + $0x141] sm:$0xff] %vm118_vm0, %v79_v14 }
  0x96   :  { %11953 = vmatmul.msk.f32.gmra.mxu2 %vm118_vm0, %v1235_v41  ;;  %v75_v41 = vld [vmem:[%s18903_s0 + $0xa8] sm:$0xff] }
  0x97   :  { %11882 = vmatmul.msk.f32.gmra.mxu3 %vm118_vm0, %v420_v42  ;;  %250 = vst.msk [vmem:[#allocation2 + $0x111] sm:$0xff] %vm118_vm0, %v75_v41  ;;  %v81_v41 = vld [vmem:[%s18903_s0 + $0xd8] sm:$0xff]  ;;  %v315_v49 = vld [vmem:[#allocation2 + $0x108] sm:$0xff] }
  0x98   :  { %11825 = vmatmul.msk.f32.gmra.mxu0 %vm118_vm0, %v363_v43  ;;  %256 = vst.msk [vmem:[#allocation2 + $0x159] sm:$0xff] %vm118_vm0, %v81_v41 }
  0x9d   :  { %11888 = vmatmul.msk.f32.gmra.mxu1 %vm118_vm0, %v296_v45 }
  0x9e   :  { %11954 = vmatmul.msk.f32.gmra.mxu2 %vm118_vm0, %v1236_v46  ;;  %v1249_v46 = vld [vmem:[#allocation2 + $0xc2] sm:$0xff] }
  0x9f   :  { %11883 = vmatmul.msk.f32.gmra.mxu3 %vm118_vm0, %v421_v47  ;;  %v387_v41 = vld [vmem:[#allocation2 + $0x159] sm:$0xff] }
  0xa0   :  { %11826 = vmatmul.msk.f32.gmra.mxu0 %vm118_vm0, %v364_v48  ;;  %v377_v48 = vld [vmem:[#allocation2 + $0xe1] sm:$0xff] }
  0xa5   :  { %11889 = vmatmul.msk.f32.gmra.mxu1 %vm118_vm0, %v297_v50 }
  0xa6   :  { %11955 = vmatmul.msk.f32.gmra.mxu2 %vm118_vm0, %v1237_v51 }
  0xa7   :  { %12017 = vmatmul.msk.f32.vlgmr.msrb.gmra.mxu3 %vm118_vm0, %v295_v40  ;;  %v376_v40 = vld [vmem:[#allocation2 + $0xd9] sm:$0xff] }
  0xa8   :  { %11827 = vmatmul.msk.f32.gmra.mxu0 %vm118_vm0, %v365_v52 }
  0xad   :  { %11890 = vmatmul.msk.f32.gmra.mxu1 %vm118_vm0, %v298_v54 }
  0xae   :  { %11956 = vmatmul.msk.f32.gmra.mxu2 %vm118_vm0, %v1238_v55 }
  0xaf   :  { %12018 = vmatmul.msk.f32.gmra.mxu3 %vm118_vm0, %v296_v45  ;;  %v309_v45 = vld [vmem:[#allocation2 + $0xc0] sm:$0xff] }
  0xb0   :  { %11828 = vmatmul.msk.f32.gmra.mxu0 %vm118_vm0, %v366_v56  ;;  %v378_v56 = vld [vmem:[#allocation2 + $0xf1] sm:$0xff] }
  0xb5   :  { %11891 = vmatmul.msk.f32.gmra.mxu1 %vm118_vm0, %v299_v58 }
  0xb6   :  { %11957 = vmatmul.msk.f32.gmra.mxu2 %vm118_vm0, %v1239_v59 }
  0xb7   :  { %12019 = vmatmul.msk.f32.gmra.mxu3 %vm118_vm0, %v297_v50 }
  0xb8   :  { %11829 = vmatmul.msk.f32.gmra.mxu0 %vm118_vm0, %v367_v60 }
  0xbd   :  { %11892 = vmatmul.msk.f32.gmra.mxu1 %vm118_vm0, %v300_v62 }
  0xbe   :  { %11958 = vmatmul.msk.f32.gmra.mxu2 %vm118_vm0, %v1240_v63  ;;  %v311_v63 = vld [vmem:[#allocation2 + $0xd8] sm:$0xff] }
  0xbf   :  { %12020 = vmatmul.msk.f32.gmra.mxu3 %vm118_vm0, %v298_v54  ;;  %v1250_v54 = vld [vmem:[#allocation2 + $0xca] sm:$0xff] }
  0xc0   :  { %11830 = vmatmul.msk.f32.gmra.mxu0 %vm118_vm0, %v368_v1  ;;  %v1251_v1 = vld [vmem:[#allocation2 + $0xda] sm:$0xff] }
  0xc5   :  { %11893 = vmatmul.msk.f32.gmra.mxu1 %vm118_vm0, %v301_v3 }
  0xc6   :  { %11959 = vmatmul.msk.f32.gmra.mxu2 %vm118_vm0, %v1241_v4  ;;  %v78_v4 = vld [vmem:[%s18903_s0 + $0xc0] sm:$0xff] }
  0xc7   :  { %12021 = vmatmul.msk.f32.gmra.mxu3 %vm118_vm0, %v299_v58  ;;  %253 = vst.msk [vmem:[#allocation2 + $0x139] sm:$0xff] %vm118_vm0, %v78_v4  ;;  %v83_v4 = vld [vmem:[%s18903_s0 + $0xe8] sm:$0xff] }
  0xc8   :  { %11831 = vmatmul.msk.f32.gmra.mxu0 %vm118_vm0, %v369_v5  ;;  %258 = vst.msk [vmem:[#allocation2 + $0x171] sm:$0xff] %vm118_vm0, %v83_v4 }
  0xcd   :  { %11894 = vmatmul.msk.f32.gmra.mxu1 %vm118_vm0, %v302_v7 }
  0xce   :  { %11960 = vmatmul.msk.f32.gmra.mxu2 %vm118_vm0, %v1242_v8 }
  0xcf   :  { %12022 = vmatmul.msk.f32.gmra.mxu3 %vm118_vm0, %v300_v62 }
  0xd0   :  { %11832 = vmatmul.msk.f32.gmra.mxu0 %vm118_vm0, %v370_v9 }
  0xd3   :  { %v13678_v28 = vpop.f32.mrf.mxu1 }
  0xd5   :  { %11895 = vmatmul.msk.f32.gmra.mxu1 %vm118_vm0, %v303_v11 }
  0xd6   :  { %11961 = vmatmul.msk.f32.gmra.mxu2 %vm118_vm0, %v1243_v12  ;;  %v640_v30 = vpop.f32.mrf.mxu0 }
  0xd7   :  { %12023 = vmatmul.msk.f32.gmra.mxu3 %vm118_vm0, %v301_v3  ;;  %v379_v3 = vld [vmem:[#allocation2 + $0xf9] sm:$0xff] }
  0xd8   :  { %11833 = vmatmul.msk.f32.gmra.mxu0 %vm118_vm0, %v371_v13  ;;  %v380_v13 = vld [vmem:[#allocation2 + $0x109] sm:$0xff] }
  0xda   :  { %v13684_v33 = vpop.f32.mrf.mxu2 }
  0xdb   :  { %v13690_v35 = vpop.f32.mrf.mxu3 }
  0xdd   :  { %11896 = vmatmul.msk.f32.gmra.mxu1 %vm118_vm0, %v304_v15 }
  0xde   :  { %11962 = vmatmul.msk.f32.gmra.mxu2 %vm118_vm0, %v1244_v16 }
  0xdf   :  { %12024 = vmatmul.msk.f32.gmra.mxu3 %vm118_vm0, %v302_v7 }
  0xe0   :  { %11834 = vmatmul.msk.f32.gmra.mxu0 %vm118_vm0, %v372_v17 }
  0xe5   :  { %11897 = vmatmul.msk.f32.gmra.mxu1 %vm118_vm0, %v305_v19 }
  0xe6   :  { %11963 = vmatmul.msk.f32.gmra.mxu2 %vm118_vm0, %v1245_v20  ;;  %v313_v20 = vld [vmem:[#allocation2 + $0xf0] sm:$0xff] }
  0xe7   :  { %12025 = vmatmul.msk.f32.gmra.mxu3 %vm118_vm0, %v303_v11  ;;  %v1252_v11 = vld [vmem:[#allocation2 + $0xe2] sm:$0xff] }
  0xe8   :  { %11835 = vmatmul.msk.f32.gmra.mxu0 %vm118_vm0, %v373_v21  ;;  %v1253_v21 = vld [vmem:[#allocation2 + $0xf2] sm:$0xff] }
  0xed   :  { %11898 = vmatmul.msk.f32.gmra.mxu1 %vm118_vm0, %v306_v24 }
  0xee   :  { %11964 = vmatmul.msk.f32.gmra.mxu2 %vm118_vm0, %v1246_v25 }
  0xef   :  { %12026 = vmatmul.msk.f32.gmra.mxu3 %vm118_vm0, %v304_v15 }
  0xf0   :  { %11836 = vmatmul.msk.f32.gmra.mxu0 %vm118_vm0, %v374_v26  ;;  %v80_v26 = vld [vmem:[%s18903_s0 + $0xd0] sm:$0xff] }
  0xf1   :  { %255 = vst.msk [vmem:[#allocation2 + $0x151] sm:$0xff] %vm118_vm0, %v80_v26 }
  0xf5   :  { %11899 = vmatmul.msk.f32.gmra.mxu1 %vm118_vm0, %v307_v29 }
  0xf6   :  { %11965 = vmatmul.msk.f32.gmra.mxu2 %vm118_vm0, %v1247_v31 }
  0xf7   :  { %12027 = vmatmul.msk.f32.gmra.mxu3 %vm118_vm0, %v305_v19 }
  0xf8   :  { %11837 = vmatmul.msk.f32.gmra.mxu0 %vm118_vm0, %v375_v32  ;;  %v1261_v4 = vld [vmem:[#allocation2 + $0x152] sm:$0xff] }
  0xfa   :  { %v13693_v36 = vpop.f32.mrf.mxu1 }
  0xfd   :  { %v643_v39 = vpop.f32.mrf.mxu0  ;;  %11900 = vmatmul.msk.f32.gmra.mxu1 %vm118_vm0, %v308_v37 }
  0xfe   :  { %11966 = vmatmul.msk.f32.gmra.mxu2 %vm118_vm0, %v1248_v38 }
  0xff   :  { %12028 = vmatmul.msk.f32.gmra.mxu3 %vm118_vm0, %v306_v24  ;;  %v381_v24 = vld [vmem:[#allocation2 + $0x111] sm:$0xff] }
 0x100   :  { %11838 = vmatmul.msk.f32.gmra.mxu0 %vm118_vm0, %v376_v40  ;;  %v382_v40 = vld [vmem:[#allocation2 + $0x121] sm:$0xff] }
 0x101   :  { %v13703_v42 = vpop.f32.mrf.mxu2 }
 0x102   :  { %v13705_v43 = vpop.f32.mrf.mxu3  ;;  %v13707_v44 = vpop.f32.mrf.mxu1 }
 0x103   :  { %v1042_v25 = vadd.f32 %v13707_v44, %v13669_v23  ;;  %v1254_v23 = vld [vmem:[#allocation2 + $0xfa] sm:$0xff] }
 0x105   :  { %v646_v47 = vpop.f32.mrf.mxu0  ;;  %11901 = vmatmul.msk.f32.gmra.mxu1 %vm118_vm0, %v309_v45 }
 0x106   :  { %11967 = vmatmul.msk.f32.gmra.mxu2 %vm118_vm0, %v1249_v46 }
 0x107   :  { %12029 = vmatmul.msk.f32.gmra.mxu3 %vm118_vm0, %v307_v29 }
 0x108   :  { %11839 = vmatmul.msk.f32.gmra.mxu0 %vm118_vm0, %v377_v48 }
 0x109   :  { %v1511_v50 = vpop.f32.mrf.mxu2 }
 0x10a   :  { %v13717_v51 = vpop.f32.mrf.mxu3  ;;  %v1044_v52 = vpop.f32.mrf.mxu1  ;;  %v1703_v29 = vadd.f32 %v1511_v50, %v1042_v25  ;;  %v1258_v25 = vld [vmem:[#allocation2 + $0x12a] sm:$0xff] }
 0x10b   :  { %v1045_v58 = vadd.f32 %v1044_v52, %v640_v30  ;;  %v1255_v52 = vld [vmem:[#allocation2 + $0x10a] sm:$0xff] }
 0x10d   :  { %v649_v55 = vpop.f32.mrf.mxu0  ;;  %11902 = vmatmul.msk.f32.gmra.mxu1 %vm118_vm0, %v310_v53 }
 0x10e   :  { %11968 = vmatmul.msk.f32.gmra.mxu2 %vm118_vm0, %v1250_v54  ;;  %v383_v54 = vld [vmem:[#allocation2 + $0x129] sm:$0xff] }
 0x10f   :  { %12030 = vmatmul.msk.f32.gmra.mxu3 %vm118_vm0, %v308_v37  ;;  %v314_v37 = vld [vmem:[#allocation2 + $0xf8] sm:$0xff] }
 0x110   :  { %11840 = vmatmul.msk.f32.gmra.mxu0 %vm118_vm0, %v378_v56 }
 0x111   :  { %v1514_v59 = vpop.f32.mrf.mxu2 }
 0x112   :  { %v13727_v60 = vpop.f32.mrf.mxu3  ;;  %v13729_v61 = vadd.f32 %v1514_v59, %v1045_v58  ;;  %v1047_v62 = vpop.f32.mrf.mxu1 }
 0x113   :  { %v1048_v5 = vadd.f32 %v1047_v62, %v643_v39  ;;  %v316_v62 = vld [vmem:[#allocation2 + $0x110] sm:$0xff] }
 0x115   :  { %v652_v2 = vpop.f32.mrf.mxu0  ;;  %11903 = vmatmul.msk.f32.gmra.mxu1 %vm118_vm0, %v311_v63 }
 0x116   :  { %11969 = vmatmul.msk.f32.gmra.mxu2 %vm118_vm0, %v1251_v1  ;;  %v1256_v1 = vld [vmem:[#allocation2 + $0x112] sm:$0xff] }
 0x117   :  { %12031 = vmatmul.msk.f32.gmra.mxu3 %vm118_vm0, %v309_v45 }
 0x118   :  { %11841 = vmatmul.msk.f32.gmra.mxu0 %vm118_vm0, %v379_v3  ;;  %v384_v3 = vld [vmem:[#allocation2 + $0x139] sm:$0xff] }
 0x119   :  { %v1517_v6 = vpop.f32.mrf.mxu2 }
 0x11a   :  { %v13739_v7 = vpop.f32.mrf.mxu3  ;;  %v13741_v8 = vadd.f32 %v1517_v6, %v1048_v5  ;;  %v1050_v9 = vpop.f32.mrf.mxu1 }
 0x11b   :  { %v1051_v15 = vadd.f32 %v1050_v9, %v646_v47 }
 0x11d   :  { %v655_v12 = vpop.f32.mrf.mxu0  ;;  %11904 = vmatmul.msk.f32.gmra.mxu1 %vm118_vm0, %v312_v10 }
 0x11e   :  { %11970 = vmatmul.msk.f32.gmra.mxu2 %vm118_vm0, %v1252_v11  ;;  %v317_v11 = vld [vmem:[#allocation2 + $0x120] sm:$0xff] }
 0x11f   :  { %12032 = vmatmul.msk.f32.gmra.mxu3 %vm118_vm0, %v310_v53 }
 0x120   :  { %11842 = vmatmul.msk.f32.gmra.mxu0 %vm118_vm0, %v380_v13  ;;  %v1257_v13 = vld [vmem:[#allocation2 + $0x122] sm:$0xff] }
 0x121   :  { %v1520_v16 = vpop.f32.mrf.mxu2 }
 0x122   :  { %v13751_v17 = vpop.f32.mrf.mxu3  ;;  %v13753_v18 = vadd.f32 %v1520_v16, %v1051_v15  ;;  %v1053_v19 = vpop.f32.mrf.mxu1  ;;  %v385_v15 = vld [vmem:[#allocation2 + $0x141] sm:$0xff] }
 0x123   :  { %v1054_v27 = vadd.f32 %v1053_v19, %v649_v55  ;;  %v82_v55 = vld [vmem:[%s18903_s0 + $0xe0] sm:$0xff] }
 0x124   :  { %257 = vst.msk [vmem:[#allocation2 + $0x169] sm:$0xff] %vm118_vm0, %v82_v55 }
 0x125   :  { %v658_v22 = vpop.f32.mrf.mxu0  ;;  %11905 = vmatmul.msk.f32.gmra.mxu1 %vm118_vm0, %v313_v20 }
 0x126   :  { %11971 = vmatmul.msk.f32.gmra.mxu2 %vm118_vm0, %v1253_v21 }
 0x127   :  { %12033 = vmatmul.msk.f32.gmra.mxu3 %vm118_vm0, %v311_v63 }
 0x128   :  { %11843 = vmatmul.msk.f32.gmra.mxu0 %vm118_vm0, %v381_v24  ;;  %v318_v24 = vld [vmem:[#allocation2 + $0x128] sm:$0xff] }
 0x129   :  { %v1523_v30 = vpop.f32.mrf.mxu2 }
 0x12a   :  { %v13765_v31 = vadd.f32 %v1523_v30, %v1054_v27  ;;  %v2045_v32 = vpop.f32.mrf.mxu3  ;;  %v1056_v34 = vpop.f32.mrf.mxu1  ;;  %v386_v27 = vld [vmem:[#allocation2 + $0x151] sm:$0xff] }
 0x12b   :  { %v13767_v38 = vadd.f32 %v2045_v32, %v1703_v29  ;;  %v1057_v44 = vadd.f32 %v1056_v34, %v652_v2 }
 0x12d   :  { %v661_v39 = vpop.f32.mrf.mxu0  ;;  %11906 = vmatmul.msk.f32.gmra.mxu1 %vm118_vm0, %v314_v37 }
 0x12e   :  { %11972 = vmatmul.msk.f32.gmra.mxu2 %vm118_vm0, %v1254_v23  ;;  %v319_v23 = vld [vmem:[#allocation2 + $0x138] sm:$0xff] }
 0x12f   :  { %12034 = vmatmul.msk.f32.gmra.mxu3 %vm118_vm0, %v312_v10 }
 0x130   :  { %11844 = vmatmul.msk.f32.gmra.mxu0 %vm118_vm0, %v382_v40 }
 0x131   :  { %v1526_v45 = vpop.f32.mrf.mxu2 }
 0x132   :  { %v13777_v46 = vadd.f32 %v1526_v45, %v1057_v44  ;;  %v2048_v47 = vpop.f32.mrf.mxu3  ;;  %v1059_v48 = vpop.f32.mrf.mxu1  ;;  %v86_v44 = vld [vmem:[%s18903_s0 + $0x100] sm:$0xff] }
 0x133   :  { %v13780_v50 = vadd.f32 %v2048_v47, %v13729_v61  ;;  %v1060_v56 = vadd.f32 %v1059_v48, %v655_v12  ;;  %261 = vst.msk [vmem:[#allocation2 + $0x1c9] sm:$0xff] %vm118_vm0, %v86_v44 }
 0x135   :  { %v664_v53 = vpop.f32.mrf.mxu0  ;;  %11907 = vmatmul.msk.f32.gmra.mxu1 %vm118_vm0, %v315_v49 }
 0x136   :  { %11973 = vmatmul.msk.f32.gmra.mxu2 %vm118_vm0, %v1255_v52  ;;  %v320_v52 = vld [vmem:[#allocation2 + $0x140] sm:$0xff] }
 0x137   :  { %12035 = vmatmul.msk.f32.gmra.mxu3 %vm118_vm0, %v313_v20 }
 0x138   :  { %11845 = vmatmul.msk.f32.gmra.mxu0 %vm118_vm0, %v383_v54  ;;  %v1260_v54 = vld [vmem:[#allocation2 + $0x142] sm:$0xff] }
 0x139   :  { %v1529_v57 = vpop.f32.mrf.mxu2 }
 0x13a   :  { %v13790_v58 = vadd.f32 %v1529_v57, %v1060_v56  ;;  %v2051_v59 = vpop.f32.mrf.mxu3  ;;  %v1062_v61 = vpop.f32.mrf.mxu1  ;;  %v388_v56 = vld [vmem:[#allocation2 + $0x169] sm:$0xff] }
 0x13b   :  { %v13793_v63 = vadd.f32 %v2051_v59, %v13741_v8  ;;  %v1063_v5 = vadd.f32 %v1062_v61, %v658_v22  ;;  %v87_v57 = vld [vmem:[%s18903_s0 + $0x108] sm:$0xff] }
 0x13c   :  { %262 = vst.msk [vmem:[#allocation2 + $0x1d1] sm:$0xff] %vm118_vm0, %v87_v57 }
 0x13d   :  { %v667_v2 = vpop.f32.mrf.mxu0  ;;  %11908 = vmatmul.msk.f32.gmra.mxu1 %vm118_vm0, %v316_v62 }
 0x13e   :  { %11974 = vmatmul.msk.f32.gmra.mxu2 %vm118_vm0, %v1256_v1 }
 0x13f   :  { %12036 = vmatmul.msk.f32.gmra.mxu3 %vm118_vm0, %v314_v37 }
 0x140   :  { %11846 = vmatmul.msk.f32.gmra.mxu0 %vm118_vm0, %v384_v3 }
 0x141   :  { %v1532_v6 = vpop.f32.mrf.mxu2 }
 0x142   :  { %v13803_v8 = vadd.f32 %v1532_v6, %v1063_v5  ;;  %v2054_v9 = vpop.f32.mrf.mxu3  ;;  %v1065_v10 = vpop.f32.mrf.mxu1  ;;  %v389_v6 = vld [vmem:[#allocation2 + $0x171] sm:$0xff] }
 0x143   :  { %v13806_v12 = vadd.f32 %v2054_v9, %v13753_v18  ;;  %v1066_v16 = vadd.f32 %v1065_v10, %v661_v39  ;;  %v1259_v39 = vld [vmem:[#allocation2 + $0x13a] sm:$0xff]  ;;  %v88_v9 = vld [vmem:[%s18903_s0 + $0x110] sm:$0xff] }
 0x144   :  { %263 = vst.msk [vmem:[#allocation2 + $0x1e1] sm:$0xff] %vm118_vm0, %v88_v9  ;;  %v1265_v9 = vld [vmem:[#allocation2 + $0x1b2] sm:$0xff] }
 0x145   :  { %v670_v14 = vpop.f32.mrf.mxu0  ;;  %11909 = vmatmul.msk.f32.gmra.mxu1 %vm118_vm0, %v317_v11 }
 0x146   :  { %11975 = vmatmul.msk.f32.gmra.mxu2 %vm118_vm0, %v1257_v13 }
 0x147   :  { %12037 = vmatmul.msk.f32.gmra.mxu3 %vm118_vm0, %v315_v49 }
 0x148   :  { %11847 = vmatmul.msk.f32.gmra.mxu0 %vm118_vm0, %v385_v15  ;;  %v322_v15 = vld [vmem:[#allocation2 + $0x158] sm:$0xff] }
 0x149   :  { %v1535_v19 = vpop.f32.mrf.mxu2 }
 0x14a   :  { %v13812_v20 = vadd.f32 %v1535_v19, %v1066_v16  ;;  %v2057_v21 = vpop.f32.mrf.mxu3  ;;  %v1068_v22 = vpop.f32.mrf.mxu1  ;;  %v1262_v19 = vld [vmem:[#allocation2 + $0x15a] sm:$0xff] }
 0x14b   :  { %v13815_v18 = vadd.f32 %v2057_v21, %v13765_v31  ;;  %v1069_v29 = vadd.f32 %v1068_v22, %v664_v53  ;;  %v390_v22 = vld [vmem:[#allocation2 + $0x1b1] sm:$0xff] }
 0x14d   :  { %v673_v26 = vpop.f32.mrf.mxu0  ;;  %11910 = vmatmul.msk.f32.gmra.mxu1 %vm118_vm0, %v318_v24 }
 0x14e   :  { %11976 = vmatmul.msk.f32.gmra.mxu2 %vm118_vm0, %v1258_v25 }
 0x14f   :  { %12038 = vmatmul.msk.f32.gmra.mxu3 %vm118_vm0, %v316_v62 }
 0x150   :  { %11848 = vmatmul.msk.f32.gmra.mxu0 %vm118_vm0, %v386_v27 }
 0x151   :  { %v1538_v30 = vpop.f32.mrf.mxu2 }
 0x152   :  { %v13821_v32 = vadd.f32 %v1538_v30, %v1069_v29  ;;  %v2060_v34 = vpop.f32.mrf.mxu3  ;;  %v1071_v37 = vpop.f32.mrf.mxu1 }
 0x153   :  { %v13824_v31 = vadd.f32 %v2060_v34, %v13777_v46  ;;  %v1072_v45 = vadd.f32 %v1071_v37, %v667_v2  ;;  %v321_v2 = vld [vmem:[#allocation2 + $0x150] sm:$0xff]  ;;  %v323_v34 = vld [vmem:[#allocation2 + $0x168] sm:$0xff] }
 0x155   :  { %v676_v40 = vpop.f32.mrf.mxu0  ;;  %11911 = vmatmul.msk.f32.gmra.mxu1 %vm118_vm0, %v319_v23 }
 0x156   :  { %11977 = vmatmul.msk.f32.gmra.mxu2 %vm118_vm0, %v1259_v39 }
 0x157   :  { %12039 = vmatmul.msk.f32.gmra.mxu3 %vm118_vm0, %v317_v11 }
 0x158   :  { %11849 = vmatmul.msk.f32.gmra.mxu0 %vm118_vm0, %v387_v41  ;;  %v391_v41 = vld [vmem:[#allocation2 + $0x1b9] sm:$0xff] }
 0x159   :  { %v1541_v46 = vpop.f32.mrf.mxu2 }
 0x15a   :  { %v13834_v47 = vadd.f32 %v1541_v46, %v1072_v45  ;;  %v2063_v48 = vpop.f32.mrf.mxu3  ;;  %v1074_v49 = vpop.f32.mrf.mxu1 }
 0x15b   :  { %v13837_v53 = vadd.f32 %v2063_v48, %v13790_v58  ;;  %v1075_v59 = vadd.f32 %v1074_v49, %v670_v14 }
 0x15d   :  { %v679_v55 = vpop.f32.mrf.mxu0  ;;  %11912 = vmatmul.msk.f32.gmra.mxu1 %vm118_vm0, %v320_v52 }
 0x15e   :  { %11978 = vmatmul.msk.f32.gmra.mxu2 %vm118_vm0, %v1260_v54 }
 0x15f   :  { %12040 = vmatmul.msk.f32.gmra.mxu3 %vm118_vm0, %v318_v24  ;;  %v84_v24 = vld [vmem:[%s18903_s0 + $0xf0] sm:$0xff] }
 0x160   :  { %11850 = vmatmul.msk.f32.gmra.mxu0 %vm118_vm0, %v388_v56  ;;  %259 = vst.msk [vmem:[#allocation2 + $0x181] sm:$0xff] %vm118_vm0, %v84_v24  ;;  %v1264_v56 = vld [vmem:[#allocation2 + $0x172] sm:$0xff] }
 0x161   :  { %v1544_v58 = vpop.f32.mrf.mxu2 }
 0x162   :  { %v13847_v61 = vadd.f32 %v1544_v58, %v1075_v59  ;;  %v2066_v62 = vpop.f32.mrf.mxu3  ;;  %v1077_v1 = vpop.f32.mrf.mxu1  ;;  %v392_v59 = vld [vmem:[#allocation2 + $0x1c9] sm:$0xff] }
 0x163   :  { %v13850_v3 = vadd.f32 %v2066_v62, %v13803_v8  ;;  %v1078_v10 = vadd.f32 %v1077_v1, %v673_v26 }
 0x165   :  { %v682_v5 = vpop.f32.mrf.mxu0  ;;  %11913 = vmatmul.msk.f32.gmra.mxu1 %vm118_vm0, %v321_v2 }
 0x166   :  { %11979 = vmatmul.msk.f32.gmra.mxu2 %vm118_vm0, %v1261_v4  ;;  %v325_v4 = vld [vmem:[#allocation2 + $0x1b0] sm:$0xff] }
 0x167   :  { %12041 = vmatmul.msk.f32.gmra.mxu3 %vm118_vm0, %v319_v23  ;;  %v1263_v23 = vld [vmem:[#allocation2 + $0x16a] sm:$0xff] }
 0x168   :  { %11851 = vmatmul.msk.f32.gmra.mxu0 %vm118_vm0, %v389_v6 }
 0x169   :  { %v1547_v8 = vpop.f32.mrf.mxu2 }
 0x16a   :  { %v13860_v11 = vadd.f32 %v1547_v8, %v1078_v10  ;;  %v2069_v13 = vpop.f32.mrf.mxu3  ;;  %v1080_v14 = vpop.f32.mrf.mxu1  ;;  %v393_v8 = vld [vmem:[#allocation2 + $0x1d1] sm:$0xff] }
 0x16b   :  { %v13863_v16 = vadd.f32 %v2069_v13, %v13812_v20  ;;  %v89_v20 = vld [vmem:[%s18903_s0 + $0x118] sm:$0xff]  ;;  %v1081_v25 = vadd.f32 %v1080_v14, %v676_v40 }
 0x16c   :  { %264 = vst.msk [vmem:[#allocation2 + $0x1e9] sm:$0xff] %vm118_vm0, %v89_v20  ;;  %v85_v40 = vld [vmem:[%s18903_s0 + $0xf8] sm:$0xff] }
 0x16d   :  { %v685_v21 = vpop.f32.mrf.mxu0  ;;  %11914 = vmatmul.msk.f32.gmra.mxu1 %vm118_vm0, %v322_v15  ;;  %260 = vst.msk [vmem:[#allocation2 + $0x189] sm:$0xff] %vm118_vm0, %v85_v40  ;;  %v1266_v20 = vld [vmem:[#allocation2 + $0x1ba] sm:$0xff] }
 0x16e   :  { %11980 = vmatmul.msk.f32.gmra.mxu2 %vm118_vm0, %v1262_v19 }
 0x16f   :  { %12042 = vmatmul.msk.f32.gmra.mxu3 %vm118_vm0, %v320_v52  ;;  %v324_v52 = vld [vmem:[#allocation2 + $0x170] sm:$0xff] }
 0x170   :  { %11852 = vmatmul.msk.f32.gmra.mxu0 %vm118_vm0, %v390_v22  ;;  %v326_v22 = vld [vmem:[#allocation2 + $0x1b8] sm:$0xff] }
 0x171   :  { %v1550_v26 = vpop.f32.mrf.mxu2 }
 0x172   :  { %v13877_v27 = vadd.f32 %v1550_v26, %v1081_v25  ;;  %v2072_v29 = vpop.f32.mrf.mxu3  ;;  %v1083_v30 = vpop.f32.mrf.mxu1  ;;  %v394_v26 = vld [vmem:[#allocation2 + $0x1e1] sm:$0xff] }
 0x173   :  { %v13880_v37 = vadd.f32 %v2072_v29, %v13821_v32  ;;  %v90_v32 = vld [vmem:[%s18903_s0 + $0x120] sm:$0xff]  ;;  %v1084_v44 = vadd.f32 %v1083_v30, %v679_v55  ;;  %v91_v55 = vld [vmem:[%s18903_s0 + $0x128] sm:$0xff] }
 0x174   :  { %265 = vst.msk [vmem:[#allocation2 + $0x1f9] sm:$0xff] %vm118_vm0, %v90_v32  ;;  %v1267_v32 = vld [vmem:[#allocation2 + $0x1ca] sm:$0xff] }
 0x175   :  { %v688_v39 = vpop.f32.mrf.mxu0  ;;  %11915 = vmatmul.msk.f32.gmra.mxu1 %vm118_vm0, %v323_v34  ;;  %266 = vst.msk [vmem:[#allocation2 + $0x201] sm:$0xff] %vm118_vm0, %v91_v55  ;;  %v328_v55 = vld [vmem:[#allocation2 + $0x1d0] sm:$0xff] }
 0x176   :  { %11981 = vmatmul.msk.f32.gmra.mxu2 %vm118_vm0, %v1263_v23 }
 0x177   :  { %12043 = vmatmul.msk.f32.gmra.mxu3 %vm118_vm0, %v321_v2 }
 0x178   :  { %11853 = vmatmul.msk.f32.gmra.mxu0 %vm118_vm0, %v391_v41  ;;  %v327_v41 = vld [vmem:[#allocation2 + $0x1c8] sm:$0xff] }
 0x179   :  { %v1553_v45 = vpop.f32.mrf.mxu2 }
 0x17a   :  { %v13894_v46 = vadd.f32 %v1553_v45, %v1084_v44  ;;  %v2075_v48 = vpop.f32.mrf.mxu3  ;;  %v1086_v49 = vpop.f32.mrf.mxu1  ;;  %v1797_v44 = vld [vmem:[#allocation2 + $0x180] sm:$0xff] }
 0x17b   :  { %v13897_v54 = vadd.f32 %v2075_v48, %v13834_v47  ;;  %v1087_v58 = vadd.f32 %v1086_v49, %v682_v5  ;;  %v92_v5 = vld [vmem:[%s18903_s0 + $0x130] sm:$0xff] }
 0x17c   :  { %267 = vst.msk [vmem:[#allocation2 + $0x211] sm:$0xff] %vm118_vm0, %v92_v5  ;;  %v395_v48 = vld [vmem:[#allocation2 + $0x1e9] sm:$0xff] }
 0x17d   :  { %v691_v57 = vpop.f32.mrf.mxu0  ;;  %11916 = vmatmul.msk.f32.gmra.mxu1 %vm118_vm0, %v324_v52 }
 0x17e   :  { %11982 = vmatmul.msk.f32.gmra.mxu2 %vm118_vm0, %v1264_v56 }
 0x17f   :  { %12044 = vmatmul.msk.f32.gmra.mxu3 %vm118_vm0, %v322_v15 }
 0x180   :  { %11854 = vmatmul.msk.f32.gmra.mxu0 %vm118_vm0, %v392_v59 }
 0x181   :  { %v1556_v47 = vpop.f32.mrf.mxu2 }
 0x182   :  { %v13907_v62 = vadd.f32 %v1556_v47, %v1087_v58  ;;  %v2078_v1 = vpop.f32.mrf.mxu3  ;;  %v1089_v2 = vpop.f32.mrf.mxu1  ;;  %v1268_v47 = vld [vmem:[#allocation2 + $0x1d2] sm:$0xff] }
 0x183   :  { %v13910_v6 = vadd.f32 %v2078_v1, %v13847_v61  ;;  %v1090_v13 = vadd.f32 %v1089_v2, %v685_v21  ;;  %v93_v21 = vld [vmem:[%s18903_s0 + $0x138] sm:$0xff]  ;;  %v1798_v1 = vld [vmem:[#allocation2 + $0x188] sm:$0xff] }
 0x184   :  { %268 = vst.msk [vmem:[#allocation2 + $0x219] sm:$0xff] %vm118_vm0, %v93_v21 }
 0x185   :  { %18918 = vst [vmem:[#allocation8_spill] sm:$0xff] %v13910_v6  ;;  %v694_v10 = vpop.f32.mrf.mxu0  ;;  %11917 = vmatmul.msk.f32.gmra.mxu1 %vm118_vm0, %v325_v4  ;;  %v396_v4 = vld [vmem:[#allocation2 + $0x1f9] sm:$0xff] }
 0x186   :  { %11983 = vmatmul.msk.f32.gmra.mxu2 %vm118_vm0, %v1265_v9 }
 0x187   :  { %12045 = vmatmul.msk.f32.gmra.mxu3 %vm118_vm0, %v323_v34 }
 0x188   :  { %11855 = vmatmul.msk.f32.gmra.mxu0 %vm118_vm0, %v393_v8 }
 0x189   :  { %v1559_v61 = vpop.f32.mrf.mxu2 }
 0x18a   :  { %v13920_v14 = vadd.f32 %v1559_v61, %v1090_v13  ;;  %v2081_v15 = vpop.f32.mrf.mxu3  ;;  %v1092_v19 = vpop.f32.mrf.mxu1  ;;  %v329_v61 = vld [vmem:[#allocation2 + $0x1e0] sm:$0xff] }
 0x18b   :  { %v13923_v24 = vadd.f32 %v2081_v15, %v13860_v11  ;;  %v1093_v29 = vadd.f32 %v1092_v19, %v688_v39  ;;  %v94_v39 = vld [vmem:[%s18903_s0 + $0x140] sm:$0xff] }
 0x18c   :  { %269 = vst.msk [vmem:[#allocation2 + $0x229] sm:$0xff] %vm118_vm0, %v94_v39  ;;  %v1269_v19 = vld [vmem:[#allocation2 + $0x1e2] sm:$0xff] }
 0x18d   :  { %18919 = vst [vmem:[#allocation9_spill] sm:$0xff] %v13923_v24  ;;  %v697_v25 = vpop.f32.mrf.mxu0  ;;  %11918 = vmatmul.msk.f32.gmra.mxu1 %vm118_vm0, %v326_v22 }
 0x18e   :  { %11984 = vmatmul.msk.f32.gmra.mxu2 %vm118_vm0, %v1266_v20  ;;  %v397_v20 = vld [vmem:[#allocation2 + $0x201] sm:$0xff] }
 0x18f   :  { %12046 = vmatmul.msk.f32.gmra.mxu3 %vm118_vm0, %v324_v52 }
 0x190   :  { %11856 = vmatmul.msk.f32.gmra.mxu0 %vm118_vm0, %v394_v26 }
 0x191   :  { %v1562_v11 = vpop.f32.mrf.mxu2 }
 0x192   :  { %v13933_v30 = vadd.f32 %v1562_v11, %v1093_v29  ;;  %v2084_v34 = vpop.f32.mrf.mxu3  ;;  %v1095_v23 = vpop.f32.mrf.mxu1 }
 0x193   :  { %v13936_v40 = vadd.f32 %v2084_v34, %v13877_v27  ;;  %v1096_v49 = vadd.f32 %v1095_v23, %v691_v57  ;;  %v95_v57 = vld [vmem:[%s18903_s0 + $0x148] sm:$0xff] }
 0x194   :  { %270 = vst.msk [vmem:[#allocation2 + $0x231] sm:$0xff] %vm118_vm0, %v95_v57  ;;  %v330_v34 = vld [vmem:[#allocation2 + $0x1e8] sm:$0xff] }
 0x195   :  { %18920 = vst [vmem:[#allocation10_spill] sm:$0xff] %v13936_v40  ;;  %v700_v45 = vpop.f32.mrf.mxu0  ;;  %11919 = vmatmul.msk.f32.gmra.mxu1 %vm118_vm0, %v327_v41  ;;  %v2846_v40 = vld [vmem:[#allocation2 + $0x9a] sm:$0xff] }
 0x196   :  { %11985 = vmatmul.msk.f32.gmra.mxu2 %vm118_vm0, %v1267_v32  ;;  %v1270_v32 = vld [vmem:[#allocation2 + $0x1ea] sm:$0xff] }
 0x197   :  { %12047 = vmatmul.msk.f32.gmra.mxu3 %vm118_vm0, %v1797_v44  ;;  %v398_v44 = vld [vmem:[#allocation2 + $0x211] sm:$0xff] }
 0x198   :  { %11857 = vmatmul.msk.f32.gmra.mxu0 %vm118_vm0, %v395_v48 }
 0x199   :  { %v1565_v27 = vpop.f32.mrf.mxu2 }
 0x19a   :  { %v13946_v52 = vadd.f32 %v1565_v27, %v1096_v49  ;;  %v2087_v56 = vpop.f32.mrf.mxu3  ;;  %v1098_v59 = vpop.f32.mrf.mxu1 }
 0x19b   :  { %v13949_v58 = vadd.f32 %v2087_v56, %v13894_v46  ;;  %v1099_v9 = vadd.f32 %v1098_v59, %v694_v10  ;;  %v96_v10 = vld [vmem:[%s18903_s0 + $0x150] sm:$0xff]  ;;  %v331_v59 = vld [vmem:[#allocation2 + $0x1f8] sm:$0xff] }
 0x19c   :  { %271 = vst.msk [vmem:[#allocation2 + $0x241] sm:$0xff] %vm118_vm0, %v96_v10  ;;  %v400_v10 = vld [vmem:[#allocation2 + $0x229] sm:$0xff] }
 0x19d   :  { %18921 = vst [vmem:[#allocation11_spill] sm:$0xff] %v13949_v58  ;;  %v703_v2 = vpop.f32.mrf.mxu0  ;;  %11920 = vmatmul.msk.f32.gmra.mxu1 %vm118_vm0, %v328_v55 }
 0x19e   :  { %11986 = vmatmul.msk.f32.gmra.mxu2 %vm118_vm0, %v1268_v47 }
 0x19f   :  { %12048 = vmatmul.msk.f32.gmra.mxu3 %vm118_vm0, %v1798_v1  ;;  %v399_v1 = vld [vmem:[#allocation2 + $0x219] sm:$0xff] }
 0x1a0   :  { %11858 = vmatmul.msk.f32.gmra.mxu0 %vm118_vm0, %v396_v4  ;;  %v98_v4 = vld [vmem:[%s18903_s0 + $0x160] sm:$0xff] }
 0x1a1   :  { %v1568_v46 = vpop.f32.mrf.mxu2  ;;  %273 = vst.msk [vmem:[#allocation2 + $0x259] sm:$0xff] %vm118_vm0, %v98_v4  ;;  %v1274_v4 = vld [vmem:[#allocation2 + $0x21a] sm:$0xff] }
 0x1a2   :  { %v13959_v8 = vadd.f32 %v1568_v46, %v1099_v9  ;;  %v2090_v5 = vpop.f32.mrf.mxu3  ;;  %v1101_v13 = vpop.f32.mrf.mxu1 }
 0x1a3   :  { %v13962_v15 = vadd.f32 %v2090_v5, %v13907_v62  ;;  %v1102_v26 = vadd.f32 %v1101_v13, %v697_v25  ;;  %v97_v25 = vld [vmem:[%s18903_s0 + $0x158] sm:$0xff]  ;;  %v332_v13 = vld [vmem:[#allocation2 + $0x200] sm:$0xff] }
 0x1a4   :  { %272 = vst.msk [vmem:[#allocation2 + $0x249] sm:$0xff] %vm118_vm0, %v97_v25  ;;  %v1273_v25 = vld [vmem:[#allocation2 + $0x212] sm:$0xff] }
 0x1a5   :  { %18922 = vst [vmem:[#allocation12_spill] sm:$0xff] %v13962_v15  ;;  %v706_v22 = vpop.f32.mrf.mxu0  ;;  %11921 = vmatmul.msk.f32.gmra.mxu1 %vm118_vm0, %v329_v61 }
 0x1a6   :  { %11987 = vmatmul.msk.f32.gmra.mxu2 %vm118_vm0, %v1269_v19 }
 0x1a7   :  { %12049 = vmatmul.msk.f32.gmra.mxu3 %vm118_vm0, %v327_v41 }
 0x1a8   :  { %11859 = vmatmul.msk.f32.gmra.mxu0 %vm118_vm0, %v397_v20  ;;  %v1272_v20 = vld [vmem:[#allocation2 + $0x202] sm:$0xff] }
 0x1a9   :  { %v1571_v62 = vpop.f32.mrf.mxu2 }
 0x1aa   :  { %v13972_v21 = vadd.f32 %v1571_v62, %v1102_v26  ;;  %v2093_v29 = vpop.f32.mrf.mxu3  ;;  %v1104_v11 = vpop.f32.mrf.mxu1 }
 0x1ab   :  { %v13975_v23 = vadd.f32 %v2093_v29, %v13920_v14  ;;  %v1105_v48 = vadd.f32 %v1104_v11, %v700_v45  ;;  %v12081_v14 = vld [vmem:[%s18904_s1 + $0x10] sm:$0x7]  ;;  %v1271_v45 = vld [vmem:[#allocation2 + $0x1fa] sm:$0xff] }
 0x1ac   :  { %12082 = vmatpush.msk.msrb.mxu0 %vm616_vm1, %v12081_v14 }
 0x1ad   :  { %18923 = vst [vmem:[#allocation13_spill] sm:$0xff] %v13975_v23  ;;  %v709_v41 = vpop.f32.mrf.mxu0  ;;  %11922 = vmatmul.msk.f32.gmra.mxu1 %vm118_vm0, %v330_v34 }
 0x1ae   :  { %11988 = vmatmul.msk.f32.gmra.mxu2 %vm118_vm0, %v1270_v32  ;;  %v333_v32 = vld [vmem:[#allocation2 + $0x210] sm:$0xff] }
 0x1af   :  { %12050 = vmatmul.msk.f32.gmra.mxu3 %vm118_vm0, %v328_v55 }
 0x1b0   :  { %11860 = vmatmul.msk.f32.gmra.mxu0 %vm118_vm0, %v398_v44 }
 0x1b1   :  { %v1574_v39 = vpop.f32.mrf.mxu2 }
 0x1b2   :  { %v13989_v49 = vadd.f32 %v1574_v39, %v1105_v48  ;;  %v2096_v27 = vpop.f32.mrf.mxu3  ;;  %v1107_v56 = vpop.f32.mrf.mxu1  ;;  %v401_v48 = vld [vmem:[#allocation2 + $0x231] sm:$0xff] }
 0x1b3   :  { %v13992_v55 = vadd.f32 %v2096_v27, %v13933_v30  ;;  %v1108_v57 = vadd.f32 %v1107_v56, %v703_v2  ;;  %v99_v2 = vld [vmem:[%s18903_s0 + $0x168] sm:$0xff] }
 0x1b4   :  { %274 = vst.msk [vmem:[#allocation2 + $0x261] sm:$0xff] %vm118_vm0, %v99_v2 }
 0x1b5   :  { %18924 = vst [vmem:[#allocation14_spill] sm:$0xff] %v13992_v55  ;;  %v712_v47 = vpop.f32.mrf.mxu0  ;;  %11923 = vmatmul.msk.f32.gmra.mxu1 %vm118_vm0, %v331_v59 }
 0x1b6   :  { %11989 = vmatmul.msk.f32.gmra.mxu2 %vm118_vm0, %v1271_v45  ;;  %v334_v45 = vld [vmem:[#allocation2 + $0x218] sm:$0xff] }
 0x1b7   :  { %12051 = vmatmul.msk.f32.gmra.mxu3 %vm118_vm0, %v329_v61 }
 0x1b8   :  { %11861 = vmatmul.msk.f32.gmra.mxu0 %vm118_vm0, %v399_v1 }
 0x1b9   :  { %v1577_v30 = vpop.f32.mrf.mxu2 }
 0x1ba   :  { %v14002_v9 = vadd.f32 %v1577_v30, %v1108_v57  ;;  %v2099_v46 = vpop.f32.mrf.mxu3  ;;  %v1110_v5 = vpop.f32.mrf.mxu1  ;;  %v402_v57 = vld [vmem:[#allocation2 + $0x241] sm:$0xff] }
 0x1bb   :  { %v14005_v19 = vadd.f32 %v2099_v46, %v13946_v52  ;;  %v1111_v26 = vadd.f32 %v1110_v5, %v706_v22  ;;  %v100_v22 = vld [vmem:[%s18903_s0 + $0x170] sm:$0xff] }
 0x1bc   :  { %275 = vst.msk [vmem:[#allocation2 + $0x271] sm:$0xff] %vm118_vm0, %v100_v22  ;;  %v336_v22 = vld [vmem:[#allocation2 + $0x230] sm:$0xff] }
 0x1bd   :  { %18925 = vst [vmem:[#allocation15_spill] sm:$0xff] %v14005_v19  ;;  %v715_v61 = vpop.f32.mrf.mxu0  ;;  %11924 = vmatmul.msk.f32.gmra.mxu1 %vm118_vm0, %v332_v13 }
 0x1be   :  { %11990 = vmatmul.msk.f32.gmra.mxu2 %vm118_vm0, %v1272_v20 }
 0x1bf   :  { %12052 = vmatmul.msk.f32.gmra.mxu3 %vm118_vm0, %v330_v34 }
 0x1c0   :  { %11862 = vmatmul.msk.f32.gmra.mxu0 %vm118_vm0, %v400_v10  ;;  %v335_v10 = vld [vmem:[#allocation2 + $0x228] sm:$0xff] }
 0x1c1   :  { %v1580_v52 = vpop.f32.mrf.mxu2 }
 0x1c2   :  { %v14015_v62 = vadd.f32 %v1580_v52, %v1111_v26  ;;  %v2102_v29 = vpop.f32.mrf.mxu3  ;;  %v1113_v11 = vpop.f32.mrf.mxu1  ;;  %v1275_v26 = vld [vmem:[#allocation2 + $0x22a] sm:$0xff] }
 0x1c3   :  { %v14018_v44 = vadd.f32 %v2102_v29, %v13959_v8  ;;  %v1114_v14 = vadd.f32 %v1113_v11, %v709_v41  ;;  %v101_v41 = vld [vmem:[%s18903_s0 + $0x178] sm:$0xff]  ;;  %v403_v52 = vld [vmem:[#allocation2 + $0x249] sm:$0xff] }
 0x1c4   :  { %276 = vst.msk [vmem:[#allocation2 + $0x279] sm:$0xff] %vm118_vm0, %v101_v41 }
 0x1c5   :  { %18926 = vst [vmem:[#allocation16_spill] sm:$0xff] %v14018_v44  ;;  %v718_v34 = vpop.f32.mrf.mxu0  ;;  %11925 = vmatmul.msk.f32.gmra.mxu1 %vm118_vm0, %v333_v32 }
 0x1c6   :  { %11991 = vmatmul.msk.f32.gmra.mxu2 %vm118_vm0, %v1273_v25 }
 0x1c7   :  { %12053 = vmatmul.msk.f32.gmra.mxu3 %vm118_vm0, %v331_v59 }
 0x1c8   :  { %11863 = vmatmul.msk.f32.gmra.mxu0 %vm118_vm0, %v401_v48 }
 0x1c9   :  { %v1583_v8 = vpop.f32.mrf.mxu2 }
 0x1ca   :  { %v14028_v39 = vadd.f32 %v1583_v8, %v1114_v14  ;;  %v2105_v27 = vpop.f32.mrf.mxu3  ;;  %v1116_v56 = vpop.f32.mrf.mxu1  ;;  %v1276_v8 = vld [vmem:[#allocation2 + $0x232] sm:$0xff] }
 0x1cb   :  { %v14031_v1 = vadd.f32 %v2105_v27, %v13972_v21  ;;  %v1117_v30 = vadd.f32 %v1116_v56, %v712_v47  ;;  %v102_v47 = vld [vmem:[%s18903_s0 + $0x180] sm:$0xff]  ;;  %v103_v56 = vld [vmem:[%s18903_s0 + $0x188] sm:$0xff] }
 0x1cc   :  { %277 = vst.msk [vmem:[#allocation2 + $0x289] sm:$0xff] %vm118_vm0, %v102_v47  ;;  %v404_v27 = vld [vmem:[#allocation2 + $0x259] sm:$0xff] }
 0x1cd   :  { %18927 = vst [vmem:[#allocation17_spill] sm:$0xff] %v14031_v1  ;;  %v721_v59 = vpop.f32.mrf.mxu0  ;;  %11926 = vmatmul.msk.f32.gmra.mxu1 %vm118_vm0, %v334_v45 }
 0x1ce   :  { %11992 = vmatmul.msk.f32.gmra.mxu2 %vm118_vm0, %v1274_v4  ;;  %278 = vst.msk [vmem:[#allocation2 + $0x291] sm:$0xff] %vm118_vm0, %v103_v56 }
 0x1cf   :  { %12054 = vmatmul.msk.f32.gmra.mxu3 %vm118_vm0, %v332_v13 }
 0x1d0   :  { %11864 = vmatmul.msk.f32.gmra.mxu0 %vm118_vm0, %v402_v57 }
 0x1d1   :  { %v1586_v21 = vpop.f32.mrf.mxu2 }
 0x1d2   :  { %v14041_v46 = vadd.f32 %v1586_v21, %v1117_v30  ;;  %v2108_v5 = vpop.f32.mrf.mxu3  ;;  %v1119_v20 = vpop.f32.mrf.mxu1  ;;  %v337_v30 = vld [vmem:[#allocation2 + $0x240] sm:$0xff] }
 0x1d3   :  { %v14044_v2 = vadd.f32 %v2108_v5, %v13989_v49  ;;  %v1120_v29 = vadd.f32 %v1119_v20, %v715_v61  ;;  %v12147_v61 = vld [vmem:[%s18904_s1 + $0x14] sm:$0x7]  ;;  %v1277_v5 = vld [vmem:[#allocation2 + $0x242] sm:$0xff] }
 0x1d4   :  { %12148 = vmatpush.msk.msra.mxu1 %vm616_vm1, %v12147_v61 }
 0x1d5   :  { %18928 = vst [vmem:[#allocation18_spill] sm:$0xff] %v14044_v2  ;;  %v724_v13 = vpop.f32.mrf.mxu0  ;;  %11927 = vmatmul.msk.f32.gmra.mxu1 %vm118_vm0, %v335_v10 }
 0x1d6   :  { %11993 = vmatmul.msk.f32.gmra.mxu2 %vm118_vm0, %v1275_v26  ;;  %v104_v26 = vld [vmem:[%s18903_s0 + $0x190] sm:$0xff] }
 0x1d7   :  { %12055 = vmatmul.msk.f32.gmra.mxu3 %vm118_vm0, %v333_v32  ;;  %279 = vst.msk [vmem:[#allocation2 + $0x2a1] sm:$0xff] %vm118_vm0, %v104_v26 }
 0x1d8   :  { %11865 = vmatmul.msk.f32.gmra.mxu0 %vm118_vm0, %v403_v52 }
 0x1d9   :  { %v1589_v49 = vpop.f32.mrf.mxu2 }
 0x1da   :  { %v14054_v11 = vadd.f32 %v1589_v49, %v1120_v29  ;;  %v2111_v25 = vpop.f32.mrf.mxu3  ;;  %v1122_v48 = vpop.f32.mrf.mxu1 }
 0x1db   :  { %v14057_v14 = vadd.f32 %v2111_v25, %v14002_v9  ;;  %v1123_v4 = vadd.f32 %v1122_v48, %v718_v34  ;;  %v405_v34 = vld [vmem:[#allocation2 + $0x261] sm:$0xff] }
 0x1dc   :  { %v338_v25 = vld [vmem:[#allocation2 + $0x248] sm:$0xff] }
 0x1dd   :  { %18929 = vst [vmem:[#allocation19_spill] sm:$0xff] %v14057_v14  ;;  %v727_v32 = vpop.f32.mrf.mxu0  ;;  %11928 = vmatmul.msk.f32.gmra.mxu1 %vm118_vm0, %v336_v22  ;;  %v14259_v14 = vld [vmem:[#allocation2 + $0xa9] sm:$0xff] }
 0x1de   :  { %11994 = vmatmul.msk.f32.gmra.mxu2 %vm118_vm0, %v1276_v8  ;;  %v1278_v8 = vld [vmem:[#allocation2 + $0x24a] sm:$0xff] }
 0x1df   :  { %12056 = vmatmul.msk.f32.gmra.mxu3 %vm118_vm0, %v334_v45 }
 0x1e0   :  { %11866 = vmatmul.msk.f32.gmra.mxu0 %vm118_vm0, %v404_v27 }
 0x1e1   :  { %v1592_v9 = vpop.f32.mrf.mxu2 }
 0x1e2   :  { %v14071_v57 = vadd.f32 %v1592_v9, %v1123_v4  ;;  %v2114_v41 = vpop.f32.mrf.mxu3  ;;  %v1125_v45 = vpop.f32.mrf.mxu1 }
 0x1e3   :  { %v14074_v21 = vadd.f32 %v2114_v41, %v14015_v62  ;;  %v1126_v52 = vadd.f32 %v1125_v45, %v721_v59  ;;  %v105_v59 = vld [vmem:[%s18903_s0 + $0x198] sm:$0xff] }
 0x1e4   :  { %280 = vst.msk [vmem:[#allocation2 + $0x2a9] sm:$0xff] %vm118_vm0, %v105_v59  ;;  %v339_v41 = vld [vmem:[#allocation2 + $0x258] sm:$0xff]  ;;  %v408_v59 = vld [vmem:[#allocation2 + $0x289] sm:$0xff] }
 0x1e5   :  { %18930 = vst [vmem:[#allocation20_spill] sm:$0xff] %v14074_v21  ;;  %v730_v20 = vpop.f32.mrf.mxu0  ;;  %11929 = vmatmul.msk.f32.gmra.mxu1 %vm118_vm0, %v337_v30 }
 0x1e6   :  { %11995 = vmatmul.msk.f32.gmra.mxu2 %vm118_vm0, %v1277_v5  ;;  %v1279_v5 = vld [vmem:[#allocation2 + $0x25a] sm:$0xff] }
 0x1e7   :  { %12057 = vmatmul.msk.f32.gmra.mxu3 %vm118_vm0, %v335_v10  ;;  %v406_v10 = vld [vmem:[#allocation2 + $0x271] sm:$0xff] }
 0x1e8   :  { %11867 = vmatmul.msk.f32.gmra.mxu0 %vm118_vm0, %v405_v34 }
 0x1e9   :  { %v1595_v62 = vpop.f32.mrf.mxu2 }
 0x1ea   :  { %v1731_v47 = vadd.f32 %v1595_v62, %v1126_v52  ;;  %v2117_v29 = vpop.f32.mrf.mxu3  ;;  %v1128_v49 = vpop.f32.mrf.mxu1 }
 0x1eb   :  { %v14085_v48 = vadd.f32 %v2117_v29, %v14028_v39  ;;  %v1129_v61 = vadd.f32 %v1128_v49, %v724_v13  ;;  %v340_v49 = vld [vmem:[#allocation2 + $0x260] sm:$0xff] }
 0x1ed   :  { %18931 = vst [vmem:[#allocation21_spill] sm:$0xff] %v14085_v48  ;;  %v733_v27 = vpop.f32.mrf.mxu0  ;;  %11930 = vmatmul.msk.f32.gmra.mxu1 %vm118_vm0, %v338_v25  ;;  %v14212_v48 = vld [vmem:[#allocation2 + $0x81] sm:$0xff] }
 0x1ee   :  { %11996 = vmatmul.msk.f32.gmra.mxu2 %vm118_vm0, %v1278_v8  ;;  %v1280_v8 = vld [vmem:[#allocation2 + $0x262] sm:$0xff] }
 0x1ef   :  { %12058 = vmatmul.msk.f32.gmra.mxu3 %vm118_vm0, %v336_v22  ;;  %v407_v22 = vld [vmem:[#allocation2 + $0x279] sm:$0xff] }
 0x1f0   :  { %11868 = vmatmul.msk.f32.gmra.mxu0 %vm118_vm0, %v406_v10 }
 0x1f1   :  { %v1598_v39 = vpop.f32.mrf.mxu2 }
 0x1f2   :  { %v1732_v56 = vadd.f32 %v1598_v39, %v1129_v61  ;;  %v2120_v4 = vpop.f32.mrf.mxu3  ;;  %v1131_v9 = vpop.f32.mrf.mxu1 }
 0x1f3   :  { %v14096_v45 = vadd.f32 %v2120_v4, %v14041_v46  ;;  %v1132_v13 = vadd.f32 %v1131_v9, %v727_v32  ;;  %v341_v9 = vld [vmem:[#allocation2 + $0x270] sm:$0xff] }
 0x1f5   :  { %18932 = vst [vmem:[#allocation22_spill] sm:$0xff] %v14096_v45  ;;  %v736_v34 = vpop.f32.mrf.mxu0  ;;  %11931 = vmatmul.msk.f32.gmra.mxu1 %vm118_vm0, %v339_v41  ;;  %v14201_v45 = vld [vmem:[#allocation2 + $0x79] sm:$0xff] }
 0x1f6   :  { %11997 = vmatmul.msk.f32.gmra.mxu2 %vm118_vm0, %v1279_v5  ;;  %v1281_v5 = vld [vmem:[#allocation2 + $0x272] sm:$0xff] }
 0x1f7   :  { %12059 = vmatmul.msk.f32.gmra.mxu3 %vm118_vm0, %v337_v30 }
 0x1f8   :  { %11869 = vmatmul.msk.f32.gmra.mxu0 %vm118_vm0, %v407_v22 }
 0x1f9   :  { %v1601_v26 = vpop.f32.mrf.mxu2 }
 0x1fa   :  { %v1733_v52 = vadd.f32 %v1601_v26, %v1132_v13  ;;  %v2123_v62 = vpop.f32.mrf.mxu3  ;;  %v1134_v29 = vpop.f32.mrf.mxu1  ;;  %v409_v13 = vld [vmem:[#allocation2 + $0x291] sm:$0xff] }
 0x1fb   :  { %v14103_v46 = vadd.f32 %v2123_v62, %v14054_v11  ;;  %v1135_v32 = vadd.f32 %v1134_v29, %v730_v20 }
 0x1fd   :  { %18933 = vst [vmem:[#allocation23_spill] sm:$0xff] %v14103_v46  ;;  %v739_v10 = vpop.f32.mrf.mxu0  ;;  %11932 = vmatmul.msk.f32.gmra.mxu1 %vm118_vm0, %v340_v49  ;;  %v14190_v46 = vld [vmem:[#allocation2 + $0x69] sm:$0xff] }
 0x1fe   :  { %11998 = vmatmul.msk.f32.gmra.mxu2 %vm118_vm0, %v1280_v8  ;;  %v342_v8 = vld [vmem:[#allocation2 + $0x278] sm:$0xff] }
 0x1ff   :  { %12060 = vmatmul.msk.f32.gmra.mxu3 %vm118_vm0, %v338_v25 }
 0x200   :  { %11870 = vmatmul.msk.f32.gmra.mxu0 %vm118_vm0, %v408_v59 }
 0x201   :  { %v1604_v30 = vpop.f32.mrf.mxu2 }
 0x202   :  { %v1734_v61 = vadd.f32 %v1604_v30, %v1135_v32  ;;  %v2126_v39 = vpop.f32.mrf.mxu3  ;;  %v1137_v4 = vpop.f32.mrf.mxu1  ;;  %v410_v30 = vld [vmem:[#allocation2 + $0x2a1] sm:$0xff] }
 0x203   :  { %v14110_v11 = vadd.f32 %v2126_v39, %v14071_v57  ;;  %v1138_v20 = vadd.f32 %v1137_v4, %v733_v27  ;;  %v1282_v57 = vld [vmem:[#allocation2 + $0x27a] sm:$0xff] }
 0x205   :  { %18934 = vst [vmem:[#allocation24_spill] sm:$0xff] %v14110_v11  ;;  %v742_v22 = vpop.f32.mrf.mxu0  ;;  %11933 = vmatmul.msk.f32.gmra.mxu1 %vm118_vm0, %v341_v9  ;;  %v14179_v11 = vld [vmem:[#allocation2 + $0x61] sm:$0xff] }
 0x206   :  { %11999 = vmatmul.msk.f32.gmra.mxu2 %vm118_vm0, %v1281_v5 }
 0x207   :  { %12061 = vmatmul.msk.f32.gmra.mxu3 %vm118_vm0, %v339_v41 }
 0x208   :  { %11871 = vmatmul.msk.f32.gmra.mxu0 %vm118_vm0, %v409_v13  ;;  %v343_v13 = vld [vmem:[#allocation2 + $0x288] sm:$0xff] }
 0x209   :  { %v1607_v25 = vpop.f32.mrf.mxu2 }
 0x20a   :  { %v1735_v26 = vadd.f32 %v1607_v25, %v1138_v20  ;;  %v2129_v62 = vpop.f32.mrf.mxu3  ;;  %v1140_v29 = vpop.f32.mrf.mxu1 }
 0x20b   :  { %v14116_v59 = vadd.f32 %v2129_v62, %v1731_v47  ;;  %v1141_v41 = vadd.f32 %v1140_v29, %v736_v34  ;;  %v1283_v47 = vld [vmem:[#allocation2 + $0x28a] sm:$0xff] }
 0x20c   :  { %v411_v62 = vld [vmem:[#allocation2 + $0x2a9] sm:$0xff] }
 0x20d   :  { %18935 = vst [vmem:[#allocation25_spill] sm:$0xff] %v14116_v59  ;;  %v745_v32 = vpop.f32.mrf.mxu0  ;;  %11934 = vmatmul.msk.f32.gmra.mxu1 %vm118_vm0, %v342_v8  ;;  %v14170_v59 = vld [vmem:[#allocation2 + $0x51] sm:$0xff] }
 0x20e   :  { %12000 = vmatmul.msk.f32.gmra.mxu2 %vm118_vm0, %v1282_v57 }
 0x20f   :  { %12062 = vmatmul.msk.f32.gmra.mxu3 %vm118_vm0, %v340_v49 }
 0x210   :  { %11872 = vmatmul.msk.f32.gmra.mxu0 %vm118_vm0, %v410_v30 }
 0x211   :  { %v1610_v27 = vpop.f32.mrf.mxu2 }
 0x212   :  { %v1736_v39 = vadd.f32 %v1610_v27, %v1141_v41  ;;  %v2132_v4 = vpop.f32.mrf.mxu3  ;;  %v1143_v5 = vpop.f32.mrf.mxu1  ;;  %v344_v41 = vld [vmem:[#allocation2 + $0x290] sm:$0xff] }
 0x213   :  { %v14122_v20 = vadd.f32 %v2132_v4, %v1732_v56  ;;  %v1144_v49 = vadd.f32 %v1143_v5, %v739_v10  ;;  %v1284_v56 = vld [vmem:[#allocation2 + $0x292] sm:$0xff] }
 0x215   :  { %18936 = vst [vmem:[#allocation26_spill] sm:$0xff] %v14122_v20  ;;  %v748_v25 = vpop.f32.mrf.mxu0  ;;  %11935 = vmatmul.msk.f32.gmra.mxu1 %vm118_vm0, %v343_v13  ;;  %v14161_v20 = vld [vmem:[#allocation2 + $0x49] sm:$0xff] }
 0x216   :  { %12001 = vmatmul.msk.f32.gmra.mxu2 %vm118_vm0, %v1283_v47 }
 0x217   :  { %12063 = vmatmul.msk.f32.gmra.mxu3 %vm118_vm0, %v341_v9 }
 0x218   :  { %11873 = vmatmul.msk.f32.gmra.mxu0 %vm118_vm0, %v411_v62 }
 0x219   :  { %v1613_v34 = vpop.f32.mrf.mxu2 }
 0x21a   :  { %v1737_v29 = vadd.f32 %v1613_v34, %v1144_v49  ;;  %v2135_v57 = vpop.f32.mrf.mxu3  ;;  %v1146_v30 = vpop.f32.mrf.mxu1  ;;  %v345_v49 = vld [vmem:[#allocation2 + $0x2a0] sm:$0xff] }
 0x21b   :  { %v14128_v27 = vadd.f32 %v2135_v57, %v1733_v52  ;;  %v1147_v9 = vadd.f32 %v1146_v30, %v742_v22  ;;  %v1285_v52 = vld [vmem:[#allocation2 + $0x2a2] sm:$0xff] }
 0x21d   :  { %18937 = vst [vmem:[#allocation27_spill] sm:$0xff] %v14128_v27  ;;  %v751_v4 = vpop.f32.mrf.mxu0  ;;  %11936 = vmatmul.msk.f32.gmra.mxu1 %vm118_vm0, %v344_v41  ;;  %v2302_v27 = vld [vmem:[#allocation2 + $0x21] sm:$0xff] }
 0x21e   :  { %12002 = vmatmul.msk.f32.gmra.mxu2 %vm118_vm0, %v1284_v56 }
 0x21f   :  { %12064 = vmatmul.msk.f32.gmra.mxu3 %vm118_vm0, %v342_v8 }
 0x220   :  { %12083 = vmatmul.msk.f32.vlgmr.msrb.gmra.mxu0 %vm118_vm0, %v2301_v0 }
 0x221   :  { %v1616_v10 = vpop.f32.mrf.mxu2 }
 0x222   :  { %v1738_v5 = vadd.f32 %v1616_v10, %v1147_v9  ;;  %v2138_v47 = vpop.f32.mrf.mxu3  ;;  %v1149_v62 = vpop.f32.mrf.mxu1  ;;  %v346_v9 = vld [vmem:[#allocation2 + $0x2a8] sm:$0xff] }
 0x223   :  { %v14134_v34 = vadd.f32 %v2138_v47, %v1734_v61  ;;  %v1150_v8 = vadd.f32 %v1149_v62, %v745_v32  ;;  %v1286_v61 = vld [vmem:[#allocation2 + $0x2aa] sm:$0xff] }
 0x225   :  { %18938 = vst [vmem:[#allocation28_spill] sm:$0xff] %v14134_v34  ;;  %v754_v57 = vpop.f32.mrf.mxu0  ;;  %11937 = vmatmul.msk.f32.gmra.mxu1 %vm118_vm0, %v345_v49  ;;  %v14143_v34 = vld [vmem:[#allocation2 + $0x31] sm:$0xff] }
 0x226   :  { %12003 = vmatmul.msk.f32.gmra.mxu2 %vm118_vm0, %v1285_v52 }
 0x227   :  { %12065 = vmatmul.msk.f32.gmra.mxu3 %vm118_vm0, %v343_v13 }
 0x228   :  { %12084 = vmatmul.msk.f32.gmra.mxu0 %vm118_vm0, %v2302_v27 }
 0x229   :  { %v1619_v0 = vpop.f32.mrf.mxu2 }
 0x22a   :  { %v1739_v22 = vadd.f32 %v1619_v0, %v1150_v8  ;;  %v2141_v30 = vpop.f32.mrf.mxu3  ;;  %v1152_v56 = vpop.f32.mrf.mxu1  ;;  %v1287_v0 = vld [vmem:[#allocation2 + $0x2ba] sm:$0xff] }
 0x22b   :  { %v14140_v10 = vadd.f32 %v2141_v30, %v1735_v26  ;;  %v1153_v32 = vadd.f32 %v1152_v56, %v748_v25  ;;  %v347_v26 = vld [vmem:[#allocation2 + $0x2b8] sm:$0xff] }
 0x22d   :  { %18939 = vst [vmem:[#allocation29_spill] sm:$0xff] %v14140_v10  ;;  %v757_v47 = vpop.f32.mrf.mxu0  ;;  %11938 = vmatmul.msk.f32.gmra.mxu1 %vm118_vm0, %v346_v9  ;;  %v14152_v10 = vld [vmem:[#allocation2 + $0x39] sm:$0xff] }
 0x22e   :  { %12004 = vmatmul.msk.f32.gmra.mxu2 %vm118_vm0, %v1286_v61 }
 0x22f   :  { %12066 = vmatmul.msk.f32.gmra.mxu3 %vm118_vm0, %v344_v41 }
 0x230   :  { %12085 = vmatmul.msk.f32.gmra.mxu0 %vm118_vm0, %v14143_v34 }
 0x231   :  { %v1622_v13 = vpop.f32.mrf.mxu2 }
 0x232   :  { %v1740_v27 = vadd.f32 %v1622_v13, %v1153_v32  ;;  %v2144_v62 = vpop.f32.mrf.mxu3  ;;  %v1155_v52 = vpop.f32.mrf.mxu1 }
 0x233   :  { %v14149_v8 = vadd.f32 %v2144_v62, %v1736_v39  ;;  %v1156_v25 = vadd.f32 %v1155_v52, %v751_v4  ;;  %v348_v39 = vld [vmem:[#allocation2 + $0x2c0] sm:$0xff] }
 0x234   :  { %v1288_v62 = vld [vmem:[#allocation2 + $0x2c2] sm:$0xff] }
 0x235   :  { %18940 = vst [vmem:[#allocation30_spill] sm:$0xff] %v14149_v8  ;;  %v760_v30 = vpop.f32.mrf.mxu0  ;;  %11939 = vmatmul.msk.f32.gmra.mxu1 %vm118_vm0, %v347_v26 }
 0x236   :  { %12005 = vmatmul.msk.f32.gmra.mxu2 %vm118_vm0, %v1287_v0 }
 0x237   :  { %12067 = vmatmul.msk.f32.gmra.mxu3 %vm118_vm0, %v345_v49 }
 0x238   :  { %12086 = vmatmul.msk.f32.gmra.mxu0 %vm118_vm0, %v14152_v10 }
 0x239   :  { %v1625_v41 = vpop.f32.mrf.mxu2 }
 0x23a   :  { %v1741_v56 = vadd.f32 %v1625_v41, %v1156_v25  ;;  %v2147_v61 = vpop.f32.mrf.mxu3  ;;  %v1158_v32 = vpop.f32.mrf.mxu1 }
 0x23b   :  { %v14158_v13 = vadd.f32 %v2147_v61, %v1737_v29  ;;  %v1159_v4 = vadd.f32 %v1158_v32, %v754_v57  ;;  %v349_v29 = vld [vmem:[#allocation2 + $0x2d0] sm:$0xff] }
 0x23c   :  { %v1289_v61 = vld [vmem:[#allocation2 + $0x2d2] sm:$0xff] }
 0x23d   :  { %18941 = vst [vmem:[#allocation31_spill] sm:$0xff] %v14158_v13  ;;  %v763_v8 = vpop.f32.mrf.mxu0  ;;  %11940 = vmatmul.msk.f32.gmra.mxu1 %vm118_vm0, %v348_v39 }
 0x23e   :  { %12006 = vmatmul.msk.f32.gmra.mxu2 %vm118_vm0, %v1288_v62 }
 0x23f   :  { %12068 = vmatmul.msk.f32.gmra.mxu3 %vm118_vm0, %v346_v9 }
 0x240   :  { %12087 = vmatmul.msk.f32.gmra.mxu0 %vm118_vm0, %v14161_v20 }
 0x241   :  { %v1628_v49 = vpop.f32.mrf.mxu2 }
 0x242   :  { %v1742_v52 = vadd.f32 %v1628_v49, %v1159_v4  ;;  %v2150_v0 = vpop.f32.mrf.mxu3  ;;  %v1161_v25 = vpop.f32.mrf.mxu1 }
 0x243   :  { %v14167_v41 = vadd.f32 %v2150_v0, %v1738_v5  ;;  %v1162_v57 = vadd.f32 %v1161_v25, %v757_v47  ;;  %v350_v5 = vld [vmem:[#allocation2 + $0x2d8] sm:$0xff] }
 0x244   :  { %v1290_v0 = vld [vmem:[#allocation2 + $0x2da] sm:$0xff] }
 0x245   :  { %18942 = vst [vmem:[#allocation32_spill] sm:$0xff] %v14167_v41  ;;  %v766_v13 = vpop.f32.mrf.mxu0  ;;  %11941 = vmatmul.msk.f32.gmra.mxu1 %vm118_vm0, %v349_v29 }
 0x246   :  { %12007 = vmatmul.msk.f32.gmra.mxu2 %vm118_vm0, %v1289_v61 }
 0x247   :  { %12069 = vmatmul.msk.f32.gmra.mxu3 %vm118_vm0, %v347_v26 }
 0x248   :  { %12088 = vmatmul.msk.f32.gmra.mxu0 %vm118_vm0, %v14170_v59 }
 0x249   :  { %v1631_v9 = vpop.f32.mrf.mxu2 }
 0x24a   :  { %v1743_v32 = vadd.f32 %v1631_v9, %v1162_v57  ;;  %v2153_v62 = vpop.f32.mrf.mxu3  ;;  %v1164_v4 = vpop.f32.mrf.mxu1  ;;  %v351_v57 = vld [vmem:[#allocation2 + $0x2e8] sm:$0xff] }
 0x24b   :  { %v14176_v49 = vadd.f32 %v2153_v62, %v1739_v22  ;;  %v1165_v47 = vadd.f32 %v1164_v4, %v760_v30  ;;  %v1291_v62 = vld [vmem:[#allocation2 + $0x2ea] sm:$0xff] }
 0x24d   :  { %18943 = vst [vmem:[#allocation33_spill] sm:$0xff] %v14176_v49  ;;  %v769_v41 = vpop.f32.mrf.mxu0  ;;  %11942 = vmatmul.msk.f32.gmra.mxu1 %vm118_vm0, %v350_v5 }
 0x24e   :  { %12008 = vmatmul.msk.f32.gmra.mxu2 %vm118_vm0, %v1290_v0 }
 0x24f   :  { %12070 = vmatmul.msk.f32.gmra.mxu3 %vm118_vm0, %v348_v39 }
 0x250   :  { %12089 = vmatmul.msk.f32.gmra.mxu0 %vm118_vm0, %v14179_v11 }
 0x251   :  { %v1634_v26 = vpop.f32.mrf.mxu2 }
 0x252   :  { %v14185_v25 = vadd.f32 %v1634_v26, %v1165_v47  ;;  %v2156_v61 = vpop.f32.mrf.mxu3  ;;  %v1167_v22 = vpop.f32.mrf.mxu1  ;;  %v352_v47 = vld [vmem:[#allocation2 + $0x2f0] sm:$0xff] }
 0x253   :  { %v14187_v9 = vadd.f32 %v2156_v61, %v1740_v27  ;;  %v1168_v30 = vadd.f32 %v1167_v22, %v763_v8  ;;  %v1292_v61 = vld [vmem:[#allocation2 + $0x2f2] sm:$0xff] }
 0x255   :  { %18944 = vst [vmem:[#allocation34_spill] sm:$0xff] %v14187_v9  ;;  %v772_v49 = vpop.f32.mrf.mxu0  ;;  %11943 = vmatmul.msk.f32.gmra.mxu1 %vm118_vm0, %v351_v57 }
 0x256   :  { %12009 = vmatmul.msk.f32.gmra.mxu2 %vm118_vm0, %v1291_v62 }
 0x257   :  { %12071 = vmatmul.msk.f32.gmra.mxu3 %vm118_vm0, %v349_v29 }
 0x258   :  { %12090 = vmatmul.msk.f32.gmra.mxu0 %vm118_vm0, %v14190_v46 }
 0x259   :  { %v1637_v39 = vpop.f32.mrf.mxu2 }
 0x25a   :  { %v14196_v4 = vadd.f32 %v1637_v39, %v1168_v30  ;;  %v2159_v0 = vpop.f32.mrf.mxu3  ;;  %v1170_v27 = vpop.f32.mrf.mxu1  ;;  %v353_v30 = vld [vmem:[#allocation2 + $0x300] sm:$0xff] }
 0x25b   :  { %v14198_v26 = vadd.f32 %v2159_v0, %v1741_v56  ;;  %v1171_v8 = vadd.f32 %v1170_v27, %v766_v13  ;;  %v1293_v0 = vld [vmem:[#allocation2 + $0x302] sm:$0xff]  ;;  %v12213_v13 = vld [vmem:[%s18904_s1 + $0x18] sm:$0x7] }
 0x25c   :  { %12214 = vmatpush.msk.msra.mxu2 %vm616_vm1, %v12213_v13 }
 0x25d   :  { %18945 = vst [vmem:[#allocation35_spill] sm:$0xff] %v14198_v26  ;;  %v775_v9 = vpop.f32.mrf.mxu0  ;;  %11944 = vmatmul.msk.f32.gmra.mxu1 %vm118_vm0, %v352_v47 }
 0x25e   :  { %12010 = vmatmul.msk.f32.gmra.mxu2 %vm118_vm0, %v1292_v61 }
 0x25f   :  { %12072 = vmatmul.msk.f32.gmra.mxu3 %vm118_vm0, %v350_v5 }
 0x260   :  { %12091 = vmatmul.msk.f32.gmra.mxu0 %vm118_vm0, %v14201_v45 }
 0x261   :  { %v1640_v29 = vpop.f32.mrf.mxu2 }
 0x262   :  { %v14207_v22 = vadd.f32 %v1640_v29, %v1171_v8  ;;  %v2162_v62 = vpop.f32.mrf.mxu3  ;;  %v1173_v56 = vpop.f32.mrf.mxu1  ;;  %v354_v29 = vld [vmem:[#allocation2 + $0x308] sm:$0xff] }
 0x263   :  { %v14209_v39 = vadd.f32 %v2162_v62, %v1742_v52  ;;  %v1174_v5 = vadd.f32 %v1173_v56, %v769_v41  ;;  %v116_v41 = vld [vmem:[%s18903_s0 + $0x1f0] sm:$0xff] }
 0x264   :  { %291 = vst.msk [vmem:[#allocation2 + $0x331] sm:$0xff] %vm118_vm0, %v116_v41 }
 0x265   :  { %18946 = vst [vmem:[#allocation36_spill] sm:$0xff] %v14209_v39  ;;  %v778_v26 = vpop.f32.mrf.mxu0  ;;  %11945 = vmatmul.msk.f32.gmra.mxu1 %vm118_vm0, %v353_v30  ;;  %v1294_v39 = vld [vmem:[#allocation2 + $0x30a] sm:$0xff] }
 0x266   :  { %12011 = vmatmul.msk.f32.gmra.mxu2 %vm118_vm0, %v1293_v0  ;;  %v14227_v0 = vld [vmem:[#allocation2 + $0x91] sm:$0xff] }
 0x267   :  { %12073 = vmatmul.msk.f32.gmra.mxu3 %vm118_vm0, %v351_v57 }
 0x268   :  { %12092 = vmatmul.msk.f32.gmra.mxu0 %vm118_vm0, %v14212_v48 }
 0x269   :  { %v1643_v52 = vpop.f32.mrf.mxu2 }
 0x26a   :  { %v14222_v27 = vadd.f32 %v1643_v52, %v1174_v5  ;;  %v2165_v61 = vpop.f32.mrf.mxu3  ;;  %v1176_v8 = vpop.f32.mrf.mxu1  ;;  %v355_v52 = vld [vmem:[#allocation2 + $0x318] sm:$0xff] }
 0x26b   :  { %v14224_v62 = vadd.f32 %v2165_v61, %v1743_v32  ;;  %v1177_v57 = vadd.f32 %v1176_v8, %v772_v49  ;;  %v1295_v61 = vld [vmem:[#allocation2 + $0x31a] sm:$0xff] }
 0x26c   :  { %v117_v49 = vld [vmem:[%s18903_s0 + $0x1f8] sm:$0xff] }
 0x26d   :  { %18947 = vst [vmem:[#allocation37_spill] sm:$0xff] %v14224_v62  ;;  %v781_v21 = vpop.f32.mrf.mxu0  ;;  %11946 = vmatmul.msk.f32.gmra.mxu1 %vm118_vm0, %v354_v29 }
 0x26e   :  { %12012 = vmatmul.msk.f32.gmra.mxu2 %vm118_vm0, %v1294_v39  ;;  %292 = vst.msk [vmem:[#allocation2 + $0x339] sm:$0xff] %vm118_vm0, %v117_v49 }
 0x26f   :  { %12074 = vmatmul.msk.f32.gmra.mxu3 %vm118_vm0, %v352_v47  ;;  %v14243_v47 = vld [vmem:[#allocation2 + $0x99] sm:$0xff] }
 0x270   :  { %12093 = vmatmul.msk.f32.gmra.mxu0 %vm118_vm0, %v14227_v0 }
 0x271   :  { %v1646_v32 = vpop.f32.mrf.mxu2 }
 0x272   :  { %v14237_v56 = vadd.f32 %v1646_v32, %v1177_v57  ;;  %v2168_v13 = vpop.f32.mrf.mxu3  ;;  %v1179_v5 = vpop.f32.mrf.mxu1 }
 0x273   :  { %v14240_v39 = vadd.f32 %v2168_v13, %v14185_v25  ;;  %v1180_v8 = vadd.f32 %v1179_v5, %v775_v9  ;;  %v356_v13 = vld [vmem:[#allocation2 + $0x320] sm:$0xff] }
 0x275   :  { %18948 = vst [vmem:[#allocation38_spill] sm:$0xff] %v14240_v39  ;;  %v784_v62 = vpop.f32.mrf.mxu0  ;;  %11947 = vmatmul.msk.f32.gmra.mxu1 %vm118_vm0, %v355_v52 }
 0x276   :  { %12013 = vmatmul.msk.f32.gmra.mxu2 %vm118_vm0, %v1295_v61 }
 0x277   :  { %12075 = vmatmul.msk.f32.gmra.mxu3 %vm118_vm0, %v353_v30  ;;  %v1296_v30 = vld [vmem:[#allocation2 + $0x322] sm:$0xff] }
 0x278   :  { %12094 = vmatmul.msk.f32.gmra.mxu0 %vm118_vm0, %v14243_v47 }
 0x279   :  { %v1649_v25 = vpop.f32.mrf.mxu2 }
 0x27a   :  { %v14253_v41 = vadd.f32 %v1649_v25, %v1180_v8  ;;  %v2171_v57 = vpop.f32.mrf.mxu3  ;;  %v1182_v32 = vpop.f32.mrf.mxu1  ;;  %v2835_v25 = vld [vmem:[#allocation2 + $0x1a] sm:$0xff] }
 0x27b   :  { %v14256_v61 = vadd.f32 %v2171_v57, %v14196_v4  ;;  %v1183_v9 = vadd.f32 %v1182_v32, %v778_v26  ;;  %v12279_v26 = vld [vmem:[%s18904_s1 + $0x1c] sm:$0x7] }
 0x27c   :  { %12280 = vmatpush.msk.msra.mxu3 %vm616_vm1, %v12279_v26 }
 0x27d   :  { %18949 = vst [vmem:[#allocation39_spill] sm:$0xff] %v14256_v61  ;;  %v787_v39 = vpop.f32.mrf.mxu0  ;;  %11948 = vmatmul.msk.f32.gmra.mxu1 %vm118_vm0, %v356_v13  ;;  %v3370_v61 = vld [vmem:[#allocation2 + $0x30] sm:$0xff] }
 0x27e   :  { %12014 = vmatmul.msk.f32.gmra.mxu2 %vm118_vm0, %v1296_v30  ;;  %v14271_v30 = vld [vmem:[#allocation2 + $0xb1] sm:$0xff] }
 0x27f   :  { %12076 = vmatmul.msk.f32.gmra.mxu3 %vm118_vm0, %v354_v29 }
 0x280   :  { %12095 = vmatmul.msk.f32.gmra.mxu0 %vm118_vm0, %v14259_v14 }
 0x281   :  { %v1652_v5 = vpop.f32.mrf.mxu2 }
 0x282   :  { %v14265_v49 = vadd.f32 %v1652_v5, %v1183_v9  ;;  %v2174_v8 = vpop.f32.mrf.mxu3  ;;  %v1185_v4 = vpop.f32.mrf.mxu1 }
 0x283   :  { %v14268_v57 = vadd.f32 %v2174_v8, %v14207_v22  ;;  %v1186_v29 = vadd.f32 %v1185_v4, %v781_v21  ;;  %v2836_v8 = vld [vmem:[#allocation2 + $0x22] sm:$0xff] }
 0x285   :  { %18950 = vst [vmem:[#allocation40_spill] sm:$0xff] %v14268_v57  ;;  %v790_v2 = vpop.f32.mrf.mxu0  ;;  %12149 = vmatmul.msk.f32.vlgmr.msra.gmra.mxu1 %vm118_vm0, %v2835_v25  ;;  %v3371_v57 = vld [vmem:[#allocation2 + $0x38] sm:$0xff] }
 0x286   :  { %12215 = vmatmul.msk.f32.vlgmr.msra.gmra.mxu2 %vm118_vm0, %v3370_v61  ;;  %v14285_v61 = vld [vmem:[#allocation2 + $0xc1] sm:$0xff] }
 0x287   :  { %12077 = vmatmul.msk.f32.gmra.mxu3 %vm118_vm0, %v355_v52 }
 0x288   :  { %12096 = vmatmul.msk.f32.gmra.mxu0 %vm118_vm0, %v14271_v30 }
 0x289   :  { %v1655_v22 = vpop.f32.mrf.mxu2 }
 0x28a   :  { %v1751_v32 = vadd.f32 %v1655_v22, %v1186_v29  ;;  %v2177_v9 = vpop.f32.mrf.mxu3  ;;  %v1188_v5 = vpop.f32.mrf.mxu1 }
 0x28b   :  { %v14282_v25 = vadd.f32 %v2177_v9, %v14222_v27  ;;  %v1189_v21 = vadd.f32 %v1188_v5, %v784_v62  ;;  %v2837_v27 = vld [vmem:[#allocation2 + $0x32] sm:$0xff]  ;;  %v3372_v9 = vld [vmem:[#allocation2 + $0x48] sm:$0xff] }
 0x28d   :  { %18951 = vst [vmem:[#allocation41_spill] sm:$0xff] %v14282_v25  ;;  %v793_v1 = vpop.f32.mrf.mxu0  ;;  %12150 = vmatmul.msk.f32.gmra.mxu1 %vm118_vm0, %v2836_v8  ;;  %v1829_v8 = vld [vmem:[#allocation2 + $0x330] sm:$0xff] }
 0x28e   :  { %12216 = vmatmul.msk.f32.gmra.mxu2 %vm118_vm0, %v3371_v57  ;;  %v14295_v57 = vld [vmem:[#allocation2 + $0xc9] sm:$0xff] }
 0x28f   :  { %12078 = vmatmul.msk.f32.gmra.mxu3 %vm118_vm0, %v356_v13 }
 0x290   :  { %12097 = vmatmul.msk.f32.gmra.mxu0 %vm118_vm0, %v14285_v61 }
 0x291   :  { %v1658_v52 = vpop.f32.mrf.mxu2 }
 0x292   :  { %v1752_v4 = vadd.f32 %v1658_v52, %v1189_v21  ;;  %v2180_v26 = vpop.f32.mrf.mxu3  ;;  %v1191_v29 = vpop.f32.mrf.mxu1  ;;  %v2838_v52 = vld [vmem:[#allocation2 + $0x3a] sm:$0xff] }
 0x293   :  { %v14292_v22 = vadd.f32 %v2180_v26, %v14237_v56  ;;  %v1192_v62 = vadd.f32 %v1191_v29, %v787_v39 }
 0x295   :  { %18952 = vst [vmem:[#allocation42_spill] sm:$0xff] %v14292_v22  ;;  %v796_v25 = vpop.f32.mrf.mxu0  ;;  %12151 = vmatmul.msk.f32.gmra.mxu1 %vm118_vm0, %v2837_v27  ;;  %v3373_v22 = vld [vmem:[#allocation2 + $0x50] sm:$0xff]  ;;  %v1830_v27 = vld [vmem:[#allocation2 + $0x338] sm:$0xff] }
 0x296   :  { %12217 = vmatmul.msk.f32.gmra.mxu2 %vm118_vm0, %v3372_v9  ;;  %v14307_v9 = vld [vmem:[#allocation2 + $0xd9] sm:$0xff] }
 0x297   :  { %12079 = vmatmul.msk.f32.gmra.mxu3 %vm118_vm0, %v1829_v8 }
 0x298   :  { %12098 = vmatmul.msk.f32.gmra.mxu0 %vm118_vm0, %v14295_v57 }
 0x299   :  { %v1661_v13 = vpop.f32.mrf.mxu2 }
 0x29a   :  { %v1753_v5 = vadd.f32 %v1661_v13, %v1192_v62  ;;  %v2183_v21 = vpop.f32.mrf.mxu3  ;;  %v1194_v56 = vpop.f32.mrf.mxu1  ;;  %v2839_v13 = vld [vmem:[#allocation2 + $0x4a] sm:$0xff] }
 0x29b   :  { %v14302_v26 = vadd.f32 %v2183_v21, %v14253_v41  ;;  %v1195_v39 = vadd.f32 %v1194_v56, %v790_v2 }
 0x29d   :  { %18953 = vst [vmem:[#allocation43_spill] sm:$0xff] %v14302_v26  ;;  %v14304_v44 = vpop.f32.mrf.mxu0  ;;  %12152 = vmatmul.msk.f32.gmra.mxu1 %vm118_vm0, %v2838_v52  ;;  %v3374_v26 = vld [vmem:[#allocation2 + $0x60] sm:$0xff] }
 0x29e   :  { %12218 = vmatmul.msk.f32.gmra.mxu2 %vm118_vm0, %v3373_v22  ;;  %v14319_v22 = vld [vmem:[#allocation2 + $0xe1] sm:$0xff] }
 0x29f   :  { %12080 = vmatmul.msk.f32.gmra.mxu3 %vm118_vm0, %v1830_v27 }
 0x2a0   :  { %12099 = vmatmul.msk.f32.gmra.mxu0 %vm118_vm0, %v14307_v9 }
 0x2a1   :  { %v1664_v29 = vpop.f32.mrf.mxu2 }
 0x2a2   :  { %v1754_v8 = vadd.f32 %v1664_v29, %v1195_v39  ;;  %v2186_v41 = vpop.f32.mrf.mxu3  ;;  %v1197_v62 = vpop.f32.mrf.mxu1  ;;  %v2840_v29 = vld [vmem:[#allocation2 + $0x52] sm:$0xff] }
 0x2a3   :  { %v14314_v21 = vadd.f32 %v2186_v41, %v14265_v49  ;;  %v1198_v2 = vadd.f32 %v1197_v62, %v793_v1 }
 0x2a5   :  { %18954 = vst [vmem:[#allocation44_spill] sm:$0xff] %v14314_v21  ;;  %v14316_v52 = vpop.f32.mrf.mxu0  ;;  %12153 = vmatmul.msk.f32.gmra.mxu1 %vm118_vm0, %v2839_v13  ;;  %v3375_v21 = vld [vmem:[#allocation2 + $0x68] sm:$0xff] }
 0x2a6   :  { %12219 = vmatmul.msk.f32.gmra.mxu2 %vm118_vm0, %v3374_v26  ;;  %v14331_v26 = vld [vmem:[#allocation2 + $0xf1] sm:$0xff] }
 0x2a7   :  { %12281 = vmatmul.msk.f32.vlgmr.msra.gmra.mxu3 %vm118_vm0, %v14143_v34 }
 0x2a8   :  { %12100 = vmatmul.msk.f32.gmra.mxu0 %vm118_vm0, %v14319_v22 }
 0x2a9   :  { %v1667_v56 = vpop.f32.mrf.mxu2 }
 0x2aa   :  { %v1755_v27 = vadd.f32 %v1667_v56, %v1198_v2  ;;  %v2189_v49 = vpop.f32.mrf.mxu3  ;;  %v1200_v39 = vpop.f32.mrf.mxu1  ;;  %v2841_v56 = vld [vmem:[#allocation2 + $0x62] sm:$0xff] }
 0x2ab   :  { %v14326_v41 = vadd.f32 %v2189_v49, %v1751_v32  ;;  %v1201_v1 = vadd.f32 %v1200_v39, %v796_v25 }
 0x2ad   :  { %18955 = vst [vmem:[#allocation45_spill] sm:$0xff] %v14326_v41  ;;  %v14328_v13 = vpop.f32.mrf.mxu0  ;;  %12154 = vmatmul.msk.f32.gmra.mxu1 %vm118_vm0, %v2840_v29  ;;  %v3376_v41 = vld [vmem:[#allocation2 + $0x78] sm:$0xff] }
 0x2ae   :  { %12220 = vmatmul.msk.f32.gmra.mxu2 %vm118_vm0, %v3375_v21  ;;  %v14343_v21 = vld [vmem:[#allocation2 + $0xf9] sm:$0xff] }
 0x2af   :  { %12282 = vmatmul.msk.f32.gmra.mxu3 %vm118_vm0, %v14152_v10 }
 0x2b0   :  { %12101 = vmatmul.msk.f32.gmra.mxu0 %vm118_vm0, %v14331_v26 }
 0x2b1   :  { %v1670_v34 = vpop.f32.mrf.mxu2 }
 0x2b2   :  { %v1756_v62 = vadd.f32 %v1670_v34, %v1201_v1  ;;  %v2192_v32 = vpop.f32.mrf.mxu3  ;;  %v1203_v2 = vpop.f32.mrf.mxu1  ;;  %v3377_v34 = vld [vmem:[#allocation2 + $0x80] sm:$0xff] }
 0x2b3   :  { %v14338_v49 = vadd.f32 %v2192_v32, %v1752_v4  ;;  %v2842_v4 = vld [vmem:[#allocation2 + $0x6a] sm:$0xff] }
 0x2b5   :  { %18956 = vst [vmem:[#allocation46_spill] sm:$0xff] %v14338_v49  ;;  %v14340_v29 = vpop.f32.mrf.mxu0  ;;  %12155 = vmatmul.msk.f32.gmra.mxu1 %vm118_vm0, %v2841_v56  ;;  %v14355_v56 = vld [vmem:[#allocation2 + $0x109] sm:$0xff] }
 0x2b6   :  { %12221 = vmatmul.msk.f32.gmra.mxu2 %vm118_vm0, %v3376_v41 }
 0x2b7   :  { %12283 = vmatmul.msk.f32.gmra.mxu3 %vm118_vm0, %v14161_v20 }
 0x2b8   :  { %12102 = vmatmul.msk.f32.gmra.mxu0 %vm118_vm0, %v14343_v21 }
 0x2b9   :  { %v1673_v10 = vpop.f32.mrf.mxu2 }
 0x2ba   :  { %v2195_v25 = vpop.f32.mrf.mxu3  ;;  %v1206_v39 = vpop.f32.mrf.mxu1 }
 0x2bb   :  { %v14350_v1 = vadd.f32 %v2195_v25, %v1753_v5  ;;  %v2843_v5 = vld [vmem:[#allocation2 + $0x7a] sm:$0xff] }
 0x2bd   :  { %18957 = vst [vmem:[#allocation47_spill] sm:$0xff] %v14350_v1  ;;  %v14352_v32 = vpop.f32.mrf.mxu0  ;;  %12156 = vmatmul.msk.f32.gmra.mxu1 %vm118_vm0, %v2842_v4  ;;  %v3378_v1 = vld [vmem:[#allocation2 + $0x90] sm:$0xff] }
 0x2be   :  { %12222 = vmatmul.msk.f32.gmra.mxu2 %vm118_vm0, %v3377_v34  ;;  %v14367_v4 = vld [vmem:[#allocation2 + $0x111] sm:$0xff] }
 0x2bf   :  { %12284 = vmatmul.msk.f32.gmra.mxu3 %vm118_vm0, %v14170_v59 }
 0x2c0   :  { %12103 = vmatmul.msk.f32.gmra.mxu0 %vm118_vm0, %v14355_v56 }
 0x2c1   :  { %v1676_v20 = vpop.f32.mrf.mxu2 }
 0x2c2   :  { %v2198_v41 = vpop.f32.mrf.mxu3  ;;  %v1209_v49 = vpop.f32.mrf.mxu1 }
 0x2c3   :  { %v14362_v25 = vadd.f32 %v2198_v41, %v1754_v8  ;;  %v2844_v8 = vld [vmem:[#allocation2 + $0x82] sm:$0xff] }
 0x2c5   :  { %18958 = vst [vmem:[#allocation48_spill] sm:$0xff] %v14362_v25  ;;  %v14364_v19 = vpop.f32.mrf.mxu0  ;;  %12157 = vmatmul.msk.f32.gmra.mxu1 %vm118_vm0, %v2843_v5  ;;  %v3379_v25 = vld [vmem:[#allocation2 + $0x98] sm:$0xff]  ;;  %v14379_v5 = vld [vmem:[#allocation2 + $0x121] sm:$0xff] }
 0x2c6   :  { %12223 = vmatmul.msk.f32.gmra.mxu2 %vm118_vm0, %v3378_v1 }
 0x2c7   :  { %12285 = vmatmul.msk.f32.gmra.mxu3 %vm118_vm0, %v14179_v11 }
 0x2c8   :  { %12104 = vmatmul.msk.f32.gmra.mxu0 %vm118_vm0, %v14367_v4 }
 0x2c9   :  { %v1679_v59 = vpop.f32.mrf.mxu2 }
 0x2ca   :  { %v2201_v34 = vpop.f32.mrf.mxu3  ;;  %v1212_v55 = vpop.f32.mrf.mxu1 }
 0x2cb   :  { %v14374_v41 = vadd.f32 %v2201_v34, %v1755_v27  ;;  %v2845_v27 = vld [vmem:[#allocation2 + $0x92] sm:$0xff] }
 0x2cd   :  { %18959 = vst [vmem:[#allocation49_spill] sm:$0xff] %v14374_v41  ;;  %v14376_v23 = vpop.f32.mrf.mxu0  ;;  %12158 = vmatmul.msk.f32.gmra.mxu1 %vm118_vm0, %v2844_v8  ;;  %v3380_v41 = vld [vmem:[#allocation2 + $0xa8] sm:$0xff] }
 0x2ce   :  { %12224 = vmatmul.msk.f32.gmra.mxu2 %vm118_vm0, %v3379_v25  ;;  %v14393_v8 = vld [vmem:[#allocation2 + $0x129] sm:$0xff] }
 0x2cf   :  { %12286 = vmatmul.msk.f32.gmra.mxu3 %vm118_vm0, %v14190_v46  ;;  %v1204_v46 = vadd.f32 %v1203_v2, %v13678_v28  ;;  %v14408_v28 = vld [vmem:[#allocation2 + $0x139] sm:$0xff] }
 0x2d0   :  { %12105 = vmatmul.msk.f32.gmra.mxu0 %vm118_vm0, %v14379_v5 }
 0x2d1   :  { %v1682_v11 = vpop.f32.mrf.mxu2  ;;  %v1757_v25 = vadd.f32 %v1673_v10, %v1204_v46 }
 0x2d2   :  { %v2204_v1 = vpop.f32.mrf.mxu3  ;;  %v14386_v15 = vpop.f32.mrf.mxu1 }
 0x2d3   :  { %v14388_v34 = vadd.f32 %v2204_v1, %v1756_v62 }
 0x2d5   :  { %18960 = vst [vmem:[#allocation50_spill] sm:$0xff] %v14388_v34  ;;  %v14390_v58 = vpop.f32.mrf.mxu0  ;;  %12159 = vmatmul.msk.f32.gmra.mxu1 %vm118_vm0, %v2845_v27  ;;  %v3381_v27 = vld [vmem:[#allocation2 + $0xb0] sm:$0xff] }
 0x2d6   :  { %12225 = vmatmul.msk.f32.gmra.mxu2 %vm118_vm0, %v3380_v41 }
 0x2d7   :  { %12287 = vmatmul.msk.f32.gmra.mxu3 %vm118_vm0, %v14201_v45  ;;  %v1207_v45 = vadd.f32 %v1206_v39, %v13693_v36  ;;  %v14423_v36 = vld [vmem:[#allocation2 + $0x141] sm:$0xff] }
 0x2d8   :  { %12106 = vmatmul.msk.f32.gmra.mxu0 %vm118_vm0, %v14393_v8 }
 0x2d9   :  { %v1685_v62 = vpop.f32.mrf.mxu2  ;;  %v1758_v2 = vadd.f32 %v1676_v20, %v1207_v45 }
 0x2da   :  { %v2207_v1 = vpop.f32.mrf.mxu3  ;;  %v14401_v34 = vpop.f32.mrf.mxu1 }
 0x2db   :  { %v14403_v24 = vadd.f32 %v2207_v1, %v1757_v25  ;;  %v2847_v25 = vld [vmem:[#allocation2 + $0xaa] sm:$0xff] }
 0x2dd   :  { %18961 = vst [vmem:[#allocation51_spill] sm:$0xff] %v14403_v24  ;;  %v14405_v6 = vpop.f32.mrf.mxu0  ;;  %12160 = vmatmul.msk.f32.gmra.mxu1 %vm118_vm0, %v2846_v40  ;;  %v3382_v40 = vld [vmem:[#allocation2 + $0xc0] sm:$0xff] }
 0x2de   :  { %12226 = vmatmul.msk.f32.gmra.mxu2 %vm118_vm0, %v3381_v27 }
 0x2df   :  { %12288 = vmatmul.msk.f32.gmra.mxu3 %vm118_vm0, %v14212_v48  ;;  %v1210_v48 = vadd.f32 %v1209_v49, %v13684_v33  ;;  %v14438_v33 = vld [vmem:[#allocation2 + $0x151] sm:$0xff] }
 0x2e0   :  { %12107 = vmatmul.msk.f32.gmra.mxu0 %vm118_vm0, %v14408_v28 }
 0x2e1   :  { %v1688_v10 = vpop.f32.mrf.mxu2  ;;  %v1759_v39 = vadd.f32 %v1679_v59, %v1210_v48 }
 0x2e2   :  { %v2210_v41 = vpop.f32.mrf.mxu3  ;;  %v14416_v46 = vpop.f32.mrf.mxu1 }
 0x2e3   :  { %v14418_v1 = vadd.f32 %v2210_v41, %v1758_v2  ;;  %v2848_v2 = vld [vmem:[#allocation2 + $0xb2] sm:$0xff] }
 0x2e5   :  { %18962 = vst [vmem:[#allocation52_spill] sm:$0xff] %v14418_v1  ;;  %v14420_v24 = vpop.f32.mrf.mxu0  ;;  %12161 = vmatmul.msk.f32.gmra.mxu1 %vm118_vm0, %v2847_v25  ;;  %v3383_v25 = vld [vmem:[#allocation2 + $0xc8] sm:$0xff] }
 0x2e6   :  { %12227 = vmatmul.msk.f32.gmra.mxu2 %vm118_vm0, %v3382_v40 }
 0x2e7   :  { %12289 = vmatmul.msk.f32.gmra.mxu3 %vm118_vm0, %v14227_v0  ;;  %v1213_v0 = vadd.f32 %v1212_v55, %v13703_v42  ;;  %v14453_v42 = vld [vmem:[#allocation2 + $0x159] sm:$0xff]  ;;  %v1216_v55 = vadd.f32 %v14386_v15, %v13690_v35  ;;  %v14471_v35 = vld [vmem:[#allocation2 + $0x169] sm:$0xff]  ;;  %v1219_v15 = vadd.f32 %v14401_v34, %v13705_v43  ;;  %v14487_v43 = vld [vmem:[#allocation2 + $0x171] sm:$0xff]  ;;  %v1222_v34 = vadd.f32 %v14416_v46, %v13717_v51 }
 0x2e8   :  { %12108 = vmatmul.msk.f32.gmra.mxu0 %vm118_vm0, %v14423_v36  ;;  %v14505_v51 = vld [vmem:[#allocation2 + $0x181] sm:$0xff] }
 0x2e9   :  { %v1691_v20 = vpop.f32.mrf.mxu2  ;;  %v1760_v49 = vadd.f32 %v1682_v11, %v1213_v0 }
 0x2ea   :  { %v2213_v27 = vpop.f32.mrf.mxu3  ;;  %v14431_v45 = vpop.f32.mrf.mxu1 }
 0x2eb   :  { %v14433_v41 = vadd.f32 %v2213_v27, %v1759_v39  ;;  %v2849_v39 = vld [vmem:[#allocation2 + $0xc2] sm:$0xff]  ;;  %v1225_v46 = vadd.f32 %v14431_v45, %v13727_v60 }
 0x2ec   :  { %v14523_v60 = vld [vmem:[#allocation2 + $0x189] sm:$0xff] }
 0x2ed   :  { %18963 = vst [vmem:[#allocation53_spill] sm:$0xff] %v14433_v41  ;;  %v14435_v1 = vpop.f32.mrf.mxu0  ;;  %12162 = vmatmul.msk.f32.gmra.mxu1 %vm118_vm0, %v2848_v2  ;;  %v3384_v2 = vld [vmem:[#allocation2 + $0xd8] sm:$0xff] }
 0x2ee   :  { %12228 = vmatmul.msk.f32.gmra.mxu2 %vm118_vm0, %v3383_v25 }
 0x2ef   :  { %12290 = vmatmul.msk.f32.gmra.mxu3 %vm118_vm0, %v14243_v47  ;;  %v1761_v47 = vadd.f32 %v1685_v62, %v1216_v55 }
 0x2f0   :  { %12109 = vmatmul.msk.f32.gmra.mxu0 %vm118_vm0, %v14438_v33 }
 0x2f1   :  { %v1694_v59 = vpop.f32.mrf.mxu2 }
 0x2f2   :  { %v2216_v40 = vpop.f32.mrf.mxu3  ;;  %v14446_v48 = vpop.f32.mrf.mxu1 }
 0x2f3   :  { %v14448_v27 = vadd.f32 %v2216_v40, %v1760_v49  ;;  %v2850_v49 = vld [vmem:[#allocation2 + $0xca] sm:$0xff]  ;;  %v1228_v45 = vadd.f32 %v14446_v48, %v13739_v7 }
 0x2f4   :  { %v2333_v7 = vld [vmem:[#allocation2 + $0x1c9] sm:$0xff] }
 0x2f5   :  { %18964 = vst [vmem:[#allocation54_spill] sm:$0xff] %v14448_v27  ;;  %v14450_v41 = vpop.f32.mrf.mxu0  ;;  %12163 = vmatmul.msk.f32.gmra.mxu1 %vm118_vm0, %v2849_v39  ;;  %v3385_v39 = vld [vmem:[#allocation2 + $0xe0] sm:$0xff] }
 0x2f6   :  { %12229 = vmatmul.msk.f32.gmra.mxu2 %vm118_vm0, %v3384_v2 }
 0x2f7   :  { %12291 = vmatmul.msk.f32.gmra.mxu3 %vm118_vm0, %v14259_v14  ;;  %v1762_v14 = vadd.f32 %v1688_v10, %v1219_v15 }
 0x2f8   :  { %12110 = vmatmul.msk.f32.gmra.mxu0 %vm118_vm0, %v14453_v42 }
 0x2f9   :  { %v14462_v11 = vpop.f32.mrf.mxu2 }
 0x2fa   :  { %v2219_v25 = vpop.f32.mrf.mxu3  ;;  %v14464_v0 = vpop.f32.mrf.mxu1 }
 0x2fb   :  { %v14466_v40 = vadd.f32 %v2219_v25, %v1761_v47  ;;  %v2851_v25 = vld [vmem:[#allocation2 + $0xda] sm:$0xff]  ;;  %v1231_v48 = vadd.f32 %v14464_v0, %v13751_v17  ;;  %v2334_v17 = vld [vmem:[#allocation2 + $0x1d1] sm:$0xff] }
 0x2fd   :  { %18965 = vst [vmem:[#allocation55_spill] sm:$0xff] %v14466_v40  ;;  %v14468_v2 = vpop.f32.mrf.mxu0  ;;  %12164 = vmatmul.msk.f32.gmra.mxu1 %vm118_vm0, %v2850_v49  ;;  %v3386_v40 = vld [vmem:[#allocation2 + $0xf0] sm:$0xff] }
 0x2fe   :  { %12230 = vmatmul.msk.f32.gmra.mxu2 %vm118_vm0, %v3385_v39  ;;  %v1763_v39 = vadd.f32 %v1691_v20, %v1222_v34 }
 0x2ff   :  { %12292 = vmatmul.msk.f32.gmra.mxu3 %vm118_vm0, %v14271_v30  ;;  %v2771_v30 = vadd.f32 %v14304_v44, %v13767_v38  ;;  %v3387_v44 = vld [vmem:[#allocation2 + $0xf8] sm:$0xff] }
 0x300   :  { %12111 = vmatmul.msk.f32.gmra.mxu0 %vm118_vm0, %v14471_v35 }
 0x301   :  { %v14480_v62 = vpop.f32.mrf.mxu2 }
 0x302   :  { %v2222_v55 = vpop.f32.mrf.mxu3  ;;  %v3113_v47 = vpop.f32.mrf.mxu1 }
 0x303   :  { %v14482_v49 = vadd.f32 %v2222_v55, %v1762_v14  ;;  %v3305_v10 = vadd.f32 %v3113_v47, %v2771_v30  ;;  %v1764_v47 = vadd.f32 %v1694_v59, %v1225_v46 }
 0x305   :  { %18966 = vst [vmem:[#allocation56_spill] sm:$0xff] %v14482_v49  ;;  %v14484_v27 = vpop.f32.mrf.mxu0  ;;  %12165 = vmatmul.msk.f32.gmra.mxu1 %vm118_vm0, %v2851_v25  ;;  %v2852_v49 = vld [vmem:[#allocation2 + $0xe2] sm:$0xff] }
 0x306   :  { %12231 = vmatmul.msk.f32.gmra.mxu2 %vm118_vm0, %v3386_v40 }
 0x307   :  { %12293 = vmatmul.msk.f32.gmra.mxu3 %vm118_vm0, %v14285_v61  ;;  %v2772_v61 = vadd.f32 %v14316_v52, %v13780_v50  ;;  %v3388_v52 = vld [vmem:[#allocation2 + $0x108] sm:$0xff] }
 0x308   :  { %12112 = vmatmul.msk.f32.gmra.mxu0 %vm118_vm0, %v14487_v43 }
 0x309   :  { %v3648_v15 = vpop.f32.mrf.mxu2 }
 0x30a   :  { %v2225_v14 = vpop.f32.mrf.mxu3  ;;  %v14498_v55 = vadd.f32 %v3648_v15, %v3305_v10  ;;  %v3116_v25 = vpop.f32.mrf.mxu1 }
 0x30b   :  { %v14500_v38 = vadd.f32 %v2225_v14, %v1763_v39  ;;  %v3306_v20 = vadd.f32 %v3116_v25, %v2772_v61  ;;  %v2853_v39 = vld [vmem:[#allocation2 + $0xf2] sm:$0xff]  ;;  %v1765_v14 = vadd.f32 %v14462_v11, %v1228_v45 }
 0x30d   :  { %18967 = vst [vmem:[#allocation57_spill] sm:$0xff] %v14500_v38  ;;  %v14502_v40 = vpop.f32.mrf.mxu0  ;;  %12166 = vmatmul.msk.f32.gmra.mxu1 %vm118_vm0, %v2852_v49  ;;  %v3409_v38 = vld [vmem:[#allocation2 + $0x230] sm:$0xff] }
 0x30e   :  { %12232 = vmatmul.msk.f32.gmra.mxu2 %vm118_vm0, %v3387_v44 }
 0x30f   :  { %12294 = vmatmul.msk.f32.gmra.mxu3 %vm118_vm0, %v14295_v57  ;;  %v2773_v57 = vadd.f32 %v14328_v13, %v13793_v63  ;;  %v2854_v63 = vld [vmem:[#allocation2 + $0xfa] sm:$0xff] }
 0x310   :  { %12113 = vmatmul.msk.f32.gmra.mxu0 %vm118_vm0, %v14505_v51 }
 0x311   :  { %v3651_v30 = vpop.f32.mrf.mxu2 }
 0x312   :  { %v2228_v49 = vpop.f32.mrf.mxu3  ;;  %v14516_v34 = vadd.f32 %v3651_v30, %v3306_v20  ;;  %v3119_v10 = vpop.f32.mrf.mxu1  ;;  %v3389_v20 = vld [vmem:[#allocation2 + $0x110] sm:$0xff]  ;;  %v1766_v30 = vadd.f32 %v14480_v62, %v1231_v48 }
 0x313   :  { %v14518_v50 = vadd.f32 %v2228_v49, %v1764_v47  ;;  %v3307_v59 = vadd.f32 %v3119_v10, %v2773_v57  ;;  %v2855_v57 = vld [vmem:[#allocation2 + $0x10a] sm:$0xff] }
 0x315   :  { %18968 = vst [vmem:[#allocation58_spill] sm:$0xff] %v14518_v50  ;;  %v14520_v15 = vpop.f32.mrf.mxu0  ;;  %12167 = vmatmul.msk.f32.gmra.mxu1 %vm118_vm0, %v2853_v39  ;;  %v3408_v50 = vld [vmem:[#allocation2 + $0x228] sm:$0xff] }
 0x316   :  { %12233 = vmatmul.msk.f32.gmra.mxu2 %vm118_vm0, %v3388_v52 }
 0x317   :  { %12295 = vmatmul.msk.f32.gmra.mxu3 %vm118_vm0, %v14307_v9  ;;  %v2774_v9 = vadd.f32 %v14340_v29, %v13806_v12  ;;  %v3390_v29 = vld [vmem:[#allocation2 + $0x120] sm:$0xff] }
 0x318   :  { %12114 = vmatmul.msk.f32.gmra.mxu0 %vm118_vm0, %v14523_v60 }
 0x319   :  { %v3654_v25 = vpop.f32.mrf.mxu2 }
 0x31a   :  { %v2231_v44 = vpop.f32.mrf.mxu3  ;;  %v14535_v61 = vadd.f32 %v3654_v25, %v3307_v59  ;;  %v3122_v46 = vpop.f32.mrf.mxu1 }
 0x31b   :  { %v14537_v13 = vadd.f32 %v2231_v44, %v1765_v14  ;;  %v3308_v11 = vadd.f32 %v3122_v46, %v2774_v9  ;;  %v2856_v44 = vld [vmem:[#allocation2 + $0x112] sm:$0xff] }
 0x31d   :  { %18969 = vst [vmem:[#allocation59_spill] sm:$0xff] %v14537_v13  ;;  %v14539_v47 = vpop.f32.mrf.mxu0  ;;  %12168 = vmatmul.msk.f32.gmra.mxu1 %vm118_vm0, %v2854_v63  ;;  %v3391_v63 = vld [vmem:[#allocation2 + $0x128] sm:$0xff] }
 0x31e   :  { %12234 = vmatmul.msk.f32.gmra.mxu2 %vm118_vm0, %v3389_v20 }
 0x31f   :  { %12296 = vmatmul.msk.f32.gmra.mxu3 %vm118_vm0, %v14319_v22  ;;  %v2775_v22 = vadd.f32 %v14352_v32, %v13815_v18  ;;  %v14572_v18 = vld [vmem:[#allocation2 + $0x1e1] sm:$0xff] }
 0x320   :  { %12115 = vmatmul.msk.f32.gmra.mxu0 %vm118_vm0, %v2333_v7 }
 0x321   :  { %v3657_v49 = vpop.f32.mrf.mxu2 }
 0x322   :  { %v2234_v10 = vpop.f32.mrf.mxu3  ;;  %v14551_v39 = vadd.f32 %v3657_v49, %v3308_v11  ;;  %v3125_v52 = vpop.f32.mrf.mxu1  ;;  %v2857_v11 = vld [vmem:[#allocation2 + $0x122] sm:$0xff]  ;;  %v3392_v49 = vld [vmem:[#allocation2 + $0x138] sm:$0xff] }
 0x323   :  { %v14553_v12 = vadd.f32 %v2234_v10, %v1766_v30  ;;  %v3309_v0 = vadd.f32 %v3125_v52, %v2775_v22 }
 0x325   :  { %18970 = vst [vmem:[#allocation60_spill] sm:$0xff] %v14553_v12  ;;  %v14555_v45 = vpop.f32.mrf.mxu0  ;;  %12169 = vmatmul.msk.f32.gmra.mxu1 %vm118_vm0, %v2855_v57  ;;  %v3406_v12 = vld [vmem:[#allocation2 + $0x210] sm:$0xff] }
 0x326   :  { %12235 = vmatmul.msk.f32.gmra.mxu2 %vm118_vm0, %v3390_v29 }
 0x327   :  { %12297 = vmatmul.msk.f32.gmra.mxu3 %vm118_vm0, %v14331_v26  ;;  %v2776_v26 = vadd.f32 %v14364_v19, %v13824_v31  ;;  %v14589_v19 = vld [vmem:[#allocation2 + $0x1e9] sm:$0xff] }
 0x328   :  { %12116 = vmatmul.msk.f32.gmra.mxu0 %vm118_vm0, %v2334_v17  ;;  %v2858_v17 = vld [vmem:[#allocation2 + $0x12a] sm:$0xff] }
 0x329   :  { %v3660_v62 = vpop.f32.mrf.mxu2 }
 0x32a   :  { %v14564_v59 = vadd.f32 %v3660_v62, %v3309_v0  ;;  %v4182_v14 = vpop.f32.mrf.mxu3  ;;  %v3128_v25 = vpop.f32.mrf.mxu1  ;;  %v3393_v0 = vld [vmem:[#allocation2 + $0x140] sm:$0xff] }
 0x32b   :  { %v14567_v46 = vadd.f32 %v4182_v14, %v14498_v55  ;;  %v3310_v32 = vadd.f32 %v3128_v25, %v2776_v26 }
 0x32d   :  { %v14569_v20 = vpop.f32.mrf.mxu0  ;;  %12170 = vmatmul.msk.f32.gmra.mxu1 %vm118_vm0, %v2856_v44 }
 0x32e   :  { %12236 = vmatmul.msk.f32.gmra.mxu2 %vm118_vm0, %v3391_v63  ;;  %v2859_v63 = vld [vmem:[#allocation2 + $0x13a] sm:$0xff] }
 0x32f   :  { %12298 = vmatmul.msk.f32.gmra.mxu3 %vm118_vm0, %v14343_v21  ;;  %v2777_v21 = vadd.f32 %v14376_v23, %v13837_v53  ;;  %v14606_v23 = vld [vmem:[#allocation2 + $0x1f9] sm:$0xff] }
 0x330   :  { %12117 = vmatmul.msk.f32.gmra.mxu0 %vm118_vm0, %v14572_v18 }
 0x331   :  { %v3663_v55 = vpop.f32.mrf.mxu2 }
 0x332   :  { %v14581_v7 = vadd.f32 %v3663_v55, %v3310_v32  ;;  %v4185_v9 = vpop.f32.mrf.mxu3  ;;  %v3131_v48 = vpop.f32.mrf.mxu1  ;;  %v3394_v32 = vld [vmem:[#allocation2 + $0x150] sm:$0xff] }
 0x333   :  { %v14584_v30 = vadd.f32 %v4185_v9, %v14516_v34  ;;  %v3311_v10 = vadd.f32 %v3131_v48, %v2777_v21 }
 0x335   :  { %v14586_v31 = vpop.f32.mrf.mxu0  ;;  %12171 = vmatmul.msk.f32.gmra.mxu1 %vm118_vm0, %v2857_v11 }
 0x336   :  { %12237 = vmatmul.msk.f32.gmra.mxu2 %vm118_vm0, %v3392_v49  ;;  %v2860_v49 = vld [vmem:[#allocation2 + $0x142] sm:$0xff] }
 0x337   :  { %12299 = vmatmul.msk.f32.gmra.mxu3 %vm118_vm0, %v14355_v56  ;;  %v2778_v56 = vadd.f32 %v14390_v58, %v13850_v3  ;;  %v14623_v58 = vld [vmem:[#allocation2 + $0x201] sm:$0xff] }
 0x338   :  { %12118 = vmatmul.msk.f32.gmra.mxu0 %vm118_vm0, %v14589_v19 }
 0x339   :  { %v3666_v34 = vpop.f32.mrf.mxu2 }
 0x33a   :  { %v14598_v52 = vadd.f32 %v3666_v34, %v3311_v10  ;;  %v4188_v57 = vpop.f32.mrf.mxu3  ;;  %v3134_v29 = vpop.f32.mrf.mxu1  ;;  %v3395_v10 = vld [vmem:[#allocation2 + $0x158] sm:$0xff] }
 0x33b   :  { %v14601_v22 = vadd.f32 %v4188_v57, %v14535_v61  ;;  %v3312_v62 = vadd.f32 %v3134_v29, %v2778_v56 }
 0x33d   :  { %v14603_v53 = vpop.f32.mrf.mxu0  ;;  %12172 = vmatmul.msk.f32.gmra.mxu1 %vm118_vm0, %v2858_v17 }
 0x33e   :  { %12238 = vmatmul.msk.f32.gmra.mxu2 %vm118_vm0, %v3393_v0  ;;  %v2861_v0 = vld [vmem:[#allocation2 + $0x152] sm:$0xff] }
 0x33f   :  { %12300 = vmatmul.msk.f32.gmra.mxu3 %vm118_vm0, %v14367_v4  ;;  %v2779_v4 = vadd.f32 %v14405_v6, %v13863_v16  ;;  %v14640_v6 = vld [vmem:[#allocation2 + $0x211] sm:$0xff] }
 0x340   :  { %12119 = vmatmul.msk.f32.gmra.mxu0 %vm118_vm0, %v14606_v23 }
 0x341   :  { %v3669_v61 = vpop.f32.mrf.mxu2 }
 0x342   :  { %v14615_v14 = vadd.f32 %v3669_v61, %v3312_v62  ;;  %v4191_v25 = vpop.f32.mrf.mxu3  ;;  %v3137_v44 = vpop.f32.mrf.mxu1  ;;  %v3396_v62 = vld [vmem:[#allocation2 + $0x168] sm:$0xff] }
 0x343   :  { %v14618_v26 = vadd.f32 %v4191_v25, %v14551_v39  ;;  %v3313_v55 = vadd.f32 %v3137_v44, %v2779_v4 }
 0x345   :  { %v14620_v3 = vpop.f32.mrf.mxu0  ;;  %12173 = vmatmul.msk.f32.gmra.mxu1 %vm118_vm0, %v2859_v63 }
 0x346   :  { %12239 = vmatmul.msk.f32.gmra.mxu2 %vm118_vm0, %v3394_v32  ;;  %v2862_v32 = vld [vmem:[#allocation2 + $0x15a] sm:$0xff] }
 0x347   :  { %12301 = vmatmul.msk.f32.gmra.mxu3 %vm118_vm0, %v14379_v5  ;;  %v2780_v5 = vadd.f32 %v14420_v24, %v13880_v37  ;;  %v14657_v24 = vld [vmem:[#allocation2 + $0x219] sm:$0xff] }
 0x348   :  { %12120 = vmatmul.msk.f32.gmra.mxu0 %vm118_vm0, %v14623_v58 }
 0x349   :  { %v3672_v39 = vpop.f32.mrf.mxu2 }
 0x34a   :  { %v14632_v9 = vadd.f32 %v3672_v39, %v3313_v55  ;;  %v4194_v48 = vpop.f32.mrf.mxu3  ;;  %v3140_v11 = vpop.f32.mrf.mxu1  ;;  %v3397_v55 = vld [vmem:[#allocation2 + $0x170] sm:$0xff] }
 0x34b   :  { %v14635_v21 = vadd.f32 %v4194_v48, %v14564_v59  ;;  %v3314_v34 = vadd.f32 %v3140_v11, %v2780_v5  ;;  %v2863_v5 = vld [vmem:[#allocation2 + $0x16a] sm:$0xff] }
 0x34d   :  { %v14637_v16 = vpop.f32.mrf.mxu0  ;;  %12174 = vmatmul.msk.f32.gmra.mxu1 %vm118_vm0, %v2860_v49 }
 0x34e   :  { %12240 = vmatmul.msk.f32.gmra.mxu2 %vm118_vm0, %v3395_v10 }
 0x34f   :  { %12302 = vmatmul.msk.f32.gmra.mxu3 %vm118_vm0, %v14393_v8  ;;  %v2781_v8 = vadd.f32 %v14435_v1, %v13897_v54  ;;  %v14674_v1 = vld [vmem:[#allocation2 + $0x229] sm:$0xff] }
 0x350   :  { %12121 = vmatmul.msk.f32.gmra.mxu0 %vm118_vm0, %v14640_v6 }
 0x351   :  { %v3675_v59 = vpop.f32.mrf.mxu2 }
 0x352   :  { %v14649_v57 = vadd.f32 %v3675_v59, %v3314_v34  ;;  %v4197_v29 = vpop.f32.mrf.mxu3  ;;  %v3143_v17 = vpop.f32.mrf.mxu1 }
 0x353   :  { %v14652_v56 = vadd.f32 %v4197_v29, %v14581_v7  ;;  %v3315_v61 = vadd.f32 %v3143_v17, %v2781_v8  ;;  %v14695_v29 = vld [vmem:[#allocation2 + $0x231] sm:$0xff] }
 0x354   :  { %v18972_v17 = vld [vmem:[#allocation9_spill] sm:$0xff] }
 0x355   :  { %v14654_v37 = vpop.f32.mrf.mxu0  ;;  %12175 = vmatmul.msk.f32.gmra.mxu1 %vm118_vm0, %v2861_v0  ;;  %v2783_v0 = vadd.f32 %v14468_v2, %v18972_v17 }
 0x356   :  { %12241 = vmatmul.msk.f32.gmra.mxu2 %vm118_vm0, %v3396_v62 }
 0x357   :  { %12303 = vmatmul.msk.f32.gmra.mxu3 %vm118_vm0, %v14408_v28  ;;  %v18971_v28 = vld [vmem:[#allocation8_spill] sm:$0xff] }
 0x358   :  { %12122 = vmatmul.msk.f32.gmra.mxu0 %vm118_vm0, %v14657_v24  ;;  %v2782_v39 = vadd.f32 %v14450_v41, %v18971_v28 }
 0x359   :  { %v3678_v7 = vpop.f32.mrf.mxu2 }
 0x35a   :  { %v14666_v25 = vadd.f32 %v3678_v7, %v3315_v61  ;;  %v4200_v44 = vpop.f32.mrf.mxu3  ;;  %v3146_v63 = vpop.f32.mrf.mxu1 }
 0x35b   :  { %v14669_v4 = vadd.f32 %v4200_v44, %v14598_v52  ;;  %v3316_v48 = vadd.f32 %v3146_v63, %v2782_v39  ;;  %v12345_v52 = vld [vmem:[%s18904_s1 + $0x20] sm:$0x7]  ;;  %v2864_v44 = vld [vmem:[#allocation2 + $0x172] sm:$0xff] }
 0x35c   :  { %12346 = vmatpush.msk.msra.mxu0 %vm616_vm1, %v12345_v52 }
 0x35d   :  { %v14671_v54 = vpop.f32.mrf.mxu0  ;;  %12176 = vmatmul.msk.f32.gmra.mxu1 %vm118_vm0, %v2862_v32  ;;  %v3399_v32 = vld [vmem:[#allocation2 + $0x188] sm:$0xff] }
 0x35e   :  { %12242 = vmatmul.msk.f32.gmra.mxu2 %vm118_vm0, %v3397_v55  ;;  %v14712_v55 = vld [vmem:[#allocation2 + $0x241] sm:$0xff] }
 0x35f   :  { %12304 = vmatmul.msk.f32.gmra.mxu3 %vm118_vm0, %v14423_v36  ;;  %v3398_v36 = vld [vmem:[#allocation2 + $0x180] sm:$0xff] }
 0x360   :  { %12123 = vmatmul.msk.f32.gmra.mxu0 %vm118_vm0, %v14674_v1 }
 0x361   :  { %v3681_v11 = vpop.f32.mrf.mxu2 }
 0x362   :  { %v14687_v49 = vadd.f32 %v3681_v11, %v3316_v48  ;;  %v4203_v10 = vpop.f32.mrf.mxu3  ;;  %v3149_v41 = vpop.f32.mrf.mxu1 }
 0x363   :  { %v14690_v34 = vadd.f32 %v4203_v10, %v14615_v14  ;;  %v3317_v62 = vadd.f32 %v3149_v41, %v2783_v0  ;;  %v2865_v10 = vld [vmem:[#allocation2 + $0x182] sm:$0xff] }
 0x365   :  { %v14692_v59 = vpop.f32.mrf.mxu0  ;;  %12177 = vmatmul.msk.f32.gmra.mxu1 %vm118_vm0, %v2863_v5  ;;  %v3400_v5 = vld [vmem:[#allocation2 + $0x198] sm:$0xff] }
 0x366   :  { %12243 = vmatmul.msk.f32.gmra.mxu2 %vm118_vm0, %v3398_v36  ;;  %v14729_v36 = vld [vmem:[#allocation2 + $0x249] sm:$0xff] }
 0x367   :  { %12305 = vmatmul.msk.f32.gmra.mxu3 %vm118_vm0, %v14438_v33  ;;  %v18973_v33 = vld [vmem:[#allocation10_spill] sm:$0xff] }
 0x368   :  { %12124 = vmatmul.msk.f32.gmra.mxu0 %vm118_vm0, %v14695_v29  ;;  %v2784_v28 = vadd.f32 %v14484_v27, %v18973_v33  ;;  %v14746_v33 = vld [vmem:[#allocation2 + $0x259] sm:$0xff] }
 0x369   :  { %v3684_v14 = vpop.f32.mrf.mxu2 }
 0x36a   :  { %v14704_v8 = vadd.f32 %v3684_v14, %v3317_v62  ;;  %v4206_v61 = vpop.f32.mrf.mxu3  ;;  %v3152_v7 = vpop.f32.mrf.mxu1 }
 0x36b   :  { %v14707_v63 = vadd.f32 %v4206_v61, %v14632_v9  ;;  %v3318_v39 = vadd.f32 %v3152_v7, %v2784_v28  ;;  %v2866_v7 = vld [vmem:[#allocation2 + $0x18a] sm:$0xff] }
 0x36d   :  { %v14709_v2 = vpop.f32.mrf.mxu0  ;;  %12178 = vmatmul.msk.f32.gmra.mxu1 %vm118_vm0, %v2864_v44 }
 0x36e   :  { %12244 = vmatmul.msk.f32.gmra.mxu2 %vm118_vm0, %v3399_v32  ;;  %v3401_v32 = vld [vmem:[#allocation2 + $0x1a0] sm:$0xff] }
 0x36f   :  { %12306 = vmatmul.msk.f32.gmra.mxu3 %vm118_vm0, %v14453_v42  ;;  %v18974_v42 = vld [vmem:[#allocation11_spill] sm:$0xff] }
 0x370   :  { %12125 = vmatmul.msk.f32.gmra.mxu0 %vm118_vm0, %v14712_v55  ;;  %v2785_v17 = vadd.f32 %v14502_v40, %v18974_v42  ;;  %v3402_v42 = vld [vmem:[#allocation2 + $0x1e0] sm:$0xff] }
 0x371   :  { %v3687_v9 = vpop.f32.mrf.mxu2 }
 0x372   :  { %v14721_v48 = vadd.f32 %v3687_v9, %v3318_v39  ;;  %v4209_v52 = vpop.f32.mrf.mxu3  ;;  %v3155_v11 = vpop.f32.mrf.mxu1 }
 0x373   :  { %v14724_v41 = vadd.f32 %v4209_v52, %v14649_v57  ;;  %v3319_v0 = vadd.f32 %v3155_v11, %v2785_v17  ;;  %v14763_v17 = vld [vmem:[#allocation2 + $0x261] sm:$0xff] }
 0x375   :  { %v14726_v27 = vpop.f32.mrf.mxu0  ;;  %12179 = vmatmul.msk.f32.gmra.mxu1 %vm118_vm0, %v2865_v10  ;;  %v2867_v10 = vld [vmem:[#allocation2 + $0x1ca] sm:$0xff] }
 0x376   :  { %12245 = vmatmul.msk.f32.gmra.mxu2 %vm118_vm0, %v3400_v5 }
 0x377   :  { %12307 = vmatmul.msk.f32.gmra.mxu3 %vm118_vm0, %v14471_v35  ;;  %v18975_v35 = vld [vmem:[#allocation12_spill] sm:$0xff] }
 0x378   :  { %12126 = vmatmul.msk.f32.gmra.mxu0 %vm118_vm0, %v14729_v36  ;;  %v2786_v28 = vadd.f32 %v14520_v15, %v18975_v35 }
 0x379   :  { %v3690_v57 = vpop.f32.mrf.mxu2 }
 0x37a   :  { %v14738_v62 = vadd.f32 %v3690_v57, %v3319_v0  ;;  %v4212_v14 = vpop.f32.mrf.mxu3  ;;  %v3158_v61 = vpop.f32.mrf.mxu1 }
 0x37b   :  { %v14741_v44 = vadd.f32 %v4212_v14, %v14666_v25  ;;  %v3320_v39 = vadd.f32 %v3158_v61, %v2786_v28  ;;  %v3403_v28 = vld [vmem:[#allocation2 + $0x1e8] sm:$0xff] }
 0x37d   :  { %v14743_v40 = vpop.f32.mrf.mxu0  ;;  %12180 = vmatmul.msk.f32.gmra.mxu1 %vm118_vm0, %v2866_v7 }
 0x37e   :  { %12246 = vmatmul.msk.f32.gmra.mxu2 %vm118_vm0, %v3401_v32  ;;  %v2868_v32 = vld [vmem:[#allocation2 + $0x1d2] sm:$0xff] }
 0x37f   :  { %12308 = vmatmul.msk.f32.gmra.mxu3 %vm118_vm0, %v14487_v43  ;;  %v18976_v43 = vld [vmem:[#allocation13_spill] sm:$0xff] }
 0x380   :  { %12127 = vmatmul.msk.f32.gmra.mxu0 %vm118_vm0, %v14746_v33  ;;  %v2787_v0 = vadd.f32 %v14539_v47, %v18976_v43  ;;  %v2869_v43 = vld [vmem:[#allocation2 + $0x1e2] sm:$0xff] }
 0x381   :  { %v3693_v25 = vpop.f32.mrf.mxu2 }
 0x382   :  { %v14755_v9 = vadd.f32 %v3693_v25, %v3320_v39  ;;  %v4215_v52 = vpop.f32.mrf.mxu3  ;;  %v3161_v11 = vpop.f32.mrf.mxu1  ;;  %v14780_v39 = vld [vmem:[#allocation2 + $0x271] sm:$0xff] }
 0x383   :  { %v14758_v5 = vadd.f32 %v4215_v52, %v14687_v49  ;;  %v3321_v57 = vadd.f32 %v3161_v11, %v2787_v0 }
 0x385   :  { %v14760_v15 = vpop.f32.mrf.mxu0  ;;  %12181 = vmatmul.msk.f32.gmra.mxu1 %vm118_vm0, %v2867_v10 }
 0x386   :  { %12247 = vmatmul.msk.f32.gmra.mxu2 %vm118_vm0, %v3402_v42 }
 0x387   :  { %12309 = vmatmul.msk.f32.gmra.mxu3 %vm118_vm0, %v14505_v51  ;;  %v18977_v51 = vld [vmem:[#allocation14_spill] sm:$0xff] }
 0x388   :  { %12128 = vmatmul.msk.f32.gmra.mxu0 %vm118_vm0, %v14763_v17  ;;  %v2788_v25 = vadd.f32 %v14555_v45, %v18977_v51  ;;  %v3934_v45 = vld [vmem:[#allocation2 + $0x199] sm:$0xff] }
 0x389   :  { %v3696_v49 = vpop.f32.mrf.mxu2 }
 0x38a   :  { %v14772_v14 = vadd.f32 %v3696_v49, %v3321_v57  ;;  %v4218_v61 = vpop.f32.mrf.mxu3  ;;  %v3164_v7 = vpop.f32.mrf.mxu1  ;;  %v3404_v57 = vld [vmem:[#allocation2 + $0x1f8] sm:$0xff] }
 0x38b   :  { %v14775_v35 = vadd.f32 %v4218_v61, %v14704_v8  ;;  %v3322_v52 = vadd.f32 %v3164_v7, %v2788_v25  ;;  %v18978_v61 = vld [vmem:[#allocation15_spill] sm:$0xff] }
 0x38c   :  { %v2789_v7 = vadd.f32 %v14569_v20, %v18978_v61 }
 0x38d   :  { %v14777_v47 = vpop.f32.mrf.mxu0  ;;  %12182 = vmatmul.msk.f32.gmra.mxu1 %vm118_vm0, %v2868_v32 }
 0x38e   :  { %12248 = vmatmul.msk.f32.gmra.mxu2 %vm118_vm0, %v3403_v28 }
 0x38f   :  { %12310 = vmatmul.msk.f32.gmra.mxu3 %vm118_vm0, %v14523_v60  ;;  %v14797_v60 = vld [vmem:[#allocation2 + $0x279] sm:$0xff] }
 0x390   :  { %12129 = vmatmul.msk.f32.gmra.mxu0 %vm118_vm0, %v14780_v39 }
 0x391   :  { %v3699_v8 = vpop.f32.mrf.mxu2 }
 0x392   :  { %v14789_v11 = vadd.f32 %v3699_v8, %v3322_v52  ;;  %v4221_v10 = vpop.f32.mrf.mxu3  ;;  %v3167_v42 = vpop.f32.mrf.mxu1  ;;  %v2870_v52 = vld [vmem:[#allocation2 + $0x1ea] sm:$0xff] }
 0x393   :  { %v14792_v0 = vadd.f32 %v4221_v10, %v14721_v48  ;;  %v3323_v32 = vadd.f32 %v3167_v42, %v2789_v7  ;;  %v3405_v10 = vld [vmem:[#allocation2 + $0x200] sm:$0xff]  ;;  %v18979_v42 = vld [vmem:[#allocation16_spill] sm:$0xff] }
 0x395   :  { %v14794_v49 = vpop.f32.mrf.mxu0  ;;  %12183 = vmatmul.msk.f32.gmra.mxu1 %vm118_vm0, %v2869_v43  ;;  %v3935_v43 = vld [vmem:[#allocation2 + $0x1a1] sm:$0xff] }
 0x396   :  { %12249 = vmatmul.msk.f32.gmra.mxu2 %vm118_vm0, %v3404_v57  ;;  %v14813_v57 = vld [vmem:[#allocation2 + $0x289] sm:$0xff] }
 0x397   :  { %12311 = vmatmul.msk.f32.gmra.mxu3 %vm118_vm0, %v3934_v45  ;;  %v2790_v45 = vadd.f32 %v14586_v31, %v18979_v42  ;;  %v14829_v31 = vld [vmem:[#allocation2 + $0x291] sm:$0xff] }
 0x398   :  { %12130 = vmatmul.msk.f32.gmra.mxu0 %vm118_vm0, %v14797_v60 }
 0x399   :  { %v3702_v48 = vpop.f32.mrf.mxu2 }
 0x39a   :  { %v14805_v28 = vadd.f32 %v3702_v48, %v3323_v32  ;;  %v4224_v51 = vpop.f32.mrf.mxu3  ;;  %v3170_v25 = vpop.f32.mrf.mxu1 }
 0x39b   :  { %v14808_v8 = vadd.f32 %v4224_v51, %v14738_v62  ;;  %v3324_v61 = vadd.f32 %v3170_v25, %v2790_v45  ;;  %v2871_v51 = vld [vmem:[#allocation2 + $0x1fa] sm:$0xff]  ;;  %v18980_v25 = vld [vmem:[#allocation17_spill] sm:$0xff] }
 0x39d   :  { %v14810_v20 = vpop.f32.mrf.mxu0  ;;  %12184 = vmatmul.msk.f32.gmra.mxu1 %vm118_vm0, %v2870_v52 }
 0x39e   :  { %12250 = vmatmul.msk.f32.gmra.mxu2 %vm118_vm0, %v3405_v10  ;;  %v2791_v10 = vadd.f32 %v14603_v53, %v18980_v25 }
 0x39f   :  { %12312 = vmatmul.msk.f32.gmra.mxu3 %vm118_vm0, %v3935_v43 }
 0x3a0   :  { %12131 = vmatmul.msk.f32.gmra.mxu0 %vm118_vm0, %v14813_v57 }
 0x3a1   :  { %v3705_v62 = vpop.f32.mrf.mxu2 }
 0x3a2   :  { %v14821_v7 = vadd.f32 %v3705_v62, %v3324_v61  ;;  %v4227_v32 = vpop.f32.mrf.mxu3  ;;  %v3173_v48 = vpop.f32.mrf.mxu1  ;;  %v2872_v62 = vld [vmem:[#allocation2 + $0x202] sm:$0xff] }
 0x3a3   :  { %v14824_v52 = vadd.f32 %v4227_v32, %v14755_v9  ;;  %v3325_v43 = vadd.f32 %v3173_v48, %v2791_v10 }
 0x3a5   :  { %v14826_v13 = vpop.f32.mrf.mxu0  ;;  %12185 = vmatmul.msk.f32.gmra.mxu1 %vm118_vm0, %v2871_v51  ;;  %v3407_v51 = vld [vmem:[#allocation2 + $0x218] sm:$0xff] }
 0x3a6   :  { %12251 = vmatmul.msk.f32.gmra.mxu2 %vm118_vm0, %v3406_v12  ;;  %v14846_v12 = vld [vmem:[#allocation2 + $0x2a1] sm:$0xff] }
 0x3a7   :  { %12313 = vmatmul.msk.f32.gmra.mxu3 %vm118_vm0, %v14572_v18  ;;  %v18981_v18 = vld [vmem:[#allocation18_spill] sm:$0xff] }
 0x3a8   :  { %12132 = vmatmul.msk.f32.gmra.mxu0 %vm118_vm0, %v14829_v31  ;;  %v2792_v48 = vadd.f32 %v14620_v3, %v18981_v18 }
 0x3a9   :  { %v3708_v9 = vpop.f32.mrf.mxu2 }
 0x3aa   :  { %v14838_v42 = vadd.f32 %v3708_v9, %v3325_v43  ;;  %v4230_v45 = vpop.f32.mrf.mxu3  ;;  %v3176_v61 = vpop.f32.mrf.mxu1 }
 0x3ab   :  { %v14841_v32 = vadd.f32 %v4230_v45, %v14772_v14  ;;  %v3326_v25 = vadd.f32 %v3176_v61, %v2792_v48  ;;  %v2873_v45 = vld [vmem:[#allocation2 + $0x212] sm:$0xff] }
 0x3ad   :  { %v14843_v53 = vpop.f32.mrf.mxu0  ;;  %12186 = vmatmul.msk.f32.gmra.mxu1 %vm118_vm0, %v2872_v62 }
 0x3ae   :  { %12252 = vmatmul.msk.f32.gmra.mxu2 %vm118_vm0, %v3407_v51  ;;  %v14863_v51 = vld [vmem:[#allocation2 + $0x2a9] sm:$0xff] }
 0x3af   :  { %12314 = vmatmul.msk.f32.gmra.mxu3 %vm118_vm0, %v14589_v19  ;;  %v18982_v19 = vld [vmem:[#allocation19_spill] sm:$0xff] }
 0x3b0   :  { %12133 = vmatmul.msk.f32.gmra.mxu0 %vm118_vm0, %v14846_v12  ;;  %v2793_v61 = vadd.f32 %v14637_v16, %v18982_v19 }
 0x3b1   :  { %v3711_v14 = vpop.f32.mrf.mxu2 }
 0x3b2   :  { %v14855_v10 = vadd.f32 %v3711_v14, %v3326_v25  ;;  %v4233_v43 = vpop.f32.mrf.mxu3  ;;  %v3179_v9 = vpop.f32.mrf.mxu1 }
 0x3b3   :  { %v14858_v62 = vadd.f32 %v4233_v43, %v14789_v11  ;;  %v3327_v18 = vadd.f32 %v3179_v9, %v2793_v61  ;;  %v2874_v43 = vld [vmem:[#allocation2 + $0x21a] sm:$0xff] }
 0x3b5   :  { %v14860_v3 = vpop.f32.mrf.mxu0  ;;  %12187 = vmatmul.msk.f32.gmra.mxu1 %vm118_vm0, %v2873_v45 }
 0x3b6   :  { %12253 = vmatmul.msk.f32.gmra.mxu2 %vm118_vm0, %v3408_v50  ;;  %v14880_v50 = vld [vmem:[#allocation2 + $0x2b9] sm:$0xff] }
 0x3b7   :  { %12315 = vmatmul.msk.f32.gmra.mxu3 %vm118_vm0, %v14606_v23  ;;  %v18984_v23 = vld [vmem:[#allocation20_spill] sm:$0xff] }
 0x3b8   :  { %12134 = vmatmul.msk.f32.gmra.mxu0 %vm118_vm0, %v14863_v51  ;;  %v2794_v9 = vadd.f32 %v14654_v37, %v18984_v23 }
 0x3b9   :  { %v3714_v11 = vpop.f32.mrf.mxu2 }
 0x3ba   :  { %v14872_v48 = vadd.f32 %v3714_v11, %v3327_v18  ;;  %v4236_v25 = vpop.f32.mrf.mxu3  ;;  %v3182_v14 = vpop.f32.mrf.mxu1 }
 0x3bb   :  { %v14875_v45 = vadd.f32 %v4236_v25, %v14805_v28  ;;  %v3328_v19 = vadd.f32 %v3182_v14, %v2794_v9  ;;  %v2875_v25 = vld [vmem:[#allocation2 + $0x22a] sm:$0xff] }
 0x3bd   :  { %18983 = vst [vmem:[#allocation8_spill] sm:$0xff] %v14875_v45  ;;  %v14877_v16 = vpop.f32.mrf.mxu0  ;;  %12188 = vmatmul.msk.f32.gmra.mxu1 %vm118_vm0, %v2874_v43  ;;  %v3410_v45 = vld [vmem:[#allocation2 + $0x240] sm:$0xff] }
 0x3be   :  { %12254 = vmatmul.msk.f32.gmra.mxu2 %vm118_vm0, %v3409_v38  ;;  %v14897_v38 = vld [vmem:[#allocation2 + $0x2c1] sm:$0xff] }
 0x3bf   :  { %12316 = vmatmul.msk.f32.gmra.mxu3 %vm118_vm0, %v14623_v58  ;;  %v18986_v58 = vld [vmem:[#allocation21_spill] sm:$0xff] }
 0x3c0   :  { %12135 = vmatmul.msk.f32.gmra.mxu0 %vm118_vm0, %v14880_v50  ;;  %v2795_v14 = vadd.f32 %v14671_v54, %v18986_v58 }
 0x3c1   :  { %v3717_v28 = vpop.f32.mrf.mxu2 }
 0x3c2   :  { %v14889_v61 = vadd.f32 %v3717_v28, %v3328_v19  ;;  %v4239_v18 = vpop.f32.mrf.mxu3  ;;  %v3185_v11 = vpop.f32.mrf.mxu1 }
 0x3c3   :  { %v14892_v43 = vadd.f32 %v4239_v18, %v14821_v7  ;;  %v3329_v23 = vadd.f32 %v3185_v11, %v2795_v14  ;;  %v2876_v18 = vld [vmem:[#allocation2 + $0x232] sm:$0xff] }
 0x3c5   :  { %18985 = vst [vmem:[#allocation9_spill] sm:$0xff] %v14892_v43  ;;  %v14894_v37 = vpop.f32.mrf.mxu0  ;;  %12189 = vmatmul.msk.f32.gmra.mxu1 %vm118_vm0, %v2875_v25  ;;  %v3411_v43 = vld [vmem:[#allocation2 + $0x248] sm:$0xff] }
 0x3c6   :  { %12255 = vmatmul.msk.f32.gmra.mxu2 %vm118_vm0, %v3410_v45  ;;  %v14914_v45 = vld [vmem:[#allocation2 + $0x2d1] sm:$0xff] }
 0x3c7   :  { %12317 = vmatmul.msk.f32.gmra.mxu3 %vm118_vm0, %v14640_v6  ;;  %v18988_v6 = vld [vmem:[#allocation22_spill] sm:$0xff] }
 0x3c8   :  { %12136 = vmatmul.msk.f32.gmra.mxu0 %vm118_vm0, %v14897_v38  ;;  %v2796_v11 = vadd.f32 %v14692_v59, %v18988_v6 }
 0x3c9   :  { %v3720_v7 = vpop.f32.mrf.mxu2 }
 0x3ca   :  { %v14906_v9 = vadd.f32 %v3720_v7, %v3329_v23  ;;  %v4242_v19 = vpop.f32.mrf.mxu3  ;;  %v3188_v28 = vpop.f32.mrf.mxu1 }
 0x3cb   :  { %v14909_v25 = vadd.f32 %v4242_v19, %v14838_v42  ;;  %v3330_v58 = vadd.f32 %v3188_v28, %v2796_v11  ;;  %v2877_v19 = vld [vmem:[#allocation2 + $0x242] sm:$0xff] }
 0x3cd   :  { %18987 = vst [vmem:[#allocation10_spill] sm:$0xff] %v14909_v25  ;;  %v14911_v54 = vpop.f32.mrf.mxu0  ;;  %12190 = vmatmul.msk.f32.gmra.mxu1 %vm118_vm0, %v2876_v18  ;;  %v3412_v25 = vld [vmem:[#allocation2 + $0x258] sm:$0xff] }
 0x3ce   :  { %12256 = vmatmul.msk.f32.gmra.mxu2 %vm118_vm0, %v3411_v43  ;;  %v14931_v43 = vld [vmem:[#allocation2 + $0x2d9] sm:$0xff] }
 0x3cf   :  { %12318 = vmatmul.msk.f32.gmra.mxu3 %vm118_vm0, %v14657_v24  ;;  %v18990_v24 = vld [vmem:[#allocation23_spill] sm:$0xff] }
 0x3d0   :  { %12137 = vmatmul.msk.f32.gmra.mxu0 %vm118_vm0, %v14914_v45  ;;  %v2797_v28 = vadd.f32 %v14709_v2, %v18990_v24  ;;  %v5473_v24 = vld [vmem:[#allocation5 + $0x8] sm:$0xff] }
 0x3d1   :  { %v3723_v42 = vpop.f32.mrf.mxu2  ;;  %5681 = vmatpush.msrb.mxu1 %v5473_v24 }
 0x3d2   :  { %v14923_v14 = vadd.f32 %v3723_v42, %v3330_v58  ;;  %v4245_v23 = vpop.f32.mrf.mxu3  ;;  %v3191_v7 = vpop.f32.mrf.mxu1 }
 0x3d3   :  { %v14926_v18 = vadd.f32 %v4245_v23, %v14855_v10  ;;  %v3331_v6 = vadd.f32 %v3191_v7, %v2797_v28  ;;  %v2878_v23 = vld [vmem:[#allocation2 + $0x24a] sm:$0xff] }
 0x3d5   :  { %18989 = vst [vmem:[#allocation11_spill] sm:$0xff] %v14926_v18  ;;  %v14928_v59 = vpop.f32.mrf.mxu0  ;;  %12191 = vmatmul.msk.f32.gmra.mxu1 %vm118_vm0, %v2877_v19  ;;  %v3413_v18 = vld [vmem:[#allocation2 + $0x260] sm:$0xff] }
 0x3d6   :  { %12257 = vmatmul.msk.f32.gmra.mxu2 %vm118_vm0, %v3412_v25  ;;  %v14948_v25 = vld [vmem:[#allocation2 + $0x2e9] sm:$0xff] }
 0x3d7   :  { %12319 = vmatmul.msk.f32.gmra.mxu3 %vm118_vm0, %v14674_v1  ;;  %v18992_v1 = vld [vmem:[#allocation24_spill] sm:$0xff] }
 0x3d8   :  { %12138 = vmatmul.msk.f32.gmra.mxu0 %vm118_vm0, %v14931_v43  ;;  %v2798_v7 = vadd.f32 %v14726_v27, %v18992_v1  ;;  %v3414_v27 = vld [vmem:[#allocation2 + $0x270] sm:$0xff] }
 0x3d9   :  { %v3726_v10 = vpop.f32.mrf.mxu2 }
 0x3da   :  { %v14940_v11 = vadd.f32 %v3726_v10, %v3331_v6  ;;  %v4248_v58 = vpop.f32.mrf.mxu3  ;;  %v3194_v42 = vpop.f32.mrf.mxu1 }
 0x3db   :  { %v14943_v19 = vadd.f32 %v4248_v58, %v14872_v48  ;;  %v3332_v28 = vadd.f32 %v3194_v42, %v2798_v7  ;;  %v18994_v42 = vld [vmem:[#allocation25_spill] sm:$0xff] }
 0x3dc   :  { %v2799_v1 = vadd.f32 %v14743_v40, %v18994_v42 }
 0x3dd   :  { %18991 = vst [vmem:[#allocation12_spill] sm:$0xff] %v14943_v19  ;;  %v14945_v2 = vpop.f32.mrf.mxu0  ;;  %12192 = vmatmul.msk.f32.gmra.mxu1 %vm118_vm0, %v2878_v23  ;;  %v2879_v23 = vld [vmem:[#allocation2 + $0x25a] sm:$0xff] }
 0x3de   :  { %12258 = vmatmul.msk.f32.gmra.mxu2 %vm118_vm0, %v3413_v18 }
 0x3df   :  { %12320 = vmatmul.msk.f32.gmra.mxu3 %vm118_vm0, %v14695_v29  ;;  %v14965_v29 = vld [vmem:[#allocation2 + $0x2f1] sm:$0xff] }
 0x3e0   :  { %12139 = vmatmul.msk.f32.gmra.mxu0 %vm118_vm0, %v14948_v25 }
 0x3e1   :  { %v3729_v48 = vpop.f32.mrf.mxu2 }
 0x3e2   :  { %v14957_v6 = vadd.f32 %v3729_v48, %v3332_v28  ;;  %v4251_v10 = vpop.f32.mrf.mxu3  ;;  %v3197_v58 = vpop.f32.mrf.mxu1 }
 0x3e3   :  { %v14960_v19 = vadd.f32 %v4251_v10, %v14889_v61  ;;  %v3333_v7 = vadd.f32 %v3197_v58, %v2799_v1  ;;  %v2880_v10 = vld [vmem:[#allocation2 + $0x262] sm:$0xff] }
 0x3e5   :  { %18993 = vst [vmem:[#allocation13_spill] sm:$0xff] %v14960_v19  ;;  %v14962_v18 = vpop.f32.mrf.mxu0  ;;  %12193 = vmatmul.msk.f32.gmra.mxu1 %vm118_vm0, %v2879_v23  ;;  %v3415_v19 = vld [vmem:[#allocation2 + $0x278] sm:$0xff] }
 0x3e6   :  { %12259 = vmatmul.msk.f32.gmra.mxu2 %vm118_vm0, %v3414_v27  ;;  %v14982_v27 = vld [vmem:[#allocation2 + $0x301] sm:$0xff] }
 0x3e7   :  { %12321 = vmatmul.msk.f32.gmra.mxu3 %vm118_vm0, %v14712_v55  ;;  %v18996_v55 = vld [vmem:[#allocation26_spill] sm:$0xff] }
 0x3e8   :  { %12140 = vmatmul.msk.f32.gmra.mxu0 %vm118_vm0, %v14965_v29  ;;  %v2800_v58 = vadd.f32 %v14760_v15, %v18996_v55 }
 0x3e9   :  { %v3732_v61 = vpop.f32.mrf.mxu2 }
 0x3ea   :  { %v14974_v24 = vadd.f32 %v3732_v61, %v3333_v7  ;;  %v4254_v28 = vpop.f32.mrf.mxu3  ;;  %v3200_v48 = vpop.f32.mrf.mxu1 }
 0x3eb   :  { %v14977_v23 = vadd.f32 %v4254_v28, %v14906_v9  ;;  %v3334_v42 = vadd.f32 %v3200_v48, %v2800_v58  ;;  %v2881_v28 = vld [vmem:[#allocation2 + $0x272] sm:$0xff] }
 0x3ed   :  { %v14979_v40 = vpop.f32.mrf.mxu0  ;;  %12194 = vmatmul.msk.f32.gmra.mxu1 %vm118_vm0, %v2880_v10 }
 0x3ee   :  { %18995 = vst [vmem:[#allocation14_spill] sm:$0xff] %v14979_v40  ;;  %12260 = vmatmul.msk.f32.gmra.mxu2 %vm118_vm0, %v3415_v19  ;;  %v3416_v40 = vld [vmem:[#allocation2 + $0x288] sm:$0xff] }
 0x3ef   :  { %12322 = vmatmul.msk.f32.gmra.mxu3 %vm118_vm0, %v14729_v36  ;;  %v14999_v19 = vld [vmem:[#allocation2 + $0x309] sm:$0xff]  ;;  %v18998_v36 = vld [vmem:[#allocation27_spill] sm:$0xff] }
 0x3f0   :  { %12141 = vmatmul.msk.f32.gmra.mxu0 %vm118_vm0, %v14982_v27  ;;  %v2801_v48 = vadd.f32 %v14777_v47, %v18998_v36 }
 0x3f1   :  { %v3735_v9 = vpop.f32.mrf.mxu2 }
 0x3f2   :  { %v14991_v1 = vadd.f32 %v3735_v9, %v3334_v42  ;;  %v4257_v7 = vpop.f32.mrf.mxu3  ;;  %v3203_v61 = vpop.f32.mrf.mxu1 }
 0x3f3   :  { %v14994_v10 = vadd.f32 %v4257_v7, %v14923_v14  ;;  %v3335_v55 = vadd.f32 %v3203_v61, %v2801_v48  ;;  %v2882_v7 = vld [vmem:[#allocation2 + $0x27a] sm:$0xff] }
 0x3f5   :  { %v14996_v15 = vpop.f32.mrf.mxu0  ;;  %12195 = vmatmul.msk.f32.gmra.mxu1 %vm118_vm0, %v2881_v28 }
 0x3f6   :  { %18997 = vst [vmem:[#allocation15_spill] sm:$0xff] %v14996_v15  ;;  %12261 = vmatmul.msk.f32.gmra.mxu2 %vm118_vm0, %v3416_v40  ;;  %v3417_v15 = vld [vmem:[#allocation2 + $0x290] sm:$0xff]  ;;  %v15016_v40 = vld [vmem:[#allocation2 + $0x319] sm:$0xff] }
 0x3f7   :  { %12323 = vmatmul.msk.f32.gmra.mxu3 %vm118_vm0, %v14746_v33  ;;  %v19000_v33 = vld [vmem:[#allocation28_spill] sm:$0xff] }
 0x3f8   :  { %12142 = vmatmul.msk.f32.gmra.mxu0 %vm118_vm0, %v14999_v19  ;;  %v2802_v61 = vadd.f32 %v14794_v49, %v19000_v33 }
 0x3f9   :  { %v3738_v14 = vpop.f32.mrf.mxu2 }
 0x3fa   :  { %v15008_v58 = vadd.f32 %v3738_v14, %v3335_v55  ;;  %v4260_v42 = vpop.f32.mrf.mxu3  ;;  %v3206_v9 = vpop.f32.mrf.mxu1 }
 0x3fb   :  { %v15011_v28 = vadd.f32 %v4260_v42, %v14940_v11  ;;  %v3336_v36 = vadd.f32 %v3206_v9, %v2802_v61  ;;  %v2883_v42 = vld [vmem:[#allocation2 + $0x28a] sm:$0xff] }
 0x3fd   :  { %v15013_v47 = vpop.f32.mrf.mxu0  ;;  %12196 = vmatmul.msk.f32.gmra.mxu1 %vm118_vm0, %v2882_v7 }
 0x3fe   :  { %18999 = vst [vmem:[#allocation16_spill] sm:$0xff] %v15013_v47  ;;  %12262 = vmatmul.msk.f32.gmra.mxu2 %vm118_vm0, %v3417_v15  ;;  %v3418_v47 = vld [vmem:[#allocation2 + $0x2a0] sm:$0xff] }
 0x3ff   :  { %12324 = vmatmul.msk.f32.gmra.mxu3 %vm118_vm0, %v14763_v17  ;;  %v15033_v15 = vld [vmem:[#allocation2 + $0x321] sm:$0xff]  ;;  %v19002_v17 = vld [vmem:[#allocation29_spill] sm:$0xff] }
 0x400   :  { %12143 = vmatmul.msk.f32.gmra.mxu0 %vm118_vm0, %v15016_v40  ;;  %v2803_v9 = vadd.f32 %v14810_v20, %v19002_v17 }
 0x401   :  { %v3741_v11 = vpop.f32.mrf.mxu2 }
 0x402   :  { %v15025_v48 = vadd.f32 %v3741_v11, %v3336_v36  ;;  %v4263_v55 = vpop.f32.mrf.mxu3  ;;  %v3209_v14 = vpop.f32.mrf.mxu1 }
 0x403   :  { %v15028_v7 = vadd.f32 %v4263_v55, %v14957_v6  ;;  %v3337_v33 = vadd.f32 %v3209_v14, %v2803_v9  ;;  %v2884_v55 = vld [vmem:[#allocation2 + $0x292] sm:$0xff] }
 0x405   :  { %v15030_v49 = vpop.f32.mrf.mxu0  ;;  %12197 = vmatmul.msk.f32.gmra.mxu1 %vm118_vm0, %v2883_v42 }
 0x406   :  { %19001 = vst [vmem:[#allocation17_spill] sm:$0xff] %v15030_v49  ;;  %12263 = vmatmul.msk.f32.gmra.mxu2 %vm118_vm0, %v3418_v47  ;;  %v3419_v49 = vld [vmem:[#allocation2 + $0x2a8] sm:$0xff]  ;;  %v15050_v47 = vld [vmem:[#allocation2 + $0x331] sm:$0xff] }
 0x407   :  { %12325 = vmatmul.msk.f32.gmra.mxu3 %vm118_vm0, %v14780_v39  ;;  %v19004_v39 = vld [vmem:[#allocation30_spill] sm:$0xff] }
 0x408   :  { %12144 = vmatmul.msk.f32.gmra.mxu0 %vm118_vm0, %v15033_v15  ;;  %v2804_v14 = vadd.f32 %v14826_v13, %v19004_v39 }
 0x409   :  { %v3744_v6 = vpop.f32.mrf.mxu2 }
 0x40a   :  { %v15042_v61 = vadd.f32 %v3744_v6, %v3337_v33  ;;  %v4266_v36 = vpop.f32.mrf.mxu3  ;;  %v3212_v11 = vpop.f32.mrf.mxu1 }
 0x40b   :  { %v15045_v42 = vadd.f32 %v4266_v36, %v14974_v24  ;;  %v3338_v17 = vadd.f32 %v3212_v11, %v2804_v14  ;;  %v2885_v36 = vld [vmem:[#allocation2 + $0x2a2] sm:$0xff] }
 0x40d   :  { %v15047_v20 = vpop.f32.mrf.mxu0  ;;  %12198 = vmatmul.msk.f32.gmra.mxu1 %vm118_vm0, %v2884_v55 }
 0x40e   :  { %19003 = vst [vmem:[#allocation18_spill] sm:$0xff] %v15047_v20  ;;  %12264 = vmatmul.msk.f32.gmra.mxu2 %vm118_vm0, %v3419_v49  ;;  %v3420_v20 = vld [vmem:[#allocation2 + $0x2b8] sm:$0xff] }
 0x40f   :  { %12326 = vmatmul.msk.f32.gmra.mxu3 %vm118_vm0, %v14797_v60  ;;  %v15067_v49 = vld [vmem:[#allocation2 + $0x339] sm:$0xff] }
 0x410   :  { %12145 = vmatmul.msk.f32.gmra.mxu0 %vm118_vm0, %v15050_v47  ;;  %v19006_v60 = vld [vmem:[#allocation31_spill] sm:$0xff] }
 0x411   :  { %v3747_v24 = vpop.f32.mrf.mxu2  ;;  %v2805_v11 = vadd.f32 %v14843_v53, %v19006_v60 }
 0x412   :  { %v15059_v9 = vadd.f32 %v3747_v24, %v3338_v17  ;;  %v4269_v33 = vpop.f32.mrf.mxu3  ;;  %v3215_v6 = vpop.f32.mrf.mxu1 }
 0x413   :  { %v15062_v55 = vadd.f32 %v4269_v33, %v14991_v1  ;;  %v3339_v39 = vadd.f32 %v3215_v6, %v2805_v11  ;;  %v2886_v33 = vld [vmem:[#allocation2 + $0x2aa] sm:$0xff] }
 0x415   :  { %v15064_v13 = vpop.f32.mrf.mxu0  ;;  %12199 = vmatmul.msk.f32.gmra.mxu1 %vm118_vm0, %v2885_v36 }
 0x416   :  { %19005 = vst [vmem:[#allocation19_spill] sm:$0xff] %v15064_v13  ;;  %12265 = vmatmul.msk.f32.gmra.mxu2 %vm118_vm0, %v3420_v20  ;;  %v3421_v13 = vld [vmem:[#allocation2 + $0x2c0] sm:$0xff]  ;;  %v4438_v20 = vld [vmem:[#allocation2 + $0x32] sm:$0xff] }
 0x417   :  { %12327 = vmatmul.msk.f32.gmra.mxu3 %vm118_vm0, %v14813_v57  ;;  %v19009_v57 = vld [vmem:[#allocation32_spill] sm:$0xff] }
 0x418   :  { %12146 = vmatmul.msk.f32.gmra.mxu0 %vm118_vm0, %v15067_v49  ;;  %v2806_v6 = vadd.f32 %v14860_v3, %v19009_v57  ;;  %v4439_v3 = vld [vmem:[#allocation2 + $0x3a] sm:$0xff] }
 0x419   :  { %v3750_v1 = vpop.f32.mrf.mxu2 }
 0x41a   :  { %v15076_v14 = vadd.f32 %v3750_v1, %v3339_v39  ;;  %v4272_v17 = vpop.f32.mrf.mxu3  ;;  %v3218_v24 = vpop.f32.mrf.mxu1 }
 0x41b   :  { %v15079_v36 = vadd.f32 %v4272_v17, %v15008_v58  ;;  %v3340_v60 = vadd.f32 %v3218_v24, %v2806_v6  ;;  %v2887_v17 = vld [vmem:[#allocation2 + $0x2ba] sm:$0xff] }
 0x41d   :  { %19007 = vst [vmem:[#allocation20_spill] sm:$0xff] %v15079_v36  ;;  %v15081_v53 = vpop.f32.mrf.mxu0  ;;  %12200 = vmatmul.msk.f32.gmra.mxu1 %vm118_vm0, %v2886_v33 }
 0x41e   :  { %19008 = vst [vmem:[#allocation21_spill] sm:$0xff] %v15081_v53  ;;  %12266 = vmatmul.msk.f32.gmra.mxu2 %vm118_vm0, %v3421_v13  ;;  %v3422_v53 = vld [vmem:[#allocation2 + $0x2d0] sm:$0xff] }
 0x41f   :  { %12328 = vmatmul.msk.f32.gmra.mxu3 %vm118_vm0, %v14829_v31  ;;  %v19011_v13 = vld [vmem:[#allocation33_spill] sm:$0xff] }
 0x420   :  { %12347 = vmatmul.msk.f32.vlgmr.msra.gmra.mxu0 %vm118_vm0, %v4438_v20  ;;  %v2807_v31 = vadd.f32 %v14877_v16, %v19011_v13  ;;  %v4440_v16 = vld [vmem:[#allocation2 + $0x4a] sm:$0xff] }
 0x421   :  { %v3753_v11 = vpop.f32.mrf.mxu2 }
 0x422   :  { %v15090_v58 = vadd.f32 %v3753_v11, %v3340_v60  ;;  %v4275_v39 = vpop.f32.mrf.mxu3  ;;  %v3221_v1 = vpop.f32.mrf.mxu1  ;;  %v2888_v60 = vld [vmem:[#allocation2 + $0x2c2] sm:$0xff] }
 0x423   :  { %v15093_v33 = vadd.f32 %v4275_v39, %v15025_v48  ;;  %v3341_v24 = vadd.f32 %v3221_v1, %v2807_v31  ;;  %v3423_v39 = vld [vmem:[#allocation2 + $0x2d8] sm:$0xff] }
 0x425   :  { %v15095_v36 = vpop.f32.mrf.mxu0  ;;  %12201 = vmatmul.msk.f32.gmra.mxu1 %vm118_vm0, %v2887_v17 }
 0x426   :  { %19010 = vst [vmem:[#allocation22_spill] sm:$0xff] %v15095_v36  ;;  %12267 = vmatmul.msk.f32.gmra.mxu2 %vm118_vm0, %v3422_v53  ;;  %v19013_v53 = vld [vmem:[#allocation34_spill] sm:$0xff]  ;;  %v15403_v36 = vld [vmem:[%s18907_s4] ss:$0 sm:$0xff] }
 0x427   :  { %12329 = vmatmul.msk.f32.gmra.mxu3 %vm118_vm0, %v14846_v12  ;;  %v2808_v12 = vadd.f32 %v14894_v37, %v19013_v53  ;;  %v4441_v37 = vld [vmem:[#allocation2 + $0x52] sm:$0xff] }
 0x428   :  { %12348 = vmatmul.msk.f32.gmra.mxu0 %vm118_vm0, %v4439_v3 }
 0x429   :  { %v3756_v20 = vpop.f32.mrf.mxu2 }
 0x42a   :  { %v15104_v48 = vadd.f32 %v3756_v20, %v3341_v24  ;;  %v4278_v57 = vpop.f32.mrf.mxu3  ;;  %v3224_v6 = vpop.f32.mrf.mxu1  ;;  %v2889_v24 = vld [vmem:[#allocation2 + $0x2d2] sm:$0xff] }
 0x42b   :  { %v15107_v11 = vadd.f32 %v4278_v57, %v15042_v61  ;;  %v3342_v1 = vadd.f32 %v3224_v6, %v2808_v12  ;;  %v3424_v57 = vld [vmem:[#allocation2 + $0x2e8] sm:$0xff] }
 0x42d   :  { %v15109_v17 = vpop.f32.mrf.mxu0  ;;  %12202 = vmatmul.msk.f32.gmra.mxu1 %vm118_vm0, %v2888_v60 }
 0x42e   :  { %19012 = vst [vmem:[#allocation23_spill] sm:$0xff] %v15109_v17  ;;  %12268 = vmatmul.msk.f32.gmra.mxu2 %vm118_vm0, %v3423_v39  ;;  %v19015_v39 = vld [vmem:[#allocation35_spill] sm:$0xff] }
 0x42f   :  { %12330 = vmatmul.msk.f32.gmra.mxu3 %vm118_vm0, %v14863_v51  ;;  %v2809_v51 = vadd.f32 %v14911_v54, %v19015_v39  ;;  %v4442_v54 = vld [vmem:[#allocation2 + $0x62] sm:$0xff] }
 0x430   :  { %12349 = vmatmul.msk.f32.gmra.mxu0 %vm118_vm0, %v4440_v16 }
 0x431   :  { %v3759_v3 = vpop.f32.mrf.mxu2 }
 0x432   :  { %v15118_v61 = vadd.f32 %v3759_v3, %v3342_v1  ;;  %v4281_v13 = vpop.f32.mrf.mxu3  ;;  %v3227_v31 = vpop.f32.mrf.mxu1  ;;  %v2890_v1 = vld [vmem:[#allocation2 + $0x2da] sm:$0xff] }
 0x433   :  { %v15121_v20 = vadd.f32 %v4281_v13, %v15059_v9  ;;  %v3343_v6 = vadd.f32 %v3227_v31, %v2809_v51  ;;  %v3425_v13 = vld [vmem:[#allocation2 + $0x2f0] sm:$0xff] }
 0x434   :  { %v2891_v51 = vld [vmem:[#allocation2 + $0x2ea] sm:$0xff] }
 0x435   :  { %v15123_v60 = vpop.f32.mrf.mxu0  ;;  %12203 = vmatmul.msk.f32.gmra.mxu1 %vm118_vm0, %v2889_v24 }
 0x436   :  { %19014 = vst [vmem:[#allocation24_spill] sm:$0xff] %v15123_v60  ;;  %12269 = vmatmul.msk.f32.gmra.mxu2 %vm118_vm0, %v3424_v57  ;;  %v19017_v57 = vld [vmem:[#allocation36_spill] sm:$0xff] }
 0x437   :  { %12331 = vmatmul.msk.f32.gmra.mxu3 %vm118_vm0, %v14880_v50  ;;  %v2810_v50 = vadd.f32 %v14928_v59, %v19017_v57  ;;  %v4443_v59 = vld [vmem:[#allocation2 + $0x6a] sm:$0xff] }
 0x438   :  { %12350 = vmatmul.msk.f32.gmra.mxu0 %vm118_vm0, %v4441_v37 }
 0x439   :  { %v3762_v16 = vpop.f32.mrf.mxu2 }
 0x43a   :  { %v3878_v9 = vadd.f32 %v3762_v16, %v3343_v6  ;;  %v4284_v53 = vpop.f32.mrf.mxu3  ;;  %v3230_v12 = vpop.f32.mrf.mxu1 }
 0x43b   :  { %v15133_v3 = vadd.f32 %v4284_v53, %v15076_v14  ;;  %v3344_v31 = vadd.f32 %v3230_v12, %v2810_v50  ;;  %v3426_v53 = vld [vmem:[#allocation2 + $0x300] sm:$0xff]  ;;  %v2892_v50 = vld [vmem:[#allocation2 + $0x2f2] sm:$0xff] }
 0x43d   :  { %v15135_v24 = vpop.f32.mrf.mxu0  ;;  %12204 = vmatmul.msk.f32.gmra.mxu1 %vm118_vm0, %v2890_v1 }
 0x43e   :  { %19016 = vst [vmem:[#allocation25_spill] sm:$0xff] %v15135_v24  ;;  %12270 = vmatmul.msk.f32.gmra.mxu2 %vm118_vm0, %v3425_v13  ;;  %v19019_v13 = vld [vmem:[#allocation37_spill] sm:$0xff] }
 0x43f   :  { %12332 = vmatmul.msk.f32.gmra.mxu3 %vm118_vm0, %v14897_v38  ;;  %v2811_v38 = vadd.f32 %v14945_v2, %v19019_v13  ;;  %v4444_v2 = vld [vmem:[#allocation2 + $0x7a] sm:$0xff] }
 0x440   :  { %12351 = vmatmul.msk.f32.gmra.mxu0 %vm118_vm0, %v4442_v54 }
 0x441   :  { %v3765_v37 = vpop.f32.mrf.mxu2 }
 0x442   :  { %v3879_v14 = vadd.f32 %v3765_v37, %v3344_v31  ;;  %v4287_v39 = vpop.f32.mrf.mxu3  ;;  %v3233_v16 = vpop.f32.mrf.mxu1  ;;  %v3427_v37 = vld [vmem:[#allocation2 + $0x308] sm:$0xff] }
 0x443   :  { %v15145_v6 = vadd.f32 %v4287_v39, %v15090_v58  ;;  %v3345_v12 = vadd.f32 %v3233_v16, %v2811_v38  ;;  %v2893_v38 = vld [vmem:[#allocation2 + $0x302] sm:$0xff] }
 0x445   :  { %v15147_v1 = vpop.f32.mrf.mxu0  ;;  %12205 = vmatmul.msk.f32.gmra.mxu1 %vm118_vm0, %v2891_v51 }
 0x446   :  { %19018 = vst [vmem:[#allocation26_spill] sm:$0xff] %v15147_v1  ;;  %12271 = vmatmul.msk.f32.gmra.mxu2 %vm118_vm0, %v3426_v53  ;;  %v19021_v53 = vld [vmem:[#allocation38_spill] sm:$0xff] }
 0x447   :  { %12333 = vmatmul.msk.f32.gmra.mxu3 %vm118_vm0, %v14914_v45  ;;  %v2812_v45 = vadd.f32 %v14962_v18, %v19021_v53  ;;  %v4445_v18 = vld [vmem:[#allocation2 + $0x82] sm:$0xff] }
 0x448   :  { %12352 = vmatmul.msk.f32.gmra.mxu0 %vm118_vm0, %v4443_v59 }
 0x449   :  { %v3768_v58 = vpop.f32.mrf.mxu2 }
 0x44a   :  { %v3880_v54 = vadd.f32 %v3768_v58, %v3345_v12  ;;  %v4290_v57 = vpop.f32.mrf.mxu3  ;;  %v3236_v39 = vpop.f32.mrf.mxu1  ;;  %v3428_v58 = vld [vmem:[#allocation2 + $0x318] sm:$0xff] }
 0x44b   :  { %v15157_v31 = vadd.f32 %v4290_v57, %v15104_v48  ;;  %v3346_v16 = vadd.f32 %v3236_v39, %v2812_v45  ;;  %v3429_v39 = vld [vmem:[#allocation2 + $0x320] sm:$0xff] }
 0x44c   :  { %v2895_v45 = vld [vmem:[#allocation2 + $0x31a] sm:$0xff] }
 0x44d   :  { %v15159_v51 = vpop.f32.mrf.mxu0  ;;  %12206 = vmatmul.msk.f32.gmra.mxu1 %vm118_vm0, %v2892_v50  ;;  %v2894_v50 = vld [vmem:[#allocation2 + $0x30a] sm:$0xff] }
 0x44e   :  { %19020 = vst [vmem:[#allocation27_spill] sm:$0xff] %v15159_v51  ;;  %12272 = vmatmul.msk.f32.gmra.mxu2 %vm118_vm0, %v3427_v37  ;;  %v6341_v51 = vld [vmem:[#allocation5 + $0x10] sm:$0xff] }
 0x44f   :  { %12334 = vmatmul.msk.f32.gmra.mxu3 %vm118_vm0, %v14931_v43 }
 0x450   :  { %12353 = vmatmul.msk.f32.gmra.mxu0 %vm118_vm0, %v4444_v2  ;;  %v4446_v2 = vld [vmem:[#allocation2 + $0x92] sm:$0xff]  ;;  %6549 = vmatpush.msrb.mxu3 %v6341_v51 }
 0x451   :  { %v3771_v48 = vpop.f32.mrf.mxu2 }
 0x452   :  { %v15168_v59 = vadd.f32 %v3771_v48, %v3346_v16  ;;  %v4293_v13 = vpop.f32.mrf.mxu3 }
 0x453   :  { %v15171_v12 = vadd.f32 %v4293_v13, %v15118_v61  ;;  %v4447_v13 = vld [vmem:[#allocation2 + $0x9a] sm:$0xff] }
 0x455   :  { %v15173_v57 = vpop.f32.mrf.mxu0  ;;  %12207 = vmatmul.msk.f32.gmra.mxu1 %vm118_vm0, %v2893_v38 }
 0x456   :  { %19022 = vst [vmem:[#allocation28_spill] sm:$0xff] %v15173_v57  ;;  %12273 = vmatmul.msk.f32.gmra.mxu2 %vm118_vm0, %v3428_v58  ;;  %v2896_v58 = vld [vmem:[#allocation2 + $0x322] sm:$0xff]  ;;  %v4454_v57 = vld [vmem:[#allocation2 + $0xf2] sm:$0xff] }
 0x457   :  { %12335 = vmatmul.msk.f32.gmra.mxu3 %vm118_vm0, %v14948_v25  ;;  %v15189_v25 = vpop.f32.mrf.mxu1 }
 0x458   :  { %12354 = vmatmul.msk.f32.gmra.mxu0 %vm118_vm0, %v4445_v18 }
 0x45a   :  { %v4296_v43 = vpop.f32.mrf.mxu3 }
 0x45b   :  { %v15180_v37 = vadd.f32 %v4296_v43, %v3878_v9  ;;  %v3430_v9 = vld [vmem:[#allocation2 + $0x330] sm:$0xff]  ;;  %v3431_v43 = vld [vmem:[#allocation2 + $0x338] sm:$0xff] }
 0x45d   :  { %v15182_v61 = vpop.f32.mrf.mxu0  ;;  %12208 = vmatmul.msk.f32.gmra.mxu1 %vm118_vm0, %v2894_v50 }
 0x45e   :  { %19023 = vst [vmem:[#allocation29_spill] sm:$0xff] %v15182_v61  ;;  %12274 = vmatmul.msk.f32.gmra.mxu2 %vm118_vm0, %v3429_v39  ;;  %v4448_v39 = vld [vmem:[#allocation2 + $0xaa] sm:$0xff] }
 0x45f   :  { %12336 = vmatmul.msk.f32.gmra.mxu3 %vm118_vm0, %v14965_v29  ;;  %v15200_v29 = vpop.f32.mrf.mxu2  ;;  %v15202_v18 = vpop.f32.mrf.mxu1 }
 0x460   :  { %12355 = vmatmul.msk.f32.gmra.mxu0 %vm118_vm0, %v4446_v2  ;;  %v2897_v2 = vld [vmem:[#allocation2 + $0x332] sm:$0xff] }
 0x462   :  { %v4299_v53 = vpop.f32.mrf.mxu3 }
 0x463   :  { %v15191_v16 = vadd.f32 %v4299_v53, %v3879_v14 }
 0x465   :  { %v15193_v48 = vpop.f32.mrf.mxu0  ;;  %12209 = vmatmul.msk.f32.gmra.mxu1 %vm118_vm0, %v2895_v45  ;;  %v3432_v45 = vld [vmem:[#allocation2 + $0x348] sm:$0xff] }
 0x466   :  { %19024 = vst [vmem:[#allocation30_spill] sm:$0xff] %v15193_v48  ;;  %12275 = vmatmul.msk.f32.gmra.mxu2 %vm118_vm0, %v3430_v9  ;;  %v4453_v48 = vld [vmem:[#allocation2 + $0xe2] sm:$0xff] }
 0x467   :  { %12337 = vmatmul.msk.f32.gmra.mxu3 %vm118_vm0, %v14982_v27  ;;  %v19026_v27 = vmov 0.0   ;;  %v15221_v53 = vpop.f32.mrf.mxu2 }
 0x468   :  { %12356 = vmatmul.msk.f32.gmra.mxu0 %vm118_vm0, %v4447_v13  ;;  %5169 = vst.msk [vmem:[#allocation3] sm:$0xff] %vm5168_vm3, %v19026_v27  ;;  %v4449_v13 = vld [vmem:[#allocation2 + $0xb2] sm:$0xff] }
 0x469   :  { %5170 = vst.msk [vmem:[#allocation3 + $0x8] sm:$0xff] %vm5168_vm3, %v19026_v27 }
 0x46a   :  { %v4302_v38 = vpop.f32.mrf.mxu3  ;;  %5173 = vst.msk [vmem:[#allocation3 + $0x18] sm:$0xff] %vm5168_vm3, %v19026_v27 }
 0x46b   :  { %v15204_v14 = vadd.f32 %v4302_v38, %v3880_v54  ;;  %5174 = vst.msk [vmem:[#allocation3 + $0x20] sm:$0xff] %vm5168_vm3, %v19026_v27  ;;  %v5407_v38 = vld [vmem:[#allocation5] sm:$0xff] }
 0x46c   :  { %5176 = vst.msk [vmem:[#allocation3 + $0x30] sm:$0xff] %vm5168_vm3, %v19026_v27  ;;  %6082 = vmatpush.msrb.mxu2 %v5407_v38 }
 0x46d   :  { %v15206_v50 = vpop.f32.mrf.mxu0  ;;  %12210 = vmatmul.msk.f32.gmra.mxu1 %vm118_vm0, %v2896_v58  ;;  %5177 = vst.msk [vmem:[#allocation3 + $0x38] sm:$0xff] %vm5168_vm3, %v19026_v27 }
 0x46e   :  { %19025 = vst [vmem:[#allocation31_spill] sm:$0xff] %v15206_v50  ;;  %12276 = vmatmul.msk.f32.gmra.mxu2 %vm118_vm0, %v3431_v43  ;;  %v2898_v43 = vld [vmem:[#allocation2 + $0x33a] sm:$0xff] }
 0x46f   :  { %12338 = vmatmul.msk.f32.gmra.mxu3 %vm118_vm0, %v14999_v19  ;;  %v15227_v19 = vpop.f32.mrf.mxu1  ;;  %5179 = vst.msk [vmem:[#allocation3 + $0x48] sm:$0xff] %vm5168_vm3, %v19026_v27 }
 0x470   :  { %12357 = vmatmul.msk.f32.gmra.mxu0 %vm118_vm0, %v4448_v39  ;;  %5180 = vst.msk [vmem:[#allocation3 + $0x50] sm:$0xff] %vm5168_vm3, %v19026_v27  ;;  %v3433_v39 = vld [vmem:[#allocation2 + $0x350] sm:$0xff] }
 0x471   :  { %5182 = vst.msk [vmem:[#allocation3 + $0x60] sm:$0xff] %vm5168_vm3, %v19026_v27 }
 0x472   :  { %v15217_v54 = vpop.f32.mrf.mxu3  ;;  %5183 = vst.msk [vmem:[#allocation3 + $0x68] sm:$0xff] %vm5168_vm3, %v19026_v27 }
 0x473   :  { %5185 = vst.msk [vmem:[#allocation3 + $0x78] sm:$0xff] %vm5168_vm3, %v19026_v27 }
 0x474   :  { %5186 = vst.msk [vmem:[#allocation3 + $0x80] sm:$0xff] %vm5168_vm3, %v19026_v27 }
 0x475   :  { %v15229_v9 = vpop.f32.mrf.mxu0  ;;  %12211 = vmatmul.msk.f32.gmra.mxu1 %vm118_vm0, %v2897_v2  ;;  %5188 = vst.msk [vmem:[#allocation3 + $0x90] sm:$0xff] %vm5168_vm3, %v19026_v27 }
 0x476   :  { %19027 = vst [vmem:[#allocation32_spill] sm:$0xff] %v15229_v9  ;;  %12277 = vmatmul.msk.f32.gmra.mxu2 %vm118_vm0, %v3432_v45  ;;  %v4450_v45 = vld [vmem:[#allocation2 + $0xc2] sm:$0xff] }
 0x477   :  { %12339 = vmatmul.msk.f32.gmra.mxu3 %vm118_vm0, %v15016_v40  ;;  %v15254_v40 = vpop.f32.mrf.mxu2  ;;  %5189 = vst.msk [vmem:[#allocation3 + $0x98] sm:$0xff] %vm5168_vm3, %v19026_v27  ;;  %v5344_v9 = vld [vmem:[#allocation3 + $0x8] sm:$0xff] }
 0x478   :  { %12358 = vmatmul.msk.f32.gmra.mxu0 %vm118_vm0, %v4449_v13  ;;  %5191 = vst.msk [vmem:[#allocation3 + $0xa8] sm:$0xff] %vm5168_vm3, %v19026_v27  ;;  %v15264_v13 = vpop.f32.mrf.mxu1 }
 0x479   :  { %5192 = vst.msk [vmem:[#allocation3 + $0xb0] sm:$0xff] %vm5168_vm3, %v19026_v27 }
 0x47a   :  { %v15246_v58 = vpop.f32.mrf.mxu3  ;;  %5194 = vst.msk [vmem:[#allocation3 + $0xc0] sm:$0xff] %vm5168_vm3, %v19026_v27 }
 0x47b   :  { %5195 = vst.msk [vmem:[#allocation3 + $0xc8] sm:$0xff] %vm5168_vm3, %v19026_v27 }
 0x47c   :  { %5197 = vst.msk [vmem:[#allocation3 + $0xd8] sm:$0xff] %vm5168_vm3, %v19026_v27 }
 0x47d   :  { %v15256_v2 = vpop.f32.mrf.mxu0  ;;  %12212 = vmatmul.msk.f32.gmra.mxu1 %vm118_vm0, %v2898_v43  ;;  %v5343_v43 = vld [vmem:[#allocation3] sm:$0xff]  ;;  %5198 = vst.msk [vmem:[#allocation3 + $0xe0] sm:$0xff] %vm5168_vm3, %v19026_v27 }
 0x47e   :  { %19028 = vst [vmem:[#allocation33_spill] sm:$0xff] %v15256_v2  ;;  %12278 = vmatmul.msk.f32.gmra.mxu2 %vm118_vm0, %v3433_v39  ;;  %v4451_v39 = vld [vmem:[#allocation2 + $0xca] sm:$0xff]  ;;  %v5408_v2 = vld [vmem:[#allocation3 + $0x1] sm:$0xff] }
 0x47f   :  { %12340 = vmatmul.msk.f32.gmra.mxu3 %vm118_vm0, %v15033_v15  ;;  %5200 = vst.msk [vmem:[#allocation3 + $0xf0] sm:$0xff] %vm5168_vm3, %v19026_v27 }
 0x480   :  { %12359 = vmatmul.msk.f32.gmra.mxu0 %vm118_vm0, %v4450_v45  ;;  %5201 = vst.msk [vmem:[#allocation3 + $0xf8] sm:$0xff] %vm5168_vm3, %v19026_v27  ;;  %v15290_v45 = vpop.f32.mrf.mxu2 }
 0x481   :  { %5203 = vst.msk [vmem:[#allocation3 + $0x108] sm:$0xff] %vm5168_vm3, %v19026_v27 }
 0x482   :  { %v15275_v38 = vpop.f32.mrf.mxu3  ;;  %5204 = vst.msk [vmem:[#allocation3 + $0x110] sm:$0xff] %vm5168_vm3, %v19026_v27 }
 0x483   :  { %5206 = vst.msk [vmem:[#allocation3 + $0x120] sm:$0xff] %vm5168_vm3, %v19026_v27 }
 0x484   :  { %5207 = vst.msk [vmem:[#allocation3 + $0x128] sm:$0xff] %vm5168_vm3, %v19026_v27 }
 0x485   :  { %v15283_v15 = vpop.f32.mrf.mxu0  ;;  %5209 = vst.msk [vmem:[#allocation3 + $0x138] sm:$0xff] %vm5168_vm3, %v19026_v27  ;;  %12411 = vmatmul.msk.f32.vlgmr.msrb.gmra.mxu1 %vm5168_vm3, %v5408_v2 }
 0x486   :  { %19029 = vst [vmem:[#allocation34_spill] sm:$0xff] %v15283_v15  ;;  %12475 = vmatmul.msk.f32.vlgmr.msrb.gmra.mxu2 %vm5168_vm3, %v5343_v43  ;;  %v15299_v15 = vpop.f32.mrf.mxu1 }
 0x487   :  { %12341 = vmatmul.msk.f32.gmra.mxu3 %vm118_vm0, %v15050_v47  ;;  %5210 = vst.msk [vmem:[#allocation3 + $0x140] sm:$0xff] %vm5168_vm3, %v19026_v27 }
 0x488   :  { %12360 = vmatmul.msk.f32.gmra.mxu0 %vm118_vm0, %v4451_v39  ;;  %5212 = vst.msk [vmem:[#allocation3 + $0x150] sm:$0xff] %vm5168_vm3, %v19026_v27  ;;  %v4452_v39 = vld [vmem:[#allocation2 + $0xda] sm:$0xff] }
 0x489   :  { %5213 = vst.msk [vmem:[#allocation3 + $0x158] sm:$0xff] %vm5168_vm3, %v19026_v27 }
 0x48a   :  { %v15303_v43 = vpop.f32.mrf.mxu3  ;;  %5215 = vst.msk [vmem:[#allocation3 + $0x168] sm:$0xff] %vm5168_vm3, %v19026_v27 }
 0x48b   :  { %5216 = vst.msk [vmem:[#allocation3 + $0x170] sm:$0xff] %vm5168_vm3, %v19026_v27 }
 0x48c   :  { %5218 = vst.msk [vmem:[#allocation3 + $0x180] sm:$0xff] %vm5168_vm3, %v19026_v27 }
 0x48d   :  { %v15311_v47 = vpop.f32.mrf.mxu0  ;;  %5219 = vst.msk [vmem:[#allocation3 + $0x188] sm:$0xff] %vm5168_vm3, %v19026_v27 }
 0x48e   :  { %19030 = vst [vmem:[#allocation35_spill] sm:$0xff] %v15311_v47  ;;  %v15325_v47 = vpop.f32.mrf.mxu2  ;;  %12476 = vmatmul.msk.f32.gmra.mxu2 %vm5168_vm3, %v5344_v9 }
 0x48f   :  { %12342 = vmatmul.msk.f32.gmra.mxu3 %vm118_vm0, %v15067_v49  ;;  %5221 = vst.msk [vmem:[#allocation3 + $0x198] sm:$0xff] %vm5168_vm3, %v19026_v27  ;;  %v15334_v49 = vpop.f32.mrf.mxu1 }
 0x490   :  { %12361 = vmatmul.msk.f32.gmra.mxu0 %vm118_vm0, %v4452_v39  ;;  %5222 = vst.msk [vmem:[#allocation3 + $0x1a0] sm:$0xff] %vm5168_vm3, %v19026_v27  ;;  %v3966_v39 = vld [vmem:[#allocation2 + $0x349] sm:$0xff] }
 0x491   :  { %5224 = vst.msk [vmem:[#allocation3 + $0x1b0] sm:$0xff] %vm5168_vm3, %v19026_v27 }
 0x492   :  { %v15329_v50 = vpop.f32.mrf.mxu3  ;;  %5225 = vst.msk [vmem:[#allocation3 + $0x1b8] sm:$0xff] %vm5168_vm3, %v19026_v27 }
 0x493   :  { %5227 = vst.msk [vmem:[#allocation3 + $0x1c8] sm:$0xff] %vm5168_vm3, %v19026_v27 }
 0x494   :  { %5228 = vst.msk [vmem:[#allocation3 + $0x1d0] sm:$0xff] %vm5168_vm3, %v19026_v27 }
 0x495   :  { %v15340_v2 = vpop.f32.mrf.mxu0  ;;  %5230 = vst.msk [vmem:[#allocation3 + $0x1e0] sm:$0xff] %vm5168_vm3, %v19026_v27 }
 0x496   :  { %19031 = vst [vmem:[#allocation36_spill] sm:$0xff] %v15340_v2  ;;  %v15356_v9 = vpop.f32.mrf.mxu2 }
 0x497   :  { %12343 = vmatmul.msk.f32.gmra.mxu3 %vm118_vm0, %v3966_v39  ;;  %5231 = vst.msk [vmem:[#allocation3 + $0x1e8] sm:$0xff] %vm5168_vm3, %v19026_v27  ;;  %v15364_v2 = vpop.f32.mrf.mxu1 }
 0x498   :  { %12362 = vmatmul.msk.f32.gmra.mxu0 %vm118_vm0, %v4453_v48  ;;  %5233 = vst.msk [vmem:[#allocation3 + $0x1f8] sm:$0xff] %vm5168_vm3, %v19026_v27  ;;  %v3967_v48 = vld [vmem:[#allocation2 + $0x351] sm:$0xff] }
 0x499   :  { %19032 = vst [vmem:[#allocation37_spill] sm:$0xff] %v15356_v9 }
 0x49a   :  { %5234 = vst.msk [vmem:[#allocation3 + $0x200] sm:$0xff] %vm5168_vm3, %v19026_v27  ;;  %v15362_v39 = vpop.f32.mrf.mxu3 }
 0x49b   :  { %5236 = vst.msk [vmem:[#allocation3 + $0x210] sm:$0xff] %vm5168_vm3, %v19026_v27 }
 0x49c   :  { %19033 = vst [vmem:[#allocation38_spill] sm:$0xff] %v15364_v2 }
 0x49d   :  { %5237 = vst.msk [vmem:[#allocation3 + $0x218] sm:$0xff] %vm5168_vm3, %v19026_v27  ;;  %v4716_v61 = vpop.f32.mrf.mxu0 }
 0x49e   :  { %5239 = vst.msk [vmem:[#allocation3 + $0x228] sm:$0xff] %vm5168_vm3, %v19026_v27  ;;  %v15384_v1 = vpop.f32.mrf.mxu2  ;;  %v4908_v17 = vadd.f32 %v4716_v61, %v14567_v46 }
 0x49f   :  { %5240 = vst.msk [vmem:[#allocation3 + $0x230] sm:$0xff] %vm5168_vm3, %v19026_v27  ;;  %12344 = vmatmul.msk.f32.gmra.mxu3 %vm118_vm0, %v3967_v48  ;;  %v6276_v48 = vld [vmem:[#allocation3 + $0x2] sm:$0xff]  ;;  %v15392_v60 = vpop.f32.mrf.mxu1 }
 0x4a0   :  { %5242 = vst.msk [vmem:[#allocation3 + $0x240] sm:$0xff] %vm5168_vm3, %v19026_v27  ;;  %12363 = vmatmul.msk.f32.gmra.mxu0 %vm118_vm0, %v4454_v57  ;;  %v4455_v57 = vld [vmem:[#allocation2 + $0xfa] sm:$0xff]  ;;  %v4976_v46 = vadd.f32 %v15403_v36, %v4908_v17 }
 0x4a1   :  { %5243 = vst.msk [vmem:[#allocation3 + $0x248] sm:$0xff] %vm5168_vm3, %v19026_v27 }
 0x4a2   :  { %5245 = vst.msk [vmem:[#allocation3 + $0x258] sm:$0xff] %vm5168_vm3, %v19026_v27  ;;  %v15390_v24 = vpop.f32.mrf.mxu3 }
 0x4a3   :  { %5246 = vst.msk [vmem:[#allocation3 + $0x260] sm:$0xff] %vm5168_vm3, %v19026_v27 }
 0x4a4   :  { %5248 = vst.msk [vmem:[#allocation3 + $0x270] sm:$0xff] %vm5168_vm3, %v19026_v27 }
 0x4a5   :  { %19034 = vst [vmem:[#allocation61_spill] sm:$0xff] %v15384_v1  ;;  %v4719_v51 = vpop.f32.mrf.mxu0 }
 0x4a6   :  { %5249 = vst.msk [vmem:[#allocation3 + $0x278] sm:$0xff] %vm5168_vm3, %v19026_v27 }
 0x4a7   :  { %5251 = vst.msk [vmem:[#allocation3 + $0x288] sm:$0xff] %vm5168_vm3, %v19026_v27  ;;  %12539 = vmatmul.msk.f32.vlgmr.msrb.gmra.mxu3 %vm5168_vm3, %v6276_v48  ;;  %v4909_v48 = vadd.f32 %v4719_v51, %v14584_v30  ;;  %v5040_v30 = vmul.f32 0.1, %v4976_v46  ;;  %v15429_v17 = vpop.f32.mrf.mxu1 }
 0x4a8   :  { %19035 = vst [vmem:[#allocation62_spill] sm:$0xff] %v15390_v24  ;;  %12364 = vmatmul.msk.f32.gmra.mxu0 %vm118_vm0, %v4455_v57  ;;  %v15421_v57 = vpop.f32.mrf.mxu2 }
 0x4a9   :  { %19036 = vst [vmem:[#allocation63_spill] sm:$0xff] %v15392_v60  ;;  %v4977_v61 = vadd.f32 %v15403_v36, %v4909_v48  ;;  %v5104_v60 = vmax.f32 %v4976_v46, %v5040_v30 }
 0x4aa   :  { %5252 = vst.msk [vmem:[#allocation3 + $0x290] sm:$0xff] %vm5168_vm3, %v19026_v27  ;;  %v15427_v51 = vpop.f32.mrf.mxu3 }
 0x4ab   :  { %5254 = vst.msk [vmem:[#allocation3 + $0x2a0] sm:$0xff] %vm5168_vm3, %v19026_v27  ;;  %v5041_v48 = vmul.f32 0.1, %v4977_v61 }
 0x4ac   :  { %5255 = vst.msk [vmem:[#allocation3 + $0x2a8] sm:$0xff] %vm5168_vm3, %v19026_v27 }
 0x4ad   :  { %5257 = vst.msk [vmem:[#allocation3 + $0x2b8] sm:$0xff] %vm5168_vm3, %v19026_v27 }
 0x4ae   :  { %5258 = vst.msk [vmem:[#allocation3 + $0x2c0] sm:$0xff] %vm5168_vm3, %v19026_v27 }
 0x4af   :  { %5260 = vst.msk [vmem:[#allocation3 + $0x2d0] sm:$0xff] %vm5168_vm3, %v19026_v27  ;;  %v15454_v30 = vpop.f32.mrf.mxu1 }
 0x4b0   :  { %5261 = vst.msk [vmem:[#allocation3 + $0x2d8] sm:$0xff] %vm5168_vm3, %v19026_v27  ;;  %v15447_v1 = vpop.f32.mrf.mxu2 }
 0x4b1   :  { %5263 = vst.msk [vmem:[#allocation3 + $0x2e8] sm:$0xff] %vm5168_vm3, %v19026_v27 }
 0x4b2   :  { %19037 = vst [vmem:[#allocation64_spill] sm:$0xff] %v15421_v57  ;;  %v4722_v57 = vpop.f32.mrf.mxu0  ;;  %v15452_v46 = vpop.f32.mrf.mxu3 }
 0x4b3   :  { %5264 = vst.msk [vmem:[#allocation3 + $0x2f0] sm:$0xff] %vm5168_vm3, %v19026_v27 }
 0x4b4   :  { %5266 = vst.msk [vmem:[#allocation3 + $0x300] sm:$0xff] %vm5168_vm3, %v19026_v27 }
 0x4b5   :  { %19038 = vst [vmem:[#allocation65_spill] sm:$0xff] %v15427_v51  ;;  %v4456_v51 = vld [vmem:[#allocation2 + $0x10a] sm:$0xff] }
 0x4b6   :  { %19039 = vst [vmem:[#allocation66_spill] sm:$0xff] %v15429_v17  ;;  %v5105_v17 = vmax.f32 %v4977_v61, %v5041_v48  ;;  %12365 = vmatmul.msk.f32.gmra.mxu0 %vm118_vm0, %v4456_v51  ;;  %v4457_v51 = vld [vmem:[#allocation2 + $0x112] sm:$0xff] }
 0x4b7   :  { %5267 = vst.msk [vmem:[#allocation3 + $0x308] sm:$0xff] %vm5168_vm3, %v19026_v27 }
 0x4b8   :  { %5269 = vst.msk [vmem:[#allocation3 + $0x318] sm:$0xff] %vm5168_vm3, %v19026_v27 }
 0x4b9   :  { %5270 = vst.msk [vmem:[#allocation3 + $0x320] sm:$0xff] %vm5168_vm3, %v19026_v27 }
 0x4ba   :  { %5272 = vst.msk [vmem:[#allocation3 + $0x330] sm:$0xff] %vm5168_vm3, %v19026_v27 }
 0x4bb   :  { %5273 = vst.msk [vmem:[#allocation3 + $0x338] sm:$0xff] %vm5168_vm3, %v19026_v27 }
 0x4bc   :  { %5275 = vst.msk [vmem:[#allocation3 + $0x348] sm:$0xff] %vm5168_vm3, %v19026_v27 }
 0x4bd   :  { %5276 = vst.msk [vmem:[#allocation3 + $0x350] sm:$0xff] %vm5168_vm3, %v19026_v27 }
 0x4be   :  { %5279 = vst.msk [vmem:[#allocation3 + $0x19] sm:$0xff] %vm5168_vm3, %v5104_v60  ;;  %v4725_v60 = vpop.f32.mrf.mxu0  ;;  %12366 = vmatmul.msk.f32.gmra.mxu0 %vm118_vm0, %v4457_v51 }
 0x4bf   :  { %19040 = vst [vmem:[#allocation67_spill] sm:$0xff] %v15447_v1  ;;  %v15476_v1 = vpop.f32.mrf.mxu2 }
 0x4c0   :  { %5175 = vst.msk [vmem:[#allocation3 + $0x28] sm:$0x3] %vm5171_vm4, %v19026_v27 }
 0x4c1   :  { %5280 = vst.msk [vmem:[#allocation3 + $0x21] sm:$0xff] %vm5168_vm3, %v5105_v17 }
 0x4c2   :  { %19041 = vst [vmem:[#allocation68_spill] sm:$0xff] %v15452_v46 }
 0x4c3   :  { %19042 = vst [vmem:[#allocation69_spill] sm:$0xff] %v15454_v30  ;;  %v15474_v30 = vpop.f32.mrf.mxu3 }
 0x4c4   :  { %5172 = vst.msk [vmem:[#allocation3 + $0x10] sm:$0x3] %vm5171_vm4, %v19026_v27 }
 0x4c5   :  { %5178 = vst.msk [vmem:[#allocation3 + $0x40] sm:$0x3] %vm5171_vm4, %v19026_v27  ;;  %v5345_v61 = vld [vmem:[#allocation3 + $0x18] sm:$0xff] }
 0x4c6   :  { %5181 = vst.msk [vmem:[#allocation3 + $0x58] sm:$0x3] %vm5171_vm4, %v19026_v27  ;;  %12477 = vmatmul.msk.f32.gmra.mxu2 %vm5168_vm3, %v5345_v61  ;;  %v15484_v61 = vpop.f32.mrf.mxu1  ;;  %v4728_v46 = vpop.f32.mrf.mxu0 }
 0x4c7   :  { %5184 = vst.msk [vmem:[#allocation3 + $0x70] sm:$0x3] %vm5171_vm4, %v19026_v27 }
 0x4c8   :  { %5187 = vst.msk [vmem:[#allocation3 + $0x88] sm:$0x3] %vm5171_vm4, %v19026_v27  ;;  %v5346_v51 = vld [vmem:[#allocation3 + $0x20] sm:$0xff] }
 0x4c9   :  { %5190 = vst.msk [vmem:[#allocation3 + $0xa0] sm:$0x3] %vm5171_vm4, %v19026_v27  ;;  %v5411_v2 = vld [vmem:[#allocation3 + $0x21] sm:$0xff] }
 0x4ca   :  { %5193 = vst.msk [vmem:[#allocation3 + $0xb8] sm:$0x3] %vm5171_vm4, %v19026_v27 }
 0x4cb   :  { %5196 = vst.msk [vmem:[#allocation3 + $0xd0] sm:$0x3] %vm5171_vm4, %v19026_v27  ;;  %v5409_v17 = vld [vmem:[#allocation3 + $0x9] sm:$0xff] }
 0x4cc   :  { %v6277_v48 = vld [vmem:[#allocation3 + $0xa] sm:$0xff]  ;;  %19043 = vst [vmem:[#allocation70_spill] sm:$0xff] %v15474_v30  ;;  %12412 = vmatmul.msk.f32.gmra.mxu1 %vm5168_vm3, %v5409_v17  ;;  %v5410_v17 = vld [vmem:[#allocation3 + $0x19] sm:$0xff] }
 0x4cd   :  { %19044 = vst [vmem:[#allocation71_spill] sm:$0xff] %v15476_v1  ;;  %12540 = vmatmul.msk.f32.gmra.mxu3 %vm5168_vm3, %v6277_v48  ;;  %v4458_v1 = vld [vmem:[#allocation2 + $0x122] sm:$0xff]  ;;  %v6278_v48 = vld [vmem:[#allocation3 + $0x1a] sm:$0xff]  ;;  %v4459_v30 = vld [vmem:[#allocation2 + $0x12a] sm:$0xff] }
 0x4ce   :  { %5199 = vst.msk [vmem:[#allocation3 + $0xe8] sm:$0x3] %vm5171_vm4, %v19026_v27  ;;  %12478 = vmatmul.msk.f32.gmra.mxu2 %vm5168_vm3, %v5346_v51  ;;  %12367 = vmatmul.msk.f32.gmra.mxu0 %vm118_vm0, %v4458_v1  ;;  %v15510_v1 = vpop.f32.mrf.mxu2  ;;  %v4731_v51 = vpop.f32.mrf.mxu0 }
 0x4cf   :  { %5202 = vst.msk [vmem:[#allocation3 + $0x100] sm:$0x3] %vm5171_vm4, %v19026_v27 }
 0x4d0   :  { %19045 = vst [vmem:[#allocation72_spill] sm:$0xff] %v15484_v61  ;;  %v15500_v61 = vpop.f32.mrf.mxu3 }
 0x4d1   :  { %5205 = vst.msk [vmem:[#allocation3 + $0x118] sm:$0x3] %vm5171_vm4, %v19026_v27 }
 0x4d2   :  { %5208 = vst.msk [vmem:[#allocation3 + $0x130] sm:$0x3] %vm5171_vm4, %v19026_v27 }
 0x4d3   :  { %5211 = vst.msk [vmem:[#allocation3 + $0x148] sm:$0x3] %vm5171_vm4, %v19026_v27 }
 0x4d4   :  { %5214 = vst.msk [vmem:[#allocation3 + $0x160] sm:$0x3] %vm5171_vm4, %v19026_v27  ;;  %12413 = vmatmul.msk.f32.gmra.mxu1 %vm5168_vm3, %v5410_v17  ;;  %v15517_v17 = vpop.f32.mrf.mxu1 }
 0x4d5   :  { %5217 = vst.msk [vmem:[#allocation3 + $0x178] sm:$0x3] %vm5171_vm4, %v19026_v27  ;;  %12541 = vmatmul.msk.f32.gmra.mxu3 %vm5168_vm3, %v6278_v48  ;;  %v4911_v48 = vadd.f32 %v4725_v60, %v14618_v26 }
 0x4d6   :  { %5220 = vst.msk [vmem:[#allocation3 + $0x190] sm:$0x3] %vm5171_vm4, %v19026_v27  ;;  %12368 = vmatmul.msk.f32.gmra.mxu0 %vm118_vm0, %v4459_v30  ;;  %v4734_v30 = vpop.f32.mrf.mxu0 }
 0x4d7   :  { %19046 = vst [vmem:[#allocation73_spill] sm:$0xff] %v15500_v61  ;;  %v4910_v61 = vadd.f32 %v4722_v57, %v14601_v22  ;;  %v4913_v22 = vadd.f32 %v4731_v51, %v14652_v56  ;;  %v15548_v51 = vpop.f32.mrf.mxu2 }
 0x4d8   :  { %5223 = vst.msk [vmem:[#allocation3 + $0x1a8] sm:$0x3] %vm5171_vm4, %v19026_v27  ;;  %v15530_v26 = vpop.f32.mrf.mxu3 }
 0x4d9   :  { %5226 = vst.msk [vmem:[#allocation3 + $0x1c0] sm:$0x3] %vm5171_vm4, %v19026_v27  ;;  %v4978_v57 = vadd.f32 %v15403_v36, %v4910_v61  ;;  %v4914_v61 = vadd.f32 %v4734_v30, %v14669_v4 }
 0x4da   :  { %5229 = vst.msk [vmem:[#allocation3 + $0x1d8] sm:$0x3] %vm5171_vm4, %v19026_v27 }
 0x4db   :  { %19047 = vst [vmem:[#allocation74_spill] sm:$0xff] %v15510_v1  ;;  %v4912_v1 = vadd.f32 %v4728_v46, %v14635_v21  ;;  %v4979_v21 = vadd.f32 %v15403_v36, %v4911_v48  ;;  %v4981_v46 = vadd.f32 %v15403_v36, %v4913_v22  ;;  %v5042_v60 = vmul.f32 0.1, %v4978_v57 }
 0x4dc   :  { %5232 = vst.msk [vmem:[#allocation3 + $0x1f0] sm:$0x3] %vm5171_vm4, %v19026_v27  ;;  %12414 = vmatmul.msk.f32.gmra.mxu1 %vm5168_vm3, %v5411_v2  ;;  %v4460_v2 = vld [vmem:[#allocation2 + $0x13a] sm:$0xff]  ;;  %v4982_v48 = vadd.f32 %v15403_v36, %v4914_v61  ;;  %v15556_v22 = vpop.f32.mrf.mxu1 }
 0x4dd   :  { %5235 = vst.msk [vmem:[#allocation3 + $0x208] sm:$0x3] %vm5171_vm4, %v19026_v27  ;;  %v4980_v56 = vadd.f32 %v15403_v36, %v4912_v1  ;;  %v5045_v4 = vmul.f32 0.1, %v4981_v46  ;;  %v5106_v30 = vmax.f32 %v4978_v57, %v5042_v60  ;;  %v4461_v60 = vld [vmem:[#allocation2 + $0x142] sm:$0xff] }
 0x4de   :  { %19048 = vst [vmem:[#allocation75_spill] sm:$0xff] %v15517_v17  ;;  %v6279_v17 = vld [vmem:[#allocation3 + $0x22] sm:$0xff]  ;;  %12369 = vmatmul.msk.f32.gmra.mxu0 %vm118_vm0, %v4460_v2 }
 0x4df   :  { %5238 = vst.msk [vmem:[#allocation3 + $0x220] sm:$0x3] %vm5171_vm4, %v19026_v27  ;;  %12542 = vmatmul.msk.f32.gmra.mxu3 %vm5168_vm3, %v6279_v17  ;;  %v5043_v17 = vmul.f32 0.1, %v4979_v21  ;;  %v5044_v1 = vmul.f32 0.1, %v4980_v56  ;;  %v5109_v2 = vmax.f32 %v4981_v46, %v5045_v4 }
 0x4e0   :  { %5241 = vst.msk [vmem:[#allocation3 + $0x238] sm:$0x3] %vm5171_vm4, %v19026_v27 }
 0x4e1   :  { %5244 = vst.msk [vmem:[#allocation3 + $0x250] sm:$0x3] %vm5171_vm4, %v19026_v27  ;;  %v5107_v24 = vmax.f32 %v4979_v21, %v5043_v17  ;;  %v5108_v61 = vmax.f32 %v4980_v56, %v5044_v1  ;;  %v15574_v56 = vpop.f32.mrf.mxu2 }
 0x4e2   :  { %19049 = vst [vmem:[#allocation76_spill] sm:$0xff] %v15530_v26  ;;  %v15560_v26 = vpop.f32.mrf.mxu3 }
 0x4e3   :  { %5247 = vst.msk [vmem:[#allocation3 + $0x268] sm:$0x3] %vm5171_vm4, %v19026_v27 }
 0x4e4   :  { %5250 = vst.msk [vmem:[#allocation3 + $0x280] sm:$0x3] %vm5171_vm4, %v19026_v27 }
 0x4e5   :  { %5253 = vst.msk [vmem:[#allocation3 + $0x298] sm:$0x3] %vm5171_vm4, %v19026_v27 }
 0x4e6   :  { %5256 = vst.msk [vmem:[#allocation3 + $0x2b0] sm:$0x3] %vm5171_vm4, %v19026_v27  ;;  %12370 = vmatmul.msk.f32.gmra.mxu0 %vm118_vm0, %v4461_v60 }
 0x4e7   :  { %5259 = vst.msk [vmem:[#allocation3 + $0x2c8] sm:$0x3] %vm5171_vm4, %v19026_v27 }
 0x4e8   :  { %19050 = vst [vmem:[#allocation77_spill] sm:$0xff] %v15548_v51  ;;  %v5046_v51 = vmul.f32 0.1, %v4982_v48 }
 0x4e9   :  { %5262 = vst.msk [vmem:[#allocation3 + $0x2e0] sm:$0x3] %vm5171_vm4, %v19026_v27 }
 0x4ea   :  { %5265 = vst.msk [vmem:[#allocation3 + $0x2f8] sm:$0x3] %vm5171_vm4, %v19026_v27  ;;  %v5110_v9 = vmax.f32 %v4982_v48, %v5046_v51  ;;  %v15578_v17 = vpop.f32.mrf.mxu3  ;;  %v15580_v51 = vpop.f32.mrf.mxu1 }
 0x4eb   :  { %19051 = vst [vmem:[#allocation78_spill] sm:$0xff] %v15556_v22  ;;  %v4737_v22 = vpop.f32.mrf.mxu0 }
 0x4ec   :  { %5268 = vst.msk [vmem:[#allocation3 + $0x310] sm:$0x3] %vm5171_vm4, %v19026_v27  ;;  %v4915_v57 = vadd.f32 %v4737_v22, %v14690_v34 }
 0x4ed   :  { %5271 = vst.msk [vmem:[#allocation3 + $0x328] sm:$0x3] %vm5171_vm4, %v19026_v27 }
 0x4ee   :  { %5274 = vst.msk [vmem:[#allocation3 + $0x340] sm:$0x3] %vm5171_vm4, %v19026_v27  ;;  %v4983_v21 = vadd.f32 %v15403_v36, %v4915_v57  ;;  %v15590_v57 = vpop.f32.mrf.mxu2 }
 0x4ef   :  { %5277 = vst.msk [vmem:[#allocation3 + $0x358] sm:$0x3] %vm5171_vm4, %v19026_v27 }
 0x4f0   :  { %5281 = vst.msk [vmem:[#allocation3 + $0x31] sm:$0xff] %vm5168_vm3, %v5106_v30  ;;  %v5047_v46 = vmul.f32 0.1, %v4983_v21 }
 0x4f1   :  { %5282 = vst.msk [vmem:[#allocation3 + $0x39] sm:$0xff] %vm5168_vm3, %v5107_v24 }
 0x4f2   :  { %5283 = vst.msk [vmem:[#allocation3 + $0x49] sm:$0xff] %vm5168_vm3, %v5108_v61  ;;  %v5111_v34 = vmax.f32 %v4983_v21, %v5047_v46  ;;  %v4462_v61 = vld [vmem:[#allocation2 + $0x152] sm:$0xff] }
 0x4f3   :  { %5284 = vst.msk [vmem:[#allocation3 + $0x51] sm:$0xff] %vm5168_vm3, %v5109_v2  ;;  %v4740_v48 = vpop.f32.mrf.mxu0  ;;  %v15588_v2 = vpop.f32.mrf.mxu3  ;;  %12371 = vmatmul.msk.f32.gmra.mxu0 %vm118_vm0, %v4462_v61 }
 0x4f4   :  { %5285 = vst.msk [vmem:[#allocation3 + $0x61] sm:$0xff] %vm5168_vm3, %v5110_v9  ;;  %v4916_v4 = vadd.f32 %v4740_v48, %v14707_v63 }
 0x4f5   :  { %5286 = vst.msk [vmem:[#allocation3 + $0x69] sm:$0xff] %vm5168_vm3, %v5111_v34 }
 0x4f6   :  { %v4984_v9 = vadd.f32 %v15403_v36, %v4916_v4 }
 0x4f7   :  { %v5412_v1 = vld [vmem:[#allocation3 + $0x31] sm:$0xff] }
 0x4f8   :  { %v5347_v24 = vld [vmem:[#allocation3 + $0x30] sm:$0xff]  ;;  %12415 = vmatmul.msk.f32.gmra.mxu1 %vm5168_vm3, %v5412_v1  ;;  %v5048_v30 = vmul.f32 0.1, %v4984_v9  ;;  %v5413_v60 = vld [vmem:[#allocation3 + $0x39] sm:$0xff]  ;;  %v15593_v1 = vpop.f32.mrf.mxu1 }
 0x4f9   :  { %12479 = vmatmul.msk.f32.gmra.mxu2 %vm5168_vm3, %v5347_v24  ;;  %v6280_v22 = vld [vmem:[#allocation3 + $0x32] sm:$0xff]  ;;  %19052 = vst [vmem:[#allocation79_spill] sm:$0xff] %v15593_v1  ;;  %v6281_v63 = vld [vmem:[#allocation3 + $0x3a] sm:$0xff] }
 0x4fa   :  { %12543 = vmatmul.msk.f32.gmra.mxu3 %vm5168_vm3, %v6280_v22  ;;  %v5348_v21 = vld [vmem:[#allocation3 + $0x38] sm:$0xff]  ;;  %v5112_v46 = vmax.f32 %v4984_v9, %v5048_v30  ;;  %v5414_v9 = vld [vmem:[#allocation3 + $0x49] sm:$0xff] }
 0x4fb   :  { %v4743_v34 = vpop.f32.mrf.mxu0  ;;  %v4463_v22 = vld [vmem:[#allocation2 + $0x15a] sm:$0xff]  ;;  %v15601_v61 = vpop.f32.mrf.mxu3  ;;  %v5349_v30 = vld [vmem:[#allocation3 + $0x48] sm:$0xff] }
 0x4fc   :  { %5287 = vst.msk [vmem:[#allocation3 + $0x79] sm:$0xff] %vm5168_vm3, %v5112_v46  ;;  %v4917_v24 = vadd.f32 %v4743_v34, %v14724_v41  ;;  %12372 = vmatmul.msk.f32.gmra.mxu0 %vm118_vm0, %v4463_v22  ;;  %v5350_v22 = vld [vmem:[#allocation3 + $0x50] sm:$0xff] }
 0x4fe   :  { %v4985_v48 = vadd.f32 %v15403_v36, %v4917_v24 }
 0x500   :  { %12416 = vmatmul.msk.f32.gmra.mxu1 %vm5168_vm3, %v5413_v60  ;;  %v5049_v4 = vmul.f32 0.1, %v4985_v48  ;;  %v6282_v60 = vld [vmem:[#allocation3 + $0x4a] sm:$0xff]  ;;  %v15610_v46 = vpop.f32.mrf.mxu1 }
 0x501   :  { %12480 = vmatmul.msk.f32.gmra.mxu2 %vm5168_vm3, %v5348_v21  ;;  %v15604_v21 = vpop.f32.mrf.mxu2  ;;  %19053 = vst [vmem:[#allocation80_spill] sm:$0xff] %v15610_v46 }
 0x502   :  { %12544 = vmatmul.msk.f32.gmra.mxu3 %vm5168_vm3, %v6281_v63  ;;  %v5113_v27 = vmax.f32 %v4985_v48, %v5049_v4  ;;  %v4464_v63 = vld [vmem:[#allocation2 + $0x16a] sm:$0xff] }
 0x503   :  { %v4746_v1 = vpop.f32.mrf.mxu0  ;;  %v5415_v48 = vld [vmem:[#allocation3 + $0x51] sm:$0xff] }
 0x504   :  { %5288 = vst.msk [vmem:[#allocation3 + $0x81] sm:$0xff] %vm5168_vm3, %v5113_v27  ;;  %v4918_v41 = vadd.f32 %v4746_v1, %v14741_v44  ;;  %12373 = vmatmul.msk.f32.gmra.mxu0 %vm118_vm0, %v4464_v63  ;;  %v6283_v44 = vld [vmem:[#allocation3 + $0x52] sm:$0xff] }
 0x506   :  { %v4986_v34 = vadd.f32 %v15403_v36, %v4918_v41  ;;  %v4465_v41 = vld [vmem:[#allocation2 + $0x172] sm:$0xff] }
 0x508   :  { %12417 = vmatmul.msk.f32.gmra.mxu1 %vm5168_vm3, %v5414_v9  ;;  %v5050_v24 = vmul.f32 0.1, %v4986_v34  ;;  %v15615_v9 = vpop.f32.mrf.mxu3 }
 0x509   :  { %12481 = vmatmul.msk.f32.gmra.mxu2 %vm5168_vm3, %v5349_v30  ;;  %19054 = vst [vmem:[#allocation81_spill] sm:$0xff] %v15615_v9  ;;  %v15621_v1 = vpop.f32.mrf.mxu2  ;;  %v5351_v9 = vld [vmem:[#allocation3 + $0x60] sm:$0xff] }
 0x50a   :  { %12545 = vmatmul.msk.f32.gmra.mxu3 %vm5168_vm3, %v6282_v60  ;;  %v5114_v4 = vmax.f32 %v4986_v34, %v5050_v24  ;;  %v15625_v34 = vpop.f32.mrf.mxu1  ;;  %v5416_v24 = vld [vmem:[#allocation3 + $0x61] sm:$0xff] }
 0x50b   :  { %v4749_v30 = vpop.f32.mrf.mxu0 }
 0x50c   :  { %5289 = vst.msk [vmem:[#allocation3 + $0x91] sm:$0xff] %vm5168_vm3, %v5114_v4  ;;  %v4919_v27 = vadd.f32 %v4749_v30, %v14758_v5  ;;  %12374 = vmatmul.msk.f32.gmra.mxu0 %vm118_vm0, %v4465_v41 }
 0x50e   :  { %v4987_v60 = vadd.f32 %v15403_v36, %v4919_v27 }
 0x510   :  { %12418 = vmatmul.msk.f32.gmra.mxu1 %vm5168_vm3, %v5415_v48  ;;  %v5051_v63 = vmul.f32 0.1, %v4987_v60  ;;  %v6284_v48 = vld [vmem:[#allocation3 + $0x62] sm:$0xff]  ;;  %v15631_v5 = vpop.f32.mrf.mxu3 }
 0x511   :  { %12482 = vmatmul.msk.f32.gmra.mxu2 %vm5168_vm3, %v5350_v22  ;;  %19055 = vst [vmem:[#allocation82_spill] sm:$0xff] %v15631_v5  ;;  %v15636_v27 = vpop.f32.mrf.mxu2 }
 0x512   :  { %12546 = vmatmul.msk.f32.gmra.mxu3 %vm5168_vm3, %v6283_v44  ;;  %v5115_v22 = vmax.f32 %v4987_v60, %v5051_v63  ;;  %v4466_v44 = vld [vmem:[#allocation2 + $0x182] sm:$0xff]  ;;  %19056 = vst [vmem:[#allocation83_spill] sm:$0xff] %v15636_v27  ;;  %v15638_v60 = vpop.f32.mrf.mxu1 }
 0x513   :  { %v4752_v46 = vpop.f32.mrf.mxu0  ;;  %19057 = vst [vmem:[#allocation84_spill] sm:$0xff] %v15638_v60  ;;  %v5417_v63 = vld [vmem:[#allocation3 + $0x69] sm:$0xff] }
 0x514   :  { %5290 = vst.msk [vmem:[#allocation3 + $0x99] sm:$0xff] %vm5168_vm3, %v5115_v22  ;;  %v4920_v4 = vadd.f32 %v4752_v46, %v14775_v35  ;;  %12375 = vmatmul.msk.f32.gmra.mxu0 %vm118_vm0, %v4466_v44  ;;  %v6285_v35 = vld [vmem:[#allocation3 + $0x6a] sm:$0xff] }
 0x515   :  { %v4467_v60 = vld [vmem:[#allocation2 + $0x18a] sm:$0xff] }
 0x516   :  { %v4988_v30 = vadd.f32 %v15403_v36, %v4920_v4 }
 0x518   :  { %12419 = vmatmul.msk.f32.gmra.mxu1 %vm5168_vm3, %v5416_v24  ;;  %v5052_v41 = vmul.f32 0.1, %v4988_v30  ;;  %v5352_v24 = vld [vmem:[#allocation3 + $0x68] sm:$0xff] }
 0x519   :  { %12483 = vmatmul.msk.f32.gmra.mxu2 %vm5168_vm3, %v5351_v9  ;;  %v15649_v44 = vpop.f32.mrf.mxu2 }
 0x51a   :  { %12547 = vmatmul.msk.f32.gmra.mxu3 %vm5168_vm3, %v6284_v48  ;;  %v5116_v9 = vmax.f32 %v4988_v30, %v5052_v41  ;;  %v15646_v48 = vpop.f32.mrf.mxu3  ;;  %v5418_v30 = vld [vmem:[#allocation3 + $0x79] sm:$0xff]  ;;  %v15652_v27 = vpop.f32.mrf.mxu1 }
 0x51b   :  { %v4755_v22 = vpop.f32.mrf.mxu0  ;;  %v5353_v41 = vld [vmem:[#allocation3 + $0x78] sm:$0xff]  ;;  %19058 = vst [vmem:[#allocation85_spill] sm:$0xff] %v15652_v27 }
 0x51c   :  { %5291 = vst.msk [vmem:[#allocation3 + $0xa9] sm:$0xff] %vm5168_vm3, %v5116_v9  ;;  %v4921_v46 = vadd.f32 %v4755_v22, %v14792_v0  ;;  %12376 = vmatmul.msk.f32.gmra.mxu0 %vm118_vm0, %v4467_v60 }
 0x51e   :  { %v4989_v4 = vadd.f32 %v15403_v36, %v4921_v46 }
 0x520   :  { %12420 = vmatmul.msk.f32.gmra.mxu1 %vm5168_vm3, %v5417_v63  ;;  %v5053_v5 = vmul.f32 0.1, %v4989_v4  ;;  %v6286_v63 = vld [vmem:[#allocation3 + $0x7a] sm:$0xff] }
 0x521   :  { %12484 = vmatmul.msk.f32.gmra.mxu2 %vm5168_vm3, %v5352_v24 }
 0x522   :  { %12548 = vmatmul.msk.f32.gmra.mxu3 %vm5168_vm3, %v6285_v35  ;;  %v5117_v24 = vmax.f32 %v4989_v4, %v5053_v5  ;;  %v4468_v35 = vld [vmem:[#allocation2 + $0x19a] sm:$0xff]  ;;  %v15660_v46 = vpop.f32.mrf.mxu3 }
 0x523   :  { %v4758_v9 = vpop.f32.mrf.mxu0  ;;  %19059 = vst [vmem:[#allocation86_spill] sm:$0xff] %v15660_v46  ;;  %v5419_v5 = vld [vmem:[#allocation3 + $0x81] sm:$0xff] }
 0x524   :  { %5292 = vst.msk [vmem:[#allocation3 + $0xb1] sm:$0xff] %vm5168_vm3, %v5117_v24  ;;  %v4922_v0 = vadd.f32 %v4758_v9, %v14808_v8  ;;  %v5354_v4 = vld [vmem:[#allocation3 + $0x80] sm:$0xff]  ;;  %12377 = vmatmul.msk.f32.gmra.mxu0 %vm118_vm0, %v4468_v35  ;;  %v15669_v24 = vpop.f32.mrf.mxu1  ;;  %v5420_v35 = vld [vmem:[#allocation3 + $0x91] sm:$0xff] }
 0x525   :  { %v6287_v8 = vld [vmem:[#allocation3 + $0x82] sm:$0xff] }
 0x526   :  { %v4990_v22 = vadd.f32 %v15403_v36, %v4922_v0  ;;  %v4469_v0 = vld [vmem:[#allocation2 + $0x1a2] sm:$0xff] }
 0x528   :  { %12421 = vmatmul.msk.f32.gmra.mxu1 %vm5168_vm3, %v5418_v30  ;;  %v5054_v60 = vmul.f32 0.1, %v4990_v22  ;;  %v15663_v30 = vpop.f32.mrf.mxu2 }
 0x529   :  { %12485 = vmatmul.msk.f32.gmra.mxu2 %vm5168_vm3, %v5353_v41  ;;  %19060 = vst [vmem:[#allocation87_spill] sm:$0xff] %v15663_v30 }
 0x52a   :  { %12549 = vmatmul.msk.f32.gmra.mxu3 %vm5168_vm3, %v6286_v63  ;;  %v5118_v27 = vmax.f32 %v4990_v22, %v5054_v60  ;;  %v5355_v60 = vld [vmem:[#allocation3 + $0x90] sm:$0xff]  ;;  %v15674_v46 = vpop.f32.mrf.mxu3 }
 0x52b   :  { %v4761_v41 = vpop.f32.mrf.mxu0  ;;  %19061 = vst [vmem:[#allocation88_spill] sm:$0xff] %v15674_v46 }
 0x52c   :  { %5293 = vst.msk [vmem:[#allocation3 + $0xc1] sm:$0xff] %vm5168_vm3, %v5118_v27  ;;  %v4923_v63 = vadd.f32 %v4761_v41, %v14824_v52  ;;  %12378 = vmatmul.msk.f32.gmra.mxu0 %vm118_vm0, %v4469_v0 }
 0x52e   :  { %v4991_v9 = vadd.f32 %v15403_v36, %v4923_v63  ;;  %v15684_v63 = vpop.f32.mrf.mxu1 }
 0x52f   :  { %19063 = vst [vmem:[#allocation90_spill] sm:$0xff] %v15684_v63 }
 0x530   :  { %12422 = vmatmul.msk.f32.gmra.mxu1 %vm5168_vm3, %v5419_v5  ;;  %v5055_v22 = vmul.f32 0.1, %v4991_v9  ;;  %v6288_v5 = vld [vmem:[#allocation3 + $0x92] sm:$0xff]  ;;  %v15680_v27 = vpop.f32.mrf.mxu2 }
 0x531   :  { %12486 = vmatmul.msk.f32.gmra.mxu2 %vm5168_vm3, %v5354_v4  ;;  %19062 = vst [vmem:[#allocation89_spill] sm:$0xff] %v15680_v27 }
 0x532   :  { %12550 = vmatmul.msk.f32.gmra.mxu3 %vm5168_vm3, %v6287_v8  ;;  %v5119_v4 = vmax.f32 %v4991_v9, %v5055_v22  ;;  %v4470_v8 = vld [vmem:[#allocation2 + $0x1e2] sm:$0xff]  ;;  %v5421_v9 = vld [vmem:[#allocation3 + $0x99] sm:$0xff] }
 0x533   :  { %v4764_v30 = vpop.f32.mrf.mxu0  ;;  %v5356_v22 = vld [vmem:[#allocation3 + $0x98] sm:$0xff] }
 0x534   :  { %5294 = vst.msk [vmem:[#allocation3 + $0xc9] sm:$0xff] %vm5168_vm3, %v5119_v4  ;;  %v4924_v52 = vadd.f32 %v4764_v30, %v14841_v32  ;;  %12379 = vmatmul.msk.f32.gmra.mxu0 %vm118_vm0, %v4470_v8  ;;  %v6289_v32 = vld [vmem:[#allocation3 + $0x9a] sm:$0xff]  ;;  %v15689_v30 = vpop.f32.mrf.mxu3 }
 0x535   :  { %19064 = vst [vmem:[#allocation91_spill] sm:$0xff] %v15689_v30 }
 0x536   :  { %v4992_v41 = vadd.f32 %v15403_v36, %v4924_v52  ;;  %v4471_v52 = vld [vmem:[#allocation2 + $0x1ea] sm:$0xff]  ;;  %v15697_v8 = vpop.f32.mrf.mxu1 }
 0x537   :  { %19066 = vst [vmem:[#allocation93_spill] sm:$0xff] %v15697_v8 }
 0x538   :  { %12423 = vmatmul.msk.f32.gmra.mxu1 %vm5168_vm3, %v5420_v35  ;;  %v5056_v0 = vmul.f32 0.1, %v4992_v41  ;;  %v15695_v63 = vpop.f32.mrf.mxu2 }
 0x539   :  { %12487 = vmatmul.msk.f32.gmra.mxu2 %vm5168_vm3, %v5355_v60  ;;  %19065 = vst [vmem:[#allocation92_spill] sm:$0xff] %v15695_v63 }
 0x53a   :  { %12551 = vmatmul.msk.f32.gmra.mxu3 %vm5168_vm3, %v6288_v5  ;;  %v5120_v35 = vmax.f32 %v4992_v41, %v5056_v0  ;;  %v5422_v0 = vld [vmem:[#allocation3 + $0xa9] sm:$0xff] }
 0x53b   :  { %v4767_v60 = vpop.f32.mrf.mxu0 }
 0x53c   :  { %5295 = vst.msk [vmem:[#allocation3 + $0xd9] sm:$0xff] %vm5168_vm3, %v5120_v35  ;;  %v4925_v5 = vadd.f32 %v4767_v60, %v14858_v62  ;;  %12380 = vmatmul.msk.f32.gmra.mxu0 %vm118_vm0, %v4471_v52  ;;  %v19067_v62 = vld [vmem:[#allocation8_spill] sm:$0xff]  ;;  %v15705_v60 = vpop.f32.mrf.mxu3 }
 0x53d   :  { %19068 = vst [vmem:[#allocation8_spill] sm:$0xff] %v15705_v60 }
 0x53e   :  { %v4993_v4 = vadd.f32 %v15403_v36, %v4925_v5  ;;  %v4472_v5 = vld [vmem:[#allocation2 + $0x1fa] sm:$0xff]  ;;  %v15710_v63 = vpop.f32.mrf.mxu1 }
 0x53f   :  { %19070 = vst [vmem:[#allocation95_spill] sm:$0xff] %v15710_v63 }
 0x540   :  { %12424 = vmatmul.msk.f32.gmra.mxu1 %vm5168_vm3, %v5421_v9  ;;  %v5057_v41 = vmul.f32 0.1, %v4993_v4  ;;  %v5357_v9 = vld [vmem:[#allocation3 + $0xa8] sm:$0xff]  ;;  %v15708_v52 = vpop.f32.mrf.mxu2 }
 0x541   :  { %12488 = vmatmul.msk.f32.gmra.mxu2 %vm5168_vm3, %v5356_v22  ;;  %v6290_v22 = vld [vmem:[#allocation3 + $0xaa] sm:$0xff]  ;;  %19069 = vst [vmem:[#allocation94_spill] sm:$0xff] %v15708_v52 }
 0x542   :  { %12552 = vmatmul.msk.f32.gmra.mxu3 %vm5168_vm3, %v6289_v32  ;;  %v5121_v30 = vmax.f32 %v4993_v4, %v5057_v41  ;;  %v5423_v4 = vld [vmem:[#allocation3 + $0xb1] sm:$0xff] }
 0x543   :  { %v4770_v46 = vpop.f32.mrf.mxu0  ;;  %v5358_v41 = vld [vmem:[#allocation3 + $0xb0] sm:$0xff] }
 0x544   :  { %5296 = vst.msk [vmem:[#allocation3 + $0xe1] sm:$0xff] %vm5168_vm3, %v5121_v30  ;;  %v4926_v35 = vadd.f32 %v4770_v46, %v19067_v62  ;;  %12381 = vmatmul.msk.f32.gmra.mxu0 %vm118_vm0, %v4472_v5  ;;  %v6291_v46 = vld [vmem:[#allocation3 + $0xb2] sm:$0xff]  ;;  %v15719_v60 = vpop.f32.mrf.mxu3 }
 0x546   :  { %v4994_v32 = vadd.f32 %v15403_v36, %v4926_v35  ;;  %v4473_v35 = vld [vmem:[#allocation2 + $0x202] sm:$0xff] }
 0x548   :  { %12425 = vmatmul.msk.f32.gmra.mxu1 %vm5168_vm3, %v5422_v0  ;;  %v5058_v8 = vmul.f32 0.1, %v4994_v32  ;;  %v15721_v5 = vpop.f32.mrf.mxu2 }
 0x549   :  { %12489 = vmatmul.msk.f32.gmra.mxu2 %vm5168_vm3, %v5357_v9  ;;  %v19071_v9 = vld [vmem:[#allocation9_spill] sm:$0xff]  ;;  %19073 = vst [vmem:[#allocation96_spill] sm:$0xff] %v15721_v5  ;;  %v15724_v52 = vpop.f32.mrf.mxu1  ;;  %v5360_v5 = vld [vmem:[#allocation3 + $0xc8] sm:$0xff] }
 0x54a   :  { %12553 = vmatmul.msk.f32.gmra.mxu3 %vm5168_vm3, %v6290_v22  ;;  %v5122_v0 = vmax.f32 %v4994_v32, %v5058_v8  ;;  %19072 = vst [vmem:[#allocation9_spill] sm:$0xff] %v15719_v60  ;;  %v5424_v8 = vld [vmem:[#allocation3 + $0xc1] sm:$0xff] }
 0x54b   :  { %v4773_v30 = vpop.f32.mrf.mxu0  ;;  %v5359_v32 = vld [vmem:[#allocation3 + $0xc0] sm:$0xff]  ;;  %19074 = vst [vmem:[#allocation97_spill] sm:$0xff] %v15724_v52 }
 0x54c   :  { %5297 = vst.msk [vmem:[#allocation3 + $0xf1] sm:$0xff] %vm5168_vm3, %v5122_v0  ;;  %v4927_v22 = vadd.f32 %v4773_v30, %v19071_v9  ;;  %12382 = vmatmul.msk.f32.gmra.mxu0 %vm118_vm0, %v4473_v35  ;;  %v19075_v30 = vld [vmem:[#allocation10_spill] sm:$0xff]  ;;  %v5425_v35 = vld [vmem:[#allocation3 + $0xc9] sm:$0xff] }
 0x54e   :  { %v4995_v62 = vadd.f32 %v15403_v36, %v4927_v22  ;;  %v4474_v22 = vld [vmem:[#allocation2 + $0x212] sm:$0xff] }
 0x550   :  { %12426 = vmatmul.msk.f32.gmra.mxu1 %vm5168_vm3, %v5423_v4  ;;  %v5059_v63 = vmul.f32 0.1, %v4995_v62  ;;  %v6292_v4 = vld [vmem:[#allocation3 + $0xc2] sm:$0xff] }
 0x551   :  { %12490 = vmatmul.msk.f32.gmra.mxu2 %vm5168_vm3, %v5358_v41 }
 0x552   :  { %12554 = vmatmul.msk.f32.gmra.mxu3 %vm5168_vm3, %v6291_v46  ;;  %v5123_v41 = vmax.f32 %v4995_v62, %v5059_v63  ;;  %v15733_v63 = vpop.f32.mrf.mxu3 }
 0x553   :  { %v4776_v0 = vpop.f32.mrf.mxu0  ;;  %19076 = vst [vmem:[#allocation10_spill] sm:$0xff] %v15733_v63  ;;  %v5361_v63 = vld [vmem:[#allocation3 + $0xd8] sm:$0xff] }
 0x554   :  { %5298 = vst.msk [vmem:[#allocation3 + $0xf9] sm:$0xff] %vm5168_vm3, %v5123_v41  ;;  %v4928_v46 = vadd.f32 %v4776_v0, %v19075_v30  ;;  %12383 = vmatmul.msk.f32.gmra.mxu0 %vm118_vm0, %v4474_v22  ;;  %v6293_v41 = vld [vmem:[#allocation3 + $0xca] sm:$0xff]  ;;  %v15741_v30 = vpop.f32.mrf.mxu1  ;;  %v4475_v22 = vld [vmem:[#allocation2 + $0x21a] sm:$0xff] }
 0x556   :  { %v4996_v9 = vadd.f32 %v15403_v36, %v4928_v46 }
 0x558   :  { %12427 = vmatmul.msk.f32.gmra.mxu1 %vm5168_vm3, %v5424_v8  ;;  %v5060_v60 = vmul.f32 0.1, %v4996_v9  ;;  %v15735_v8 = vpop.f32.mrf.mxu2 }
 0x559   :  { %12491 = vmatmul.msk.f32.gmra.mxu2 %vm5168_vm3, %v5359_v32  ;;  %19077 = vst [vmem:[#allocation98_spill] sm:$0xff] %v15735_v8 }
 0x55a   :  { %12555 = vmatmul.msk.f32.gmra.mxu3 %vm5168_vm3, %v6292_v4  ;;  %v5124_v62 = vmax.f32 %v4996_v9, %v5060_v60  ;;  %v19078_v4 = vld [vmem:[#allocation11_spill] sm:$0xff] }
 0x55b   :  { %v4779_v32 = vpop.f32.mrf.mxu0  ;;  %19079 = vst [vmem:[#allocation11_spill] sm:$0xff] %v15741_v30  ;;  %v5426_v9 = vld [vmem:[#allocation3 + $0xd9] sm:$0xff] }
 0x55c   :  { %5299 = vst.msk [vmem:[#allocation3 + $0x109] sm:$0xff] %vm5168_vm3, %v5124_v62  ;;  %v4929_v0 = vadd.f32 %v4779_v32, %v19078_v4  ;;  %12384 = vmatmul.msk.f32.gmra.mxu0 %vm118_vm0, %v4475_v22  ;;  %v15750_v62 = vpop.f32.mrf.mxu3  ;;  %v19082_v32 = vld [vmem:[#allocation12_spill] sm:$0xff]  ;;  %v15756_v22 = vpop.f32.mrf.mxu1  ;;  %v5429_v27 = vld [vmem:[#allocation3 + $0xf9] sm:$0xff] }
 0x55d   :  { %19081 = vst [vmem:[#allocation100_spill] sm:$0xff] %v15750_v62  ;;  %v5428_v62 = vld [vmem:[#allocation3 + $0xf1] sm:$0xff] }
 0x55e   :  { %v4997_v46 = vadd.f32 %v15403_v36, %v4929_v0  ;;  %v4476_v0 = vld [vmem:[#allocation2 + $0x22a] sm:$0xff]  ;;  %19083 = vst [vmem:[#allocation12_spill] sm:$0xff] %v15756_v22 }
 0x560   :  { %12428 = vmatmul.msk.f32.gmra.mxu1 %vm5168_vm3, %v5425_v35  ;;  %v5061_v60 = vmul.f32 0.1, %v4997_v46  ;;  %v6294_v35 = vld [vmem:[#allocation3 + $0xda] sm:$0xff] }
 0x561   :  { %12492 = vmatmul.msk.f32.gmra.mxu2 %vm5168_vm3, %v5360_v5  ;;  %v15746_v5 = vpop.f32.mrf.mxu2 }
 0x562   :  { %12556 = vmatmul.msk.f32.gmra.mxu3 %vm5168_vm3, %v6293_v41  ;;  %v5125_v8 = vmax.f32 %v4997_v46, %v5061_v60  ;;  %19080 = vst [vmem:[#allocation99_spill] sm:$0xff] %v15746_v5  ;;  %v5427_v60 = vld [vmem:[#allocation3 + $0xe1] sm:$0xff] }
 0x563   :  { %v4782_v52 = vpop.f32.mrf.mxu0  ;;  %v5362_v5 = vld [vmem:[#allocation3 + $0xe0] sm:$0xff] }
 0x564   :  { %5300 = vst.msk [vmem:[#allocation3 + $0x111] sm:$0xff] %vm5168_vm3, %v5125_v8  ;;  %v4930_v41 = vadd.f32 %v4782_v52, %v19082_v32  ;;  %12385 = vmatmul.msk.f32.gmra.mxu0 %vm118_vm0, %v4476_v0  ;;  %v6295_v8 = vld [vmem:[#allocation3 + $0xe2] sm:$0xff]  ;;  %v19084_v52 = vld [vmem:[#allocation13_spill] sm:$0xff] }
 0x565   :  { %v4477_v0 = vld [vmem:[#allocation2 + $0x232] sm:$0xff] }
 0x566   :  { %v4998_v4 = vadd.f32 %v15403_v36, %v4930_v41  ;;  %v15766_v41 = vpop.f32.mrf.mxu3 }
 0x567   :  { %19086 = vst [vmem:[#allocation101_spill] sm:$0xff] %v15766_v41 }
 0x568   :  { %12429 = vmatmul.msk.f32.gmra.mxu1 %vm5168_vm3, %v5426_v9  ;;  %v5062_v46 = vmul.f32 0.1, %v4998_v4 }
 0x569   :  { %12493 = vmatmul.msk.f32.gmra.mxu2 %vm5168_vm3, %v5361_v63  ;;  %v15763_v32 = vpop.f32.mrf.mxu2 }
 0x56a   :  { %12557 = vmatmul.msk.f32.gmra.mxu3 %vm5168_vm3, %v6294_v35  ;;  %v5126_v9 = vmax.f32 %v4998_v4, %v5062_v46  ;;  %19085 = vst [vmem:[#allocation13_spill] sm:$0xff] %v15763_v32 }
 0x56b   :  { %v4785_v63 = vpop.f32.mrf.mxu0 }
 0x56c   :  { %5301 = vst.msk [vmem:[#allocation3 + $0x121] sm:$0xff] %vm5168_vm3, %v5126_v9  ;;  %v4931_v35 = vadd.f32 %v4785_v63, %v19084_v52  ;;  %12386 = vmatmul.msk.f32.gmra.mxu0 %vm118_vm0, %v4477_v0  ;;  %v4478_v63 = vld [vmem:[#allocation2 + $0x242] sm:$0xff]  ;;  %v5364_v0 = vld [vmem:[#allocation3 + $0xf8] sm:$0xff] }
 0x56e   :  { %v4999_v22 = vadd.f32 %v15403_v36, %v4931_v35 }
 0x570   :  { %12430 = vmatmul.msk.f32.gmra.mxu1 %vm5168_vm3, %v5427_v60  ;;  %v5063_v4 = vmul.f32 0.1, %v4999_v22  ;;  %v5363_v60 = vld [vmem:[#allocation3 + $0xf0] sm:$0xff] }
 0x571   :  { %12494 = vmatmul.msk.f32.gmra.mxu2 %vm5168_vm3, %v5362_v5  ;;  %v6296_v5 = vld [vmem:[#allocation3 + $0xf2] sm:$0xff] }
 0x572   :  { %12558 = vmatmul.msk.f32.gmra.mxu3 %vm5168_vm3, %v6295_v8  ;;  %v5127_v30 = vmax.f32 %v4999_v22, %v5063_v4 }
 0x573   :  { %v4788_v9 = vpop.f32.mrf.mxu0 }
 0x574   :  { %5302 = vst.msk [vmem:[#allocation3 + $0x129] sm:$0xff] %vm5168_vm3, %v5127_v30  ;;  %v4932_v52 = vadd.f32 %v4788_v9, %v14977_v23  ;;  %12387 = vmatmul.msk.f32.gmra.mxu0 %vm118_vm0, %v4478_v63  ;;  %v6297_v30 = vld [vmem:[#allocation3 + $0xfa] sm:$0xff] }
 0x575   :  { %v5695_v46 = vpop.f32.mrf.mxu1 }
 0x576   :  { %v5000_v22 = vadd.f32 %v15403_v36, %v4932_v52  ;;  %v5430_v52 = vld [vmem:[#allocation3 + $0x109] sm:$0xff] }
 0x578   :  { %12431 = vmatmul.msk.f32.gmra.mxu1 %vm5168_vm3, %v5428_v62  ;;  %v5064_v4 = vmul.f32 0.1, %v5000_v22 }
 0x579   :  { %12495 = vmatmul.msk.f32.gmra.mxu2 %vm5168_vm3, %v5363_v60  ;;  %v4479_v60 = vld [vmem:[#allocation2 + $0x24a] sm:$0xff] }
 0x57a   :  { %12559 = vmatmul.msk.f32.gmra.mxu3 %vm5168_vm3, %v6296_v5  ;;  %v5128_v23 = vmax.f32 %v5000_v22, %v5064_v4  ;;  %v4480_v4 = vld [vmem:[#allocation2 + $0x25a] sm:$0xff] }
 0x57c   :  { %v6096_v8 = vpop.f32.mrf.mxu2  ;;  %5303 = vst.msk [vmem:[#allocation3 + $0x139] sm:$0xff] %vm5168_vm3, %v5128_v23  ;;  %12388 = vmatmul.msk.f32.gmra.mxu0 %vm118_vm0, %v4479_v60 }
 0x57d   :  { %v6097_v35 = vadd.f32 %v6096_v8, %v5695_v46  ;;  %v6563_v41 = vpop.f32.mrf.mxu3  ;;  %v5698_v32 = vpop.f32.mrf.mxu1 }
 0x57e   :  { %v4791_v46 = vpop.f32.mrf.mxu0 }
 0x57f   :  { %v15777_v62 = vadd.f32 %v6563_v41, %v6097_v35  ;;  %v4933_v9 = vadd.f32 %v4791_v46, %v14994_v10  ;;  %v5365_v35 = vld [vmem:[#allocation3 + $0x108] sm:$0xff] }
 0x580   :  { %12432 = vmatmul.msk.f32.gmra.mxu1 %vm5168_vm3, %v5429_v27 }
 0x581   :  { %12496 = vmatmul.msk.f32.gmra.mxu2 %vm5168_vm3, %v5364_v0  ;;  %v5001_v27 = vadd.f32 %v15403_v36, %v4933_v9 }
 0x582   :  { %12560 = vmatmul.msk.f32.gmra.mxu3 %vm5168_vm3, %v6297_v30  ;;  %v6298_v30 = vld [vmem:[#allocation3 + $0x10a] sm:$0xff] }
 0x583   :  { %v5065_v22 = vmul.f32 0.1, %v5001_v27 }
 0x584   :  { %v6099_v5 = vpop.f32.mrf.mxu2  ;;  %12389 = vmatmul.msk.f32.gmra.mxu0 %vm118_vm0, %v4480_v4 }
 0x585   :  { %v6100_v8 = vadd.f32 %v6099_v5, %v5698_v32  ;;  %v6566_v63 = vpop.f32.mrf.mxu3  ;;  %v5701_v41 = vpop.f32.mrf.mxu1  ;;  %v5129_v10 = vmax.f32 %v5001_v27, %v5065_v22  ;;  %v6299_v27 = vld [vmem:[#allocation3 + $0x112] sm:$0xff] }
 0x586   :  { %v4794_v32 = vpop.f32.mrf.mxu0 }
 0x587   :  { %v15786_v0 = vadd.f32 %v6566_v63, %v6100_v8  ;;  %5304 = vst.msk [vmem:[#allocation3 + $0x141] sm:$0xff] %vm5168_vm3, %v5129_v10  ;;  %v4934_v46 = vadd.f32 %v4794_v32, %v15011_v28  ;;  %v5431_v8 = vld [vmem:[#allocation3 + $0x111] sm:$0xff] }
 0x588   :  { %12433 = vmatmul.msk.f32.gmra.mxu1 %vm5168_vm3, %v5430_v52  ;;  %v5366_v63 = vld [vmem:[#allocation3 + $0x110] sm:$0xff] }
 0x589   :  { %19087 = vst [vmem:[#allocation102_spill] sm:$0xff] %v15786_v0  ;;  %12497 = vmatmul.msk.f32.gmra.mxu2 %vm5168_vm3, %v5365_v35  ;;  %v5002_v0 = vadd.f32 %v15403_v36, %v4934_v46  ;;  %v5432_v46 = vld [vmem:[#allocation3 + $0x121] sm:$0xff] }
 0x58a   :  { %12561 = vmatmul.msk.f32.gmra.mxu3 %vm5168_vm3, %v6298_v30  ;;  %v4481_v30 = vld [vmem:[#allocation2 + $0x262] sm:$0xff] }
 0x58b   :  { %v5066_v35 = vmul.f32 0.1, %v5002_v0 }
 0x58c   :  { %v6102_v23 = vpop.f32.mrf.mxu2  ;;  %12390 = vmatmul.msk.f32.gmra.mxu0 %vm118_vm0, %v4481_v30 }
 0x58d   :  { %v6103_v5 = vadd.f32 %v6102_v23, %v5701_v41  ;;  %v6569_v60 = vpop.f32.mrf.mxu3  ;;  %v5704_v9 = vpop.f32.mrf.mxu1  ;;  %v5130_v28 = vmax.f32 %v5002_v0, %v5066_v35  ;;  %v4482_v35 = vld [vmem:[#allocation2 + $0x272] sm:$0xff] }
 0x58e   :  { %v4797_v41 = vpop.f32.mrf.mxu0 }
 0x58f   :  { %v15795_v52 = vadd.f32 %v6569_v60, %v6103_v5  ;;  %5305 = vst.msk [vmem:[#allocation3 + $0x151] sm:$0xff] %vm5168_vm3, %v5130_v28  ;;  %v4935_v10 = vadd.f32 %v4797_v41, %v15028_v7  ;;  %v5367_v5 = vld [vmem:[#allocation3 + $0x120] sm:$0xff] }
 0x590   :  { %12434 = vmatmul.msk.f32.gmra.mxu1 %vm5168_vm3, %v5431_v8 }
 0x591   :  { %12498 = vmatmul.msk.f32.gmra.mxu2 %vm5168_vm3, %v5366_v63  ;;  %v5003_v60 = vadd.f32 %v15403_v36, %v4935_v10  ;;  %v6300_v63 = vld [vmem:[#allocation3 + $0x122] sm:$0xff] }
 0x592   :  { %12562 = vmatmul.msk.f32.gmra.mxu3 %vm5168_vm3, %v6299_v27  ;;  %v5433_v10 = vld [vmem:[#allocation3 + $0x129] sm:$0xff] }
 0x593   :  { %v5067_v0 = vmul.f32 0.1, %v5003_v60 }
 0x594   :  { %v6105_v22 = vpop.f32.mrf.mxu2  ;;  %12391 = vmatmul.msk.f32.gmra.mxu0 %vm118_vm0, %v4482_v35 }
 0x595   :  { %v6106_v32 = vadd.f32 %v6105_v22, %v5704_v9  ;;  %v6572_v4 = vpop.f32.mrf.mxu3  ;;  %v5707_v23 = vpop.f32.mrf.mxu1  ;;  %v5131_v7 = vmax.f32 %v5003_v60, %v5067_v0  ;;  %v6301_v60 = vld [vmem:[#allocation3 + $0x12a] sm:$0xff] }
 0x596   :  { %v4800_v9 = vpop.f32.mrf.mxu0 }
 0x597   :  { %v15804_v8 = vadd.f32 %v6572_v4, %v6106_v32  ;;  %5306 = vst.msk [vmem:[#allocation3 + $0x159] sm:$0xff] %vm5168_vm3, %v5131_v7  ;;  %v4936_v28 = vadd.f32 %v4800_v9, %v15045_v42  ;;  %v5368_v32 = vld [vmem:[#allocation3 + $0x128] sm:$0xff] }
 0x598   :  { %12435 = vmatmul.msk.f32.gmra.mxu1 %vm5168_vm3, %v5432_v46 }
 0x599   :  { %12499 = vmatmul.msk.f32.gmra.mxu2 %vm5168_vm3, %v5367_v5  ;;  %v5004_v4 = vadd.f32 %v15403_v36, %v4936_v28  ;;  %v5369_v28 = vld [vmem:[#allocation3 + $0x138] sm:$0xff] }
 0x59a   :  { %12563 = vmatmul.msk.f32.gmra.mxu3 %vm5168_vm3, %v6300_v63  ;;  %v4483_v63 = vld [vmem:[#allocation2 + $0x27a] sm:$0xff] }
 0x59b   :  { %v5068_v5 = vmul.f32 0.1, %v5004_v4 }
 0x59c   :  { %v6108_v27 = vpop.f32.mrf.mxu2  ;;  %12392 = vmatmul.msk.f32.gmra.mxu0 %vm118_vm0, %v4483_v63 }
 0x59d   :  { %v6109_v41 = vadd.f32 %v6108_v27, %v5707_v23  ;;  %v6575_v30 = vpop.f32.mrf.mxu3  ;;  %v5710_v22 = vpop.f32.mrf.mxu1  ;;  %v5132_v42 = vmax.f32 %v5004_v4, %v5068_v5  ;;  %v5434_v27 = vld [vmem:[#allocation3 + $0x139] sm:$0xff]  ;;  %v4484_v5 = vld [vmem:[#allocation2 + $0x28a] sm:$0xff] }
 0x59e   :  { %v4803_v23 = vpop.f32.mrf.mxu0 }
 0x59f   :  { %v15813_v46 = vadd.f32 %v6575_v30, %v6109_v41  ;;  %5307 = vst.msk [vmem:[#allocation3 + $0x169] sm:$0xff] %vm5168_vm3, %v5132_v42  ;;  %v4937_v36 = vadd.f32 %v4803_v23, %v15062_v55  ;;  %v15823_v41 = vld [vmem:[%s18907_s4] ss:$0 sm:$0xff]  ;;  %v19089_v42 = vld [vmem:[#allocation20_spill] sm:$0xff] }
 0x5a0   :  { %12436 = vmatmul.msk.f32.gmra.mxu1 %vm5168_vm3, %v5433_v10 }
 0x5a1   :  { %12500 = vmatmul.msk.f32.gmra.mxu2 %vm5168_vm3, %v5368_v32  ;;  %v5005_v30 = vadd.f32 %v15823_v41, %v4937_v36  ;;  %v6302_v32 = vld [vmem:[#allocation3 + $0x13a] sm:$0xff] }
 0x5a2   :  { %12564 = vmatmul.msk.f32.gmra.mxu3 %vm5168_vm3, %v6301_v60 }
 0x5a3   :  { %v5069_v4 = vmul.f32 0.1, %v5005_v30 }
 0x5a4   :  { %v6111_v0 = vpop.f32.mrf.mxu2  ;;  %12393 = vmatmul.msk.f32.gmra.mxu0 %vm118_vm0, %v4484_v5 }
 0x5a5   :  { %v6112_v7 = vadd.f32 %v6111_v0, %v5710_v22  ;;  %v6578_v9 = vpop.f32.mrf.mxu3  ;;  %v5713_v35 = vpop.f32.mrf.mxu1  ;;  %v5133_v55 = vmax.f32 %v5005_v30, %v5069_v4  ;;  %v6303_v30 = vld [vmem:[#allocation3 + $0x142] sm:$0xff]  ;;  %v4485_v4 = vld [vmem:[#allocation2 + $0x292] sm:$0xff] }
 0x5a6   :  { %v4806_v22 = vpop.f32.mrf.mxu0 }
 0x5a7   :  { %v15827_v10 = vadd.f32 %v6578_v9, %v6112_v7  ;;  %5308 = vst.msk [vmem:[#allocation3 + $0x171] sm:$0xff] %vm5168_vm3, %v5133_v55  ;;  %v4938_v23 = vadd.f32 %v4806_v22, %v19089_v42  ;;  %v5435_v7 = vld [vmem:[#allocation3 + $0x141] sm:$0xff] }
 0x5a8   :  { %12437 = vmatmul.msk.f32.gmra.mxu1 %vm5168_vm3, %v5434_v27  ;;  %v5370_v9 = vld [vmem:[#allocation3 + $0x140] sm:$0xff] }
 0x5a9   :  { %19088 = vst [vmem:[#allocation103_spill] sm:$0xff] %v15827_v10  ;;  %12501 = vmatmul.msk.f32.gmra.mxu2 %vm5168_vm3, %v5369_v28  ;;  %v5006_v10 = vadd.f32 %v15823_v41, %v4938_v23  ;;  %v5436_v23 = vld [vmem:[#allocation3 + $0x151] sm:$0xff] }
 0x5aa   :  { %12565 = vmatmul.msk.f32.gmra.mxu3 %vm5168_vm3, %v6302_v32 }
 0x5ab   :  { %v5070_v28 = vmul.f32 0.1, %v5006_v10 }
 0x5ac   :  { %v6114_v60 = vpop.f32.mrf.mxu2  ;;  %12394 = vmatmul.msk.f32.gmra.mxu0 %vm118_vm0, %v4485_v4 }
 0x5ad   :  { %v6115_v0 = vadd.f32 %v6114_v60, %v5713_v35  ;;  %v6581_v63 = vpop.f32.mrf.mxu3  ;;  %v5716_v36 = vpop.f32.mrf.mxu1  ;;  %v5134_v32 = vmax.f32 %v5006_v10, %v5070_v28  ;;  %v4486_v28 = vld [vmem:[#allocation2 + $0x2a2] sm:$0xff] }
 0x5ae   :  { %v4809_v35 = vpop.f32.mrf.mxu0 }
 0x5af   :  { %v15836_v27 = vadd.f32 %v6581_v63, %v6115_v0  ;;  %5309 = vst.msk [vmem:[#allocation3 + $0x181] sm:$0xff] %vm5168_vm3, %v5134_v32  ;;  %v4939_v22 = vadd.f32 %v4809_v35, %v15093_v33  ;;  %v5371_v0 = vld [vmem:[#allocation3 + $0x150] sm:$0xff] }
 0x5b0   :  { %12438 = vmatmul.msk.f32.gmra.mxu1 %vm5168_vm3, %v5435_v7 }
 0x5b1   :  { %12502 = vmatmul.msk.f32.gmra.mxu2 %vm5168_vm3, %v5370_v9  ;;  %v5007_v63 = vadd.f32 %v15823_v41, %v4939_v22  ;;  %v6304_v9 = vld [vmem:[#allocation3 + $0x152] sm:$0xff] }
 0x5b2   :  { %12566 = vmatmul.msk.f32.gmra.mxu3 %vm5168_vm3, %v6303_v30  ;;  %v5437_v22 = vld [vmem:[#allocation3 + $0x159] sm:$0xff] }
 0x5b3   :  { %v5071_v10 = vmul.f32 0.1, %v5007_v63 }
 0x5b4   :  { %v6117_v55 = vpop.f32.mrf.mxu2  ;;  %12395 = vmatmul.msk.f32.gmra.mxu0 %vm118_vm0, %v4486_v28 }
 0x5b5   :  { %v6118_v60 = vadd.f32 %v6117_v55, %v5716_v36  ;;  %v6584_v5 = vpop.f32.mrf.mxu3  ;;  %v5719_v42 = vpop.f32.mrf.mxu1  ;;  %v5135_v33 = vmax.f32 %v5007_v63, %v5071_v10  ;;  %v6305_v63 = vld [vmem:[#allocation3 + $0x15a] sm:$0xff] }
 0x5b6   :  { %v4812_v36 = vpop.f32.mrf.mxu0 }
 0x5b7   :  { %v15845_v7 = vadd.f32 %v6584_v5, %v6118_v60  ;;  %5310 = vst.msk [vmem:[#allocation3 + $0x189] sm:$0xff] %vm5168_vm3, %v5135_v33  ;;  %v4940_v32 = vadd.f32 %v4812_v36, %v15107_v11  ;;  %v5372_v60 = vld [vmem:[#allocation3 + $0x158] sm:$0xff] }
 0x5b8   :  { %12439 = vmatmul.msk.f32.gmra.mxu1 %vm5168_vm3, %v5436_v23 }
 0x5b9   :  { %12503 = vmatmul.msk.f32.gmra.mxu2 %vm5168_vm3, %v5371_v0  ;;  %v5008_v5 = vadd.f32 %v15823_v41, %v4940_v32  ;;  %v5438_v32 = vld [vmem:[#allocation3 + $0x169] sm:$0xff] }
 0x5ba   :  { %12567 = vmatmul.msk.f32.gmra.mxu3 %vm5168_vm3, %v6304_v9  ;;  %v4487_v9 = vld [vmem:[#allocation2 + $0x2aa] sm:$0xff] }
 0x5bb   :  { %v5072_v0 = vmul.f32 0.1, %v5008_v5 }
 0x5bc   :  { %v6120_v30 = vpop.f32.mrf.mxu2  ;;  %12396 = vmatmul.msk.f32.gmra.mxu0 %vm118_vm0, %v4487_v9 }
 0x5bd   :  { %v6121_v35 = vadd.f32 %v6120_v30, %v5719_v42  ;;  %v6587_v4 = vpop.f32.mrf.mxu3  ;;  %v5722_v55 = vpop.f32.mrf.mxu1  ;;  %v5136_v11 = vmax.f32 %v5008_v5, %v5072_v0  ;;  %v4488_v0 = vld [vmem:[#allocation2 + $0x2ba] sm:$0xff] }
 0x5be   :  { %v4815_v42 = vpop.f32.mrf.mxu0 }
 0x5bf   :  { %v15854_v23 = vadd.f32 %v6587_v4, %v6121_v35  ;;  %5311 = vst.msk [vmem:[#allocation3 + $0x1c9] sm:$0xff] %vm5168_vm3, %v5136_v11  ;;  %v4941_v33 = vadd.f32 %v4815_v42, %v15121_v20  ;;  %v5373_v35 = vld [vmem:[#allocation3 + $0x168] sm:$0xff] }
 0x5c0   :  { %12440 = vmatmul.msk.f32.gmra.mxu1 %vm5168_vm3, %v5437_v22 }
 0x5c1   :  { %12504 = vmatmul.msk.f32.gmra.mxu2 %vm5168_vm3, %v5372_v60  ;;  %v5009_v4 = vadd.f32 %v15823_v41, %v4941_v33  ;;  %v6306_v60 = vld [vmem:[#allocation3 + $0x16a] sm:$0xff] }
 0x5c2   :  { %12568 = vmatmul.msk.f32.gmra.mxu3 %vm5168_vm3, %v6305_v63  ;;  %v5439_v33 = vld [vmem:[#allocation3 + $0x171] sm:$0xff] }
 0x5c3   :  { %v5073_v5 = vmul.f32 0.1, %v5009_v4 }
 0x5c4   :  { %v6123_v10 = vpop.f32.mrf.mxu2  ;;  %12397 = vmatmul.msk.f32.gmra.mxu0 %vm118_vm0, %v4488_v0 }
 0x5c5   :  { %v6124_v36 = vadd.f32 %v6123_v10, %v5722_v55  ;;  %v6590_v28 = vpop.f32.mrf.mxu3  ;;  %v5725_v30 = vpop.f32.mrf.mxu1  ;;  %v5137_v20 = vmax.f32 %v5009_v4, %v5073_v5  ;;  %v6307_v4 = vld [vmem:[#allocation3 + $0x172] sm:$0xff] }
 0x5c6   :  { %v4818_v55 = vpop.f32.mrf.mxu0 }
 0x5c7   :  { %v15863_v22 = vadd.f32 %v6590_v28, %v6124_v36  ;;  %5312 = vst.msk [vmem:[#allocation3 + $0x1d1] sm:$0xff] %vm5168_vm3, %v5137_v20  ;;  %v4942_v11 = vadd.f32 %v4818_v55, %v15133_v3  ;;  %v5374_v36 = vld [vmem:[#allocation3 + $0x170] sm:$0xff] }
 0x5c8   :  { %12441 = vmatmul.msk.f32.gmra.mxu1 %vm5168_vm3, %v5438_v32 }
 0x5c9   :  { %12505 = vmatmul.msk.f32.gmra.mxu2 %vm5168_vm3, %v5373_v35  ;;  %v5010_v28 = vadd.f32 %v15823_v41, %v4942_v11  ;;  %v5440_v11 = vld [vmem:[#allocation3 + $0x1b1] sm:$0xff] }
 0x5ca   :  { %12569 = vmatmul.msk.f32.gmra.mxu3 %vm5168_vm3, %v6306_v60  ;;  %v4489_v60 = vld [vmem:[#allocation2 + $0x2c2] sm:$0xff] }
 0x5cb   :  { %v5074_v35 = vmul.f32 0.1, %v5010_v28 }
 0x5cc   :  { %v6126_v63 = vpop.f32.mrf.mxu2  ;;  %12398 = vmatmul.msk.f32.gmra.mxu0 %vm118_vm0, %v4489_v60 }
 0x5cd   :  { %v6127_v42 = vadd.f32 %v6126_v63, %v5725_v30  ;;  %v6593_v9 = vpop.f32.mrf.mxu3  ;;  %v5728_v10 = vpop.f32.mrf.mxu1  ;;  %v5138_v3 = vmax.f32 %v5010_v28, %v5074_v35  ;;  %v4490_v35 = vld [vmem:[#allocation2 + $0x2d2] sm:$0xff] }
 0x5ce   :  { %v4821_v30 = vpop.f32.mrf.mxu0 }
 0x5cf   :  { %v15872_v32 = vadd.f32 %v6593_v9, %v6127_v42  ;;  %5313 = vst.msk [vmem:[#allocation3 + $0x1e1] sm:$0xff] %vm5168_vm3, %v5138_v3  ;;  %v4943_v20 = vadd.f32 %v4821_v30, %v15145_v6  ;;  %v5375_v42 = vld [vmem:[#allocation3 + $0x1b0] sm:$0xff] }
 0x5d0   :  { %12442 = vmatmul.msk.f32.gmra.mxu1 %vm5168_vm3, %v5439_v33 }
 0x5d1   :  { %12506 = vmatmul.msk.f32.gmra.mxu2 %vm5168_vm3, %v5374_v36  ;;  %v5011_v9 = vadd.f32 %v15823_v41, %v4943_v20  ;;  %v6308_v36 = vld [vmem:[#allocation3 + $0x1b2] sm:$0xff] }
 0x5d2   :  { %12570 = vmatmul.msk.f32.gmra.mxu3 %vm5168_vm3, %v6307_v4  ;;  %v5441_v20 = vld [vmem:[#allocation3 + $0x1b9] sm:$0xff] }
 0x5d3   :  { %v5075_v28 = vmul.f32 0.1, %v5011_v9 }
 0x5d4   :  { %v6129_v5 = vpop.f32.mrf.mxu2  ;;  %12399 = vmatmul.msk.f32.gmra.mxu0 %vm118_vm0, %v4490_v35 }
 0x5d5   :  { %v6130_v55 = vadd.f32 %v6129_v5, %v5728_v10  ;;  %v6596_v0 = vpop.f32.mrf.mxu3  ;;  %v5731_v63 = vpop.f32.mrf.mxu1  ;;  %v5139_v6 = vmax.f32 %v5011_v9, %v5075_v28 }
 0x5d6   :  { %v4824_v10 = vpop.f32.mrf.mxu0 }
 0x5d7   :  { %v15881_v33 = vadd.f32 %v6596_v0, %v6130_v55  ;;  %5314 = vst.msk [vmem:[#allocation3 + $0x1e9] sm:$0xff] %vm5168_vm3, %v5139_v6  ;;  %v4944_v3 = vadd.f32 %v4824_v10, %v15157_v31  ;;  %v5376_v55 = vld [vmem:[#allocation3 + $0x1b8] sm:$0xff] }
 0x5d8   :  { %12443 = vmatmul.msk.f32.gmra.mxu1 %vm5168_vm3, %v5440_v11 }
 0x5d9   :  { %12507 = vmatmul.msk.f32.gmra.mxu2 %vm5168_vm3, %v5375_v42  ;;  %v5012_v0 = vadd.f32 %v15823_v41, %v4944_v3  ;;  %v6309_v42 = vld [vmem:[#allocation3 + $0x1ba] sm:$0xff]  ;;  %v5442_v3 = vld [vmem:[#allocation3 + $0x1c9] sm:$0xff] }
 0x5da   :  { %12571 = vmatmul.msk.f32.gmra.mxu3 %vm5168_vm3, %v6308_v36  ;;  %v4491_v36 = vld [vmem:[#allocation2 + $0x2da] sm:$0xff] }
 0x5db   :  { %v5076_v9 = vmul.f32 0.1, %v5012_v0 }
 0x5dc   :  { %v6132_v4 = vpop.f32.mrf.mxu2  ;;  %12400 = vmatmul.msk.f32.gmra.mxu0 %vm118_vm0, %v4491_v36 }
 0x5dd   :  { %v6133_v30 = vadd.f32 %v6132_v4, %v5731_v63  ;;  %v6599_v60 = vpop.f32.mrf.mxu3  ;;  %v5734_v5 = vpop.f32.mrf.mxu1  ;;  %v5140_v31 = vmax.f32 %v5012_v0, %v5076_v9 }
 0x5de   :  { %v4827_v63 = vpop.f32.mrf.mxu0 }
 0x5df   :  { %v15890_v11 = vadd.f32 %v6599_v60, %v6133_v30  ;;  %5315 = vst.msk [vmem:[#allocation3 + $0x1f9] sm:$0xff] %vm5168_vm3, %v5140_v31  ;;  %v4945_v6 = vadd.f32 %v4827_v63, %v15171_v12  ;;  %v5377_v30 = vld [vmem:[#allocation3 + $0x1c8] sm:$0xff] }
 0x5e0   :  { %12444 = vmatmul.msk.f32.gmra.mxu1 %vm5168_vm3, %v5441_v20 }
 0x5e1   :  { %12508 = vmatmul.msk.f32.gmra.mxu2 %vm5168_vm3, %v5376_v55  ;;  %v5013_v60 = vadd.f32 %v15823_v41, %v4945_v6  ;;  %v6310_v55 = vld [vmem:[#allocation3 + $0x1ca] sm:$0xff] }
 0x5e2   :  { %12572 = vmatmul.msk.f32.gmra.mxu3 %vm5168_vm3, %v6309_v42  ;;  %v4492_v42 = vld [vmem:[#allocation2 + $0x2ea] sm:$0xff] }
 0x5e3   :  { %v5077_v0 = vmul.f32 0.1, %v5013_v60  ;;  %v5443_v6 = vld [vmem:[#allocation3 + $0x1d1] sm:$0xff] }
 0x5e4   :  { %v6135_v28 = vpop.f32.mrf.mxu2  ;;  %12401 = vmatmul.msk.f32.gmra.mxu0 %vm118_vm0, %v4492_v42 }
 0x5e5   :  { %v6136_v10 = vadd.f32 %v6135_v28, %v5734_v5  ;;  %v6602_v35 = vpop.f32.mrf.mxu3  ;;  %v5737_v4 = vpop.f32.mrf.mxu1  ;;  %v5141_v12 = vmax.f32 %v5013_v60, %v5077_v0  ;;  %v6311_v60 = vld [vmem:[#allocation3 + $0x1d2] sm:$0xff] }
 0x5e6   :  { %v4830_v5 = vpop.f32.mrf.mxu0 }
 0x5e7   :  { %v15899_v20 = vadd.f32 %v6602_v35, %v6136_v10  ;;  %5316 = vst.msk [vmem:[#allocation3 + $0x201] sm:$0xff] %vm5168_vm3, %v5141_v12  ;;  %v4946_v31 = vadd.f32 %v4830_v5, %v15180_v37  ;;  %v5378_v10 = vld [vmem:[#allocation3 + $0x1d0] sm:$0xff] }
 0x5e8   :  { %12445 = vmatmul.msk.f32.gmra.mxu1 %vm5168_vm3, %v5442_v3 }
 0x5e9   :  { %12509 = vmatmul.msk.f32.gmra.mxu2 %vm5168_vm3, %v5377_v30  ;;  %v5014_v35 = vadd.f32 %v15823_v41, %v4946_v31  ;;  %v5444_v31 = vld [vmem:[#allocation3 + $0x1e1] sm:$0xff] }
 0x5ea   :  { %12573 = vmatmul.msk.f32.gmra.mxu3 %vm5168_vm3, %v6310_v55  ;;  %v4493_v55 = vld [vmem:[#allocation2 + $0x2f2] sm:$0xff] }
 0x5eb   :  { %v5078_v30 = vmul.f32 0.1, %v5014_v35 }
 0x5ec   :  { %v6138_v9 = vpop.f32.mrf.mxu2  ;;  %12402 = vmatmul.msk.f32.gmra.mxu0 %vm118_vm0, %v4493_v55 }
 0x5ed   :  { %v6139_v63 = vadd.f32 %v6138_v9, %v5737_v4  ;;  %v6605_v36 = vpop.f32.mrf.mxu3  ;;  %v5740_v28 = vpop.f32.mrf.mxu1  ;;  %v5142_v37 = vmax.f32 %v5014_v35, %v5078_v30  ;;  %v4494_v30 = vld [vmem:[#allocation2 + $0x302] sm:$0xff] }
 0x5ee   :  { %v4833_v4 = vpop.f32.mrf.mxu0 }
 0x5ef   :  { %v15908_v3 = vadd.f32 %v6605_v36, %v6139_v63  ;;  %5317 = vst.msk [vmem:[#allocation3 + $0x211] sm:$0xff] %vm5168_vm3, %v5142_v37  ;;  %v4947_v12 = vadd.f32 %v4833_v4, %v15191_v16  ;;  %v5379_v63 = vld [vmem:[#allocation3 + $0x1e0] sm:$0xff] }
 0x5f0   :  { %12446 = vmatmul.msk.f32.gmra.mxu1 %vm5168_vm3, %v5443_v6 }
 0x5f1   :  { %12510 = vmatmul.msk.f32.gmra.mxu2 %vm5168_vm3, %v5378_v10  ;;  %v5015_v36 = vadd.f32 %v15823_v41, %v4947_v12  ;;  %v6312_v10 = vld [vmem:[#allocation3 + $0x1e2] sm:$0xff] }
 0x5f2   :  { %12574 = vmatmul.msk.f32.gmra.mxu3 %vm5168_vm3, %v6311_v60  ;;  %v5445_v12 = vld [vmem:[#allocation3 + $0x1e9] sm:$0xff] }
 0x5f3   :  { %v5079_v35 = vmul.f32 0.1, %v5015_v36 }
 0x5f4   :  { %v6141_v0 = vpop.f32.mrf.mxu2  ;;  %12403 = vmatmul.msk.f32.gmra.mxu0 %vm118_vm0, %v4494_v30 }
 0x5f5   :  { %v6142_v5 = vadd.f32 %v6141_v0, %v5740_v28  ;;  %v6608_v42 = vpop.f32.mrf.mxu3  ;;  %v5743_v9 = vpop.f32.mrf.mxu1  ;;  %v5143_v16 = vmax.f32 %v5015_v36, %v5079_v35  ;;  %v6313_v36 = vld [vmem:[#allocation3 + $0x1ea] sm:$0xff] }
 0x5f6   :  { %v4836_v28 = vpop.f32.mrf.mxu0  ;;  %v4495_v35 = vld [vmem:[#allocation2 + $0x30a] sm:$0xff] }
 0x5f7   :  { %v15917_v6 = vadd.f32 %v6608_v42, %v6142_v5  ;;  %5318 = vst.msk [vmem:[#allocation3 + $0x219] sm:$0xff] %vm5168_vm3, %v5143_v16  ;;  %v4948_v37 = vadd.f32 %v4836_v28, %v15204_v14  ;;  %v5380_v5 = vld [vmem:[#allocation3 + $0x1e8] sm:$0xff]  ;;  %v4415_v14 = vadd.f32 %v15217_v54, %v15168_v59  ;;  %v19092_v16 = vld [vmem:[#allocation39_spill] sm:$0xff]  ;;  %v19093_v28 = vld [vmem:[#allocation14_spill] sm:$0xff] }
 0x5f8   :  { %12447 = vmatmul.msk.f32.gmra.mxu1 %vm5168_vm3, %v5444_v31 }
 0x5f9   :  { %19090 = vst [vmem:[#allocation20_spill] sm:$0xff] %v15917_v6  ;;  %12511 = vmatmul.msk.f32.gmra.mxu2 %vm5168_vm3, %v5379_v63  ;;  %v5016_v42 = vadd.f32 %v15823_v41, %v4948_v37  ;;  %v5381_v6 = vld [vmem:[#allocation3 + $0x1f8] sm:$0xff] }
 0x5fa   :  { %12575 = vmatmul.msk.f32.gmra.mxu3 %vm5168_vm3, %v6312_v10 }
 0x5fb   :  { %v5080_v63 = vmul.f32 0.1, %v5016_v42 }
 0x5fc   :  { %v6144_v60 = vpop.f32.mrf.mxu2  ;;  %12404 = vmatmul.msk.f32.gmra.mxu0 %vm118_vm0, %v4495_v35 }
 0x5fd   :  { %v6145_v4 = vadd.f32 %v6144_v60, %v5743_v9  ;;  %v6611_v55 = vpop.f32.mrf.mxu3  ;;  %v5746_v0 = vpop.f32.mrf.mxu1  ;;  %v5144_v9 = vmax.f32 %v5016_v42, %v5080_v63  ;;  %v2813_v60 = vadd.f32 %v19093_v28, %v19092_v16  ;;  %v6314_v42 = vld [vmem:[#allocation3 + $0x1fa] sm:$0xff] }
 0x5fe   :  { %v4839_v10 = vpop.f32.mrf.mxu0  ;;  %v19096_v16 = vld [vmem:[#allocation15_spill] sm:$0xff] }
 0x5ff   :  { %v15926_v31 = vadd.f32 %v6611_v55, %v6145_v4  ;;  %5319 = vst.msk [vmem:[#allocation3 + $0x229] sm:$0xff] %vm5168_vm3, %v5144_v9  ;;  %v4949_v37 = vadd.f32 %v4839_v10, %v4415_v14  ;;  %v4496_v9 = vld [vmem:[#allocation2 + $0x31a] sm:$0xff]  ;;  %v19095_v10 = vld [vmem:[#allocation40_spill] sm:$0xff] }
 0x600   :  { %12448 = vmatmul.msk.f32.gmra.mxu1 %vm5168_vm3, %v5445_v12  ;;  %v3347_v12 = vadd.f32 %v15189_v25, %v2813_v60  ;;  %v2814_v35 = vadd.f32 %v19096_v16, %v19095_v10 }
 0x601   :  { %19091 = vst [vmem:[#allocation104_spill] sm:$0xff] %v15926_v31  ;;  %12512 = vmatmul.msk.f32.gmra.mxu2 %vm5168_vm3, %v5380_v5  ;;  %v5446_v31 = vld [vmem:[#allocation3 + $0x1f9] sm:$0xff]  ;;  %v5017_v59 = vadd.f32 %v15823_v41, %v4949_v37 }
 0x602   :  { %12576 = vmatmul.msk.f32.gmra.mxu3 %vm5168_vm3, %v6313_v36  ;;  %v3882_v63 = vadd.f32 %v15200_v29, %v3347_v12 }
 0x603   :  { %v5081_v36 = vmul.f32 0.1, %v5017_v59 }
 0x604   :  { %v6147_v30 = vpop.f32.mrf.mxu2  ;;  %12405 = vmatmul.msk.f32.gmra.mxu0 %vm118_vm0, %v4496_v9 }
 0x605   :  { %v6148_v4 = vadd.f32 %v6147_v30, %v5746_v0  ;;  %v6614_v55 = vpop.f32.mrf.mxu3  ;;  %v5749_v5 = vpop.f32.mrf.mxu1  ;;  %v4416_v0 = vadd.f32 %v15246_v58, %v3882_v63  ;;  %v5145_v25 = vmax.f32 %v5017_v59, %v5081_v36  ;;  %v4497_v36 = vld [vmem:[#allocation2 + $0x322] sm:$0xff] }
 0x606   :  { %v4842_v14 = vpop.f32.mrf.mxu0 }
 0x607   :  { %v15939_v54 = vadd.f32 %v6614_v55, %v6148_v4  ;;  %5320 = vst.msk [vmem:[#allocation3 + $0x231] sm:$0xff] %vm5168_vm3, %v5145_v25  ;;  %v4950_v60 = vadd.f32 %v4842_v14, %v4416_v0  ;;  %v5382_v4 = vld [vmem:[#allocation3 + $0x200] sm:$0xff]  ;;  %v19098_v0 = vld [vmem:[#allocation41_spill] sm:$0xff]  ;;  %v19099_v25 = vld [vmem:[#allocation16_spill] sm:$0xff] }
 0x608   :  { %12449 = vmatmul.msk.f32.gmra.mxu1 %vm5168_vm3, %v5446_v31  ;;  %v3348_v31 = vadd.f32 %v15202_v18, %v2814_v35  ;;  %v2815_v14 = vadd.f32 %v19099_v25, %v19098_v0 }
 0x609   :  { %19094 = vst [vmem:[#allocation39_spill] sm:$0xff] %v15939_v54  ;;  %12513 = vmatmul.msk.f32.gmra.mxu2 %vm5168_vm3, %v5381_v6  ;;  %v5447_v6 = vld [vmem:[#allocation3 + $0x201] sm:$0xff]  ;;  %v5018_v58 = vadd.f32 %v15823_v41, %v4950_v60  ;;  %v5448_v60 = vld [vmem:[#allocation3 + $0x211] sm:$0xff] }
 0x60a   :  { %12577 = vmatmul.msk.f32.gmra.mxu3 %vm5168_vm3, %v6314_v42  ;;  %v3883_v12 = vadd.f32 %v15221_v53, %v3348_v31  ;;  %v3349_v35 = vadd.f32 %v15227_v19, %v2815_v14  ;;  %v7403_v19 = vld [vmem:[#allocation5 + $0x20] sm:$0xff]  ;;  %v19220_v54 = vld [vmem:[#allocation98_spill] sm:$0xff] }
 0x60b   :  { %v5082_v59 = vmul.f32 0.1, %v5018_v58  ;;  %7611 = vmatpush.msra.mxu1 %v7403_v19 }
 0x60c   :  { %v6150_v28 = vpop.f32.mrf.mxu2  ;;  %v4417_v42 = vadd.f32 %v15275_v38, %v3883_v12  ;;  %12406 = vmatmul.msk.f32.gmra.mxu0 %vm118_vm0, %v4497_v36 }
 0x60d   :  { %v6151_v29 = vadd.f32 %v6150_v28, %v5749_v5  ;;  %v6617_v30 = vpop.f32.mrf.mxu3  ;;  %v5752_v37 = vpop.f32.mrf.mxu1  ;;  %v6315_v5 = vld [vmem:[#allocation3 + $0x202] sm:$0xff]  ;;  %v5146_v18 = vmax.f32 %v5018_v58, %v5082_v59 }
 0x60e   :  { %v4845_v63 = vpop.f32.mrf.mxu0 }
 0x60f   :  { %v15952_v55 = vadd.f32 %v6617_v30, %v6151_v29  ;;  %5321 = vst.msk [vmem:[#allocation3 + $0x241] sm:$0xff] %vm5168_vm3, %v5146_v18  ;;  %v4951_v53 = vadd.f32 %v4845_v63, %v4417_v42  ;;  %v5383_v29 = vld [vmem:[#allocation3 + $0x210] sm:$0xff]  ;;  %v6872_v30 = vld [vmem:[#allocation5 + $0x18] sm:$0xff] }
 0x610   :  { %12450 = vmatmul.msk.f32.gmra.mxu1 %vm5168_vm3, %v5447_v6  ;;  %v6316_v6 = vld [vmem:[#allocation3 + $0x212] sm:$0xff]  ;;  %7080 = vmatpush.msrb.mxu0 %v6872_v30  ;;  %v4499_v30 = vld [vmem:[#allocation2 + $0x33a] sm:$0xff] }
 0x611   :  { %19097 = vst [vmem:[#allocation14_spill] sm:$0xff] %v15952_v55  ;;  %12514 = vmatmul.msk.f32.gmra.mxu2 %vm5168_vm3, %v5382_v4  ;;  %v5019_v38 = vadd.f32 %v15823_v41, %v4951_v53  ;;  %v3884_v4 = vadd.f32 %v15254_v40, %v3349_v35  ;;  %v19101_v42 = vld [vmem:[#allocation42_spill] sm:$0xff]  ;;  %v19102_v18 = vld [vmem:[#allocation17_spill] sm:$0xff] }
 0x612   :  { %12578 = vmatmul.msk.f32.gmra.mxu3 %vm5168_vm3, %v6315_v5  ;;  %v4498_v5 = vld [vmem:[#allocation2 + $0x332] sm:$0xff]  ;;  %v2816_v63 = vadd.f32 %v19102_v18, %v19101_v42  ;;  %v5450_v42 = vld [vmem:[#allocation3 + $0x229] sm:$0xff] }
 0x613   :  { %v5083_v58 = vmul.f32 0.1, %v5019_v38  ;;  %v5449_v53 = vld [vmem:[#allocation3 + $0x219] sm:$0xff]  ;;  %v5385_v18 = vld [vmem:[#allocation3 + $0x228] sm:$0xff] }
 0x614   :  { %v6153_v9 = vpop.f32.mrf.mxu2  ;;  %v3350_v14 = vadd.f32 %v15264_v13, %v2816_v63  ;;  %12407 = vmatmul.msk.f32.gmra.mxu0 %vm118_vm0, %v4498_v5 }
 0x615   :  { %v6154_v10 = vadd.f32 %v6153_v9, %v5752_v37  ;;  %v6620_v16 = vpop.f32.mrf.mxu3  ;;  %v5755_v28 = vpop.f32.mrf.mxu1  ;;  %v4418_v37 = vadd.f32 %v15303_v43, %v3884_v4  ;;  %v5147_v12 = vmax.f32 %v5019_v38, %v5083_v58  ;;  %v5384_v43 = vld [vmem:[#allocation3 + $0x218] sm:$0xff] }
 0x616   :  { %v4848_v59 = vpop.f32.mrf.mxu0  ;;  %v3885_v35 = vadd.f32 %v15290_v45, %v3350_v14  ;;  %v19105_v4 = vld [vmem:[#allocation18_spill] sm:$0xff] }
 0x617   :  { %v15965_v31 = vadd.f32 %v6620_v16, %v6154_v10  ;;  %5322 = vst.msk [vmem:[#allocation3 + $0x249] sm:$0xff] %vm5168_vm3, %v5147_v12  ;;  %v4952_v40 = vadd.f32 %v4848_v59, %v4418_v37 }
 0x618   :  { %12451 = vmatmul.msk.f32.gmra.mxu1 %vm5168_vm3, %v5448_v60 }
 0x619   :  { %19100 = vst [vmem:[#allocation40_spill] sm:$0xff] %v15965_v31  ;;  %12515 = vmatmul.msk.f32.gmra.mxu2 %vm5168_vm3, %v5383_v29  ;;  %v5020_v10 = vadd.f32 %v15823_v41, %v4952_v40  ;;  %v4419_v29 = vadd.f32 %v15329_v50, %v3885_v35  ;;  %v16498_v31 = vld [vmem:[#allocation3 + $0x1e8] sm:$0xff] }
 0x61a   :  { %12579 = vmatmul.msk.f32.gmra.mxu3 %vm5168_vm3, %v6316_v6  ;;  %v19104_v6 = vld [vmem:[#allocation43_spill] sm:$0xff] }
 0x61b   :  { %v5084_v60 = vmul.f32 0.1, %v5020_v10  ;;  %v2817_v58 = vadd.f32 %v19105_v4, %v19104_v6  ;;  %v19110_v4 = vld [vmem:[#allocation37_spill] sm:$0xff] }
 0x61c   :  { %v6156_v36 = vpop.f32.mrf.mxu2  ;;  %12408 = vmatmul.msk.f32.gmra.mxu0 %vm118_vm0, %v4499_v30  ;;  %v5386_v30 = vld [vmem:[#allocation3 + $0x230] sm:$0xff] }
 0x61d   :  { %v6157_v0 = vadd.f32 %v6156_v36, %v5755_v28  ;;  %v6623_v25 = vpop.f32.mrf.mxu3  ;;  %v5758_v9 = vpop.f32.mrf.mxu1  ;;  %v6317_v28 = vld [vmem:[#allocation3 + $0x21a] sm:$0xff]  ;;  %v5148_v13 = vmax.f32 %v5020_v10, %v5084_v60  ;;  %v3351_v59 = vadd.f32 %v15299_v15, %v2817_v58  ;;  %v6318_v36 = vld [vmem:[#allocation3 + $0x22a] sm:$0xff] }
 0x61e   :  { %v4851_v38 = vpop.f32.mrf.mxu0 }
 0x61f   :  { %v15978_v16 = vadd.f32 %v6623_v25, %v6157_v0  ;;  %5323 = vst.msk [vmem:[#allocation3 + $0x259] sm:$0xff] %vm5168_vm3, %v5148_v13  ;;  %v4953_v45 = vadd.f32 %v4851_v38, %v4419_v29  ;;  %v3886_v40 = vadd.f32 %v15325_v47, %v3351_v59  ;;  %v5451_v38 = vld [vmem:[#allocation3 + $0x231] sm:$0xff] }
 0x620   :  { %12452 = vmatmul.msk.f32.gmra.mxu1 %vm5168_vm3, %v5449_v53  ;;  %v19107_v53 = vld [vmem:[#allocation44_spill] sm:$0xff] }
 0x621   :  { %19103 = vst [vmem:[#allocation15_spill] sm:$0xff] %v15978_v16  ;;  %12516 = vmatmul.msk.f32.gmra.mxu2 %vm5168_vm3, %v5384_v43  ;;  %v5021_v50 = vadd.f32 %v15823_v41, %v4953_v45  ;;  %v4420_v25 = vadd.f32 %v15362_v39, %v3886_v40  ;;  %v19108_v43 = vld [vmem:[#allocation19_spill] sm:$0xff]  ;;  %v6319_v45 = vld [vmem:[#allocation3 + $0x232] sm:$0xff] }
 0x622   :  { %12580 = vmatmul.msk.f32.gmra.mxu3 %vm5168_vm3, %v6317_v28  ;;  %v2818_v10 = vadd.f32 %v19108_v43, %v19107_v53  ;;  %v5452_v53 = vld [vmem:[#allocation3 + $0x241] sm:$0xff] }
 0x623   :  { %v5085_v0 = vmul.f32 0.1, %v5021_v50  ;;  %v5387_v43 = vld [vmem:[#allocation3 + $0x240] sm:$0xff] }
 0x624   :  { %v6159_v19 = vpop.f32.mrf.mxu2  ;;  %v3352_v29 = vadd.f32 %v15334_v49, %v2818_v10 }
 0x625   :  { %v6160_v37 = vadd.f32 %v6159_v19, %v5758_v9  ;;  %v6626_v12 = vpop.f32.mrf.mxu3  ;;  %v5761_v5 = vpop.f32.mrf.mxu1  ;;  %v5149_v15 = vmax.f32 %v5021_v50, %v5085_v0  ;;  %v4500_v9 = vld [vmem:[#allocation2 + $0x34a] sm:$0xff] }
 0x626   :  { %v4854_v14 = vpop.f32.mrf.mxu0  ;;  %12409 = vmatmul.msk.f32.gmra.mxu0 %vm118_vm0, %v4500_v9  ;;  %v3887_v58 = vadd.f32 %v19110_v4, %v3352_v29  ;;  %v19118_v4 = vld [vmem:[#allocation46_spill] sm:$0xff] }
 0x627   :  { %v15991_v63 = vadd.f32 %v6626_v12, %v6160_v37  ;;  %5324 = vst.msk [vmem:[#allocation3 + $0x261] sm:$0xff] %vm5168_vm3, %v5149_v15  ;;  %v4954_v60 = vadd.f32 %v4854_v14, %v4420_v25  ;;  %v19111_v37 = vld [vmem:[#allocation62_spill] sm:$0xff] }
 0x628   :  { %12453 = vmatmul.msk.f32.gmra.mxu1 %vm5168_vm3, %v5450_v42  ;;  %v4421_v12 = vadd.f32 %v19111_v37, %v3887_v58  ;;  %v19112_v42 = vld [vmem:[#allocation45_spill] sm:$0xff]  ;;  %v19114_v15 = vld [vmem:[#allocation38_spill] sm:$0xff] }
 0x629   :  { %19106 = vst [vmem:[#allocation41_spill] sm:$0xff] %v15991_v63  ;;  %12517 = vmatmul.msk.f32.gmra.mxu2 %vm5168_vm3, %v5385_v18  ;;  %v5022_v39 = vadd.f32 %v15823_v41, %v4954_v60  ;;  %v19113_v18 = vld [vmem:[#allocation21_spill] sm:$0xff]  ;;  %v6320_v60 = vld [vmem:[#allocation3 + $0x242] sm:$0xff]  ;;  %v19119_v58 = vld [vmem:[#allocation22_spill] sm:$0xff] }
 0x62a   :  { %12581 = vmatmul.msk.f32.gmra.mxu3 %vm5168_vm3, %v6318_v36  ;;  %v2819_v50 = vadd.f32 %v19113_v18, %v19112_v42 }
 0x62b   :  { %v5086_v19 = vmul.f32 0.1, %v5022_v39 }
 0x62c   :  { %v6162_v35 = vpop.f32.mrf.mxu2  ;;  %v3353_v14 = vadd.f32 %v19114_v15, %v2819_v50  ;;  %v5453_v50 = vld [vmem:[#allocation3 + $0x249] sm:$0xff] }
 0x62d   :  { %v6163_v47 = vadd.f32 %v6162_v35, %v5761_v5  ;;  %v6629_v28 = vpop.f32.mrf.mxu3  ;;  %v5764_v13 = vpop.f32.mrf.mxu1  ;;  %v5150_v49 = vmax.f32 %v5022_v39, %v5086_v19  ;;  %v4501_v5 = vld [vmem:[#allocation2 + $0x352] sm:$0xff]  ;;  %v2820_v19 = vadd.f32 %v19119_v58, %v19118_v4  ;;  %v6808_v4 = vld [vmem:[#allocation3 + $0x20] sm:$0xff] }
 0x62e   :  { %v4857_v59 = vpop.f32.mrf.mxu0  ;;  %12410 = vmatmul.msk.f32.gmra.mxu0 %vm118_vm0, %v4501_v5  ;;  %v19120_v5 = vld [vmem:[#allocation63_spill] sm:$0xff]  ;;  %v19126_v58 = vld [vmem:[#allocation66_spill] sm:$0xff] }
 0x62f   :  { %v16004_v6 = vadd.f32 %v6629_v28, %v6163_v47  ;;  %5325 = vst.msk [vmem:[#allocation3 + $0x271] sm:$0xff] %vm5168_vm3, %v5150_v49  ;;  %v4955_v40 = vadd.f32 %v4857_v59, %v4421_v12  ;;  %v19116_v47 = vld [vmem:[#allocation61_spill] sm:$0xff]  ;;  %v6807_v59 = vld [vmem:[#allocation3 + $0x18] sm:$0xff]  ;;  %v3354_v42 = vadd.f32 %v19120_v5, %v2820_v19 }
 0x630   :  { %12454 = vmatmul.msk.f32.gmra.mxu1 %vm5168_vm3, %v5451_v38  ;;  %v3888_v28 = vadd.f32 %v19116_v47, %v3353_v14  ;;  %v19124_v47 = vld [vmem:[#allocation47_spill] sm:$0xff] }
 0x631   :  { %19109 = vst [vmem:[#allocation16_spill] sm:$0xff] %v16004_v6  ;;  %12518 = vmatmul.msk.f32.gmra.mxu2 %vm5168_vm3, %v5386_v30  ;;  %v5023_v10 = vadd.f32 %v15823_v41, %v4955_v40  ;;  %v6322_v5 = vld [vmem:[#allocation3 + $0x25a] sm:$0xff] }
 0x632   :  { %12582 = vmatmul.msk.f32.gmra.mxu3 %vm5168_vm3, %v6319_v45 }
 0x633   :  { %v5087_v29 = vmul.f32 0.1, %v5023_v10 }
 0x634   :  { %v6165_v36 = vpop.f32.mrf.mxu2 }
 0x635   :  { %v6166_v0 = vadd.f32 %v6165_v36, %v5764_v13  ;;  %v6632_v25 = vpop.f32.mrf.mxu3  ;;  %v5767_v9 = vpop.f32.mrf.mxu1  ;;  %v19117_v13 = vld [vmem:[#allocation65_spill] sm:$0xff]  ;;  %v5151_v30 = vmax.f32 %v5023_v10, %v5087_v29  ;;  %v5388_v36 = vld [vmem:[#allocation3 + $0x248] sm:$0xff] }
 0x636   :  { %v4422_v38 = vadd.f32 %v19117_v13, %v3888_v28  ;;  %v4860_v39 = vpop.f32.mrf.mxu0  ;;  %12603 = vmatmul.msk.f32.vlgmr.msrb.gmra.mxu0 %vm5168_vm3, %v6807_v59  ;;  %v19125_v28 = vld [vmem:[#allocation23_spill] sm:$0xff] }
 0x637   :  { %v16017_v35 = vadd.f32 %v6632_v25, %v6166_v0  ;;  %5326 = vst.msk [vmem:[#allocation3 + $0x279] sm:$0xff] %vm5168_vm3, %v5151_v30  ;;  %v19122_v25 = vld [vmem:[#allocation64_spill] sm:$0xff]  ;;  %v2821_v29 = vadd.f32 %v19125_v28, %v19124_v47  ;;  %v16053_v28 = vld [vmem:[#allocation3 + $0x30] sm:$0xff] }
 0x638   :  { %12455 = vmatmul.msk.f32.gmra.mxu1 %vm5168_vm3, %v5452_v53  ;;  %v4956_v37 = vadd.f32 %v4860_v39, %v4422_v38  ;;  %v3889_v15 = vadd.f32 %v19122_v25, %v3354_v42  ;;  %v19123_v53 = vld [vmem:[#allocation68_spill] sm:$0xff]  ;;  %v19128_v42 = vld [vmem:[#allocation67_spill] sm:$0xff] }
 0x639   :  { %19115 = vst [vmem:[#allocation42_spill] sm:$0xff] %v16017_v35  ;;  %12519 = vmatmul.msk.f32.gmra.mxu2 %vm5168_vm3, %v5387_v43  ;;  %v3355_v19 = vadd.f32 %v19126_v58, %v2821_v29  ;;  %v19132_v29 = vld [vmem:[#allocation69_spill] sm:$0xff] }
 0x63a   :  { %12583 = vmatmul.msk.f32.gmra.mxu3 %vm5168_vm3, %v6320_v60  ;;  %v5024_v40 = vadd.f32 %v15823_v41, %v4956_v37  ;;  %v4423_v43 = vadd.f32 %v19123_v53, %v3889_v15  ;;  %v5454_v37 = vld [vmem:[#allocation3 + $0x259] sm:$0xff] }
 0x63c   :  { %v6168_v45 = vpop.f32.mrf.mxu2  ;;  %v5088_v14 = vmul.f32 0.1, %v5024_v40 }
 0x63d   :  { %v6169_v12 = vadd.f32 %v6168_v45, %v5767_v9  ;;  %v6635_v49 = vpop.f32.mrf.mxu3  ;;  %v5770_v18 = vpop.f32.mrf.mxu1  ;;  %v6321_v9 = vld [vmem:[#allocation3 + $0x24a] sm:$0xff] }
 0x63e   :  { %v5152_v10 = vmax.f32 %v5024_v40, %v5088_v14  ;;  %v4863_v60 = vpop.f32.mrf.mxu0  ;;  %12604 = vmatmul.msk.f32.gmra.mxu0 %vm5168_vm3, %v6808_v4  ;;  %v19130_v14 = vld [vmem:[#allocation48_spill] sm:$0xff] }
 0x63f   :  { %v16030_v0 = vadd.f32 %v6635_v49, %v6169_v12  ;;  %v4957_v38 = vadd.f32 %v4863_v60, %v4423_v43  ;;  %v5389_v12 = vld [vmem:[#allocation3 + $0x258] sm:$0xff] }
 0x640   :  { %12456 = vmatmul.msk.f32.gmra.mxu1 %vm5168_vm3, %v5453_v50  ;;  %5327 = vst.msk [vmem:[#allocation3 + $0x289] sm:$0xff] %vm5168_vm3, %v5152_v10  ;;  %v3890_v50 = vadd.f32 %v19128_v42, %v3355_v19  ;;  %v19134_v19 = vld [vmem:[#allocation71_spill] sm:$0xff] }
 0x641   :  { %19121 = vst [vmem:[#allocation17_spill] sm:$0xff] %v16030_v0  ;;  %12520 = vmatmul.msk.f32.gmra.mxu2 %vm5168_vm3, %v5388_v36  ;;  %v5025_v49 = vadd.f32 %v15823_v41, %v4957_v38 }
 0x642   :  { %12584 = vmatmul.msk.f32.gmra.mxu3 %vm5168_vm3, %v6321_v9  ;;  %v19131_v9 = vld [vmem:[#allocation24_spill] sm:$0xff] }
 0x643   :  { %v5089_v36 = vmul.f32 0.1, %v5025_v49  ;;  %v2822_v53 = vadd.f32 %v19131_v9, %v19130_v14 }
 0x644   :  { %v6171_v13 = vpop.f32.mrf.mxu2 }
 0x645   :  { %v6172_v30 = vadd.f32 %v6171_v13, %v5770_v18  ;;  %v6638_v39 = vpop.f32.mrf.mxu3  ;;  %v5773_v45 = vpop.f32.mrf.mxu1  ;;  %v19129_v18 = vld [vmem:[#allocation70_spill] sm:$0xff]  ;;  %v5153_v25 = vmax.f32 %v5025_v49, %v5089_v36  ;;  %v3356_v13 = vadd.f32 %v19132_v29, %v2822_v53  ;;  %v19135_v49 = vld [vmem:[#allocation73_spill] sm:$0xff] }
 0x646   :  { %v4424_v40 = vadd.f32 %v19129_v18, %v3890_v50  ;;  %v4866_v15 = vpop.f32.mrf.mxu0  ;;  %12605 = vmatmul.msk.f32.gmra.mxu0 %vm5168_vm3, %v16053_v28  ;;  %v19136_v36 = vld [vmem:[#allocation49_spill] sm:$0xff]  ;;  %v16069_v53 = vld [vmem:[#allocation3 + $0x38] sm:$0xff] }
 0x647   :  { %v16043_v59 = vadd.f32 %v6638_v39, %v6172_v30  ;;  %5328 = vst.msk [vmem:[#allocation3 + $0x291] sm:$0xff] %vm5168_vm3, %v5153_v25  ;;  %v5455_v30 = vld [vmem:[#allocation3 + $0x261] sm:$0xff]  ;;  %v19137_v18 = vld [vmem:[#allocation25_spill] sm:$0xff] }
 0x648   :  { %12457 = vmatmul.msk.f32.gmra.mxu1 %vm5168_vm3, %v5454_v37  ;;  %v4958_v10 = vadd.f32 %v4866_v15, %v4424_v40  ;;  %v5390_v39 = vld [vmem:[#allocation3 + $0x260] sm:$0xff]  ;;  %v3891_v37 = vadd.f32 %v19134_v19, %v3356_v13  ;;  %v2823_v40 = vadd.f32 %v19137_v18, %v19136_v36  ;;  %v5391_v29 = vld [vmem:[#allocation3 + $0x270] sm:$0xff] }
 0x649   :  { %19127 = vst [vmem:[#allocation43_spill] sm:$0xff] %v16043_v59  ;;  %12521 = vmatmul.msk.f32.gmra.mxu2 %vm5168_vm3, %v5389_v12 }
 0x64a   :  { %12585 = vmatmul.msk.f32.gmra.mxu3 %vm5168_vm3, %v6322_v5  ;;  %v5026_v4 = vadd.f32 %v15823_v41, %v4958_v10  ;;  %v4425_v5 = vadd.f32 %v19135_v49, %v3891_v37 }
 0x64c   :  { %v6174_v43 = vpop.f32.mrf.mxu2  ;;  %v5090_v12 = vmul.f32 0.1, %v5026_v4 }
 0x64d   :  { %v6175_v60 = vadd.f32 %v6174_v43, %v5773_v45  ;;  %v6641_v47 = vpop.f32.mrf.mxu3  ;;  %v5776_v38 = vpop.f32.mrf.mxu1  ;;  %v6323_v45 = vld [vmem:[#allocation3 + $0x262] sm:$0xff] }
 0x64e   :  { %v5154_v42 = vmax.f32 %v5026_v4, %v5090_v12  ;;  %v4869_v50 = vpop.f32.mrf.mxu0  ;;  %v19138_v43 = vld [vmem:[#allocation72_spill] sm:$0xff]  ;;  %12606 = vmatmul.msk.f32.gmra.mxu0 %vm5168_vm3, %v16069_v53  ;;  %v19140_v4 = vld [vmem:[#allocation74_spill] sm:$0xff] }
 0x64f   :  { %v16059_v58 = vadd.f32 %v6641_v47, %v6175_v60  ;;  %v4959_v15 = vadd.f32 %v4869_v50, %v4425_v5  ;;  %v3357_v10 = vadd.f32 %v19138_v43, %v2823_v40  ;;  %v5456_v47 = vld [vmem:[#allocation3 + $0x271] sm:$0xff] }
 0x650   :  { %12458 = vmatmul.msk.f32.gmra.mxu1 %vm5168_vm3, %v5455_v30  ;;  %5329 = vst.msk [vmem:[#allocation3 + $0x2a1] sm:$0xff] %vm5168_vm3, %v5154_v42  ;;  %v19142_v5 = vld [vmem:[#allocation50_spill] sm:$0xff] }
 0x651   :  { %19133 = vst [vmem:[#allocation18_spill] sm:$0xff] %v16059_v58  ;;  %12522 = vmatmul.msk.f32.gmra.mxu2 %vm5168_vm3, %v5390_v39  ;;  %v5027_v13 = vadd.f32 %v15823_v41, %v4959_v15  ;;  %v6324_v39 = vld [vmem:[#allocation3 + $0x272] sm:$0xff]  ;;  %v3892_v19 = vadd.f32 %v19140_v4, %v3357_v10  ;;  %v16085_v15 = vld [vmem:[#allocation3 + $0x48] sm:$0xff] }
 0x652   :  { %12586 = vmatmul.msk.f32.gmra.mxu3 %vm5168_vm3, %v6323_v45  ;;  %v19143_v42 = vld [vmem:[#allocation26_spill] sm:$0xff] }
 0x653   :  { %v5091_v37 = vmul.f32 0.1, %v5027_v13  ;;  %v2824_v50 = vadd.f32 %v19143_v42, %v19142_v5  ;;  %v5457_v10 = vld [vmem:[#allocation3 + $0x279] sm:$0xff] }
 0x654   :  { %v6177_v25 = vpop.f32.mrf.mxu2 }
 0x655   :  { %v6178_v14 = vadd.f32 %v6177_v25, %v5776_v38  ;;  %v6644_v9 = vpop.f32.mrf.mxu3  ;;  %v5779_v60 = vpop.f32.mrf.mxu1  ;;  %v19141_v38 = vld [vmem:[#allocation76_spill] sm:$0xff]  ;;  %v5155_v45 = vmax.f32 %v5027_v13, %v5091_v37 }
 0x656   :  { %v4426_v12 = vadd.f32 %v19141_v38, %v3892_v19  ;;  %v4872_v49 = vpop.f32.mrf.mxu0  ;;  %12607 = vmatmul.msk.f32.gmra.mxu0 %vm5168_vm3, %v16085_v15 }
 0x657   :  { %v16075_v30 = vadd.f32 %v6644_v9, %v6178_v14  ;;  %5330 = vst.msk [vmem:[#allocation3 + $0x2a9] sm:$0xff] %vm5168_vm3, %v5155_v45  ;;  %v19144_v14 = vld [vmem:[#allocation75_spill] sm:$0xff] }
 0x658   :  { %12459 = vmatmul.msk.f32.gmra.mxu1 %vm5168_vm3, %v5456_v47  ;;  %v4960_v18 = vadd.f32 %v4872_v49, %v4426_v12  ;;  %v3358_v9 = vadd.f32 %v19144_v14, %v2824_v50  ;;  %v5392_v47 = vld [vmem:[#allocation3 + $0x278] sm:$0xff]  ;;  %v19147_v45 = vld [vmem:[#allocation51_spill] sm:$0xff] }
 0x659   :  { %19139 = vst [vmem:[#allocation44_spill] sm:$0xff] %v16075_v30  ;;  %12523 = vmatmul.msk.f32.gmra.mxu2 %vm5168_vm3, %v5391_v29  ;;  %v19148_v49 = vld [vmem:[#allocation27_spill] sm:$0xff] }
 0x65a   :  { %12587 = vmatmul.msk.f32.gmra.mxu3 %vm5168_vm3, %v6324_v39  ;;  %v5028_v29 = vadd.f32 %v15823_v41, %v4960_v18  ;;  %v19146_v39 = vld [vmem:[#allocation77_spill] sm:$0xff]  ;;  %v2825_v5 = vadd.f32 %v19148_v49, %v19147_v45 }
 0x65b   :  { %v3893_v4 = vadd.f32 %v19146_v39, %v3358_v9  ;;  %v6326_v39 = vld [vmem:[#allocation3 + $0x28a] sm:$0xff] }
 0x65c   :  { %v6180_v36 = vpop.f32.mrf.mxu2  ;;  %v5092_v19 = vmul.f32 0.1, %v5028_v29 }
 0x65d   :  { %v6181_v40 = vadd.f32 %v6180_v36, %v5779_v60  ;;  %v6647_v25 = vpop.f32.mrf.mxu3  ;;  %v5782_v43 = vpop.f32.mrf.mxu1  ;;  %v6325_v60 = vld [vmem:[#allocation3 + $0x27a] sm:$0xff]  ;;  %v4427_v37 = vadd.f32 %v15560_v26, %v3893_v4  ;;  %v5393_v26 = vld [vmem:[#allocation3 + $0x288] sm:$0xff] }
 0x65e   :  { %v5156_v38 = vmax.f32 %v5028_v29, %v5092_v19  ;;  %v4875_v12 = vpop.f32.mrf.mxu0 }
 0x65f   :  { %v16091_v13 = vadd.f32 %v6647_v25, %v6181_v40  ;;  %v4961_v50 = vadd.f32 %v4875_v12, %v4427_v37  ;;  %v16101_v40 = vld [vmem:[#allocation3 + $0x50] sm:$0xff]  ;;  %v19149_v25 = vld [vmem:[#allocation78_spill] sm:$0xff] }
 0x660   :  { %12460 = vmatmul.msk.f32.gmra.mxu1 %vm5168_vm3, %v5457_v10  ;;  %5331 = vst.msk [vmem:[#allocation3 + $0x2b9] sm:$0xff] %vm5168_vm3, %v5156_v38  ;;  %v3359_v14 = vadd.f32 %v19149_v25, %v2825_v5  ;;  %v5458_v10 = vld [vmem:[#allocation3 + $0x289] sm:$0xff]  ;;  %12608 = vmatmul.msk.f32.gmra.mxu0 %vm5168_vm3, %v16101_v40  ;;  %v16123_v25 = vld [vmem:[%s18907_s4] ss:$0 sm:$0xff] }
 0x661   :  { %19145 = vst [vmem:[#allocation19_spill] sm:$0xff] %v16091_v13  ;;  %12524 = vmatmul.msk.f32.gmra.mxu2 %vm5168_vm3, %v5392_v47  ;;  %v5029_v47 = vadd.f32 %v15823_v41, %v4961_v50  ;;  %v19151_v41 = vld [vmem:[#allocation52_spill] sm:$0xff] }
 0x662   :  { %12588 = vmatmul.msk.f32.gmra.mxu3 %vm5168_vm3, %v6325_v60  ;;  %v3894_v4 = vadd.f32 %v15574_v56, %v3359_v14  ;;  %v19152_v38 = vld [vmem:[#allocation28_spill] sm:$0xff] }
 0x663   :  { %v5093_v19 = vmul.f32 0.1, %v5029_v47  ;;  %v2826_v12 = vadd.f32 %v19152_v38, %v19151_v41 }
 0x664   :  { %v6183_v42 = vpop.f32.mrf.mxu2 }
 0x665   :  { %v6184_v36 = vadd.f32 %v6183_v42, %v5782_v43  ;;  %v6650_v18 = vpop.f32.mrf.mxu3  ;;  %v5785_v9 = vpop.f32.mrf.mxu1  ;;  %v4428_v43 = vadd.f32 %v15578_v17, %v3894_v4  ;;  %v5157_v60 = vmax.f32 %v5029_v47, %v5093_v19  ;;  %v16117_v42 = vld [vmem:[#allocation3 + $0x60] sm:$0xff]  ;;  %v3360_v50 = vadd.f32 %v15580_v51, %v2826_v12  ;;  %v5394_v17 = vld [vmem:[#allocation3 + $0x290] sm:$0xff]  ;;  %v16138_v12 = vld [vmem:[#allocation3 + $0x68] sm:$0xff] }
 0x666   :  { %v4878_v37 = vpop.f32.mrf.mxu0  ;;  %v6327_v51 = vld [vmem:[#allocation3 + $0x292] sm:$0xff] }
 0x667   :  { %v16107_v29 = vadd.f32 %v6650_v18, %v6184_v36  ;;  %5332 = vst.msk [vmem:[#allocation3 + $0x2c1] sm:$0xff] %vm5168_vm3, %v5157_v60  ;;  %v4962_v49 = vadd.f32 %v4878_v37, %v4428_v43  ;;  %v5459_v18 = vld [vmem:[#allocation3 + $0x291] sm:$0xff] }
 0x668   :  { %12461 = vmatmul.msk.f32.gmra.mxu1 %vm5168_vm3, %v5458_v10  ;;  %12609 = vmatmul.msk.f32.gmra.mxu0 %vm5168_vm3, %v16117_v42  ;;  %v19154_v19 = vld [vmem:[#allocation53_spill] sm:$0xff] }
 0x669   :  { %19150 = vst [vmem:[#allocation37_spill] sm:$0xff] %v16107_v29  ;;  %12525 = vmatmul.msk.f32.gmra.mxu2 %vm5168_vm3, %v5393_v26  ;;  %v5030_v14 = vadd.f32 %v16123_v25, %v4962_v49  ;;  %v19155_v43 = vld [vmem:[#allocation29_spill] sm:$0xff] }
 0x66a   :  { %12589 = vmatmul.msk.f32.gmra.mxu3 %vm5168_vm3, %v6326_v39  ;;  %v2827_v60 = vadd.f32 %v19155_v43, %v19154_v19 }
 0x66b   :  { %v5094_v26 = vmul.f32 0.1, %v5030_v14 }
 0x66c   :  { %v6186_v45 = vpop.f32.mrf.mxu2 }
 0x66d   :  { %v6187_v5 = vadd.f32 %v6186_v45, %v5785_v9  ;;  %v6653_v56 = vpop.f32.mrf.mxu3  ;;  %v5788_v36 = vpop.f32.mrf.mxu1  ;;  %v3895_v9 = vadd.f32 %v15590_v57, %v3360_v50  ;;  %v5158_v39 = vmax.f32 %v5030_v14, %v5094_v26  ;;  %v19156_v45 = vld [vmem:[#allocation79_spill] sm:$0xff] }
 0x66e   :  { %v4881_v4 = vpop.f32.mrf.mxu0  ;;  %v3361_v49 = vadd.f32 %v19156_v45, %v2827_v60  ;;  %v5461_v45 = vld [vmem:[#allocation3 + $0x2a9] sm:$0xff] }
 0x66f   :  { %v16128_v10 = vadd.f32 %v6653_v56, %v6187_v5  ;;  %v4429_v47 = vadd.f32 %v15588_v2, %v3895_v9  ;;  %5333 = vst.msk [vmem:[#allocation3 + $0x2d1] sm:$0xff] %vm5168_vm3, %v5158_v39  ;;  %v5460_v56 = vld [vmem:[#allocation3 + $0x2a1] sm:$0xff]  ;;  %v19159_v39 = vld [vmem:[#allocation30_spill] sm:$0xff] }
 0x670   :  { %12462 = vmatmul.msk.f32.gmra.mxu1 %vm5168_vm3, %v5459_v18  ;;  %v5395_v2 = vld [vmem:[#allocation3 + $0x2a0] sm:$0xff]  ;;  %12610 = vmatmul.msk.f32.gmra.mxu0 %vm5168_vm3, %v16138_v12  ;;  %v3896_v14 = vadd.f32 %v15604_v21, %v3361_v49 }
 0x671   :  { %19153 = vst [vmem:[#allocation62_spill] sm:$0xff] %v16128_v10  ;;  %12526 = vmatmul.msk.f32.gmra.mxu2 %vm5168_vm3, %v5394_v17  ;;  %v4963_v41 = vadd.f32 %v4881_v4, %v4429_v47  ;;  %v6328_v17 = vld [vmem:[#allocation3 + $0x2a2] sm:$0xff]  ;;  %v19158_v47 = vld [vmem:[#allocation54_spill] sm:$0xff] }
 0x672   :  { %12590 = vmatmul.msk.f32.gmra.mxu3 %vm5168_vm3, %v6327_v51  ;;  %v2828_v4 = vadd.f32 %v19159_v39, %v19158_v47 }
 0x673   :  { %v5031_v50 = vadd.f32 %v16123_v25, %v4963_v41  ;;  %v19160_v41 = vld [vmem:[#allocation80_spill] sm:$0xff] }
 0x674   :  { %v6189_v37 = vpop.f32.mrf.mxu2 }
 0x675   :  { %v6190_v57 = vadd.f32 %v6189_v37, %v5788_v36  ;;  %v6656_v38 = vpop.f32.mrf.mxu3  ;;  %v5791_v5 = vpop.f32.mrf.mxu1  ;;  %v5095_v9 = vmul.f32 0.1, %v5031_v50  ;;  %v4430_v36 = vadd.f32 %v15601_v61, %v3896_v14  ;;  %v16154_v37 = vld [vmem:[#allocation3 + $0x78] sm:$0xff]  ;;  %v5396_v61 = vld [vmem:[#allocation3 + $0x2a8] sm:$0xff] }
 0x676   :  { %v4884_v51 = vpop.f32.mrf.mxu0 }
 0x677   :  { %v16144_v18 = vadd.f32 %v6656_v38, %v6190_v57  ;;  %v5159_v26 = vmax.f32 %v5031_v50, %v5095_v9  ;;  %v4964_v43 = vadd.f32 %v4884_v51, %v4430_v36  ;;  %v3362_v57 = vadd.f32 %v19160_v41, %v2828_v4  ;;  %v19164_v51 = vld [vmem:[#allocation31_spill] sm:$0xff] }
 0x678   :  { %12463 = vmatmul.msk.f32.gmra.mxu1 %vm5168_vm3, %v5460_v56  ;;  %12611 = vmatmul.msk.f32.gmra.mxu0 %vm5168_vm3, %v16154_v37  ;;  %v5462_v41 = vld [vmem:[#allocation3 + $0x2b9] sm:$0xff] }
 0x679   :  { %19157 = vst [vmem:[#allocation45_spill] sm:$0xff] %v16144_v18  ;;  %12527 = vmatmul.msk.f32.gmra.mxu2 %vm5168_vm3, %v5395_v2  ;;  %v5032_v49 = vadd.f32 %v16123_v25, %v4964_v43  ;;  %v3897_v2 = vadd.f32 %v15621_v1, %v3362_v57  ;;  %v16170_v43 = vld [vmem:[#allocation3 + $0x80] sm:$0xff]  ;;  %v5397_v57 = vld [vmem:[#allocation3 + $0x2b8] sm:$0xff] }
 0x67a   :  { %12591 = vmatmul.msk.f32.gmra.mxu3 %vm5168_vm3, %v6328_v17  ;;  %5334 = vst.msk [vmem:[#allocation3 + $0x2d9] sm:$0xff] %vm5168_vm3, %v5159_v26  ;;  %v19162_v17 = vld [vmem:[#allocation81_spill] sm:$0xff]  ;;  %v19163_v26 = vld [vmem:[#allocation55_spill] sm:$0xff] }
 0x67b   :  { %v5096_v50 = vmul.f32 0.1, %v5032_v49  ;;  %v4431_v14 = vadd.f32 %v19162_v17, %v3897_v2  ;;  %v2829_v47 = vadd.f32 %v19164_v51, %v19163_v26  ;;  %v19166_v2 = vld [vmem:[#allocation83_spill] sm:$0xff] }
 0x67c   :  { %v6192_v19 = vpop.f32.mrf.mxu2 }
 0x67d   :  { %v6193_v60 = vadd.f32 %v6192_v19, %v5791_v5  ;;  %v6659_v21 = vpop.f32.mrf.mxu3  ;;  %v5794_v38 = vpop.f32.mrf.mxu1  ;;  %v6329_v5 = vld [vmem:[#allocation3 + $0x2aa] sm:$0xff]  ;;  %v5160_v9 = vmax.f32 %v5032_v49, %v5096_v50  ;;  %v6330_v49 = vld [vmem:[#allocation3 + $0x2ba] sm:$0xff] }
 0x67e   :  { %v4887_v36 = vpop.f32.mrf.mxu0 }
 0x67f   :  { %v16160_v56 = vadd.f32 %v6659_v21, %v6193_v60  ;;  %5335 = vst.msk [vmem:[#allocation3 + $0x2e9] sm:$0xff] %vm5168_vm3, %v5160_v9  ;;  %v4965_v4 = vadd.f32 %v4887_v36, %v4431_v14  ;;  %v3363_v60 = vadd.f32 %v15625_v34, %v2829_v47  ;;  %v19168_v9 = vld [vmem:[#allocation56_spill] sm:$0xff] }
 0x680   :  { %12464 = vmatmul.msk.f32.gmra.mxu1 %vm5168_vm3, %v5461_v45  ;;  %12612 = vmatmul.msk.f32.gmra.mxu0 %vm5168_vm3, %v16170_v43  ;;  %v19169_v36 = vld [vmem:[#allocation32_spill] sm:$0xff] }
 0x681   :  { %19161 = vst [vmem:[#allocation21_spill] sm:$0xff] %v16160_v56  ;;  %12528 = vmatmul.msk.f32.gmra.mxu2 %vm5168_vm3, %v5396_v61  ;;  %v5033_v45 = vadd.f32 %v16123_v25, %v4965_v4  ;;  %v3898_v50 = vadd.f32 %v19166_v2, %v3363_v60  ;;  %v2830_v26 = vadd.f32 %v19169_v36, %v19168_v9  ;;  %v5398_v2 = vld [vmem:[#allocation3 + $0x2c0] sm:$0xff]  ;;  %v19173_v9 = vld [vmem:[#allocation33_spill] sm:$0xff] }
 0x682   :  { %12592 = vmatmul.msk.f32.gmra.mxu3 %vm5168_vm3, %v6329_v5 }
 0x683   :  { %v5097_v5 = vmul.f32 0.1, %v5033_v45 }
 0x684   :  { %v6195_v39 = vpop.f32.mrf.mxu2 }
 0x685   :  { %v6196_v1 = vadd.f32 %v6195_v39, %v5794_v38  ;;  %v6662_v19 = vpop.f32.mrf.mxu3  ;;  %v5797_v21 = vpop.f32.mrf.mxu1  ;;  %v19167_v38 = vld [vmem:[#allocation82_spill] sm:$0xff]  ;;  %v5161_v17 = vmax.f32 %v5033_v45, %v5097_v5 }
 0x686   :  { %v4432_v34 = vadd.f32 %v19167_v38, %v3898_v50  ;;  %v4890_v14 = vpop.f32.mrf.mxu0 }
 0x687   :  { %v16176_v61 = vadd.f32 %v6662_v19, %v6196_v1  ;;  %5336 = vst.msk [vmem:[#allocation3 + $0x2f1] sm:$0xff] %vm5168_vm3, %v5161_v17  ;;  %v16186_v1 = vld [vmem:[#allocation3 + $0x90] sm:$0xff]  ;;  %v19170_v19 = vld [vmem:[#allocation84_spill] sm:$0xff] }
 0x688   :  { %12465 = vmatmul.msk.f32.gmra.mxu1 %vm5168_vm3, %v5462_v41  ;;  %v4966_v47 = vadd.f32 %v4890_v14, %v4432_v34  ;;  %v3364_v60 = vadd.f32 %v19170_v19, %v2830_v26  ;;  %12613 = vmatmul.msk.f32.gmra.mxu0 %vm5168_vm3, %v16186_v1  ;;  %v19172_v14 = vld [vmem:[#allocation57_spill] sm:$0xff] }
 0x689   :  { %19165 = vst [vmem:[#allocation38_spill] sm:$0xff] %v16176_v61  ;;  %12529 = vmatmul.msk.f32.gmra.mxu2 %vm5168_vm3, %v5397_v57  ;;  %v5463_v57 = vld [vmem:[#allocation3 + $0x2c1] sm:$0xff]  ;;  %v2831_v36 = vadd.f32 %v19173_v9, %v19172_v14  ;;  %v19178_v9 = vld [vmem:[#allocation58_spill] sm:$0xff] }
 0x68a   :  { %12593 = vmatmul.msk.f32.gmra.mxu3 %vm5168_vm3, %v6330_v49  ;;  %v5034_v49 = vadd.f32 %v16123_v25, %v4966_v47  ;;  %v3899_v50 = vadd.f32 %v15649_v44, %v3364_v60 }
 0x68c   :  { %v6198_v51 = vpop.f32.mrf.mxu2  ;;  %v5098_v5 = vmul.f32 0.1, %v5034_v49  ;;  %v4433_v38 = vadd.f32 %v15646_v48, %v3899_v50  ;;  %v5399_v48 = vld [vmem:[#allocation3 + $0x2d0] sm:$0xff] }
 0x68d   :  { %v6199_v39 = vadd.f32 %v6198_v51, %v5797_v21  ;;  %v6665_v4 = vpop.f32.mrf.mxu3  ;;  %v5800_v41 = vpop.f32.mrf.mxu1  ;;  %v6331_v21 = vld [vmem:[#allocation3 + $0x2c2] sm:$0xff]  ;;  %v6332_v50 = vld [vmem:[#allocation3 + $0x2d2] sm:$0xff] }
 0x68e   :  { %v5162_v34 = vmax.f32 %v5034_v49, %v5098_v5  ;;  %v4893_v17 = vpop.f32.mrf.mxu0  ;;  %v19176_v5 = vld [vmem:[#allocation87_spill] sm:$0xff] }
 0x68f   :  { %v16192_v45 = vadd.f32 %v6665_v4, %v6199_v39  ;;  %v4967_v51 = vadd.f32 %v4893_v17, %v4433_v38  ;;  %v16202_v39 = vld [vmem:[#allocation3 + $0x98] sm:$0xff]  ;;  %v19174_v4 = vld [vmem:[#allocation85_spill] sm:$0xff] }
 0x690   :  { %12466 = vmatmul.msk.f32.gmra.mxu1 %vm5168_vm3, %v5463_v57  ;;  %5337 = vst.msk [vmem:[#allocation3 + $0x301] sm:$0xff] %vm5168_vm3, %v5162_v34  ;;  %v3365_v19 = vadd.f32 %v19174_v4, %v2831_v36  ;;  %v5464_v57 = vld [vmem:[#allocation3 + $0x2d1] sm:$0xff]  ;;  %12614 = vmatmul.msk.f32.gmra.mxu0 %vm5168_vm3, %v16202_v39 }
 0x691   :  { %19171 = vst [vmem:[#allocation61_spill] sm:$0xff] %v16192_v45  ;;  %12530 = vmatmul.msk.f32.gmra.mxu2 %vm5168_vm3, %v5398_v2  ;;  %v5035_v2 = vadd.f32 %v16123_v25, %v4967_v51  ;;  %v19179_v36 = vld [vmem:[#allocation34_spill] sm:$0xff] }
 0x692   :  { %12594 = vmatmul.msk.f32.gmra.mxu3 %vm5168_vm3, %v6331_v21  ;;  %v3900_v21 = vadd.f32 %v19176_v5, %v3365_v19  ;;  %v16218_v19 = vld [vmem:[#allocation3 + $0xa8] sm:$0xff]  ;;  %v5465_v5 = vld [vmem:[#allocation3 + $0x2d9] sm:$0xff]  ;;  %v5467_v45 = vld [vmem:[#allocation3 + $0x2f1] sm:$0xff] }
 0x693   :  { %v5099_v38 = vmul.f32 0.1, %v5035_v2 }
 0x694   :  { %v6201_v26 = vpop.f32.mrf.mxu2 }
 0x695   :  { %v6202_v44 = vadd.f32 %v6201_v26, %v5800_v41  ;;  %v6668_v47 = vpop.f32.mrf.mxu3  ;;  %v5803_v60 = vpop.f32.mrf.mxu1  ;;  %v19177_v41 = vld [vmem:[#allocation86_spill] sm:$0xff]  ;;  %v5163_v17 = vmax.f32 %v5035_v2, %v5099_v38  ;;  %v2832_v26 = vadd.f32 %v19179_v36, %v19178_v9  ;;  %v19181_v38 = vld [vmem:[#allocation89_spill] sm:$0xff]  ;;  %v19183_v36 = vld [vmem:[#allocation59_spill] sm:$0xff] }
 0x696   :  { %v4434_v34 = vadd.f32 %v19177_v41, %v3900_v21  ;;  %v4896_v14 = vpop.f32.mrf.mxu0  ;;  %v5400_v21 = vld [vmem:[#allocation3 + $0x2d8] sm:$0xff] }
 0x697   :  { %v16208_v49 = vadd.f32 %v6668_v47, %v6202_v44  ;;  %5338 = vst.msk [vmem:[#allocation3 + $0x309] sm:$0xff] %vm5168_vm3, %v5163_v17 }
 0x698   :  { %12467 = vmatmul.msk.f32.gmra.mxu1 %vm5168_vm3, %v5464_v57  ;;  %v4968_v44 = vadd.f32 %v4896_v14, %v4434_v34  ;;  %v3366_v57 = vadd.f32 %v15669_v24, %v2832_v26  ;;  %12615 = vmatmul.msk.f32.gmra.mxu0 %vm5168_vm3, %v16218_v19  ;;  %v19182_v34 = vld [vmem:[#allocation88_spill] sm:$0xff]  ;;  %v19184_v26 = vld [vmem:[#allocation35_spill] sm:$0xff] }
 0x699   :  { %19175 = vst [vmem:[#allocation65_spill] sm:$0xff] %v16208_v49  ;;  %12531 = vmatmul.msk.f32.gmra.mxu2 %vm5168_vm3, %v5399_v48  ;;  %v5466_v49 = vld [vmem:[#allocation3 + $0x2e9] sm:$0xff] }
 0x69a   :  { %12595 = vmatmul.msk.f32.gmra.mxu3 %vm5168_vm3, %v6332_v50  ;;  %v5036_v50 = vadd.f32 %v16123_v25, %v4968_v44  ;;  %v3901_v41 = vadd.f32 %v19181_v38, %v3366_v57  ;;  %v16234_v38 = vld [vmem:[#allocation3 + $0xb0] sm:$0xff] }
 0x69c   :  { %v6204_v51 = vpop.f32.mrf.mxu2  ;;  %v5100_v17 = vmul.f32 0.1, %v5036_v50  ;;  %v4435_v24 = vadd.f32 %v19182_v34, %v3901_v41  ;;  %v5401_v41 = vld [vmem:[#allocation3 + $0x2e8] sm:$0xff] }
 0x69d   :  { %v6205_v47 = vadd.f32 %v6204_v51, %v5803_v60  ;;  %v6671_v4 = vpop.f32.mrf.mxu3  ;;  %v5806_v48 = vpop.f32.mrf.mxu1  ;;  %v6333_v60 = vld [vmem:[#allocation3 + $0x2da] sm:$0xff]  ;;  %v2833_v51 = vadd.f32 %v19184_v26, %v19183_v36  ;;  %v19187_v34 = vld [vmem:[#allocation92_spill] sm:$0xff] }
 0x69e   :  { %v5164_v14 = vmax.f32 %v5036_v50, %v5100_v17  ;;  %v4899_v9 = vpop.f32.mrf.mxu0  ;;  %v6334_v17 = vld [vmem:[#allocation3 + $0x2ea] sm:$0xff] }
 0x69f   :  { %v16224_v2 = vadd.f32 %v6671_v4, %v6205_v47  ;;  %v4969_v47 = vadd.f32 %v4899_v9, %v4435_v24 }
 0x6a0   :  { %12468 = vmatmul.msk.f32.gmra.mxu1 %vm5168_vm3, %v5465_v5  ;;  %5339 = vst.msk [vmem:[#allocation3 + $0x319] sm:$0xff] %vm5168_vm3, %v5164_v14  ;;  %v19185_v5 = vld [vmem:[#allocation90_spill] sm:$0xff]  ;;  %12616 = vmatmul.msk.f32.gmra.mxu0 %vm5168_vm3, %v16234_v38 }
 0x6a1   :  { %19180 = vst [vmem:[#allocation46_spill] sm:$0xff] %v16224_v2  ;;  %12532 = vmatmul.msk.f32.gmra.mxu2 %vm5168_vm3, %v5400_v21  ;;  %v3367_v21 = vadd.f32 %v19185_v5, %v2833_v51  ;;  %v19189_v51 = vld [vmem:[#allocation60_spill] sm:$0xff] }
 0x6a2   :  { %12596 = vmatmul.msk.f32.gmra.mxu3 %vm5168_vm3, %v6333_v60  ;;  %v5037_v60 = vadd.f32 %v16123_v25, %v4969_v47 }
 0x6a3   :  { %v3902_v14 = vadd.f32 %v19187_v34, %v3367_v21  ;;  %v16250_v34 = vld [vmem:[#allocation3 + $0xc0] sm:$0xff] }
 0x6a4   :  { %v6207_v44 = vpop.f32.mrf.mxu2  ;;  %v5101_v24 = vmul.f32 0.1, %v5037_v60 }
 0x6a5   :  { %v6208_v4 = vadd.f32 %v6207_v44, %v5806_v48  ;;  %v6674_v57 = vpop.f32.mrf.mxu3  ;;  %v5809_v2 = vpop.f32.mrf.mxu1  ;;  %v19188_v48 = vld [vmem:[#allocation91_spill] sm:$0xff]  ;;  %v19190_v44 = vld [vmem:[#allocation36_spill] sm:$0xff] }
 0x6a6   :  { %v4436_v9 = vadd.f32 %v19188_v48, %v3902_v14  ;;  %v5165_v36 = vmax.f32 %v5037_v60, %v5101_v24  ;;  %v4902_v26 = vpop.f32.mrf.mxu0  ;;  %v2834_v47 = vadd.f32 %v19190_v44, %v19189_v51  ;;  %v5402_v14 = vld [vmem:[#allocation3 + $0x2f0] sm:$0xff]  ;;  %v19193_v24 = vld [vmem:[#allocation94_spill] sm:$0xff] }
 0x6a7   :  { %v16240_v50 = vadd.f32 %v6674_v57, %v6208_v4 }
 0x6a8   :  { %12469 = vmatmul.msk.f32.gmra.mxu1 %vm5168_vm3, %v5466_v49  ;;  %5340 = vst.msk [vmem:[#allocation3 + $0x321] sm:$0xff] %vm5168_vm3, %v5165_v36  ;;  %v4970_v4 = vadd.f32 %v4902_v26, %v4436_v9  ;;  %v19191_v49 = vld [vmem:[#allocation93_spill] sm:$0xff]  ;;  %12617 = vmatmul.msk.f32.gmra.mxu0 %vm5168_vm3, %v16250_v34  ;;  %v19194_v9 = vld [vmem:[#allocation8_spill] sm:$0xff] }
 0x6a9   :  { %19186 = vst [vmem:[#allocation22_spill] sm:$0xff] %v16240_v50  ;;  %12533 = vmatmul.msk.f32.gmra.mxu2 %vm5168_vm3, %v5401_v41  ;;  %v3368_v50 = vadd.f32 %v19191_v49, %v2834_v47  ;;  %v5468_v49 = vld [vmem:[#allocation3 + $0x301] sm:$0xff] }
 0x6aa   :  { %12597 = vmatmul.msk.f32.gmra.mxu3 %vm5168_vm3, %v6334_v17  ;;  %v5038_v17 = vadd.f32 %v16123_v25, %v4970_v4 }
 0x6ab   :  { %v3903_v48 = vadd.f32 %v19193_v24, %v3368_v50  ;;  %v7934_v24 = vld [vmem:[#allocation5 + $0x28] sm:$0xff] }
 0x6ac   :  { %v6210_v5 = vpop.f32.mrf.mxu2  ;;  %v5102_v36 = vmul.f32 0.1, %v5038_v17  ;;  %8142 = vmatpush.msra.mxu2 %v7934_v24 }
 0x6ad   :  { %v6211_v57 = vadd.f32 %v6210_v5, %v5809_v2  ;;  %v6677_v21 = vpop.f32.mrf.mxu3  ;;  %v5812_v41 = vpop.f32.mrf.mxu1  ;;  %v6335_v2 = vld [vmem:[#allocation3 + $0x2f2] sm:$0xff]  ;;  %v4437_v26 = vadd.f32 %v19194_v9, %v3903_v48 }
 0x6ae   :  { %v5166_v51 = vmax.f32 %v5038_v17, %v5102_v36  ;;  %v4905_v44 = vpop.f32.mrf.mxu0  ;;  %v6336_v17 = vld [vmem:[#allocation3 + $0x302] sm:$0xff] }
 0x6af   :  { %v16256_v60 = vadd.f32 %v6677_v21, %v6211_v57  ;;  %v4971_v5 = vadd.f32 %v4905_v44, %v4437_v26  ;;  %v16264_v21 = vld [vmem:[#allocation3 + $0xc8] sm:$0xff] }
 0x6b0   :  { %12470 = vmatmul.msk.f32.gmra.mxu1 %vm5168_vm3, %v5467_v45  ;;  %5341 = vst.msk [vmem:[#allocation3 + $0x331] sm:$0xff] %vm5168_vm3, %v5166_v51  ;;  %v5403_v45 = vld [vmem:[#allocation3 + $0x300] sm:$0xff]  ;;  %12618 = vmatmul.msk.f32.gmra.mxu0 %vm5168_vm3, %v16264_v21  ;;  %v16277_v51 = vld [vmem:[#allocation3 + $0xd8] sm:$0xff] }
 0x6b1   :  { %19192 = vst [vmem:[#allocation63_spill] sm:$0xff] %v16256_v60  ;;  %12534 = vmatmul.msk.f32.gmra.mxu2 %vm5168_vm3, %v5402_v14  ;;  %v5039_v14 = vadd.f32 %v16123_v25, %v4971_v5  ;;  %v5404_v5 = vld [vmem:[#allocation3 + $0x308] sm:$0xff] }
 0x6b2   :  { %12598 = vmatmul.msk.f32.gmra.mxu3 %vm5168_vm3, %v6335_v2  ;;  %v5471_v60 = vld [vmem:[#allocation3 + $0x321] sm:$0xff] }
 0x6b3   :  { %v5103_v36 = vmul.f32 0.1, %v5039_v14 }
 0x6b4   :  { %v6213_v47 = vpop.f32.mrf.mxu2 }
 0x6b5   :  { %v6214_v4 = vadd.f32 %v6213_v47, %v5812_v41  ;;  %v6680_v57 = vpop.f32.mrf.mxu3  ;;  %v5815_v50 = vpop.f32.mrf.mxu1  ;;  %v5167_v41 = vmax.f32 %v5039_v14, %v5103_v36  ;;  %v5469_v47 = vld [vmem:[#allocation3 + $0x309] sm:$0xff] }
 0x6b6   :  { %v16274_v2 = vpop.f32.mrf.mxu0 }
 0x6b7   :  { %v16269_v48 = vadd.f32 %v6680_v57, %v6214_v4  ;;  %5342 = vst.msk [vmem:[#allocation3 + $0x339] sm:$0xff] %vm5168_vm3, %v5167_v41  ;;  %v8466_v57 = vld [vmem:[#allocation5 + $0x30] sm:$0xff]  ;;  %v5470_v41 = vld [vmem:[#allocation3 + $0x319] sm:$0xff] }
 0x6b8   :  { %12471 = vmatmul.msk.f32.gmra.mxu1 %vm5168_vm3, %v5468_v49  ;;  %12619 = vmatmul.msk.f32.gmra.mxu0 %vm5168_vm3, %v16277_v51  ;;  %v6337_v49 = vld [vmem:[#allocation3 + $0x30a] sm:$0xff] }
 0x6b9   :  { %19195 = vst [vmem:[#allocation64_spill] sm:$0xff] %v16269_v48  ;;  %12535 = vmatmul.msk.f32.gmra.mxu2 %vm5168_vm3, %v5403_v45  ;;  %8674 = vmatpush.msra.mxu3 %v8466_v57  ;;  %v5406_v48 = vld [vmem:[#allocation3 + $0x320] sm:$0xff] }
 0x6ba   :  { %12599 = vmatmul.msk.f32.gmra.mxu3 %vm5168_vm3, %v6336_v17  ;;  %v16288_v17 = vld [vmem:[#allocation3 + $0xe0] sm:$0xff] }
 0x6bc   :  { %v6216_v9 = vpop.f32.mrf.mxu2 }
 0x6bd   :  { %v6217_v25 = vadd.f32 %v6216_v9, %v5815_v50  ;;  %v6683_v26 = vpop.f32.mrf.mxu3  ;;  %v5818_v44 = vpop.f32.mrf.mxu1  ;;  %v5405_v9 = vld [vmem:[#allocation3 + $0x318] sm:$0xff] }
 0x6be   :  { %v16286_v50 = vpop.f32.mrf.mxu0 }
 0x6bf   :  { %v16281_v4 = vadd.f32 %v6683_v26, %v6217_v25  ;;  %v6338_v26 = vld [vmem:[#allocation3 + $0x31a] sm:$0xff] }
 0x6c0   :  { %12472 = vmatmul.msk.f32.gmra.mxu1 %vm5168_vm3, %v5469_v47  ;;  %12620 = vmatmul.msk.f32.gmra.mxu0 %vm5168_vm3, %v16288_v17 }
 0x6c1   :  { %19196 = vst [vmem:[#allocation68_spill] sm:$0xff] %v16281_v4  ;;  %12536 = vmatmul.msk.f32.gmra.mxu2 %vm5168_vm3, %v5404_v5 }
 0x6c2   :  { %12600 = vmatmul.msk.f32.gmra.mxu3 %vm5168_vm3, %v6337_v49  ;;  %v16299_v49 = vld [vmem:[#allocation3 + $0xf0] sm:$0xff] }
 0x6c4   :  { %v6219_v45 = vpop.f32.mrf.mxu2 }
 0x6c5   :  { %v6220_v14 = vadd.f32 %v6219_v45, %v5818_v44  ;;  %v6686_v24 = vpop.f32.mrf.mxu3  ;;  %v5821_v36 = vpop.f32.mrf.mxu1 }
 0x6c6   :  { %v16297_v47 = vpop.f32.mrf.mxu0 }
 0x6c7   :  { %v16292_v25 = vadd.f32 %v6686_v24, %v6220_v14  ;;  %v6339_v24 = vld [vmem:[#allocation3 + $0x322] sm:$0xff] }
 0x6c8   :  { %12473 = vmatmul.msk.f32.gmra.mxu1 %vm5168_vm3, %v5470_v41  ;;  %12621 = vmatmul.msk.f32.gmra.mxu0 %vm5168_vm3, %v16299_v49 }
 0x6c9   :  { %19197 = vst [vmem:[#allocation47_spill] sm:$0xff] %v16292_v25  ;;  %12537 = vmatmul.msk.f32.gmra.mxu2 %vm5168_vm3, %v5405_v9  ;;  %v16322_v25 = vld [vmem:[#allocation3 + $0x108] sm:$0xff] }
 0x6ca   :  { %12601 = vmatmul.msk.f32.gmra.mxu3 %vm5168_vm3, %v6338_v26 }
 0x6cc   :  { %v6222_v44 = vpop.f32.mrf.mxu2 }
 0x6cd   :  { %v6223_v5 = vadd.f32 %v6222_v44, %v5821_v36  ;;  %v6689_v57 = vpop.f32.mrf.mxu3  ;;  %v5824_v45 = vpop.f32.mrf.mxu1  ;;  %v16310_v44 = vld [vmem:[#allocation3 + $0xf8] sm:$0xff] }
 0x6ce   :  { %v16308_v41 = vpop.f32.mrf.mxu0 }
 0x6cf   :  { %v16303_v14 = vadd.f32 %v6689_v57, %v6223_v5  ;;  %v7338_v57 = vld [vmem:[#allocation3 + $0x19] sm:$0xff] }
 0x6d0   :  { %12474 = vmatmul.msk.f32.gmra.mxu1 %vm5168_vm3, %v5471_v60  ;;  %12622 = vmatmul.msk.f32.gmra.mxu0 %vm5168_vm3, %v16310_v44  ;;  %v7869_v60 = vld [vmem:[#allocation3 + $0x1a] sm:$0xff] }
 0x6d1   :  { %19198 = vst [vmem:[#allocation23_spill] sm:$0xff] %v16303_v14  ;;  %12538 = vmatmul.msk.f32.gmra.mxu2 %vm5168_vm3, %v5406_v48 }
 0x6d2   :  { %12602 = vmatmul.msk.f32.gmra.mxu3 %vm5168_vm3, %v6339_v24 }
 0x6d4   :  { %v6225_v36 = vpop.f32.mrf.mxu2 }
 0x6d5   :  { %v6226_v9 = vadd.f32 %v6225_v36, %v5824_v45  ;;  %v6692_v26 = vpop.f32.mrf.mxu3  ;;  %v5827_v4 = vpop.f32.mrf.mxu1 }
 0x6d6   :  { %v16320_v48 = vpop.f32.mrf.mxu0 }
 0x6d7   :  { %v16314_v5 = vadd.f32 %v6692_v26, %v6226_v9  ;;  %v7339_v26 = vld [vmem:[#allocation3 + $0x21] sm:$0xff] }
 0x6d8   :  { %12667 = vmatmul.msk.f32.vlgmr.msra.gmra.mxu1 %vm5168_vm3, %v7338_v57  ;;  %12623 = vmatmul.msk.f32.gmra.mxu0 %vm5168_vm3, %v16322_v25  ;;  %v7870_v57 = vld [vmem:[#allocation3 + $0x22] sm:$0xff] }
 0x6d9   :  { %19199 = vst [vmem:[#allocation66_spill] sm:$0xff] %v16314_v5  ;;  %12731 = vmatmul.msk.f32.vlgmr.msra.gmra.mxu2 %vm5168_vm3, %v7869_v60  ;;  %v16334_v5 = vld [vmem:[#allocation3 + $0x110] sm:$0xff] }
 0x6da   :  { %12795 = vmatmul.msk.f32.vlgmr.msra.gmra.mxu3 %vm5168_vm3, %v16053_v28 }
 0x6dc   :  { %v6228_v45 = vpop.f32.mrf.mxu2 }
 0x6dd   :  { %v6229_v24 = vadd.f32 %v6228_v45, %v5827_v4  ;;  %v6695_v36 = vpop.f32.mrf.mxu3  ;;  %v5830_v14 = vpop.f32.mrf.mxu1 }
 0x6de   :  { %v16332_v28 = vpop.f32.mrf.mxu0 }
 0x6df   :  { %v16326_v9 = vadd.f32 %v6695_v36, %v6229_v24  ;;  %v7340_v36 = vld [vmem:[#allocation3 + $0x31] sm:$0xff] }
 0x6e0   :  { %12668 = vmatmul.msk.f32.gmra.mxu1 %vm5168_vm3, %v7339_v26  ;;  %12624 = vmatmul.msk.f32.gmra.mxu0 %vm5168_vm3, %v16334_v5  ;;  %v7871_v26 = vld [vmem:[#allocation3 + $0x32] sm:$0xff] }
 0x6e1   :  { %19200 = vst [vmem:[#allocation67_spill] sm:$0xff] %v16326_v9  ;;  %12732 = vmatmul.msk.f32.gmra.mxu2 %vm5168_vm3, %v7870_v57  ;;  %v16346_v9 = vld [vmem:[#allocation3 + $0x120] sm:$0xff] }
 0x6e2   :  { %12796 = vmatmul.msk.f32.gmra.mxu3 %vm5168_vm3, %v16069_v53 }
 0x6e4   :  { %v6231_v4 = vpop.f32.mrf.mxu2 }
 0x6e5   :  { %v6232_v60 = vadd.f32 %v6231_v4, %v5830_v14  ;;  %v6698_v45 = vpop.f32.mrf.mxu3  ;;  %v5833_v61 = vpop.f32.mrf.mxu1 }
 0x6e6   :  { %v16344_v53 = vpop.f32.mrf.mxu0 }
 0x6e7   :  { %v16338_v24 = vadd.f32 %v6698_v45, %v6232_v60  ;;  %v7341_v45 = vld [vmem:[#allocation3 + $0x39] sm:$0xff] }
 0x6e8   :  { %12669 = vmatmul.msk.f32.gmra.mxu1 %vm5168_vm3, %v7340_v36  ;;  %12625 = vmatmul.msk.f32.gmra.mxu0 %vm5168_vm3, %v16346_v9  ;;  %v7872_v36 = vld [vmem:[#allocation3 + $0x3a] sm:$0xff] }
 0x6e9   :  { %19201 = vst [vmem:[#allocation70_spill] sm:$0xff] %v16338_v24  ;;  %12733 = vmatmul.msk.f32.gmra.mxu2 %vm5168_vm3, %v7871_v26  ;;  %v16358_v24 = vld [vmem:[#allocation3 + $0x128] sm:$0xff] }
 0x6ea   :  { %12797 = vmatmul.msk.f32.gmra.mxu3 %vm5168_vm3, %v16085_v15 }
 0x6ec   :  { %v6234_v14 = vpop.f32.mrf.mxu2 }
 0x6ed   :  { %v6235_v57 = vadd.f32 %v6234_v14, %v5833_v61  ;;  %v6701_v4 = vpop.f32.mrf.mxu3  ;;  %v5836_v56 = vpop.f32.mrf.mxu1 }
 0x6ee   :  { %v16356_v15 = vpop.f32.mrf.mxu0 }
 0x6ef   :  { %v16350_v60 = vadd.f32 %v6701_v4, %v6235_v57  ;;  %v7342_v4 = vld [vmem:[#allocation3 + $0x49] sm:$0xff] }
 0x6f0   :  { %12670 = vmatmul.msk.f32.gmra.mxu1 %vm5168_vm3, %v7341_v45  ;;  %12626 = vmatmul.msk.f32.gmra.mxu0 %vm5168_vm3, %v16358_v24  ;;  %v7873_v45 = vld [vmem:[#allocation3 + $0x4a] sm:$0xff] }
 0x6f1   :  { %19202 = vst [vmem:[#allocation48_spill] sm:$0xff] %v16350_v60  ;;  %12734 = vmatmul.msk.f32.gmra.mxu2 %vm5168_vm3, %v7872_v36  ;;  %v16370_v60 = vld [vmem:[#allocation3 + $0x138] sm:$0xff] }
 0x6f2   :  { %12798 = vmatmul.msk.f32.gmra.mxu3 %vm5168_vm3, %v16101_v40 }
 0x6f4   :  { %v6237_v61 = vpop.f32.mrf.mxu2 }
 0x6f5   :  { %v6238_v26 = vadd.f32 %v6237_v61, %v5836_v56  ;;  %v6704_v14 = vpop.f32.mrf.mxu3  ;;  %v5839_v18 = vpop.f32.mrf.mxu1 }
 0x6f6   :  { %v16368_v40 = vpop.f32.mrf.mxu0 }
 0x6f7   :  { %v16362_v57 = vadd.f32 %v6704_v14, %v6238_v26  ;;  %v7343_v14 = vld [vmem:[#allocation3 + $0x51] sm:$0xff] }
 0x6f8   :  { %12671 = vmatmul.msk.f32.gmra.mxu1 %vm5168_vm3, %v7342_v4  ;;  %12627 = vmatmul.msk.f32.gmra.mxu0 %vm5168_vm3, %v16370_v60  ;;  %v7874_v4 = vld [vmem:[#allocation3 + $0x52] sm:$0xff] }
 0x6f9   :  { %19203 = vst [vmem:[#allocation24_spill] sm:$0xff] %v16362_v57  ;;  %12735 = vmatmul.msk.f32.gmra.mxu2 %vm5168_vm3, %v7873_v45  ;;  %v16382_v57 = vld [vmem:[#allocation3 + $0x140] sm:$0xff] }
 0x6fa   :  { %12799 = vmatmul.msk.f32.gmra.mxu3 %vm5168_vm3, %v16117_v42 }
 0x6fc   :  { %v6240_v56 = vpop.f32.mrf.mxu2 }
 0x6fd   :  { %v6241_v36 = vadd.f32 %v6240_v56, %v5839_v18  ;;  %v6707_v61 = vpop.f32.mrf.mxu3  ;;  %v5842_v10 = vpop.f32.mrf.mxu1 }
 0x6fe   :  { %v16380_v42 = vpop.f32.mrf.mxu0 }
 0x6ff   :  { %v16374_v26 = vadd.f32 %v6707_v61, %v6241_v36  ;;  %v7344_v61 = vld [vmem:[#allocation3 + $0x61] sm:$0xff] }
 0x700   :  { %12672 = vmatmul.msk.f32.gmra.mxu1 %vm5168_vm3, %v7343_v14  ;;  %12628 = vmatmul.msk.f32.gmra.mxu0 %vm5168_vm3, %v16382_v57  ;;  %v7875_v14 = vld [vmem:[#allocation3 + $0x62] sm:$0xff] }
 0x701   :  { %19204 = vst [vmem:[#allocation69_spill] sm:$0xff] %v16374_v26  ;;  %12736 = vmatmul.msk.f32.gmra.mxu2 %vm5168_vm3, %v7874_v4  ;;  %v16394_v26 = vld [vmem:[#allocation3 + $0x150] sm:$0xff] }
 0x702   :  { %12800 = vmatmul.msk.f32.gmra.mxu3 %vm5168_vm3, %v16138_v12 }
 0x704   :  { %v6243_v18 = vpop.f32.mrf.mxu2 }
 0x705   :  { %v6244_v45 = vadd.f32 %v6243_v18, %v5842_v10  ;;  %v6710_v56 = vpop.f32.mrf.mxu3  ;;  %v5845_v29 = vpop.f32.mrf.mxu1 }
 0x706   :  { %v16392_v12 = vpop.f32.mrf.mxu0 }
 0x707   :  { %v16386_v36 = vadd.f32 %v6710_v56, %v6244_v45  ;;  %v7345_v56 = vld [vmem:[#allocation3 + $0x69] sm:$0xff] }
 0x708   :  { %12673 = vmatmul.msk.f32.gmra.mxu1 %vm5168_vm3, %v7344_v61  ;;  %12629 = vmatmul.msk.f32.gmra.mxu0 %vm5168_vm3, %v16394_v26  ;;  %v7876_v61 = vld [vmem:[#allocation3 + $0x6a] sm:$0xff] }
 0x709   :  { %19205 = vst [vmem:[#allocation71_spill] sm:$0xff] %v16386_v36  ;;  %12737 = vmatmul.msk.f32.gmra.mxu2 %vm5168_vm3, %v7875_v14  ;;  %v16406_v36 = vld [vmem:[#allocation3 + $0x158] sm:$0xff] }
 0x70a   :  { %12801 = vmatmul.msk.f32.gmra.mxu3 %vm5168_vm3, %v16154_v37 }
 0x70c   :  { %v6246_v10 = vpop.f32.mrf.mxu2 }
 0x70d   :  { %v6247_v4 = vadd.f32 %v6246_v10, %v5845_v29  ;;  %v6713_v18 = vpop.f32.mrf.mxu3  ;;  %v5848_v13 = vpop.f32.mrf.mxu1 }
 0x70e   :  { %v16404_v37 = vpop.f32.mrf.mxu0 }
 0x70f   :  { %v16398_v45 = vadd.f32 %v6713_v18, %v6247_v4  ;;  %v7346_v18 = vld [vmem:[#allocation3 + $0x79] sm:$0xff] }
 0x710   :  { %12674 = vmatmul.msk.f32.gmra.mxu1 %vm5168_vm3, %v7345_v56  ;;  %12630 = vmatmul.msk.f32.gmra.mxu0 %vm5168_vm3, %v16406_v36  ;;  %v7877_v56 = vld [vmem:[#allocation3 + $0x7a] sm:$0xff] }
 0x711   :  { %19206 = vst [vmem:[#allocation73_spill] sm:$0xff] %v16398_v45  ;;  %12738 = vmatmul.msk.f32.gmra.mxu2 %vm5168_vm3, %v7876_v61  ;;  %v16418_v45 = vld [vmem:[#allocation3 + $0x168] sm:$0xff] }
 0x712   :  { %12802 = vmatmul.msk.f32.gmra.mxu3 %vm5168_vm3, %v16170_v43 }
 0x714   :  { %v6249_v29 = vpop.f32.mrf.mxu2 }
 0x715   :  { %v6250_v14 = vadd.f32 %v6249_v29, %v5848_v13  ;;  %v6716_v10 = vpop.f32.mrf.mxu3  ;;  %v5851_v30 = vpop.f32.mrf.mxu1 }
 0x716   :  { %v16416_v43 = vpop.f32.mrf.mxu0 }
 0x717   :  { %v16410_v4 = vadd.f32 %v6716_v10, %v6250_v14  ;;  %v7347_v10 = vld [vmem:[#allocation3 + $0x81] sm:$0xff] }
 0x718   :  { %12675 = vmatmul.msk.f32.gmra.mxu1 %vm5168_vm3, %v7346_v18  ;;  %12631 = vmatmul.msk.f32.gmra.mxu0 %vm5168_vm3, %v16418_v45  ;;  %v7878_v18 = vld [vmem:[#allocation3 + $0x82] sm:$0xff] }
 0x719   :  { %19207 = vst [vmem:[#allocation49_spill] sm:$0xff] %v16410_v4  ;;  %12739 = vmatmul.msk.f32.gmra.mxu2 %vm5168_vm3, %v7877_v56  ;;  %v16430_v4 = vld [vmem:[#allocation3 + $0x170] sm:$0xff] }
 0x71a   :  { %12803 = vmatmul.msk.f32.gmra.mxu3 %vm5168_vm3, %v16186_v1 }
 0x71c   :  { %v6252_v13 = vpop.f32.mrf.mxu2 }
 0x71d   :  { %v6253_v61 = vadd.f32 %v6252_v13, %v5851_v30  ;;  %v6719_v29 = vpop.f32.mrf.mxu3  ;;  %v5854_v58 = vpop.f32.mrf.mxu1 }
 0x71e   :  { %v16428_v1 = vpop.f32.mrf.mxu0 }
 0x71f   :  { %v16422_v14 = vadd.f32 %v6719_v29, %v6253_v61  ;;  %v7348_v29 = vld [vmem:[#allocation3 + $0x91] sm:$0xff] }
 0x720   :  { %12676 = vmatmul.msk.f32.gmra.mxu1 %vm5168_vm3, %v7347_v10  ;;  %12632 = vmatmul.msk.f32.gmra.mxu0 %vm5168_vm3, %v16430_v4  ;;  %v7879_v10 = vld [vmem:[#allocation3 + $0x92] sm:$0xff] }
 0x721   :  { %19208 = vst [vmem:[#allocation25_spill] sm:$0xff] %v16422_v14  ;;  %12740 = vmatmul.msk.f32.gmra.mxu2 %vm5168_vm3, %v7878_v18  ;;  %v16442_v14 = vld [vmem:[#allocation3 + $0x180] sm:$0xff] }
 0x722   :  { %12804 = vmatmul.msk.f32.gmra.mxu3 %vm5168_vm3, %v16202_v39 }
 0x724   :  { %v6255_v30 = vpop.f32.mrf.mxu2 }
 0x725   :  { %v6256_v56 = vadd.f32 %v6255_v30, %v5854_v58  ;;  %v6722_v13 = vpop.f32.mrf.mxu3  ;;  %v5857_v59 = vpop.f32.mrf.mxu1 }
 0x726   :  { %v16440_v39 = vpop.f32.mrf.mxu0 }
 0x727   :  { %v16434_v61 = vadd.f32 %v6722_v13, %v6256_v56  ;;  %v7349_v13 = vld [vmem:[#allocation3 + $0x99] sm:$0xff] }
 0x728   :  { %12677 = vmatmul.msk.f32.gmra.mxu1 %vm5168_vm3, %v7348_v29  ;;  %12633 = vmatmul.msk.f32.gmra.mxu0 %vm5168_vm3, %v16442_v14  ;;  %v7880_v29 = vld [vmem:[#allocation3 + $0x9a] sm:$0xff] }
 0x729   :  { %19209 = vst [vmem:[#allocation72_spill] sm:$0xff] %v16434_v61  ;;  %12741 = vmatmul.msk.f32.gmra.mxu2 %vm5168_vm3, %v7879_v10  ;;  %v16454_v61 = vld [vmem:[#allocation3 + $0x188] sm:$0xff] }
 0x72a   :  { %12805 = vmatmul.msk.f32.gmra.mxu3 %vm5168_vm3, %v16218_v19 }
 0x72c   :  { %v6258_v58 = vpop.f32.mrf.mxu2 }
 0x72d   :  { %v6259_v18 = vadd.f32 %v6258_v58, %v5857_v59  ;;  %v6725_v30 = vpop.f32.mrf.mxu3  ;;  %v5860_v0 = vpop.f32.mrf.mxu1 }
 0x72e   :  { %v16452_v19 = vpop.f32.mrf.mxu0 }
 0x72f   :  { %v16446_v56 = vadd.f32 %v6725_v30, %v6259_v18  ;;  %v7350_v30 = vld [vmem:[#allocation3 + $0xa9] sm:$0xff] }
 0x730   :  { %12678 = vmatmul.msk.f32.gmra.mxu1 %vm5168_vm3, %v7349_v13  ;;  %12634 = vmatmul.msk.f32.gmra.mxu0 %vm5168_vm3, %v16454_v61  ;;  %v7881_v13 = vld [vmem:[#allocation3 + $0xaa] sm:$0xff] }
 0x731   :  { %19210 = vst [vmem:[#allocation74_spill] sm:$0xff] %v16446_v56  ;;  %12742 = vmatmul.msk.f32.gmra.mxu2 %vm5168_vm3, %v7880_v29  ;;  %v6839_v56 = vld [vmem:[#allocation3 + $0x1c8] sm:$0xff] }
 0x732   :  { %12806 = vmatmul.msk.f32.gmra.mxu3 %vm5168_vm3, %v16234_v38 }
 0x734   :  { %v6261_v59 = vpop.f32.mrf.mxu2 }
 0x735   :  { %v6262_v10 = vadd.f32 %v6261_v59, %v5860_v0  ;;  %v6728_v58 = vpop.f32.mrf.mxu3  ;;  %v5863_v35 = vpop.f32.mrf.mxu1 }
 0x736   :  { %v16464_v38 = vpop.f32.mrf.mxu0 }
 0x737   :  { %v16458_v18 = vadd.f32 %v6728_v58, %v6262_v10  ;;  %v7351_v58 = vld [vmem:[#allocation3 + $0xb1] sm:$0xff] }
 0x738   :  { %12679 = vmatmul.msk.f32.gmra.mxu1 %vm5168_vm3, %v7350_v30  ;;  %12635 = vmatmul.msk.f32.gmra.mxu0 %vm5168_vm3, %v6839_v56 }
 0x739   :  { %19211 = vst [vmem:[#allocation76_spill] sm:$0xff] %v16458_v18  ;;  %12743 = vmatmul.msk.f32.gmra.mxu2 %vm5168_vm3, %v7881_v13  ;;  %v7882_v18 = vld [vmem:[#allocation3 + $0xb2] sm:$0xff] }
 0x73a   :  { %12807 = vmatmul.msk.f32.gmra.mxu3 %vm5168_vm3, %v16250_v34 }
 0x73c   :  { %v6264_v0 = vpop.f32.mrf.mxu2 }
 0x73d   :  { %v6265_v29 = vadd.f32 %v6264_v0, %v5863_v35  ;;  %v6731_v59 = vpop.f32.mrf.mxu3  ;;  %v5866_v6 = vpop.f32.mrf.mxu1  ;;  %v6840_v0 = vld [vmem:[#allocation3 + $0x1d0] sm:$0xff] }
 0x73e   :  { %v16473_v34 = vpop.f32.mrf.mxu0 }
 0x73f   :  { %v16467_v10 = vadd.f32 %v6731_v59, %v6265_v29  ;;  %v7352_v29 = vld [vmem:[#allocation3 + $0xc1] sm:$0xff] }
 0x740   :  { %12680 = vmatmul.msk.f32.gmra.mxu1 %vm5168_vm3, %v7351_v58  ;;  %12636 = vmatmul.msk.f32.gmra.mxu0 %vm5168_vm3, %v6840_v0  ;;  %v7883_v59 = vld [vmem:[#allocation3 + $0xc2] sm:$0xff]  ;;  %v7884_v0 = vld [vmem:[#allocation3 + $0xca] sm:$0xff] }
 0x741   :  { %19212 = vst [vmem:[#allocation50_spill] sm:$0xff] %v16467_v10  ;;  %12744 = vmatmul.msk.f32.gmra.mxu2 %vm5168_vm3, %v7882_v18 }
 0x742   :  { %12808 = vmatmul.msk.f32.gmra.mxu3 %vm5168_vm3, %v16264_v21 }
 0x744   :  { %v6267_v30 = vpop.f32.mrf.mxu2 }
 0x745   :  { %v6268_v35 = vadd.f32 %v6267_v30, %v5866_v6  ;;  %v6734_v13 = vpop.f32.mrf.mxu3  ;;  %v5869_v63 = vpop.f32.mrf.mxu1  ;;  %v16484_v30 = vld [vmem:[#allocation3 + $0x1e0] sm:$0xff] }
 0x746   :  { %v16482_v21 = vpop.f32.mrf.mxu0 }
 0x747   :  { %v16476_v56 = vadd.f32 %v6734_v13, %v6268_v35  ;;  %v7353_v13 = vld [vmem:[#allocation3 + $0xc9] sm:$0xff] }
 0x748   :  { %12681 = vmatmul.msk.f32.gmra.mxu1 %vm5168_vm3, %v7352_v29  ;;  %12637 = vmatmul.msk.f32.gmra.mxu0 %vm5168_vm3, %v16484_v30  ;;  %v19215_v29 = vld [vmem:[#allocation95_spill] sm:$0xff] }
 0x749   :  { %19213 = vst [vmem:[#allocation26_spill] sm:$0xff] %v16476_v56  ;;  %12745 = vmatmul.msk.f32.gmra.mxu2 %vm5168_vm3, %v7883_v59  ;;  %v19216_v59 = vld [vmem:[#allocation96_spill] sm:$0xff] }
 0x74a   :  { %12809 = vmatmul.msk.f32.gmra.mxu3 %vm5168_vm3, %v16277_v51 }
 0x74c   :  { %v6270_v18 = vpop.f32.mrf.mxu2 }
 0x74d   :  { %v6271_v6 = vadd.f32 %v6270_v18, %v5869_v63  ;;  %v6737_v58 = vpop.f32.mrf.mxu3  ;;  %v5872_v10 = vpop.f32.mrf.mxu1  ;;  %v6085_v18 = vadd.f32 %v19216_v59, %v19215_v29  ;;  %v19219_v59 = vld [vmem:[#allocation97_spill] sm:$0xff] }
 0x74e   :  { %v16494_v51 = vpop.f32.mrf.mxu0 }
 0x74f   :  { %v16488_v35 = vadd.f32 %v6737_v58, %v6271_v6  ;;  %v19217_v58 = vld [vmem:[#allocation9_spill] sm:$0xff] }
 0x750   :  { %12682 = vmatmul.msk.f32.gmra.mxu1 %vm5168_vm3, %v7353_v13  ;;  %12638 = vmatmul.msk.f32.gmra.mxu0 %vm5168_vm3, %v16498_v31  ;;  %v6743_v13 = vadd.f32 %v19217_v58, %v6085_v18  ;;  %v6088_v18 = vadd.f32 %v19220_v54, %v19219_v59  ;;  %v16514_v58 = vld [vmem:[#allocation3 + $0x1f8] sm:$0xff]  ;;  %v19224_v59 = vld [vmem:[#allocation99_spill] sm:$0xff] }
 0x751   :  { %19214 = vst [vmem:[#allocation75_spill] sm:$0xff] %v16488_v35  ;;  %12746 = vmatmul.msk.f32.gmra.mxu2 %vm5168_vm3, %v7884_v0  ;;  %v7354_v35 = vld [vmem:[#allocation3 + $0xd9] sm:$0xff] }
 0x752   :  { %12810 = vmatmul.msk.f32.gmra.mxu3 %vm5168_vm3, %v16288_v17  ;;  %v7885_v17 = vld [vmem:[#allocation3 + $0xda] sm:$0xff]  ;;  %v7274_v55 = vadd.f32 %v16274_v2, %v6743_v13 }
 0x753   :  { %v19221_v2 = vld [vmem:[#allocation10_spill] sm:$0xff] }
 0x754   :  { %v6273_v63 = vpop.f32.mrf.mxu2 }
 0x755   :  { %v6274_v56 = vadd.f32 %v6273_v63, %v5872_v10  ;;  %v6740_v16 = vpop.f32.mrf.mxu3  ;;  %v7613_v6 = vpop.f32.mrf.mxu1 }
 0x756   :  { %v7805_v10 = vadd.f32 %v7613_v6, %v7274_v55  ;;  %v16510_v63 = vpop.f32.mrf.mxu0  ;;  %v7886_v55 = vld [vmem:[#allocation3 + $0xe2] sm:$0xff] }
 0x757   :  { %v16503_v0 = vadd.f32 %v6740_v16, %v6274_v56 }
 0x758   :  { %12683 = vmatmul.msk.f32.gmra.mxu1 %vm5168_vm3, %v7354_v35  ;;  %12639 = vmatmul.msk.f32.gmra.mxu0 %vm5168_vm3, %v16514_v58  ;;  %v6744_v35 = vadd.f32 %v19221_v2, %v6088_v18  ;;  %v16530_v2 = vld [vmem:[#allocation3 + $0x200] sm:$0xff] }
 0x759   :  { %19218 = vst [vmem:[#allocation77_spill] sm:$0xff] %v16503_v0  ;;  %12747 = vmatmul.msk.f32.gmra.mxu2 %vm5168_vm3, %v7885_v17 }
 0x75a   :  { %12811 = vmatmul.msk.f32.gmra.mxu3 %vm5168_vm3, %v16299_v49  ;;  %v7355_v49 = vld [vmem:[#allocation3 + $0xe1] sm:$0xff]  ;;  %v7275_v6 = vadd.f32 %v16286_v50, %v6744_v35 }
 0x75b   :  { %v19225_v50 = vld [vmem:[#allocation100_spill] sm:$0xff] }
 0x75c   :  { %v8144_v29 = vpop.f32.mrf.mxu2 }
 0x75d   :  { %v8336_v16 = vadd.f32 %v8144_v29, %v7805_v10  ;;  %v8676_v56 = vpop.f32.mrf.mxu3  ;;  %v7616_v0 = vpop.f32.mrf.mxu1  ;;  %v19223_v29 = vld [vmem:[#allocation11_spill] sm:$0xff] }
 0x75e   :  { %v7806_v54 = vadd.f32 %v7616_v0, %v7275_v6  ;;  %v16526_v17 = vpop.f32.mrf.mxu0  ;;  %v6091_v18 = vadd.f32 %v19224_v59, %v19223_v29  ;;  %v7887_v0 = vld [vmem:[#allocation3 + $0xf2] sm:$0xff]  ;;  %v19227_v29 = vld [vmem:[#allocation12_spill] sm:$0xff] }
 0x75f   :  { %v16519_v13 = vadd.f32 %v8676_v56, %v8336_v16  ;;  %v19228_v59 = vld [vmem:[#allocation13_spill] sm:$0xff] }
 0x760   :  { %12684 = vmatmul.msk.f32.gmra.mxu1 %vm5168_vm3, %v7355_v49  ;;  %12640 = vmatmul.msk.f32.gmra.mxu0 %vm5168_vm3, %v16530_v2  ;;  %v6745_v35 = vadd.f32 %v19225_v50, %v6091_v18  ;;  %v6094_v18 = vadd.f32 %v19228_v59, %v19227_v29  ;;  %v16546_v50 = vld [vmem:[#allocation3 + $0x210] sm:$0xff] }
 0x761   :  { %19222 = vst [vmem:[#allocation51_spill] sm:$0xff] %v16519_v13  ;;  %12748 = vmatmul.msk.f32.gmra.mxu2 %vm5168_vm3, %v7886_v55 }
 0x762   :  { %12812 = vmatmul.msk.f32.gmra.mxu3 %vm5168_vm3, %v16310_v44  ;;  %v7356_v44 = vld [vmem:[#allocation3 + $0xf1] sm:$0xff]  ;;  %v7276_v55 = vadd.f32 %v16297_v47, %v6745_v35 }
 0x763   :  { %v19229_v47 = vld [vmem:[#allocation101_spill] sm:$0xff] }
 0x764   :  { %v8147_v10 = vpop.f32.mrf.mxu2  ;;  %v6746_v35 = vadd.f32 %v19229_v47, %v6094_v18  ;;  %v16560_v18 = vld [vmem:[#allocation3 + $0x218] sm:$0xff]  ;;  %v7889_v47 = vld [vmem:[#allocation3 + $0x10a] sm:$0xff] }
 0x765   :  { %v8337_v16 = vadd.f32 %v8147_v10, %v7806_v54  ;;  %v8679_v56 = vpop.f32.mrf.mxu3  ;;  %v7619_v13 = vpop.f32.mrf.mxu1 }
 0x766   :  { %v7807_v6 = vadd.f32 %v7619_v13, %v7276_v55  ;;  %v16542_v54 = vpop.f32.mrf.mxu0  ;;  %v7888_v13 = vld [vmem:[#allocation3 + $0xfa] sm:$0xff] }
 0x767   :  { %v16535_v49 = vadd.f32 %v8679_v56, %v8337_v16 }
 0x768   :  { %12685 = vmatmul.msk.f32.gmra.mxu1 %vm5168_vm3, %v7356_v44  ;;  %12641 = vmatmul.msk.f32.gmra.mxu0 %vm5168_vm3, %v16546_v50 }
 0x769   :  { %19226 = vst [vmem:[#allocation27_spill] sm:$0xff] %v16535_v49  ;;  %12749 = vmatmul.msk.f32.gmra.mxu2 %vm5168_vm3, %v7887_v0  ;;  %v7277_v0 = vadd.f32 %v16308_v41, %v6746_v35  ;;  %v7278_v35 = vadd.f32 %v16320_v48, %v15777_v62  ;;  %v7359_v48 = vld [vmem:[#allocation3 + $0x111] sm:$0xff] }
 0x76a   :  { %12813 = vmatmul.msk.f32.gmra.mxu3 %vm5168_vm3, %v16322_v25  ;;  %v7357_v25 = vld [vmem:[#allocation3 + $0xf9] sm:$0xff] }
 0x76c   :  { %v8150_v10 = vpop.f32.mrf.mxu2 }
 0x76d   :  { %v8338_v16 = vadd.f32 %v8150_v10, %v7807_v6  ;;  %v8682_v56 = vpop.f32.mrf.mxu3  ;;  %v7622_v49 = vpop.f32.mrf.mxu1 }
 0x76e   :  { %v7808_v55 = vadd.f32 %v7622_v49, %v7277_v0  ;;  %v16558_v6 = vpop.f32.mrf.mxu0 }
 0x76f   :  { %v16551_v44 = vadd.f32 %v8682_v56, %v8338_v16  ;;  %v7358_v56 = vld [vmem:[#allocation3 + $0x109] sm:$0xff] }
 0x770   :  { %12686 = vmatmul.msk.f32.gmra.mxu1 %vm5168_vm3, %v7357_v25  ;;  %12642 = vmatmul.msk.f32.gmra.mxu0 %vm5168_vm3, %v16560_v18 }
 0x771   :  { %19230 = vst [vmem:[#allocation78_spill] sm:$0xff] %v16551_v44  ;;  %12750 = vmatmul.msk.f32.gmra.mxu2 %vm5168_vm3, %v7888_v13 }
 0x772   :  { %12814 = vmatmul.msk.f32.gmra.mxu3 %vm5168_vm3, %v16334_v5 }
 0x774   :  { %v8153_v10 = vpop.f32.mrf.mxu2 }
 0x775   :  { %v8339_v29 = vadd.f32 %v8153_v10, %v7808_v55  ;;  %v8685_v59 = vpop.f32.mrf.mxu3  ;;  %v7625_v16 = vpop.f32.mrf.mxu1  ;;  %v16574_v55 = vld [vmem:[#allocation3 + $0x228] sm:$0xff] }
 0x776   :  { %v7809_v5 = vadd.f32 %v7625_v16, %v7278_v35  ;;  %v16572_v49 = vpop.f32.mrf.mxu0 }
 0x777   :  { %v16564_v41 = vadd.f32 %v8685_v59, %v8339_v29  ;;  %v7890_v29 = vld [vmem:[#allocation3 + $0x112] sm:$0xff] }
 0x778   :  { %12687 = vmatmul.msk.f32.gmra.mxu1 %vm5168_vm3, %v7358_v56  ;;  %12643 = vmatmul.msk.f32.gmra.mxu0 %vm5168_vm3, %v16574_v55  ;;  %v19233_v59 = vld [vmem:[#allocation102_spill] sm:$0xff] }
 0x779   :  { %19231 = vst [vmem:[#allocation52_spill] sm:$0xff] %v16564_v41  ;;  %12751 = vmatmul.msk.f32.gmra.mxu2 %vm5168_vm3, %v7889_v47  ;;  %v7279_v56 = vadd.f32 %v16332_v28, %v19233_v59 }
 0x77a   :  { %12815 = vmatmul.msk.f32.gmra.mxu3 %vm5168_vm3, %v16346_v9 }
 0x77c   :  { %v8156_v25 = vpop.f32.mrf.mxu2 }
 0x77d   :  { %v8340_v13 = vadd.f32 %v8156_v25, %v7809_v5  ;;  %v8688_v0 = vpop.f32.mrf.mxu3  ;;  %v7628_v10 = vpop.f32.mrf.mxu1  ;;  %v16588_v25 = vld [vmem:[#allocation3 + $0x230] sm:$0xff] }
 0x77e   :  { %v7810_v9 = vadd.f32 %v7628_v10, %v7279_v56  ;;  %v16586_v16 = vpop.f32.mrf.mxu0 }
 0x77f   :  { %v16578_v62 = vadd.f32 %v8688_v0, %v8340_v13  ;;  %v7360_v0 = vld [vmem:[#allocation3 + $0x121] sm:$0xff] }
 0x780   :  { %12688 = vmatmul.msk.f32.gmra.mxu1 %vm5168_vm3, %v7359_v48  ;;  %12644 = vmatmul.msk.f32.gmra.mxu0 %vm5168_vm3, %v16588_v25  ;;  %v7891_v48 = vld [vmem:[#allocation3 + $0x122] sm:$0xff] }
 0x781   :  { %19232 = vst [vmem:[#allocation28_spill] sm:$0xff] %v16578_v62  ;;  %12752 = vmatmul.msk.f32.gmra.mxu2 %vm5168_vm3, %v7890_v29  ;;  %v7280_v29 = vadd.f32 %v16344_v53, %v15795_v52  ;;  %v7361_v53 = vld [vmem:[#allocation3 + $0x129] sm:$0xff] }
 0x782   :  { %12816 = vmatmul.msk.f32.gmra.mxu3 %vm5168_vm3, %v16358_v24 }
 0x784   :  { %v8159_v47 = vpop.f32.mrf.mxu2 }
 0x785   :  { %v8341_v35 = vadd.f32 %v8159_v47, %v7810_v9  ;;  %v8691_v5 = vpop.f32.mrf.mxu3  ;;  %v7631_v13 = vpop.f32.mrf.mxu1  ;;  %v16602_v47 = vld [vmem:[#allocation3 + $0x240] sm:$0xff] }
 0x786   :  { %v7811_v24 = vadd.f32 %v7631_v13, %v7280_v29  ;;  %v16600_v10 = vpop.f32.mrf.mxu0 }
 0x787   :  { %v16592_v28 = vadd.f32 %v8691_v5, %v8341_v35  ;;  %v7892_v5 = vld [vmem:[#allocation3 + $0x12a] sm:$0xff] }
 0x788   :  { %12689 = vmatmul.msk.f32.gmra.mxu1 %vm5168_vm3, %v7360_v0  ;;  %12645 = vmatmul.msk.f32.gmra.mxu0 %vm5168_vm3, %v16602_v47  ;;  %v7281_v0 = vadd.f32 %v16356_v15, %v15804_v8  ;;  %v7362_v15 = vld [vmem:[#allocation3 + $0x139] sm:$0xff] }
 0x789   :  { %12753 = vmatmul.msk.f32.gmra.mxu2 %vm5168_vm3, %v7891_v48 }
 0x78a   :  { %12817 = vmatmul.msk.f32.gmra.mxu3 %vm5168_vm3, %v16370_v60 }
 0x78c   :  { %v8162_v59 = vpop.f32.mrf.mxu2 }
 0x78d   :  { %v8342_v56 = vadd.f32 %v8162_v59, %v7811_v24  ;;  %v8694_v9 = vpop.f32.mrf.mxu3  ;;  %v7634_v35 = vpop.f32.mrf.mxu1  ;;  %v16616_v59 = vld [vmem:[#allocation3 + $0x248] sm:$0xff] }
 0x78e   :  { %v7812_v60 = vadd.f32 %v7634_v35, %v7281_v0  ;;  %v16614_v13 = vpop.f32.mrf.mxu0 }
 0x78f   :  { %v16606_v52 = vadd.f32 %v8694_v9, %v8342_v56  ;;  %v7893_v9 = vld [vmem:[#allocation3 + $0x13a] sm:$0xff] }
 0x790   :  { %12690 = vmatmul.msk.f32.gmra.mxu1 %vm5168_vm3, %v7361_v53  ;;  %12646 = vmatmul.msk.f32.gmra.mxu0 %vm5168_vm3, %v16616_v59  ;;  %v7282_v53 = vadd.f32 %v16368_v40, %v15813_v46  ;;  %v7363_v40 = vld [vmem:[#allocation3 + $0x141] sm:$0xff] }
 0x791   :  { %12754 = vmatmul.msk.f32.gmra.mxu2 %vm5168_vm3, %v7892_v5 }
 0x792   :  { %12818 = vmatmul.msk.f32.gmra.mxu3 %vm5168_vm3, %v16382_v57 }
 0x794   :  { %v8165_v48 = vpop.f32.mrf.mxu2 }
 0x795   :  { %v8343_v29 = vadd.f32 %v8165_v48, %v7812_v60  ;;  %v8697_v24 = vpop.f32.mrf.mxu3  ;;  %v7637_v56 = vpop.f32.mrf.mxu1  ;;  %v16630_v48 = vld [vmem:[#allocation3 + $0x258] sm:$0xff] }
 0x796   :  { %v7813_v57 = vadd.f32 %v7637_v56, %v7282_v53  ;;  %v16628_v35 = vpop.f32.mrf.mxu0 }
 0x797   :  { %v16620_v8 = vadd.f32 %v8697_v24, %v8343_v29  ;;  %v7894_v24 = vld [vmem:[#allocation3 + $0x142] sm:$0xff] }
 0x798   :  { %12691 = vmatmul.msk.f32.gmra.mxu1 %vm5168_vm3, %v7362_v15  ;;  %12647 = vmatmul.msk.f32.gmra.mxu0 %vm5168_vm3, %v16630_v48  ;;  %v19234_v15 = vld [vmem:[#allocation103_spill] sm:$0xff] }
 0x799   :  { %12755 = vmatmul.msk.f32.gmra.mxu2 %vm5168_vm3, %v7893_v9  ;;  %v7283_v9 = vadd.f32 %v16380_v42, %v19234_v15  ;;  %v7895_v15 = vld [vmem:[#allocation3 + $0x152] sm:$0xff] }
 0x79a   :  { %12819 = vmatmul.msk.f32.gmra.mxu3 %vm5168_vm3, %v16394_v26 }
 0x79c   :  { %v8168_v5 = vpop.f32.mrf.mxu2 }
 0x79d   :  { %v8344_v0 = vadd.f32 %v8168_v5, %v7813_v57  ;;  %v8700_v60 = vpop.f32.mrf.mxu3  ;;  %v7640_v29 = vpop.f32.mrf.mxu1 }
 0x79e   :  { %v7814_v26 = vadd.f32 %v7640_v29, %v7283_v9  ;;  %v16642_v56 = vpop.f32.mrf.mxu0 }
 0x79f   :  { %v16634_v46 = vadd.f32 %v8700_v60, %v8344_v0  ;;  %v16644_v0 = vld [vmem:[#allocation3 + $0x260] sm:$0xff] }
 0x7a0   :  { %12692 = vmatmul.msk.f32.gmra.mxu1 %vm5168_vm3, %v7363_v40  ;;  %12648 = vmatmul.msk.f32.gmra.mxu0 %vm5168_vm3, %v16644_v0  ;;  %v7364_v40 = vld [vmem:[#allocation3 + $0x151] sm:$0xff] }
 0x7a1   :  { %12756 = vmatmul.msk.f32.gmra.mxu2 %vm5168_vm3, %v7894_v24  ;;  %v7284_v24 = vadd.f32 %v16392_v12, %v15836_v27  ;;  %v7365_v12 = vld [vmem:[#allocation3 + $0x159] sm:$0xff] }
 0x7a2   :  { %12820 = vmatmul.msk.f32.gmra.mxu3 %vm5168_vm3, %v16406_v36 }
 0x7a4   :  { %v8171_v53 = vpop.f32.mrf.mxu2 }
 0x7a5   :  { %v8345_v57 = vadd.f32 %v8171_v53, %v7814_v26  ;;  %v8703_v5 = vpop.f32.mrf.mxu3  ;;  %v7643_v60 = vpop.f32.mrf.mxu1 }
 0x7a6   :  { %v7815_v36 = vadd.f32 %v7643_v60, %v7284_v24  ;;  %v16656_v29 = vpop.f32.mrf.mxu0 }
 0x7a7   :  { %v16648_v42 = vadd.f32 %v8703_v5, %v8345_v57  ;;  %v16658_v57 = vld [vmem:[#allocation3 + $0x270] sm:$0xff] }
 0x7a8   :  { %12693 = vmatmul.msk.f32.gmra.mxu1 %vm5168_vm3, %v7364_v40  ;;  %12649 = vmatmul.msk.f32.gmra.mxu0 %vm5168_vm3, %v16658_v57  ;;  %v7896_v40 = vld [vmem:[#allocation3 + $0x15a] sm:$0xff] }
 0x7a9   :  { %12757 = vmatmul.msk.f32.gmra.mxu2 %vm5168_vm3, %v7895_v15  ;;  %v7285_v15 = vadd.f32 %v16404_v37, %v15845_v7  ;;  %v7366_v37 = vld [vmem:[#allocation3 + $0x169] sm:$0xff] }
 0x7aa   :  { %12821 = vmatmul.msk.f32.gmra.mxu3 %vm5168_vm3, %v16418_v45 }
 0x7ac   :  { %v8174_v9 = vpop.f32.mrf.mxu2 }
 0x7ad   :  { %v8346_v26 = vadd.f32 %v8174_v9, %v7815_v36  ;;  %v8706_v53 = vpop.f32.mrf.mxu3  ;;  %v7646_v5 = vpop.f32.mrf.mxu1 }
 0x7ae   :  { %v7816_v45 = vadd.f32 %v7646_v5, %v7285_v15  ;;  %v16670_v60 = vpop.f32.mrf.mxu0 }
 0x7af   :  { %v16662_v27 = vadd.f32 %v8706_v53, %v8346_v26  ;;  %v16672_v26 = vld [vmem:[#allocation3 + $0x278] sm:$0xff] }
 0x7b0   :  { %12694 = vmatmul.msk.f32.gmra.mxu1 %vm5168_vm3, %v7365_v12  ;;  %12650 = vmatmul.msk.f32.gmra.mxu0 %vm5168_vm3, %v16672_v26  ;;  %v7897_v12 = vld [vmem:[#allocation3 + $0x16a] sm:$0xff] }
 0x7b1   :  { %12758 = vmatmul.msk.f32.gmra.mxu2 %vm5168_vm3, %v7896_v40  ;;  %v7286_v40 = vadd.f32 %v16416_v43, %v15854_v23  ;;  %v7367_v43 = vld [vmem:[#allocation3 + $0x171] sm:$0xff] }
 0x7b2   :  { %12822 = vmatmul.msk.f32.gmra.mxu3 %vm5168_vm3, %v16430_v4 }
 0x7b4   :  { %v8177_v24 = vpop.f32.mrf.mxu2 }
 0x7b5   :  { %v8347_v36 = vadd.f32 %v8177_v24, %v7816_v45  ;;  %v8709_v9 = vpop.f32.mrf.mxu3  ;;  %v7649_v53 = vpop.f32.mrf.mxu1 }
 0x7b6   :  { %v7817_v4 = vadd.f32 %v7649_v53, %v7286_v40  ;;  %v16684_v5 = vpop.f32.mrf.mxu0 }
 0x7b7   :  { %v16676_v7 = vadd.f32 %v8709_v9, %v8347_v36  ;;  %v16686_v36 = vld [vmem:[#allocation3 + $0x288] sm:$0xff] }
 0x7b8   :  { %12695 = vmatmul.msk.f32.gmra.mxu1 %vm5168_vm3, %v7366_v37  ;;  %12651 = vmatmul.msk.f32.gmra.mxu0 %vm5168_vm3, %v16686_v36  ;;  %v7898_v37 = vld [vmem:[#allocation3 + $0x172] sm:$0xff] }
 0x7b9   :  { %12759 = vmatmul.msk.f32.gmra.mxu2 %vm5168_vm3, %v7897_v12  ;;  %v7287_v12 = vadd.f32 %v16428_v1, %v15863_v22  ;;  %v8431_v1 = vld [vmem:[#allocation3 + $0x198] sm:$0xff] }
 0x7ba   :  { %12823 = vmatmul.msk.f32.gmra.mxu3 %vm5168_vm3, %v16442_v14 }
 0x7bc   :  { %v8180_v15 = vpop.f32.mrf.mxu2 }
 0x7bd   :  { %v8348_v45 = vadd.f32 %v8180_v15, %v7817_v4  ;;  %v8712_v24 = vpop.f32.mrf.mxu3  ;;  %v7652_v9 = vpop.f32.mrf.mxu1 }
 0x7be   :  { %v7818_v14 = vadd.f32 %v7652_v9, %v7287_v12  ;;  %v16698_v53 = vpop.f32.mrf.mxu0 }
 0x7bf   :  { %v16690_v23 = vadd.f32 %v8712_v24, %v8348_v45  ;;  %v16700_v45 = vld [vmem:[#allocation3 + $0x290] sm:$0xff] }
 0x7c0   :  { %12696 = vmatmul.msk.f32.gmra.mxu1 %vm5168_vm3, %v7367_v43  ;;  %12652 = vmatmul.msk.f32.gmra.mxu0 %vm5168_vm3, %v16700_v45  ;;  %v7368_v43 = vld [vmem:[#allocation3 + $0x181] sm:$0xff] }
 0x7c1   :  { %12760 = vmatmul.msk.f32.gmra.mxu2 %vm5168_vm3, %v7898_v37  ;;  %v7899_v37 = vld [vmem:[#allocation3 + $0x182] sm:$0xff] }
 0x7c2   :  { %12824 = vmatmul.msk.f32.gmra.mxu3 %vm5168_vm3, %v16454_v61  ;;  %v7288_v61 = vadd.f32 %v16440_v39, %v15872_v32  ;;  %v8432_v32 = vld [vmem:[#allocation3 + $0x1a0] sm:$0xff]  ;;  %v7369_v39 = vld [vmem:[#allocation3 + $0x189] sm:$0xff] }
 0x7c4   :  { %v8183_v40 = vpop.f32.mrf.mxu2 }
 0x7c5   :  { %v8349_v4 = vadd.f32 %v8183_v40, %v7818_v14  ;;  %v8715_v15 = vpop.f32.mrf.mxu3  ;;  %v7655_v24 = vpop.f32.mrf.mxu1 }
 0x7c6   :  { %v7819_v9 = vadd.f32 %v7655_v24, %v7288_v61  ;;  %v16711_v12 = vpop.f32.mrf.mxu0 }
 0x7c7   :  { %v16704_v22 = vadd.f32 %v8715_v15, %v8349_v4  ;;  %v16713_v4 = vld [vmem:[#allocation3 + $0x2a0] sm:$0xff] }
 0x7c8   :  { %12697 = vmatmul.msk.f32.gmra.mxu1 %vm5168_vm3, %v7368_v43  ;;  %12653 = vmatmul.msk.f32.gmra.mxu0 %vm5168_vm3, %v16713_v4  ;;  %v7900_v43 = vld [vmem:[#allocation3 + $0x18a] sm:$0xff] }
 0x7c9   :  { %12761 = vmatmul.msk.f32.gmra.mxu2 %vm5168_vm3, %v7899_v37 }
 0x7ca   :  { %12825 = vmatmul.msk.f32.gmra.mxu3 %vm5168_vm3, %v8431_v1  ;;  %v7289_v1 = vadd.f32 %v16452_v19, %v15881_v33  ;;  %v7370_v33 = vld [vmem:[#allocation3 + $0x1c9] sm:$0xff] }
 0x7cb   :  { %v7901_v19 = vld [vmem:[#allocation3 + $0x1ca] sm:$0xff] }
 0x7cc   :  { %v8186_v14 = vpop.f32.mrf.mxu2 }
 0x7cd   :  { %v8350_v40 = vadd.f32 %v8186_v14, %v7819_v9  ;;  %v8718_v44 = vpop.f32.mrf.mxu3  ;;  %v7658_v15 = vpop.f32.mrf.mxu1 }
 0x7ce   :  { %v7820_v24 = vadd.f32 %v7658_v15, %v7289_v1  ;;  %v16724_v37 = vpop.f32.mrf.mxu0 }
 0x7cf   :  { %v16717_v41 = vadd.f32 %v8718_v44, %v8350_v40  ;;  %v16726_v44 = vld [vmem:[#allocation3 + $0x2a8] sm:$0xff] }
 0x7d0   :  { %12698 = vmatmul.msk.f32.gmra.mxu1 %vm5168_vm3, %v7369_v39  ;;  %12654 = vmatmul.msk.f32.gmra.mxu0 %vm5168_vm3, %v16726_v44  ;;  %v7290_v39 = vadd.f32 %v16464_v38, %v15890_v11  ;;  %v7371_v38 = vld [vmem:[#allocation3 + $0x1d1] sm:$0xff] }
 0x7d1   :  { %12762 = vmatmul.msk.f32.gmra.mxu2 %vm5168_vm3, %v7900_v43 }
 0x7d2   :  { %12826 = vmatmul.msk.f32.gmra.mxu3 %vm5168_vm3, %v8432_v32 }
 0x7d4   :  { %v8189_v61 = vpop.f32.mrf.mxu2 }
 0x7d5   :  { %v8351_v9 = vadd.f32 %v8189_v61, %v7820_v24  ;;  %v8721_v14 = vpop.f32.mrf.mxu3  ;;  %v7661_v40 = vpop.f32.mrf.mxu1  ;;  %v16740_v61 = vld [vmem:[#allocation3 + $0x2b8] sm:$0xff] }
 0x7d6   :  { %v7821_v15 = vadd.f32 %v7661_v40, %v7290_v39  ;;  %v16738_v32 = vpop.f32.mrf.mxu0 }
 0x7d7   :  { %v16730_v62 = vadd.f32 %v8721_v14, %v8351_v9  ;;  %v7902_v14 = vld [vmem:[#allocation3 + $0x1d2] sm:$0xff] }
 0x7d8   :  { %12699 = vmatmul.msk.f32.gmra.mxu1 %vm5168_vm3, %v7370_v33  ;;  %12655 = vmatmul.msk.f32.gmra.mxu0 %vm5168_vm3, %v16740_v61  ;;  %v7291_v33 = vadd.f32 %v16473_v34, %v15899_v20  ;;  %v7372_v34 = vld [vmem:[#allocation3 + $0x1e1] sm:$0xff] }
 0x7d9   :  { %12763 = vmatmul.msk.f32.gmra.mxu2 %vm5168_vm3, %v7901_v19 }
 0x7da   :  { %12827 = vmatmul.msk.f32.gmra.mxu3 %vm5168_vm3, %v16484_v30 }
 0x7dc   :  { %v8192_v43 = vpop.f32.mrf.mxu2 }
 0x7dd   :  { %v8352_v1 = vadd.f32 %v8192_v43, %v7821_v15  ;;  %v8724_v24 = vpop.f32.mrf.mxu3  ;;  %v7664_v9 = vpop.f32.mrf.mxu1  ;;  %v16754_v43 = vld [vmem:[#allocation3 + $0x2c0] sm:$0xff] }
 0x7de   :  { %v7822_v30 = vadd.f32 %v7664_v9, %v7291_v33  ;;  %v16752_v40 = vpop.f32.mrf.mxu0 }
 0x7df   :  { %v16744_v11 = vadd.f32 %v8724_v24, %v8352_v1  ;;  %v7903_v24 = vld [vmem:[#allocation3 + $0x1e2] sm:$0xff] }
 0x7e0   :  { %12700 = vmatmul.msk.f32.gmra.mxu1 %vm5168_vm3, %v7371_v38  ;;  %12656 = vmatmul.msk.f32.gmra.mxu0 %vm5168_vm3, %v16754_v43  ;;  %v7292_v38 = vadd.f32 %v16482_v21, %v15908_v3  ;;  %v7373_v21 = vld [vmem:[#allocation3 + $0x1e9] sm:$0xff] }
 0x7e1   :  { %19235 = vst [vmem:[#allocation53_spill] sm:$0xff] %v16744_v11  ;;  %12764 = vmatmul.msk.f32.gmra.mxu2 %vm5168_vm3, %v7902_v14 }
 0x7e2   :  { %12828 = vmatmul.msk.f32.gmra.mxu3 %vm5168_vm3, %v16498_v31 }
 0x7e4   :  { %v8195_v19 = vpop.f32.mrf.mxu2 }
 0x7e5   :  { %v8353_v39 = vadd.f32 %v8195_v19, %v7822_v30  ;;  %v8727_v15 = vpop.f32.mrf.mxu3  ;;  %v7667_v1 = vpop.f32.mrf.mxu1  ;;  %v16768_v19 = vld [vmem:[#allocation3 + $0x2d0] sm:$0xff] }
 0x7e6   :  { %v7823_v31 = vadd.f32 %v7667_v1, %v7292_v38  ;;  %v16766_v9 = vpop.f32.mrf.mxu0 }
 0x7e7   :  { %v16758_v20 = vadd.f32 %v8727_v15, %v8353_v39  ;;  %v7904_v15 = vld [vmem:[#allocation3 + $0x1ea] sm:$0xff] }
 0x7e8   :  { %12701 = vmatmul.msk.f32.gmra.mxu1 %vm5168_vm3, %v7372_v34  ;;  %12657 = vmatmul.msk.f32.gmra.mxu0 %vm5168_vm3, %v16768_v19  ;;  %v19238_v34 = vld [vmem:[#allocation20_spill] sm:$0xff] }
 0x7e9   :  { %19236 = vst [vmem:[#allocation29_spill] sm:$0xff] %v16758_v20  ;;  %12765 = vmatmul.msk.f32.gmra.mxu2 %vm5168_vm3, %v7903_v24  ;;  %v7293_v24 = vadd.f32 %v16494_v51, %v19238_v34  ;;  %v7905_v34 = vld [vmem:[#allocation3 + $0x1fa] sm:$0xff] }
 0x7ea   :  { %12829 = vmatmul.msk.f32.gmra.mxu3 %vm5168_vm3, %v16514_v58 }
 0x7ec   :  { %v8198_v14 = vpop.f32.mrf.mxu2 }
 0x7ed   :  { %v8354_v33 = vadd.f32 %v8198_v14, %v7823_v31  ;;  %v8730_v30 = vpop.f32.mrf.mxu3  ;;  %v7670_v39 = vpop.f32.mrf.mxu1 }
 0x7ee   :  { %v7824_v58 = vadd.f32 %v7670_v39, %v7293_v24  ;;  %v16780_v1 = vpop.f32.mrf.mxu0 }
 0x7ef   :  { %v16772_v3 = vadd.f32 %v8730_v30, %v8354_v33  ;;  %v16782_v33 = vld [vmem:[#allocation3 + $0x2d8] sm:$0xff] }
 0x7f0   :  { %12702 = vmatmul.msk.f32.gmra.mxu1 %vm5168_vm3, %v7373_v21  ;;  %12658 = vmatmul.msk.f32.gmra.mxu0 %vm5168_vm3, %v16782_v33  ;;  %v7374_v21 = vld [vmem:[#allocation3 + $0x1f9] sm:$0xff] }
 0x7f1   :  { %19237 = vst [vmem:[#allocation79_spill] sm:$0xff] %v16772_v3  ;;  %12766 = vmatmul.msk.f32.gmra.mxu2 %vm5168_vm3, %v7904_v15  ;;  %v19240_v15 = vld [vmem:[#allocation104_spill] sm:$0xff] }
 0x7f2   :  { %12830 = vmatmul.msk.f32.gmra.mxu3 %vm5168_vm3, %v16530_v2  ;;  %v7294_v11 = vadd.f32 %v16510_v63, %v19240_v15  ;;  %v7906_v15 = vld [vmem:[#allocation3 + $0x202] sm:$0xff] }
 0x7f4   :  { %v8201_v38 = vpop.f32.mrf.mxu2 }
 0x7f5   :  { %v8355_v31 = vadd.f32 %v8201_v38, %v7824_v58  ;;  %v8733_v14 = vpop.f32.mrf.mxu3  ;;  %v7673_v30 = vpop.f32.mrf.mxu1 }
 0x7f6   :  { %v7825_v2 = vadd.f32 %v7673_v30, %v7294_v11  ;;  %v16794_v39 = vpop.f32.mrf.mxu0 }
 0x7f7   :  { %v16786_v51 = vadd.f32 %v8733_v14, %v8355_v31  ;;  %v16796_v31 = vld [vmem:[#allocation3 + $0x2e8] sm:$0xff] }
 0x7f8   :  { %12703 = vmatmul.msk.f32.gmra.mxu1 %vm5168_vm3, %v7374_v21  ;;  %12659 = vmatmul.msk.f32.gmra.mxu0 %vm5168_vm3, %v16796_v31  ;;  %v7375_v21 = vld [vmem:[#allocation3 + $0x201] sm:$0xff] }
 0x7f9   :  { %19239 = vst [vmem:[#allocation54_spill] sm:$0xff] %v16786_v51  ;;  %12767 = vmatmul.msk.f32.gmra.mxu2 %vm5168_vm3, %v7905_v34  ;;  %v19242_v34 = vld [vmem:[#allocation39_spill] sm:$0xff] }
 0x7fa   :  { %12831 = vmatmul.msk.f32.gmra.mxu3 %vm5168_vm3, %v16546_v50  ;;  %v7295_v20 = vadd.f32 %v16526_v17, %v19242_v34  ;;  %v7907_v34 = vld [vmem:[#allocation3 + $0x212] sm:$0xff] }
 0x7fc   :  { %v8204_v24 = vpop.f32.mrf.mxu2 }
 0x7fd   :  { %v8356_v58 = vadd.f32 %v8204_v24, %v7825_v2  ;;  %v8736_v38 = vpop.f32.mrf.mxu3  ;;  %v7676_v14 = vpop.f32.mrf.mxu1 }
 0x7fe   :  { %v7826_v50 = vadd.f32 %v7676_v14, %v7295_v20  ;;  %v16808_v11 = vpop.f32.mrf.mxu0 }
 0x7ff   :  { %v16800_v63 = vadd.f32 %v8736_v38, %v8356_v58  ;;  %19243 = vst [vmem:[#allocation80_spill] sm:$0xff] %v16808_v11  ;;  %v16810_v58 = vld [vmem:[#allocation3 + $0x2f0] sm:$0xff] }
 0x800   :  { %12704 = vmatmul.msk.f32.gmra.mxu1 %vm5168_vm3, %v7375_v21  ;;  %12660 = vmatmul.msk.f32.gmra.mxu0 %vm5168_vm3, %v16810_v58  ;;  %v7376_v21 = vld [vmem:[#allocation3 + $0x211] sm:$0xff] }
 0x801   :  { %19241 = vst [vmem:[#allocation30_spill] sm:$0xff] %v16800_v63  ;;  %12768 = vmatmul.msk.f32.gmra.mxu2 %vm5168_vm3, %v7906_v15  ;;  %v19245_v15 = vld [vmem:[#allocation14_spill] sm:$0xff] }
 0x802   :  { %12832 = vmatmul.msk.f32.gmra.mxu3 %vm5168_vm3, %v16560_v18  ;;  %v7296_v3 = vadd.f32 %v16542_v54, %v19245_v15  ;;  %v7908_v15 = vld [vmem:[#allocation3 + $0x21a] sm:$0xff]  ;;  %v8976_v63 = vld [vmem:[#allocation3 + $0x271] sm:$0xff] }
 0x804   :  { %v8207_v30 = vpop.f32.mrf.mxu2 }
 0x805   :  { %v8357_v2 = vadd.f32 %v8207_v30, %v7826_v50  ;;  %v8739_v24 = vpop.f32.mrf.mxu3  ;;  %v7679_v38 = vpop.f32.mrf.mxu1 }
 0x806   :  { %v7827_v18 = vadd.f32 %v7679_v38, %v7296_v3  ;;  %v16822_v20 = vpop.f32.mrf.mxu0 }
 0x807   :  { %v16814_v17 = vadd.f32 %v8739_v24, %v8357_v2  ;;  %19246 = vst [vmem:[#allocation55_spill] sm:$0xff] %v16822_v20  ;;  %v16824_v2 = vld [vmem:[#allocation3 + $0x300] sm:$0xff] }
 0x808   :  { %12705 = vmatmul.msk.f32.gmra.mxu1 %vm5168_vm3, %v7376_v21  ;;  %12661 = vmatmul.msk.f32.gmra.mxu0 %vm5168_vm3, %v16824_v2  ;;  %v7377_v21 = vld [vmem:[#allocation3 + $0x219] sm:$0xff] }
 0x809   :  { %19244 = vst [vmem:[#allocation81_spill] sm:$0xff] %v16814_v17  ;;  %12769 = vmatmul.msk.f32.gmra.mxu2 %vm5168_vm3, %v7907_v34  ;;  %v19248_v34 = vld [vmem:[#allocation40_spill] sm:$0xff]  ;;  %v19251_v20 = vld [vmem:[#allocation15_spill] sm:$0xff]  ;;  %v9490_v17 = vld [vmem:[#allocation3 + $0x172] sm:$0xff] }
 0x80a   :  { %12833 = vmatmul.msk.f32.gmra.mxu3 %vm5168_vm3, %v16574_v55  ;;  %v7297_v11 = vadd.f32 %v16558_v6, %v19248_v34  ;;  %v7378_v34 = vld [vmem:[#allocation3 + $0x229] sm:$0xff] }
 0x80c   :  { %v8210_v14 = vpop.f32.mrf.mxu2 }
 0x80d   :  { %v8358_v50 = vadd.f32 %v8210_v14, %v7827_v18  ;;  %v8742_v30 = vpop.f32.mrf.mxu3  ;;  %v7682_v24 = vpop.f32.mrf.mxu1 }
 0x80e   :  { %v7828_v55 = vadd.f32 %v7682_v24, %v7297_v11  ;;  %v16836_v3 = vpop.f32.mrf.mxu0  ;;  %v9528_v11 = vld [vmem:[#allocation5 + $0x40] sm:$0xff] }
 0x80f   :  { %v16828_v54 = vadd.f32 %v8742_v30, %v8358_v50  ;;  %19249 = vst [vmem:[#allocation83_spill] sm:$0xff] %v16836_v3  ;;  %v16838_v50 = vld [vmem:[#allocation3 + $0x308] sm:$0xff]  ;;  %9736 = vmatpush.msrb.mxu1 %v9528_v11  ;;  %v16852_v3 = vld [vmem:[#allocation3 + $0x318] sm:$0xff] }
 0x810   :  { %12706 = vmatmul.msk.f32.gmra.mxu1 %vm5168_vm3, %v7377_v21  ;;  %12662 = vmatmul.msk.f32.gmra.mxu0 %vm5168_vm3, %v16838_v50  ;;  %v8997_v21 = vld [vmem:[#allocation5 + $0x38] sm:$0xff] }
 0x811   :  { %19247 = vst [vmem:[#allocation31_spill] sm:$0xff] %v16828_v54  ;;  %12770 = vmatmul.msk.f32.gmra.mxu2 %vm5168_vm3, %v7908_v15  ;;  %v7909_v15 = vld [vmem:[#allocation3 + $0x22a] sm:$0xff]  ;;  %9205 = vmatpush.msra.mxu0 %v8997_v21  ;;  %v9491_v54 = vld [vmem:[#allocation3 + $0x182] sm:$0xff] }
 0x812   :  { %12834 = vmatmul.msk.f32.gmra.mxu3 %vm5168_vm3, %v16588_v25  ;;  %v7298_v25 = vadd.f32 %v16572_v49, %v19251_v20  ;;  %v7379_v20 = vld [vmem:[#allocation3 + $0x231] sm:$0xff] }
 0x814   :  { %v8213_v38 = vpop.f32.mrf.mxu2 }
 0x815   :  { %v8359_v18 = vadd.f32 %v8213_v38, %v7828_v55  ;;  %v8745_v14 = vpop.f32.mrf.mxu3  ;;  %v7685_v30 = vpop.f32.mrf.mxu1 }
 0x816   :  { %v7829_v24 = vadd.f32 %v7685_v30, %v7298_v25  ;;  %v16850_v55 = vpop.f32.mrf.mxu0 }
 0x817   :  { %v16842_v6 = vadd.f32 %v8745_v14, %v8359_v18  ;;  %19252 = vst [vmem:[#allocation56_spill] sm:$0xff] %v16850_v55 }
 0x818   :  { %12707 = vmatmul.msk.f32.gmra.mxu1 %vm5168_vm3, %v7378_v34  ;;  %12663 = vmatmul.msk.f32.gmra.mxu0 %vm5168_vm3, %v16852_v3  ;;  %v7910_v34 = vld [vmem:[#allocation3 + $0x232] sm:$0xff] }
 0x819   :  { %19250 = vst [vmem:[#allocation82_spill] sm:$0xff] %v16842_v6  ;;  %12771 = vmatmul.msk.f32.gmra.mxu2 %vm5168_vm3, %v7909_v15  ;;  %v19253_v15 = vld [vmem:[#allocation41_spill] sm:$0xff] }
 0x81a   :  { %12835 = vmatmul.msk.f32.gmra.mxu3 %vm5168_vm3, %v16602_v47  ;;  %v7299_v47 = vadd.f32 %v16586_v16, %v19253_v15  ;;  %v7911_v15 = vld [vmem:[#allocation3 + $0x242] sm:$0xff]  ;;  %v9492_v6 = vld [vmem:[#allocation3 + $0x18a] sm:$0xff] }
 0x81c   :  { %v8216_v38 = vpop.f32.mrf.mxu2 }
 0x81d   :  { %v8360_v18 = vadd.f32 %v8216_v38, %v7829_v24  ;;  %v8748_v14 = vpop.f32.mrf.mxu3  ;;  %v7688_v21 = vpop.f32.mrf.mxu1 }
 0x81e   :  { %v7830_v30 = vadd.f32 %v7688_v21, %v7299_v47  ;;  %v16864_v25 = vpop.f32.mrf.mxu0 }
 0x81f   :  { %v16856_v49 = vadd.f32 %v8748_v14, %v8360_v18  ;;  %19254 = vst [vmem:[#allocation32_spill] sm:$0xff] %v16864_v25  ;;  %v16866_v18 = vld [vmem:[#allocation3 + $0x320] sm:$0xff] }
 0x820   :  { %12708 = vmatmul.msk.f32.gmra.mxu1 %vm5168_vm3, %v7379_v20  ;;  %12664 = vmatmul.msk.f32.gmra.mxu0 %vm5168_vm3, %v16866_v18  ;;  %v7380_v20 = vld [vmem:[#allocation3 + $0x241] sm:$0xff] }
 0x821   :  { %12772 = vmatmul.msk.f32.gmra.mxu2 %vm5168_vm3, %v7910_v34  ;;  %v19256_v34 = vld [vmem:[#allocation16_spill] sm:$0xff] }
 0x822   :  { %12836 = vmatmul.msk.f32.gmra.mxu3 %vm5168_vm3, %v16616_v59  ;;  %v7300_v55 = vadd.f32 %v16600_v10, %v19256_v34  ;;  %v7912_v34 = vld [vmem:[#allocation3 + $0x24a] sm:$0xff] }
 0x824   :  { %v8219_v11 = vpop.f32.mrf.mxu2 }
 0x825   :  { %v8361_v24 = vadd.f32 %v8219_v11, %v7830_v30  ;;  %v8751_v38 = vpop.f32.mrf.mxu3  ;;  %v7691_v14 = vpop.f32.mrf.mxu1 }
 0x826   :  { %v7831_v59 = vadd.f32 %v7691_v14, %v7300_v55  ;;  %v16878_v21 = vpop.f32.mrf.mxu0 }
 0x827   :  { %v16870_v16 = vadd.f32 %v8751_v38, %v8361_v24  ;;  %19257 = vst [vmem:[#allocation57_spill] sm:$0xff] %v16878_v21  ;;  %v16880_v24 = vld [vmem:[#allocation3 + $0x330] sm:$0xff] }
 0x828   :  { %12709 = vmatmul.msk.f32.gmra.mxu1 %vm5168_vm3, %v7380_v20  ;;  %12665 = vmatmul.msk.f32.gmra.mxu0 %vm5168_vm3, %v16880_v24  ;;  %v7381_v20 = vld [vmem:[#allocation3 + $0x249] sm:$0xff] }
 0x829   :  { %19255 = vst [vmem:[#allocation84_spill] sm:$0xff] %v16870_v16  ;;  %12773 = vmatmul.msk.f32.gmra.mxu2 %vm5168_vm3, %v7911_v15  ;;  %v19259_v15 = vld [vmem:[#allocation42_spill] sm:$0xff] }
 0x82a   :  { %12837 = vmatmul.msk.f32.gmra.mxu3 %vm5168_vm3, %v16630_v48  ;;  %v7301_v25 = vadd.f32 %v16614_v13, %v19259_v15  ;;  %v7913_v15 = vld [vmem:[#allocation3 + $0x25a] sm:$0xff] }
 0x82c   :  { %v8222_v47 = vpop.f32.mrf.mxu2 }
 0x82d   :  { %v8362_v30 = vadd.f32 %v8222_v47, %v7831_v59  ;;  %v8754_v11 = vpop.f32.mrf.mxu3  ;;  %v7694_v38 = vpop.f32.mrf.mxu1 }
 0x82e   :  { %v7832_v48 = vadd.f32 %v7694_v38, %v7301_v25  ;;  %v16892_v55 = vpop.f32.mrf.mxu0 }
 0x82f   :  { %v16884_v10 = vadd.f32 %v8754_v11, %v8362_v30  ;;  %19260 = vst [vmem:[#allocation85_spill] sm:$0xff] %v16892_v55  ;;  %v16894_v30 = vld [vmem:[#allocation3 + $0x338] sm:$0xff] }
 0x830   :  { %12710 = vmatmul.msk.f32.gmra.mxu1 %vm5168_vm3, %v7381_v20  ;;  %12666 = vmatmul.msk.f32.gmra.mxu0 %vm5168_vm3, %v16894_v30  ;;  %v7382_v20 = vld [vmem:[#allocation3 + $0x259] sm:$0xff] }
 0x831   :  { %19258 = vst [vmem:[#allocation33_spill] sm:$0xff] %v16884_v10  ;;  %12774 = vmatmul.msk.f32.gmra.mxu2 %vm5168_vm3, %v7912_v34  ;;  %v19262_v34 = vld [vmem:[#allocation17_spill] sm:$0xff]  ;;  %v9494_v10 = vld [vmem:[#allocation3 + $0x1a2] sm:$0xff] }
 0x832   :  { %12838 = vmatmul.msk.f32.gmra.mxu3 %vm5168_vm3, %v16644_v0  ;;  %v7302_v21 = vadd.f32 %v16628_v35, %v19262_v34  ;;  %v7383_v35 = vld [vmem:[#allocation3 + $0x261] sm:$0xff] }
 0x833   :  { %v7914_v34 = vld [vmem:[#allocation3 + $0x262] sm:$0xff] }
 0x834   :  { %v8225_v14 = vpop.f32.mrf.mxu2 }
 0x835   :  { %v8363_v59 = vadd.f32 %v8225_v14, %v7832_v48  ;;  %v8757_v47 = vpop.f32.mrf.mxu3  ;;  %v7697_v11 = vpop.f32.mrf.mxu1 }
 0x836   :  { %v7833_v0 = vadd.f32 %v7697_v11, %v7302_v21  ;;  %v16906_v25 = vpop.f32.mrf.mxu0 }
 0x837   :  { %v16898_v13 = vadd.f32 %v8757_v47, %v8363_v59  ;;  %19263 = vst [vmem:[#allocation86_spill] sm:$0xff] %v16906_v25  ;;  %v8932_v59 = vld [vmem:[#allocation3 + $0x31] sm:$0xff]  ;;  %v17093_v25 = vld [vmem:[#allocation3 + $0x321] sm:$0xff] }
 0x838   :  { %12711 = vmatmul.msk.f32.gmra.mxu1 %vm5168_vm3, %v7382_v20  ;;  %12859 = vmatmul.msk.f32.vlgmr.msra.gmra.mxu0 %vm5168_vm3, %v8932_v59  ;;  %v19264_v20 = vld [vmem:[#allocation43_spill] sm:$0xff] }
 0x839   :  { %19261 = vst [vmem:[#allocation87_spill] sm:$0xff] %v16898_v13  ;;  %12775 = vmatmul.msk.f32.gmra.mxu2 %vm5168_vm3, %v7913_v15  ;;  %v7303_v15 = vadd.f32 %v16642_v56, %v19264_v20  ;;  %v7384_v56 = vld [vmem:[#allocation3 + $0x271] sm:$0xff] }
 0x83a   :  { %12839 = vmatmul.msk.f32.gmra.mxu3 %vm5168_vm3, %v16658_v57  ;;  %v7915_v20 = vld [vmem:[#allocation3 + $0x272] sm:$0xff] }
 0x83c   :  { %v8228_v38 = vpop.f32.mrf.mxu2 }
 0x83d   :  { %v8364_v48 = vadd.f32 %v8228_v38, %v7833_v0  ;;  %v8760_v14 = vpop.f32.mrf.mxu3  ;;  %v7700_v47 = vpop.f32.mrf.mxu1 }
 0x83e   :  { %v7834_v57 = vadd.f32 %v7700_v47, %v7303_v15  ;;  %v16917_v21 = vpop.f32.mrf.mxu0 }
 0x83f   :  { %v16909_v55 = vadd.f32 %v8760_v14, %v8364_v48  ;;  %19265 = vst [vmem:[#allocation58_spill] sm:$0xff] %v16917_v21  ;;  %v8933_v48 = vld [vmem:[#allocation3 + $0x39] sm:$0xff] }
 0x840   :  { %12712 = vmatmul.msk.f32.gmra.mxu1 %vm5168_vm3, %v7383_v35  ;;  %12860 = vmatmul.msk.f32.gmra.mxu0 %vm5168_vm3, %v8933_v48  ;;  %v19266_v35 = vld [vmem:[#allocation18_spill] sm:$0xff] }
 0x841   :  { %12776 = vmatmul.msk.f32.gmra.mxu2 %vm5168_vm3, %v7914_v34  ;;  %v7304_v34 = vadd.f32 %v16656_v29, %v19266_v35  ;;  %v7385_v29 = vld [vmem:[#allocation3 + $0x279] sm:$0xff] }
 0x842   :  { %12840 = vmatmul.msk.f32.gmra.mxu3 %vm5168_vm3, %v16672_v26  ;;  %v7916_v35 = vld [vmem:[#allocation3 + $0x27a] sm:$0xff] }
 0x844   :  { %v8231_v11 = vpop.f32.mrf.mxu2 }
 0x845   :  { %v8365_v0 = vadd.f32 %v8231_v11, %v7834_v57  ;;  %v8763_v38 = vpop.f32.mrf.mxu3  ;;  %v7703_v14 = vpop.f32.mrf.mxu1 }
 0x846   :  { %v7835_v26 = vadd.f32 %v7703_v14, %v7304_v34  ;;  %v16928_v47 = vpop.f32.mrf.mxu0 }
 0x847   :  { %v16920_v59 = vadd.f32 %v8763_v38, %v8365_v0  ;;  %19267 = vst [vmem:[#allocation34_spill] sm:$0xff] %v16928_v47  ;;  %v8934_v0 = vld [vmem:[#allocation3 + $0x49] sm:$0xff] }
 0x848   :  { %12713 = vmatmul.msk.f32.gmra.mxu1 %vm5168_vm3, %v7384_v56  ;;  %12861 = vmatmul.msk.f32.gmra.mxu0 %vm5168_vm3, %v8934_v0  ;;  %v19268_v56 = vld [vmem:[#allocation44_spill] sm:$0xff] }
 0x849   :  { %12777 = vmatmul.msk.f32.gmra.mxu2 %vm5168_vm3, %v7915_v20  ;;  %v7305_v20 = vadd.f32 %v16670_v60, %v19268_v56  ;;  %v7386_v60 = vld [vmem:[#allocation3 + $0x289] sm:$0xff] }
 0x84a   :  { %12841 = vmatmul.msk.f32.gmra.mxu3 %vm5168_vm3, %v16686_v36  ;;  %v7917_v56 = vld [vmem:[#allocation3 + $0x28a] sm:$0xff] }
 0x84b   :  { %v8463_v47 = vld [vmem:[#allocation3 + $0x348] sm:$0xff] }
 0x84c   :  { %v8234_v15 = vpop.f32.mrf.mxu2 }
 0x84d   :  { %v8366_v57 = vadd.f32 %v8234_v15, %v7835_v26  ;;  %v8766_v11 = vpop.f32.mrf.mxu3  ;;  %v7706_v38 = vpop.f32.mrf.mxu1 }
 0x84e   :  { %v7836_v36 = vadd.f32 %v7706_v38, %v7305_v20  ;;  %v16939_v14 = vpop.f32.mrf.mxu0 }
 0x84f   :  { %v16931_v48 = vadd.f32 %v8766_v11, %v8366_v57  ;;  %19269 = vst [vmem:[#allocation89_spill] sm:$0xff] %v16939_v14  ;;  %v8935_v57 = vld [vmem:[#allocation3 + $0x51] sm:$0xff] }
 0x850   :  { %12714 = vmatmul.msk.f32.gmra.mxu1 %vm5168_vm3, %v7385_v29  ;;  %12862 = vmatmul.msk.f32.gmra.mxu0 %vm5168_vm3, %v8935_v57  ;;  %v19270_v29 = vld [vmem:[#allocation19_spill] sm:$0xff]  ;;  %v7931_v14 = vld [vmem:[#allocation3 + $0x332] sm:$0xff] }
 0x851   :  { %12778 = vmatmul.msk.f32.gmra.mxu2 %vm5168_vm3, %v7916_v35  ;;  %v7306_v35 = vadd.f32 %v16684_v5, %v19270_v29  ;;  %v7387_v5 = vld [vmem:[#allocation3 + $0x291] sm:$0xff] }
 0x852   :  { %12842 = vmatmul.msk.f32.gmra.mxu3 %vm5168_vm3, %v16700_v45  ;;  %v7918_v29 = vld [vmem:[#allocation3 + $0x292] sm:$0xff] }
 0x854   :  { %v8237_v34 = vpop.f32.mrf.mxu2 }
 0x855   :  { %v8367_v26 = vadd.f32 %v8237_v34, %v7836_v36  ;;  %v8769_v15 = vpop.f32.mrf.mxu3  ;;  %v7709_v11 = vpop.f32.mrf.mxu1 }
 0x856   :  { %v7837_v45 = vadd.f32 %v7709_v11, %v7306_v35  ;;  %v16950_v38 = vpop.f32.mrf.mxu0 }
 0x857   :  { %v16942_v0 = vadd.f32 %v8769_v15, %v8367_v26  ;;  %19271 = vst [vmem:[#allocation88_spill] sm:$0xff] %v16950_v38  ;;  %v8936_v26 = vld [vmem:[#allocation3 + $0x61] sm:$0xff] }
 0x858   :  { %12715 = vmatmul.msk.f32.gmra.mxu1 %vm5168_vm3, %v7386_v60  ;;  %12863 = vmatmul.msk.f32.gmra.mxu0 %vm5168_vm3, %v8936_v26  ;;  %v19273_v60 = vld [vmem:[#allocation37_spill] sm:$0xff] }
 0x859   :  { %12779 = vmatmul.msk.f32.gmra.mxu2 %vm5168_vm3, %v7917_v56  ;;  %v7307_v56 = vadd.f32 %v16698_v53, %v19273_v60  ;;  %v7388_v53 = vld [vmem:[#allocation3 + $0x2a1] sm:$0xff] }
 0x85a   :  { %12843 = vmatmul.msk.f32.gmra.mxu3 %vm5168_vm3, %v16713_v4  ;;  %v7919_v60 = vld [vmem:[#allocation3 + $0x2a2] sm:$0xff] }
 0x85c   :  { %v8240_v20 = vpop.f32.mrf.mxu2 }
 0x85d   :  { %v8368_v36 = vadd.f32 %v8240_v20, %v7837_v45  ;;  %v8772_v34 = vpop.f32.mrf.mxu3  ;;  %v7712_v15 = vpop.f32.mrf.mxu1 }
 0x85e   :  { %v7838_v4 = vadd.f32 %v7712_v15, %v7307_v56  ;;  %v16961_v11 = vpop.f32.mrf.mxu0 }
 0x85f   :  { %v16953_v57 = vadd.f32 %v8772_v34, %v8368_v36  ;;  %19274 = vst [vmem:[#allocation35_spill] sm:$0xff] %v16961_v11  ;;  %v8937_v36 = vld [vmem:[#allocation3 + $0x69] sm:$0xff] }
 0x860   :  { %12716 = vmatmul.msk.f32.gmra.mxu1 %vm5168_vm3, %v7387_v5  ;;  %12864 = vmatmul.msk.f32.gmra.mxu0 %vm5168_vm3, %v8937_v36  ;;  %v19276_v5 = vld [vmem:[#allocation62_spill] sm:$0xff]  ;;  %v8464_v11 = vld [vmem:[#allocation3 + $0x350] sm:$0xff] }
 0x861   :  { %19272 = vst [vmem:[#allocation59_spill] sm:$0xff] %v16953_v57  ;;  %12780 = vmatmul.msk.f32.gmra.mxu2 %vm5168_vm3, %v7918_v29  ;;  %v7308_v29 = vadd.f32 %v16711_v12, %v19276_v5  ;;  %v7389_v12 = vld [vmem:[#allocation3 + $0x2a9] sm:$0xff] }
 0x862   :  { %12844 = vmatmul.msk.f32.gmra.mxu3 %vm5168_vm3, %v16726_v44  ;;  %v7920_v5 = vld [vmem:[#allocation3 + $0x2aa] sm:$0xff] }
 0x864   :  { %v8243_v35 = vpop.f32.mrf.mxu2 }
 0x865   :  { %v8369_v45 = vadd.f32 %v8243_v35, %v7838_v4  ;;  %v8775_v20 = vpop.f32.mrf.mxu3  ;;  %v7715_v34 = vpop.f32.mrf.mxu1 }
 0x866   :  { %v7839_v44 = vadd.f32 %v7715_v34, %v7308_v29  ;;  %v16972_v15 = vpop.f32.mrf.mxu0 }
 0x867   :  { %v16964_v26 = vadd.f32 %v8775_v20, %v8369_v45  ;;  %19277 = vst [vmem:[#allocation92_spill] sm:$0xff] %v16972_v15  ;;  %v8938_v45 = vld [vmem:[#allocation3 + $0x79] sm:$0xff] }
 0x868   :  { %12717 = vmatmul.msk.f32.gmra.mxu1 %vm5168_vm3, %v7388_v53  ;;  %12865 = vmatmul.msk.f32.gmra.mxu0 %vm5168_vm3, %v8938_v45  ;;  %v19279_v53 = vld [vmem:[#allocation45_spill] sm:$0xff]  ;;  %v7932_v15 = vld [vmem:[#allocation3 + $0x33a] sm:$0xff] }
 0x869   :  { %19275 = vst [vmem:[#allocation90_spill] sm:$0xff] %v16964_v26  ;;  %12781 = vmatmul.msk.f32.gmra.mxu2 %vm5168_vm3, %v7919_v60  ;;  %v7309_v60 = vadd.f32 %v16724_v37, %v19279_v53  ;;  %v7390_v37 = vld [vmem:[#allocation3 + $0x2b9] sm:$0xff] }
 0x86a   :  { %12845 = vmatmul.msk.f32.gmra.mxu3 %vm5168_vm3, %v16740_v61  ;;  %v7921_v53 = vld [vmem:[#allocation3 + $0x2ba] sm:$0xff] }
 0x86c   :  { %v8246_v56 = vpop.f32.mrf.mxu2 }
 0x86d   :  { %v8370_v4 = vadd.f32 %v8246_v56, %v7839_v44  ;;  %v8778_v35 = vpop.f32.mrf.mxu3  ;;  %v7718_v20 = vpop.f32.mrf.mxu1 }
 0x86e   :  { %v7840_v61 = vadd.f32 %v7718_v20, %v7309_v60  ;;  %v16983_v34 = vpop.f32.mrf.mxu0 }
 0x86f   :  { %v16975_v36 = vadd.f32 %v8778_v35, %v8370_v4  ;;  %19280 = vst [vmem:[#allocation60_spill] sm:$0xff] %v16983_v34  ;;  %v8939_v4 = vld [vmem:[#allocation3 + $0x81] sm:$0xff] }
 0x870   :  { %12718 = vmatmul.msk.f32.gmra.mxu1 %vm5168_vm3, %v7389_v12  ;;  %12866 = vmatmul.msk.f32.gmra.mxu0 %vm5168_vm3, %v8939_v4  ;;  %v19282_v12 = vld [vmem:[#allocation21_spill] sm:$0xff] }
 0x871   :  { %19278 = vst [vmem:[#allocation91_spill] sm:$0xff] %v16975_v36  ;;  %12782 = vmatmul.msk.f32.gmra.mxu2 %vm5168_vm3, %v7920_v5  ;;  %v7310_v5 = vadd.f32 %v16738_v32, %v19282_v12  ;;  %v7391_v32 = vld [vmem:[#allocation3 + $0x2c1] sm:$0xff] }
 0x872   :  { %12846 = vmatmul.msk.f32.gmra.mxu3 %vm5168_vm3, %v16754_v43  ;;  %v7922_v12 = vld [vmem:[#allocation3 + $0x2c2] sm:$0xff] }
 0x874   :  { %v8249_v29 = vpop.f32.mrf.mxu2 }
 0x875   :  { %v8371_v44 = vadd.f32 %v8249_v29, %v7840_v61  ;;  %v8781_v56 = vpop.f32.mrf.mxu3  ;;  %v7721_v35 = vpop.f32.mrf.mxu1 }
 0x876   :  { %v7841_v43 = vadd.f32 %v7721_v35, %v7310_v5  ;;  %v16994_v20 = vpop.f32.mrf.mxu0 }
 0x877   :  { %v16986_v45 = vadd.f32 %v8781_v56, %v8371_v44  ;;  %19283 = vst [vmem:[#allocation93_spill] sm:$0xff] %v16994_v20  ;;  %v8940_v44 = vld [vmem:[#allocation3 + $0x91] sm:$0xff] }
 0x878   :  { %12719 = vmatmul.msk.f32.gmra.mxu1 %vm5168_vm3, %v7390_v37  ;;  %12867 = vmatmul.msk.f32.gmra.mxu0 %vm5168_vm3, %v8940_v44  ;;  %v19285_v37 = vld [vmem:[#allocation38_spill] sm:$0xff] }
 0x879   :  { %19281 = vst [vmem:[#allocation36_spill] sm:$0xff] %v16986_v45  ;;  %12783 = vmatmul.msk.f32.gmra.mxu2 %vm5168_vm3, %v7921_v53  ;;  %v7311_v53 = vadd.f32 %v16752_v40, %v19285_v37  ;;  %v7392_v40 = vld [vmem:[#allocation3 + $0x2d1] sm:$0xff] }
 0x87a   :  { %12847 = vmatmul.msk.f32.gmra.mxu3 %vm5168_vm3, %v16768_v19  ;;  %v7923_v37 = vld [vmem:[#allocation3 + $0x2d2] sm:$0xff] }
 0x87b   :  { %v9463_v20 = vld [vmem:[#allocation3 + $0x32] sm:$0xff] }
 0x87c   :  { %v8252_v60 = vpop.f32.mrf.mxu2 }
 0x87d   :  { %v8372_v61 = vadd.f32 %v8252_v60, %v7841_v43  ;;  %v8784_v29 = vpop.f32.mrf.mxu3  ;;  %v7724_v56 = vpop.f32.mrf.mxu1 }
 0x87e   :  { %v7842_v19 = vadd.f32 %v7724_v56, %v7311_v53  ;;  %v17005_v35 = vpop.f32.mrf.mxu0 }
 0x87f   :  { %v16997_v4 = vadd.f32 %v8784_v29, %v8372_v61  ;;  %19286 = vst [vmem:[#allocation8_spill] sm:$0xff] %v17005_v35  ;;  %v8941_v61 = vld [vmem:[#allocation3 + $0x99] sm:$0xff]  ;;  %v8952_v35 = vld [vmem:[#allocation3 + $0x121] sm:$0xff] }
 0x880   :  { %12720 = vmatmul.msk.f32.gmra.mxu1 %vm5168_vm3, %v7391_v32  ;;  %12868 = vmatmul.msk.f32.gmra.mxu0 %vm5168_vm3, %v8941_v61  ;;  %v19288_v32 = vld [vmem:[#allocation61_spill] sm:$0xff] }
 0x881   :  { %19284 = vst [vmem:[#allocation94_spill] sm:$0xff] %v16997_v4  ;;  %12784 = vmatmul.msk.f32.gmra.mxu2 %vm5168_vm3, %v7922_v12  ;;  %v7312_v12 = vadd.f32 %v16766_v9, %v19288_v32  ;;  %v7393_v9 = vld [vmem:[#allocation3 + $0x2d9] sm:$0xff] }
 0x882   :  { %12848 = vmatmul.msk.f32.gmra.mxu3 %vm5168_vm3, %v16782_v33  ;;  %v7924_v32 = vld [vmem:[#allocation3 + $0x2da] sm:$0xff] }
 0x884   :  { %v8255_v5 = vpop.f32.mrf.mxu2 }
 0x885   :  { %v8373_v43 = vadd.f32 %v8255_v5, %v7842_v19  ;;  %v8787_v60 = vpop.f32.mrf.mxu3  ;;  %v7727_v29 = vpop.f32.mrf.mxu1 }
 0x886   :  { %v7843_v33 = vadd.f32 %v7727_v29, %v7312_v12  ;;  %v17016_v56 = vpop.f32.mrf.mxu0 }
 0x887   :  { %v17008_v44 = vadd.f32 %v8787_v60, %v8373_v43  ;;  %19289 = vst [vmem:[#allocation96_spill] sm:$0xff] %v17016_v56  ;;  %v8942_v43 = vld [vmem:[#allocation3 + $0xa9] sm:$0xff] }
 0x888   :  { %12721 = vmatmul.msk.f32.gmra.mxu1 %vm5168_vm3, %v7392_v40  ;;  %12869 = vmatmul.msk.f32.gmra.mxu0 %vm5168_vm3, %v8942_v43  ;;  %v19291_v40 = vld [vmem:[#allocation65_spill] sm:$0xff] }
 0x889   :  { %19287 = vst [vmem:[#allocation95_spill] sm:$0xff] %v17008_v44  ;;  %12785 = vmatmul.msk.f32.gmra.mxu2 %vm5168_vm3, %v7923_v37  ;;  %v7313_v37 = vadd.f32 %v16780_v1, %v19291_v40  ;;  %v7394_v1 = vld [vmem:[#allocation3 + $0x2e9] sm:$0xff] }
 0x88a   :  { %12849 = vmatmul.msk.f32.gmra.mxu3 %vm5168_vm3, %v16796_v31  ;;  %v7925_v40 = vld [vmem:[#allocation3 + $0x2ea] sm:$0xff] }
 0x88c   :  { %v8258_v53 = vpop.f32.mrf.mxu2 }
 0x88d   :  { %v8374_v19 = vadd.f32 %v8258_v53, %v7843_v33  ;;  %v8790_v5 = vpop.f32.mrf.mxu3  ;;  %v7730_v60 = vpop.f32.mrf.mxu1 }
 0x88e   :  { %v7844_v31 = vadd.f32 %v7730_v60, %v7313_v37  ;;  %v17027_v29 = vpop.f32.mrf.mxu0 }
 0x88f   :  { %v17019_v61 = vadd.f32 %v8790_v5, %v8374_v19  ;;  %19292 = vst [vmem:[#allocation97_spill] sm:$0xff] %v17027_v29  ;;  %v8943_v19 = vld [vmem:[#allocation3 + $0xb1] sm:$0xff]  ;;  %v8953_v29 = vld [vmem:[#allocation3 + $0x129] sm:$0xff] }
 0x890   :  { %12722 = vmatmul.msk.f32.gmra.mxu1 %vm5168_vm3, %v7393_v9  ;;  %12870 = vmatmul.msk.f32.gmra.mxu0 %vm5168_vm3, %v8943_v19  ;;  %v19294_v9 = vld [vmem:[#allocation46_spill] sm:$0xff] }
 0x891   :  { %19290 = vst [vmem:[#allocation9_spill] sm:$0xff] %v17019_v61  ;;  %12786 = vmatmul.msk.f32.gmra.mxu2 %vm5168_vm3, %v7924_v32  ;;  %v7314_v32 = vadd.f32 %v16794_v39, %v19294_v9  ;;  %v17045_v39 = vld [vmem:[#allocation3 + $0x2f1] sm:$0xff]  ;;  %v17057_v9 = vld [vmem:[#allocation3 + $0x301] sm:$0xff] }
 0x892   :  { %12850 = vmatmul.msk.f32.gmra.mxu3 %vm5168_vm3, %v16810_v58 }
 0x894   :  { %v8261_v12 = vpop.f32.mrf.mxu2 }
 0x895   :  { %v8375_v33 = vadd.f32 %v8261_v12, %v7844_v31  ;;  %v8793_v53 = vpop.f32.mrf.mxu3  ;;  %v7733_v5 = vpop.f32.mrf.mxu1 }
 0x896   :  { %v7845_v58 = vadd.f32 %v7733_v5, %v7314_v32  ;;  %v17038_v60 = vpop.f32.mrf.mxu0  ;;  %v8945_v5 = vld [vmem:[#allocation3 + $0xc9] sm:$0xff] }
 0x897   :  { %v17030_v43 = vadd.f32 %v8793_v53, %v8375_v33  ;;  %19295 = vst [vmem:[#allocation10_spill] sm:$0xff] %v17038_v60  ;;  %v8944_v33 = vld [vmem:[#allocation3 + $0xc1] sm:$0xff] }
 0x898   :  { %12723 = vmatmul.msk.f32.gmra.mxu1 %vm5168_vm3, %v7394_v1  ;;  %12871 = vmatmul.msk.f32.gmra.mxu0 %vm5168_vm3, %v8944_v33  ;;  %v7926_v1 = vld [vmem:[#allocation3 + $0x2f2] sm:$0xff]  ;;  %v7927_v32 = vld [vmem:[#allocation3 + $0x302] sm:$0xff] }
 0x899   :  { %19293 = vst [vmem:[#allocation98_spill] sm:$0xff] %v17030_v43  ;;  %12787 = vmatmul.msk.f32.gmra.mxu2 %vm5168_vm3, %v7925_v40 }
 0x89a   :  { %12851 = vmatmul.msk.f32.gmra.mxu3 %vm5168_vm3, %v16824_v2 }
 0x89c   :  { %v8264_v37 = vpop.f32.mrf.mxu2 }
 0x89d   :  { %v8376_v31 = vadd.f32 %v8264_v37, %v7845_v58  ;;  %v8796_v12 = vpop.f32.mrf.mxu3  ;;  %v17040_v53 = vpop.f32.mrf.mxu1 }
 0x89e   :  { %19296 = vst [vmem:[#allocation11_spill] sm:$0xff] %v17040_v53  ;;  %v17052_v2 = vpop.f32.mrf.mxu0 }
 0x89f   :  { %v17043_v19 = vadd.f32 %v8796_v12, %v8376_v31  ;;  %19298 = vst [vmem:[#allocation100_spill] sm:$0xff] %v17052_v2  ;;  %v17069_v31 = vld [vmem:[#allocation3 + $0x309] sm:$0xff] }
 0x8a0   :  { %12724 = vmatmul.msk.f32.gmra.mxu1 %vm5168_vm3, %v17045_v39  ;;  %12872 = vmatmul.msk.f32.gmra.mxu0 %vm5168_vm3, %v8945_v5  ;;  %v7928_v12 = vld [vmem:[#allocation3 + $0x30a] sm:$0xff]  ;;  %v17081_v5 = vld [vmem:[#allocation3 + $0x319] sm:$0xff] }
 0x8a1   :  { %19297 = vst [vmem:[#allocation99_spill] sm:$0xff] %v17043_v19  ;;  %12788 = vmatmul.msk.f32.gmra.mxu2 %vm5168_vm3, %v7926_v1 }
 0x8a2   :  { %12852 = vmatmul.msk.f32.gmra.mxu3 %vm5168_vm3, %v16838_v50  ;;  %v8946_v50 = vld [vmem:[#allocation3 + $0xd9] sm:$0xff] }
 0x8a5   :  { %v17054_v40 = vpop.f32.mrf.mxu1 }
 0x8a6   :  { %19299 = vst [vmem:[#allocation12_spill] sm:$0xff] %v17054_v40  ;;  %v17064_v58 = vpop.f32.mrf.mxu0 }
 0x8a7   :  { %19300 = vst [vmem:[#allocation13_spill] sm:$0xff] %v17064_v58 }
 0x8a8   :  { %12725 = vmatmul.msk.f32.gmra.mxu1 %vm5168_vm3, %v17057_v9  ;;  %12873 = vmatmul.msk.f32.gmra.mxu0 %vm5168_vm3, %v8946_v50 }
 0x8a9   :  { %12789 = vmatmul.msk.f32.gmra.mxu2 %vm5168_vm3, %v7927_v32  ;;  %v7929_v32 = vld [vmem:[#allocation3 + $0x31a] sm:$0xff] }
 0x8aa   :  { %12853 = vmatmul.msk.f32.gmra.mxu3 %vm5168_vm3, %v16852_v3  ;;  %v8947_v3 = vld [vmem:[#allocation3 + $0xe1] sm:$0xff] }
 0x8ad   :  { %v17066_v37 = vpop.f32.mrf.mxu1 }
 0x8ae   :  { %19301 = vst [vmem:[#allocation101_spill] sm:$0xff] %v17066_v37  ;;  %v17076_v33 = vpop.f32.mrf.mxu0 }
 0x8af   :  { %19302 = vst [vmem:[#allocation102_spill] sm:$0xff] %v17076_v33 }
 0x8b0   :  { %12726 = vmatmul.msk.f32.gmra.mxu1 %vm5168_vm3, %v17069_v31  ;;  %12874 = vmatmul.msk.f32.gmra.mxu0 %vm5168_vm3, %v8947_v3  ;;  %v7930_v3 = vld [vmem:[#allocation3 + $0x322] sm:$0xff] }
 0x8b1   :  { %12790 = vmatmul.msk.f32.gmra.mxu2 %vm5168_vm3, %v7928_v12 }
 0x8b2   :  { %12854 = vmatmul.msk.f32.gmra.mxu3 %vm5168_vm3, %v16866_v18  ;;  %v8948_v18 = vld [vmem:[#allocation3 + $0xf1] sm:$0xff] }
 0x8b5   :  { %v17078_v1 = vpop.f32.mrf.mxu1 }
 0x8b6   :  { %19303 = vst [vmem:[#allocation103_spill] sm:$0xff] %v17078_v1  ;;  %v17088_v50 = vpop.f32.mrf.mxu0 }
 0x8b8   :  { %12727 = vmatmul.msk.f32.gmra.mxu1 %vm5168_vm3, %v17081_v5  ;;  %12875 = vmatmul.msk.f32.gmra.mxu0 %vm5168_vm3, %v8948_v18  ;;  %v17105_v18 = vld [vmem:[#allocation3 + $0x331] sm:$0xff] }
 0x8b9   :  { %12791 = vmatmul.msk.f32.gmra.mxu2 %vm5168_vm3, %v7929_v32 }
 0x8ba   :  { %12855 = vmatmul.msk.f32.gmra.mxu3 %vm5168_vm3, %v16880_v24  ;;  %v8949_v24 = vld [vmem:[#allocation3 + $0xf9] sm:$0xff] }
 0x8bd   :  { %v17090_v12 = vpop.f32.mrf.mxu1 }
 0x8be   :  { %19304 = vst [vmem:[#allocation20_spill] sm:$0xff] %v17090_v12  ;;  %v17100_v32 = vpop.f32.mrf.mxu0 }
 0x8c0   :  { %12728 = vmatmul.msk.f32.gmra.mxu1 %vm5168_vm3, %v17093_v25  ;;  %12876 = vmatmul.msk.f32.gmra.mxu0 %vm5168_vm3, %v8949_v24  ;;  %v17116_v24 = vld [vmem:[#allocation3 + $0x339] sm:$0xff] }
 0x8c1   :  { %12792 = vmatmul.msk.f32.gmra.mxu2 %vm5168_vm3, %v7930_v3 }
 0x8c2   :  { %12856 = vmatmul.msk.f32.gmra.mxu3 %vm5168_vm3, %v16894_v30  ;;  %v8950_v30 = vld [vmem:[#allocation3 + $0x109] sm:$0xff] }
 0x8c5   :  { %v17102_v21 = vpop.f32.mrf.mxu1 }
 0x8c6   :  { %19305 = vst [vmem:[#allocation104_spill] sm:$0xff] %v17102_v21  ;;  %v17111_v3 = vpop.f32.mrf.mxu0 }
 0x8c8   :  { %12729 = vmatmul.msk.f32.gmra.mxu1 %vm5168_vm3, %v17105_v18  ;;  %12877 = vmatmul.msk.f32.gmra.mxu0 %vm5168_vm3, %v8950_v30 }
 0x8c9   :  { %12793 = vmatmul.msk.f32.gmra.mxu2 %vm5168_vm3, %v7931_v14 }
 0x8ca   :  { %12857 = vmatmul.msk.f32.gmra.mxu3 %vm5168_vm3, %v8463_v47  ;;  %v8951_v47 = vld [vmem:[#allocation3 + $0x111] sm:$0xff] }
 0x8cd   :  { %v17113_v38 = vpop.f32.mrf.mxu1 }
 0x8ce   :  { %19306 = vst [vmem:[#allocation39_spill] sm:$0xff] %v17113_v38  ;;  %v17122_v14 = vpop.f32.mrf.mxu0  ;;  %v9484_v38 = vld [vmem:[#allocation3 + $0x12a] sm:$0xff] }
 0x8d0   :  { %12730 = vmatmul.msk.f32.gmra.mxu1 %vm5168_vm3, %v17116_v24  ;;  %12878 = vmatmul.msk.f32.gmra.mxu0 %vm5168_vm3, %v8951_v47  ;;  %v9465_v47 = vld [vmem:[#allocation3 + $0x4a] sm:$0xff] }
 0x8d1   :  { %12794 = vmatmul.msk.f32.gmra.mxu2 %vm5168_vm3, %v7932_v15  ;;  %v9464_v15 = vld [vmem:[#allocation3 + $0x3a] sm:$0xff] }
 0x8d2   :  { %12858 = vmatmul.msk.f32.gmra.mxu3 %vm5168_vm3, %v8464_v11 }
 0x8d5   :  { %v17124_v34 = vpop.f32.mrf.mxu1 }
 0x8d6   :  { %19307 = vst [vmem:[#allocation14_spill] sm:$0xff] %v17124_v34  ;;  %v17128_v30 = vpop.f32.mrf.mxu0  ;;  %v8954_v34 = vld [vmem:[#allocation3 + $0x139] sm:$0xff] }
 0x8d8   :  { %12923 = vmatmul.msk.f32.vlgmr.msrb.gmra.mxu1 %vm5168_vm3, %v9463_v20  ;;  %12879 = vmatmul.msk.f32.gmra.mxu0 %vm5168_vm3, %v8952_v35  ;;  %v9466_v35 = vld [vmem:[#allocation3 + $0x52] sm:$0xff] }
 0x8dd   :  { %v17130_v56 = vpop.f32.mrf.mxu1 }
 0x8de   :  { %19308 = vst [vmem:[#allocation40_spill] sm:$0xff] %v17130_v56  ;;  %v17134_v11 = vpop.f32.mrf.mxu0 }
 0x8e0   :  { %12924 = vmatmul.msk.f32.gmra.mxu1 %vm5168_vm3, %v9464_v15  ;;  %12880 = vmatmul.msk.f32.gmra.mxu0 %vm5168_vm3, %v8953_v29  ;;  %v8955_v15 = vld [vmem:[#allocation3 + $0x141] sm:$0xff] }
 0x8e1   :  { %v9467_v29 = vld [vmem:[#allocation3 + $0x62] sm:$0xff] }
 0x8e5   :  { %v17136_v60 = vpop.f32.mrf.mxu1 }
 0x8e6   :  { %19309 = vst [vmem:[#allocation15_spill] sm:$0xff] %v17136_v60  ;;  %v17140_v20 = vpop.f32.mrf.mxu0 }
 0x8e8   :  { %12925 = vmatmul.msk.f32.gmra.mxu1 %vm5168_vm3, %v9465_v47  ;;  %12881 = vmatmul.msk.f32.gmra.mxu0 %vm5168_vm3, %v8954_v34  ;;  %v8956_v47 = vld [vmem:[#allocation3 + $0x151] sm:$0xff] }
 0x8ed   :  { %v17142_v2 = vpop.f32.mrf.mxu1 }
 0x8ee   :  { %19310 = vst [vmem:[#allocation41_spill] sm:$0xff] %v17142_v2  ;;  %v17148_v58 = vpop.f32.mrf.mxu0  ;;  %v9468_v2 = vld [vmem:[#allocation3 + $0x6a] sm:$0xff] }
 0x8f0   :  { %12926 = vmatmul.msk.f32.gmra.mxu1 %vm5168_vm3, %v9466_v35  ;;  %12882 = vmatmul.msk.f32.gmra.mxu0 %vm5168_vm3, %v8955_v15  ;;  %v8957_v35 = vld [vmem:[#allocation3 + $0x159] sm:$0xff] }
 0x8f5   :  { %v17146_v56 = vpop.f32.mrf.mxu1 }
 0x8f6   :  { %19311 = vst [vmem:[#allocation16_spill] sm:$0xff] %v17146_v56  ;;  %v17155_v34 = vpop.f32.mrf.mxu0  ;;  %v9469_v56 = vld [vmem:[#allocation3 + $0x7a] sm:$0xff] }
 0x8f8   :  { %12927 = vmatmul.msk.f32.gmra.mxu1 %vm5168_vm3, %v9467_v29  ;;  %12883 = vmatmul.msk.f32.gmra.mxu0 %vm5168_vm3, %v8956_v47  ;;  %v8958_v29 = vld [vmem:[#allocation3 + $0x169] sm:$0xff] }
 0x8f9   :  { %v9470_v47 = vld [vmem:[#allocation3 + $0x82] sm:$0xff] }
 0x8fd   :  { %v17152_v60 = vpop.f32.mrf.mxu1 }
 0x8fe   :  { %19312 = vst [vmem:[#allocation42_spill] sm:$0xff] %v17152_v60  ;;  %v17162_v15 = vpop.f32.mrf.mxu0 }
 0x900   :  { %12928 = vmatmul.msk.f32.gmra.mxu1 %vm5168_vm3, %v9468_v2  ;;  %12884 = vmatmul.msk.f32.gmra.mxu0 %vm5168_vm3, %v8957_v35  ;;  %v8959_v2 = vld [vmem:[#allocation3 + $0x171] sm:$0xff] }
 0x901   :  { %v9471_v35 = vld [vmem:[#allocation3 + $0x92] sm:$0xff] }
 0x905   :  { %v17158_v33 = vpop.f32.mrf.mxu1 }
 0x906   :  { %19313 = vst [vmem:[#allocation17_spill] sm:$0xff] %v17158_v33  ;;  %v17168_v60 = vpop.f32.mrf.mxu0 }
 0x908   :  { %12929 = vmatmul.msk.f32.gmra.mxu1 %vm5168_vm3, %v9469_v56  ;;  %12885 = vmatmul.msk.f32.gmra.mxu0 %vm5168_vm3, %v8958_v29  ;;  %v8960_v56 = vld [vmem:[#allocation3 + $0x181] sm:$0xff] }
 0x909   :  { %v9472_v29 = vld [vmem:[#allocation3 + $0x9a] sm:$0xff] }
 0x90d   :  { %v17164_v57 = vpop.f32.mrf.mxu1 }
 0x90e   :  { %19314 = vst [vmem:[#allocation43_spill] sm:$0xff] %v17164_v57  ;;  %v17176_v36 = vpop.f32.mrf.mxu0 }
 0x910   :  { %12930 = vmatmul.msk.f32.gmra.mxu1 %vm5168_vm3, %v9470_v47  ;;  %12886 = vmatmul.msk.f32.gmra.mxu0 %vm5168_vm3, %v8959_v2  ;;  %v8961_v47 = vld [vmem:[#allocation3 + $0x189] sm:$0xff] }
 0x915   :  { %v17170_v26 = vpop.f32.mrf.mxu1 }
 0x916   :  { %19315 = vst [vmem:[#allocation18_spill] sm:$0xff] %v17170_v26  ;;  %v9473_v26 = vld [vmem:[#allocation3 + $0xaa] sm:$0xff]  ;;  %v17183_v2 = vpop.f32.mrf.mxu0 }
 0x918   :  { %12931 = vmatmul.msk.f32.gmra.mxu1 %vm5168_vm3, %v9471_v35  ;;  %12887 = vmatmul.msk.f32.gmra.mxu0 %vm5168_vm3, %v8960_v56  ;;  %v8962_v35 = vld [vmem:[#allocation3 + $0x199] sm:$0xff] }
 0x91d   :  { %v17174_v33 = vpop.f32.mrf.mxu1 }
 0x91e   :  { %19316 = vst [vmem:[#allocation44_spill] sm:$0xff] %v17174_v33  ;;  %v9474_v33 = vld [vmem:[#allocation3 + $0xb2] sm:$0xff]  ;;  %v17190_v56 = vpop.f32.mrf.mxu0 }
 0x920   :  { %12932 = vmatmul.msk.f32.gmra.mxu1 %vm5168_vm3, %v9472_v29  ;;  %12888 = vmatmul.msk.f32.gmra.mxu0 %vm5168_vm3, %v8961_v47  ;;  %v8963_v29 = vld [vmem:[#allocation3 + $0x1a1] sm:$0xff] }
 0x921   :  { %v9475_v47 = vld [vmem:[#allocation3 + $0xc2] sm:$0xff] }
 0x925   :  { %v17180_v57 = vpop.f32.mrf.mxu1 }
 0x926   :  { %19317 = vst [vmem:[#allocation19_spill] sm:$0xff] %v17180_v57  ;;  %v17196_v57 = vpop.f32.mrf.mxu0 }
 0x928   :  { %12933 = vmatmul.msk.f32.gmra.mxu1 %vm5168_vm3, %v9473_v26  ;;  %12889 = vmatmul.msk.f32.gmra.mxu0 %vm5168_vm3, %v8962_v35  ;;  %v8964_v26 = vld [vmem:[#allocation3 + $0x1e1] sm:$0xff]  ;;  %v9476_v35 = vld [vmem:[#allocation3 + $0xca] sm:$0xff] }
 0x92d   :  { %v17186_v45 = vpop.f32.mrf.mxu1 }
 0x92e   :  { %19318 = vst [vmem:[#allocation37_spill] sm:$0xff] %v17186_v45  ;;  %v17204_v61 = vpop.f32.mrf.mxu0 }
 0x930   :  { %12934 = vmatmul.msk.f32.gmra.mxu1 %vm5168_vm3, %v9474_v33  ;;  %12890 = vmatmul.msk.f32.gmra.mxu0 %vm5168_vm3, %v8963_v29  ;;  %v8965_v33 = vld [vmem:[#allocation3 + $0x1e9] sm:$0xff]  ;;  %v9477_v29 = vld [vmem:[#allocation3 + $0xda] sm:$0xff] }
 0x935   :  { %v17192_v4 = vpop.f32.mrf.mxu1 }
 0x936   :  { %19319 = vst [vmem:[#allocation62_spill] sm:$0xff] %v17192_v4 }
 0x938   :  { %12935 = vmatmul.msk.f32.gmra.mxu1 %vm5168_vm3, %v9475_v47  ;;  %12891 = vmatmul.msk.f32.gmra.mxu0 %vm5168_vm3, %v8964_v26  ;;  %v8966_v47 = vld [vmem:[#allocation3 + $0x1f9] sm:$0xff]  ;;  %v17211_v26 = vpop.f32.mrf.mxu0 }
 0x939   :  { %19323 = vst [vmem:[#allocation61_spill] sm:$0xff] %v17211_v26 }
 0x93d   :  { %v17198_v44 = vpop.f32.mrf.mxu1 }
 0x93e   :  { %19320 = vst [vmem:[#allocation45_spill] sm:$0xff] %v17198_v44  ;;  %v9478_v44 = vld [vmem:[#allocation3 + $0xe2] sm:$0xff] }
 0x940   :  { %12936 = vmatmul.msk.f32.gmra.mxu1 %vm5168_vm3, %v9476_v35  ;;  %12892 = vmatmul.msk.f32.gmra.mxu0 %vm5168_vm3, %v8965_v33  ;;  %v8967_v35 = vld [vmem:[#allocation3 + $0x201] sm:$0xff]  ;;  %v17218_v33 = vpop.f32.mrf.mxu0 }
 0x941   :  { %19324 = vst [vmem:[#allocation65_spill] sm:$0xff] %v17218_v33 }
 0x945   :  { %v17202_v45 = vpop.f32.mrf.mxu1 }
 0x946   :  { %19321 = vst [vmem:[#allocation21_spill] sm:$0xff] %v17202_v45  ;;  %v9479_v45 = vld [vmem:[#allocation3 + $0xf2] sm:$0xff] }
 0x948   :  { %12937 = vmatmul.msk.f32.gmra.mxu1 %vm5168_vm3, %v9477_v29  ;;  %12893 = vmatmul.msk.f32.gmra.mxu0 %vm5168_vm3, %v8966_v47  ;;  %v8968_v29 = vld [vmem:[#allocation3 + $0x211] sm:$0xff]  ;;  %v9480_v47 = vld [vmem:[#allocation3 + $0xfa] sm:$0xff] }
 0x94d   :  { %v17208_v4 = vpop.f32.mrf.mxu1 }
 0x94e   :  { %19322 = vst [vmem:[#allocation38_spill] sm:$0xff] %v17208_v4  ;;  %v17224_v4 = vpop.f32.mrf.mxu0 }
 0x94f   :  { %19325 = vst [vmem:[#allocation46_spill] sm:$0xff] %v17224_v4 }
 0x950   :  { %12938 = vmatmul.msk.f32.gmra.mxu1 %vm5168_vm3, %v9478_v44  ;;  %12894 = vmatmul.msk.f32.gmra.mxu0 %vm5168_vm3, %v8967_v35  ;;  %v8969_v44 = vld [vmem:[#allocation3 + $0x219] sm:$0xff]  ;;  %v9481_v35 = vld [vmem:[#allocation3 + $0x10a] sm:$0xff] }
 0x955   :  { %v17214_v43 = vpop.f32.mrf.mxu1 }
 0x956   :  { %v17232_v37 = vpop.f32.mrf.mxu0 }
 0x957   :  { %19326 = vst [vmem:[#allocation105_spill] sm:$0xff] %v17232_v37  ;;  %v8975_v37 = vld [vmem:[#allocation3 + $0x261] sm:$0xff] }
 0x958   :  { %12939 = vmatmul.msk.f32.gmra.mxu1 %vm5168_vm3, %v9479_v45  ;;  %12895 = vmatmul.msk.f32.gmra.mxu0 %vm5168_vm3, %v8968_v29  ;;  %v8970_v45 = vld [vmem:[#allocation3 + $0x229] sm:$0xff]  ;;  %v9482_v29 = vld [vmem:[#allocation3 + $0x112] sm:$0xff] }
 0x95d   :  { %v17220_v19 = vpop.f32.mrf.mxu1 }
 0x95e   :  { %v17239_v12 = vpop.f32.mrf.mxu0 }
 0x95f   :  { %19327 = vst [vmem:[#allocation106_spill] sm:$0xff] %v17239_v12  ;;  %v9487_v12 = vld [vmem:[#allocation3 + $0x152] sm:$0xff] }
 0x960   :  { %12940 = vmatmul.msk.f32.gmra.mxu1 %vm5168_vm3, %v9480_v47  ;;  %12896 = vmatmul.msk.f32.gmra.mxu0 %vm5168_vm3, %v8969_v44  ;;  %v8971_v47 = vld [vmem:[#allocation3 + $0x231] sm:$0xff]  ;;  %v9483_v44 = vld [vmem:[#allocation3 + $0x122] sm:$0xff] }
 0x965   :  { %v17226_v53 = vpop.f32.mrf.mxu1 }
 0x968   :  { %12941 = vmatmul.msk.f32.gmra.mxu1 %vm5168_vm3, %v9481_v35  ;;  %12897 = vmatmul.msk.f32.gmra.mxu0 %vm5168_vm3, %v8970_v45  ;;  %v8972_v35 = vld [vmem:[#allocation3 + $0x241] sm:$0xff]  ;;  %v17246_v45 = vpop.f32.mrf.mxu0 }
 0x969   :  { %19328 = vst [vmem:[#allocation107_spill] sm:$0xff] %v17246_v45 }
 0x96d   :  { %v17230_v40 = vpop.f32.mrf.mxu1 }
 0x970   :  { %12942 = vmatmul.msk.f32.gmra.mxu1 %vm5168_vm3, %v9482_v29  ;;  %12898 = vmatmul.msk.f32.gmra.mxu0 %vm5168_vm3, %v8971_v47  ;;  %v8973_v29 = vld [vmem:[#allocation3 + $0x249] sm:$0xff]  ;;  %v9485_v47 = vld [vmem:[#allocation3 + $0x13a] sm:$0xff]  ;;  %v17252_v33 = vpop.f32.mrf.mxu0 }
 0x971   :  { %19329 = vst [vmem:[#allocation108_spill] sm:$0xff] %v17252_v33  ;;  %v8979_v33 = vld [vmem:[#allocation3 + $0x291] sm:$0xff] }
 0x975   :  { %v17236_v1 = vpop.f32.mrf.mxu1 }
 0x978   :  { %12943 = vmatmul.msk.f32.gmra.mxu1 %vm5168_vm3, %v9483_v44  ;;  %12899 = vmatmul.msk.f32.gmra.mxu0 %vm5168_vm3, %v8972_v35  ;;  %v8974_v44 = vld [vmem:[#allocation3 + $0x259] sm:$0xff]  ;;  %v9486_v35 = vld [vmem:[#allocation3 + $0x142] sm:$0xff]  ;;  %v17260_v51 = vpop.f32.mrf.mxu0 }
 0x979   :  { %19330 = vst [vmem:[#allocation109_spill] sm:$0xff] %v17260_v51 }
 0x97d   :  { %v17242_v21 = vpop.f32.mrf.mxu1 }
 0x980   :  { %12944 = vmatmul.msk.f32.gmra.mxu1 %vm5168_vm3, %v9484_v38  ;;  %12900 = vmatmul.msk.f32.gmra.mxu0 %vm5168_vm3, %v8973_v29  ;;  %v9407_v38 = vadd.f32 %v17155_v34, %v16634_v46  ;;  %v8977_v46 = vld [vmem:[#allocation3 + $0x279] sm:$0xff] }
 0x985   :  { %v17248_v26 = vpop.f32.mrf.mxu1 }
 0x988   :  { %12945 = vmatmul.msk.f32.gmra.mxu1 %vm5168_vm3, %v9485_v47  ;;  %12901 = vmatmul.msk.f32.gmra.mxu0 %vm5168_vm3, %v8974_v44  ;;  %v17269_v44 = vpop.f32.mrf.mxu0 }
 0x98d   :  { %v17254_v4 = vpop.f32.mrf.mxu1 }
 0x990   :  { %12946 = vmatmul.msk.f32.gmra.mxu1 %vm5168_vm3, %v9486_v35  ;;  %12902 = vmatmul.msk.f32.gmra.mxu0 %vm5168_vm3, %v8975_v37  ;;  %v9488_v35 = vld [vmem:[#allocation3 + $0x15a] sm:$0xff]  ;;  %v9489_v37 = vld [vmem:[#allocation3 + $0x16a] sm:$0xff] }
 0x995   :  { %v9762_v29 = vpop.f32.mrf.mxu1 }
 0x996   :  { %v17263_v47 = vadd.f32 %v9762_v29, %v9407_v38  ;;  %v17274_v38 = vpop.f32.mrf.mxu0 }
 0x997   :  { %19331 = vst [vmem:[#allocation110_spill] sm:$0xff] %v17274_v38  ;;  %v9493_v38 = vld [vmem:[#allocation3 + $0x19a] sm:$0xff] }
 0x998   :  { %12947 = vmatmul.msk.f32.gmra.mxu1 %vm5168_vm3, %v9487_v12  ;;  %12903 = vmatmul.msk.f32.gmra.mxu0 %vm5168_vm3, %v8976_v63  ;;  %v8978_v12 = vld [vmem:[#allocation3 + $0x289] sm:$0xff] }
 0x99d   :  { %v17266_v45 = vpop.f32.mrf.mxu1 }
 0x99e   :  { %v17278_v63 = vpop.f32.mrf.mxu0 }
 0x99f   :  { %19332 = vst [vmem:[#allocation111_spill] sm:$0xff] %v17278_v63 }
 0x9a0   :  { %12948 = vmatmul.msk.f32.gmra.mxu1 %vm5168_vm3, %v9488_v35  ;;  %12904 = vmatmul.msk.f32.gmra.mxu0 %vm5168_vm3, %v8977_v46  ;;  %v8980_v46 = vld [vmem:[#allocation3 + $0x2a1] sm:$0xff] }
 0x9a5   :  { %v9768_v34 = vpop.f32.mrf.mxu1 }
 0x9a8   :  { %12949 = vmatmul.msk.f32.gmra.mxu1 %vm5168_vm3, %v9489_v37  ;;  %12905 = vmatmul.msk.f32.gmra.mxu0 %vm5168_vm3, %v8978_v12  ;;  %v17282_v37 = vpop.f32.mrf.mxu0  ;;  %v8981_v12 = vld [vmem:[#allocation3 + $0x2a9] sm:$0xff] }
 0x9a9   :  { %19333 = vst [vmem:[#allocation112_spill] sm:$0xff] %v17282_v37  ;;  %v9412_v37 = vadd.f32 %v17190_v56, %v16704_v22  ;;  %v9409_v22 = vadd.f32 %v17168_v60, %v16662_v27  ;;  %v9495_v56 = vld [vmem:[#allocation3 + $0x1e2] sm:$0xff]  ;;  %v8984_v27 = vld [vmem:[#allocation3 + $0x2d1] sm:$0xff] }
 0x9ad   :  { %v9771_v29 = vpop.f32.mrf.mxu1 }
 0x9b0   :  { %12950 = vmatmul.msk.f32.gmra.mxu1 %vm5168_vm3, %v9490_v17  ;;  %12906 = vmatmul.msk.f32.gmra.mxu0 %vm5168_vm3, %v8979_v33  ;;  %v17287_v16 = vpop.f32.mrf.mxu0  ;;  %v8982_v33 = vld [vmem:[#allocation3 + $0x2b9] sm:$0xff] }
 0x9b5   :  { %v9774_v35 = vpop.f32.mrf.mxu1 }
 0x9b8   :  { %12951 = vmatmul.msk.f32.gmra.mxu1 %vm5168_vm3, %v9491_v54  ;;  %12907 = vmatmul.msk.f32.gmra.mxu0 %vm5168_vm3, %v8980_v46  ;;  %v9414_v54 = vadd.f32 %v17204_v61, %v16730_v62  ;;  %v9411_v62 = vadd.f32 %v17183_v2, %v16690_v23  ;;  %v9408_v23 = vadd.f32 %v17162_v15, %v16648_v42  ;;  %v9496_v15 = vld [vmem:[#allocation3 + $0x1ea] sm:$0xff] }
 0x9b9   :  { %v9406_v2 = vadd.f32 %v17148_v58, %v16620_v8  ;;  %v9405_v42 = vadd.f32 %v17140_v20, %v16606_v52  ;;  %v19334_v8 = vld [vmem:[#allocation28_spill] sm:$0xff] }
 0x9ba   :  { %v9942_v13 = vadd.f32 %v9774_v35, %v9411_v62  ;;  %v9403_v58 = vadd.f32 %v17128_v30, %v19334_v8  ;;  %v19335_v52 = vld [vmem:[#allocation52_spill] sm:$0xff]  ;;  %v19337_v35 = vld [vmem:[#allocation27_spill] sm:$0xff] }
 0x9bb   :  { %v9508_v8 = vld [vmem:[#allocation3 + $0x27a] sm:$0xff] }
 0x9bc   :  { %v9934_v20 = vadd.f32 %v17236_v1, %v9403_v58 }
 0x9bd   :  { %v9777_v51 = vpop.f32.mrf.mxu1 }
 0x9be   :  { %v9943_v61 = vadd.f32 %v9777_v51, %v9412_v37  ;;  %v9940_v51 = vadd.f32 %v9768_v34, %v9409_v22  ;;  %v9936_v34 = vadd.f32 %v17248_v26, %v9405_v42  ;;  %v19338_v37 = vld [vmem:[#allocation51_spill] sm:$0xff]  ;;  %v9423_v22 = vadd.f32 %v17269_v44, %v16856_v49  ;;  %v8994_v44 = vld [vmem:[#allocation3 + $0x349] sm:$0xff] }
 0x9bf   :  { %v9506_v42 = vld [vmem:[#allocation3 + $0x262] sm:$0xff] }
 0x9c0   :  { %12952 = vmatmul.msk.f32.gmra.mxu1 %vm5168_vm3, %v9492_v6  ;;  %12908 = vmatmul.msk.f32.gmra.mxu0 %vm5168_vm3, %v8981_v12  ;;  %v9413_v6 = vadd.f32 %v17196_v57, %v16717_v41  ;;  %v8983_v41 = vld [vmem:[#allocation3 + $0x2c1] sm:$0xff] }
 0x9c5   :  { %v9780_v17 = vpop.f32.mrf.mxu1 }
 0x9c6   :  { %v9944_v12 = vadd.f32 %v9780_v17, %v9413_v6  ;;  %v9399_v17 = vadd.f32 %v17088_v50, %v19338_v37 }
 0x9c8   :  { %12953 = vmatmul.msk.f32.gmra.mxu1 %vm5168_vm3, %v9493_v38  ;;  %12909 = vmatmul.msk.f32.gmra.mxu0 %vm5168_vm3, %v8982_v33  ;;  %v17298_v38 = vpop.f32.mrf.mxu0  ;;  %v9410_v33 = vadd.f32 %v17176_v36, %v16676_v7  ;;  %v9939_v7 = vadd.f32 %v17266_v45, %v9408_v23  ;;  %v9404_v45 = vadd.f32 %v17134_v11, %v16592_v28  ;;  %v19336_v11 = vld [vmem:[#allocation78_spill] sm:$0xff]  ;;  %v9503_v23 = vld [vmem:[#allocation3 + $0x242] sm:$0xff] }
 0x9c9   :  { %v9401_v26 = vadd.f32 %v17111_v3, %v19336_v11  ;;  %v9930_v3 = vadd.f32 %v17214_v43, %v9399_v17  ;;  %v19342_v17 = vld [vmem:[#allocation33_spill] sm:$0xff] }
 0x9cb   :  { %v9932_v1 = vadd.f32 %v17226_v53, %v9401_v26  ;;  %v9498_v53 = vld [vmem:[#allocation3 + $0x202] sm:$0xff]  ;;  %v9510_v26 = vld [vmem:[#allocation3 + $0x292] sm:$0xff] }
 0x9cd   :  { %v9783_v63 = vpop.f32.mrf.mxu1 }
 0x9ce   :  { %v9945_v46 = vadd.f32 %v9783_v63, %v9414_v54 }
 0x9d0   :  { %12954 = vmatmul.msk.f32.gmra.mxu1 %vm5168_vm3, %v9494_v10  ;;  %10062 = vmatpush.msrb.mxu2 %v9945_v46  ;;  %v9941_v10 = vadd.f32 %v9771_v29, %v9410_v33  ;;  %v17313_v36 = vpop.f32.mrf.mxu0  ;;  %v9935_v29 = vadd.f32 %v17242_v21, %v9404_v45  ;;  %v9497_v21 = vld [vmem:[#allocation3 + $0x1fa] sm:$0xff]  ;;  %v9507_v45 = vld [vmem:[#allocation3 + $0x272] sm:$0xff] }
 0x9d1   :  { %12910 = vmatmul.msk.f32.gmra.mxu0 %vm5168_vm3, %v8983_v41 }
 0x9d2   :  { %10063 = vmatpush.msrb.mxu2 %v9944_v12  ;;  %v9500_v12 = vld [vmem:[#allocation3 + $0x21a] sm:$0xff] }
 0x9d4   :  { %10064 = vmatpush.msrb.mxu2 %v9943_v61 }
 0x9d5   :  { %v17304_v57 = vpop.f32.mrf.mxu1 }
 0x9d6   :  { %10065 = vmatpush.msrb.mxu2 %v9942_v13  ;;  %v9937_v13 = vadd.f32 %v17254_v4, %v9406_v2  ;;  %v9402_v4 = vadd.f32 %v17122_v14, %v19335_v52  ;;  %v9400_v14 = vadd.f32 %v17100_v32, %v19337_v35  ;;  %v9509_v52 = vld [vmem:[#allocation3 + $0x28a] sm:$0xff] }
 0x9d8   :  { %12955 = vmatmul.msk.f32.gmra.mxu1 %vm5168_vm3, %v9495_v56  ;;  %10066 = vmatpush.msrb.mxu2 %v9941_v10  ;;  %v17334_v63 = vpop.f32.mrf.mxu0  ;;  %v9933_v30 = vadd.f32 %v17230_v40, %v9402_v4  ;;  %v9931_v54 = vadd.f32 %v17220_v19, %v9400_v14  ;;  %v8986_v40 = vld [vmem:[#allocation3 + $0x2e9] sm:$0xff]  ;;  %v9499_v19 = vld [vmem:[#allocation3 + $0x212] sm:$0xff]  ;;  %v9427_v14 = vadd.f32 %v17287_v16, %v16909_v55 }
 0x9d9   :  { %12911 = vmatmul.msk.f32.gmra.mxu0 %vm5168_vm3, %v8984_v27  ;;  %v9430_v4 = vadd.f32 %v17334_v63, %v16942_v0  ;;  %v19339_v0 = vld [vmem:[#allocation87_spill] sm:$0xff]  ;;  %v19340_v63 = vld [vmem:[#allocation112_spill] sm:$0xff] }
 0x9da   :  { %10067 = vmatpush.msrb.mxu2 %v9940_v51  ;;  %v9426_v37 = vadd.f32 %v19340_v63, %v19339_v0  ;;  %v19359_v0 = vld [vmem:[#allocation65_spill] sm:$0xff] }
 0x9dc   :  { %10068 = vmatpush.msrb.mxu2 %v9939_v7 }
 0x9dd   :  { %v17317_v60 = vpop.f32.mrf.mxu1 }
 0x9de   :  { %10069 = vmatpush.msrb.mxu2 %v17263_v47  ;;  %v8985_v47 = vld [vmem:[#allocation3 + $0x2d9] sm:$0xff] }
 0x9e0   :  { %12956 = vmatmul.msk.f32.gmra.mxu1 %vm5168_vm3, %v9496_v15  ;;  %10070 = vmatpush.msrb.mxu2 %v9937_v13  ;;  %v17353_v32 = vpop.f32.mrf.mxu0 }
 0x9e1   :  { %12912 = vmatmul.msk.f32.gmra.mxu0 %vm5168_vm3, %v8985_v47  ;;  %v9429_v47 = vadd.f32 %v17313_v36, %v16931_v48 }
 0x9e2   :  { %10071 = vmatpush.msrb.mxu2 %v9936_v34 }
 0x9e4   :  { %10072 = vmatpush.msrb.mxu2 %v9935_v29 }
 0x9e5   :  { %v17336_v28 = vpop.f32.mrf.mxu1 }
 0x9e6   :  { %10073 = vmatpush.msrb.mxu2 %v9934_v20 }
 0x9e8   :  { %12957 = vmatmul.msk.f32.gmra.mxu1 %vm5168_vm3, %v9497_v21  ;;  %10074 = vmatpush.msrb.mxu2 %v9933_v30  ;;  %v17361_v43 = vpop.f32.mrf.mxu0  ;;  %v9428_v30 = vadd.f32 %v17298_v38, %v16920_v59  ;;  %v19343_v59 = vld [vmem:[#allocation111_spill] sm:$0xff] }
 0x9e9   :  { %12913 = vmatmul.msk.f32.gmra.mxu0 %vm5168_vm3, %v8986_v40  ;;  %v9425_v38 = vadd.f32 %v19343_v59, %v19342_v17  ;;  %v19344_v40 = vld [vmem:[#allocation84_spill] sm:$0xff] }
 0x9ea   :  { %10075 = vmatpush.msrb.mxu2 %v9932_v1 }
 0x9ec   :  { %10076 = vmatpush.msrb.mxu2 %v9931_v54 }
 0x9ed   :  { %v17350_v6 = vpop.f32.mrf.mxu1 }
 0x9ee   :  { %10077 = vmatpush.msrb.mxu2 %v9930_v3  ;;  %v9511_v3 = vld [vmem:[#allocation3 + $0x2a2] sm:$0xff] }
 0x9f0   :  { %12958 = vmatmul.msk.f32.gmra.mxu1 %vm5168_vm3, %v9498_v53  ;;  %v17368_v62 = vpop.f32.mrf.mxu0  ;;  %v19345_v53 = vld [vmem:[#allocation110_spill] sm:$0xff] }
 0x9f1   :  { %12914 = vmatmul.msk.f32.gmra.mxu0 %vm5168_vm3, %v17045_v39  ;;  %v9501_v39 = vld [vmem:[#allocation3 + $0x22a] sm:$0xff] }
 0x9f5   :  { %v17356_v46 = vpop.f32.mrf.mxu1 }
 0x9f8   :  { %12959 = vmatmul.msk.f32.gmra.mxu1 %vm5168_vm3, %v9499_v19  ;;  %v17375_v33 = vpop.f32.mrf.mxu0  ;;  %v9424_v19 = vadd.f32 %v19345_v53, %v19344_v40  ;;  %v9514_v53 = vld [vmem:[#allocation3 + $0x2c2] sm:$0xff] }
 0x9f9   :  { %12915 = vmatmul.msk.f32.gmra.mxu0 %vm5168_vm3, %v17057_v9  ;;  %v9502_v9 = vld [vmem:[#allocation3 + $0x232] sm:$0xff] }
 0x9fd   :  { %v17363_v50 = vpop.f32.mrf.mxu1 }
 0xa00   :  { %12960 = vmatmul.msk.f32.gmra.mxu1 %vm5168_vm3, %v9500_v12  ;;  %v17388_v56 = vpop.f32.mrf.mxu0 }
 0xa01   :  { %12916 = vmatmul.msk.f32.gmra.mxu0 %vm5168_vm3, %v17069_v31 }
 0xa05   :  { %v17370_v61 = vpop.f32.mrf.mxu1 }
 0xa08   :  { %12961 = vmatmul.msk.f32.gmra.mxu1 %vm5168_vm3, %v9501_v39  ;;  %v17394_v7 = vpop.f32.mrf.mxu0  ;;  %v9994_v39 = vld [vmem:[%s18910_s7] sm:$0xff] }
 0xa09   :  { %12917 = vmatmul.msk.f32.gmra.mxu0 %vm5168_vm3, %v17081_v5  ;;  %v9504_v5 = vld [vmem:[#allocation3 + $0x24a] sm:$0xff]  ;;  %10078 = vmatmul.f32.vlgmr.msrb.gmra.mxu2 %v9994_v39 }
 0xa0d   :  { %v17377_v41 = vpop.f32.mrf.mxu1 }
 0xa10   :  { %12962 = vmatmul.msk.f32.gmra.mxu1 %vm5168_vm3, %v9502_v9  ;;  %v17399_v2 = vpop.f32.mrf.mxu0  ;;  %v19346_v9 = vld [vmem:[#allocation82_spill] sm:$0xff] }
 0xa11   :  { %12918 = vmatmul.msk.f32.gmra.mxu0 %vm5168_vm3, %v17093_v25  ;;  %v9505_v25 = vld [vmem:[#allocation3 + $0x25a] sm:$0xff] }
 0xa15   :  { %v9810_v10 = vpop.f32.mrf.mxu1 }
 0xa16   :  { %v17386_v31 = vadd.f32 %v9810_v10, %v9423_v22  ;;  %v19347_v22 = vld [vmem:[#allocation109_spill] sm:$0xff] }
 0xa17   :  { %v9422_v10 = vadd.f32 %v19347_v22, %v19346_v9  ;;  %v10010_v9 = vld [vmem:[%s18910_s7 + $0x80] sm:$0xff] }
 0xa18   :  { %12963 = vmatmul.msk.f32.gmra.mxu1 %vm5168_vm3, %v9503_v23  ;;  %v17403_v13 = vpop.f32.mrf.mxu0 }
 0xa19   :  { %12919 = vmatmul.msk.f32.gmra.mxu0 %vm5168_vm3, %v17105_v18  ;;  %v8995_v18 = vld [vmem:[#allocation3 + $0x351] sm:$0xff] }
 0xa1d   :  { %v9813_v51 = vpop.f32.mrf.mxu1 }
 0xa1e   :  { %v9955_v16 = vadd.f32 %v9813_v51, %v9424_v19  ;;  %v9512_v51 = vld [vmem:[#allocation3 + $0x2aa] sm:$0xff] }
 0xa20   :  { %12964 = vmatmul.msk.f32.gmra.mxu1 %vm5168_vm3, %v9504_v5  ;;  %v19348_v5 = vld [vmem:[#allocation31_spill] sm:$0xff] }
 0xa21   :  { %12920 = vmatmul.msk.f32.gmra.mxu0 %vm5168_vm3, %v17116_v24  ;;  %v17407_v24 = vpop.f32.mrf.mxu2 }
 0xa25   :  { %v9816_v49 = vpop.f32.mrf.mxu1 }
 0xa26   :  { %v9956_v12 = vadd.f32 %v9816_v49, %v9425_v38  ;;  %v19349_v49 = vld [vmem:[#allocation108_spill] sm:$0xff]  ;;  %v17475_v38 = vpop.f32.mrf.mxu3 }
 0xa28   :  { %12965 = vmatmul.msk.f32.gmra.mxu1 %vm5168_vm3, %v9505_v25  ;;  %v9421_v25 = vadd.f32 %v19349_v49, %v19348_v5  ;;  %v9516_v5 = vld [vmem:[#allocation3 + $0x2da] sm:$0xff] }
 0xa29   :  { %12921 = vmatmul.msk.f32.gmra.mxu0 %vm5168_vm3, %v8994_v44  ;;  %v17410_v29 = vpop.f32.mrf.mxu2  ;;  %v9953_v44 = vadd.f32 %v17377_v41, %v9422_v10  ;;  %v9998_v41 = vld [vmem:[%s18910_s7 + $0x20] sm:$0xff] }
 0xa2a   :  { %10081 = vmatmul.f32.gmra.mxu2 %v9998_v41  ;;  %v10022_v41 = vld [vmem:[%s18910_s7 + $0xe0] sm:$0xff] }
 0xa2d   :  { %v9819_v27 = vpop.f32.mrf.mxu1 }
 0xa2e   :  { %v9957_v54 = vadd.f32 %v9819_v27, %v9426_v37  ;;  %v19350_v27 = vld [vmem:[#allocation81_spill] sm:$0xff]  ;;  %v17491_v19 = vpop.f32.mrf.mxu3 }
 0xa30   :  { %12966 = vmatmul.msk.f32.gmra.mxu1 %vm5168_vm3, %v9506_v42  ;;  %v19351_v42 = vld [vmem:[#allocation107_spill] sm:$0xff] }
 0xa31   :  { %12922 = vmatmul.msk.f32.gmra.mxu0 %vm5168_vm3, %v8995_v18  ;;  %v17420_v35 = vpop.f32.mrf.mxu2  ;;  %v9420_v18 = vadd.f32 %v19351_v42, %v19350_v27  ;;  %v9517_v27 = vld [vmem:[#allocation3 + $0x2ea] sm:$0xff] }
 0xa35   :  { %v9822_v15 = vpop.f32.mrf.mxu1 }
 0xa36   :  { %v9958_v48 = vadd.f32 %v9822_v15, %v9427_v14  ;;  %v9952_v15 = vadd.f32 %v17370_v61, %v9421_v25  ;;  %v9513_v14 = vld [vmem:[#allocation3 + $0x2ba] sm:$0xff]  ;;  %v17505_v10 = vpop.f32.mrf.mxu3 }
 0xa38   :  { %12967 = vmatmul.msk.f32.gmra.mxu1 %vm5168_vm3, %v9507_v45  ;;  %v19352_v45 = vld [vmem:[#allocation30_spill] sm:$0xff] }
 0xa39   :  { %v17433_v55 = vpop.f32.mrf.mxu2 }
 0xa3d   :  { %v9825_v34 = vpop.f32.mrf.mxu1 }
 0xa3e   :  { %v9959_v1 = vadd.f32 %v9825_v34, %v9428_v30  ;;  %v19353_v34 = vld [vmem:[#allocation106_spill] sm:$0xff]  ;;  %v17518_v42 = vpop.f32.mrf.mxu3 }
 0xa40   :  { %12968 = vmatmul.msk.f32.gmra.mxu1 %vm5168_vm3, %v9508_v8  ;;  %v9419_v8 = vadd.f32 %v19353_v34, %v19352_v45 }
 0xa42   :  { %v9950_v61 = vadd.f32 %v17356_v46, %v9419_v8  ;;  %v19360_v46 = vld [vmem:[#allocation53_spill] sm:$0xff] }
 0xa43   :  { %v9518_v8 = vld [vmem:[#allocation3 + $0x2f2] sm:$0xff] }
 0xa45   :  { %v9828_v58 = vpop.f32.mrf.mxu1 }
 0xa46   :  { %v9960_v21 = vadd.f32 %v9828_v58, %v9429_v47  ;;  %v9951_v58 = vadd.f32 %v17363_v50, %v9420_v18  ;;  %v17461_v47 = vpop.f32.mrf.mxu2  ;;  %v19357_v50 = vld [vmem:[#allocation46_spill] sm:$0xff] }
 0xa48   :  { %12969 = vmatmul.msk.f32.gmra.mxu1 %vm5168_vm3, %v9509_v52  ;;  %v17453_v52 = vpop.f32.mrf.mxu0 }
 0xa4d   :  { %v9831_v20 = vpop.f32.mrf.mxu1 }
 0xa4e   :  { %v9961_v11 = vadd.f32 %v9831_v20, %v9430_v4  ;;  %v19355_v4 = vld [vmem:[#allocation105_spill] sm:$0xff]  ;;  %v17485_v40 = vpop.f32.mrf.mxu2 }
 0xa50   :  { %12970 = vmatmul.msk.f32.gmra.mxu1 %vm5168_vm3, %v9510_v26  ;;  %10127 = vmatpush.msrb.mxu3 %v9961_v11  ;;  %v19356_v26 = vld [vmem:[#allocation79_spill] sm:$0xff] }
 0xa51   :  { %v9417_v30 = vadd.f32 %v19357_v50, %v19356_v26  ;;  %v10026_v26 = vld [vmem:[%s18910_s7 + $0x100] sm:$0xff] }
 0xa52   :  { %10128 = vmatpush.msrb.mxu3 %v9960_v21 }
 0xa53   :  { %v9948_v37 = vadd.f32 %v17336_v28, %v9417_v30 }
 0xa54   :  { %10129 = vmatpush.msrb.mxu3 %v9959_v1  ;;  %v19358_v1 = vld [vmem:[#allocation29_spill] sm:$0xff] }
 0xa55   :  { %v17426_v36 = vpop.f32.mrf.mxu1  ;;  %v9416_v63 = vadd.f32 %v19359_v0, %v19358_v1  ;;  %v10030_v0 = vld [vmem:[%s18910_s7 + $0x120] sm:$0xff] }
 0xa56   :  { %19341 = vst [vmem:[#allocation28_spill] sm:$0xff] %v17426_v36  ;;  %10130 = vmatpush.msrb.mxu3 %v9958_v48  ;;  %v19361_v48 = vld [vmem:[#allocation61_spill] sm:$0xff]  ;;  %v17498_v39 = vpop.f32.mrf.mxu2 }
 0xa57   :  { %v9415_v17 = vadd.f32 %v19361_v48, %v19360_v46  ;;  %v9947_v59 = vadd.f32 %v17317_v60, %v9416_v63  ;;  %v10006_v60 = vld [vmem:[%s18910_s7 + $0x60] sm:$0xff] }
 0xa58   :  { %12971 = vmatmul.msk.f32.gmra.mxu1 %vm5168_vm3, %v9511_v3  ;;  %10131 = vmatpush.msrb.mxu3 %v9957_v54  ;;  %v17481_v3 = vpop.f32.mrf.mxu0  ;;  %v9521_v46 = vld [vmem:[#allocation3 + $0x31a] sm:$0xff] }
 0xa59   :  { %v9946_v54 = vadd.f32 %v17304_v57, %v9415_v17 }
 0xa5a   :  { %10132 = vmatpush.msrb.mxu3 %v9956_v12 }
 0xa5c   :  { %10133 = vmatpush.msrb.mxu3 %v9955_v16  ;;  %v9515_v16 = vld [vmem:[#allocation3 + $0x2d2] sm:$0xff] }
 0xa5d   :  { %v17440_v23 = vpop.f32.mrf.mxu1 }
 0xa5e   :  { %10134 = vmatpush.msrb.mxu3 %v17386_v31  ;;  %v19354_v31 = vld [vmem:[#allocation54_spill] sm:$0xff]  ;;  %v17510_v25 = vpop.f32.mrf.mxu2 }
 0xa5f   :  { %v9418_v20 = vadd.f32 %v19355_v4, %v19354_v31  ;;  %19362 = vst [vmem:[#allocation52_spill] sm:$0xff] %v17510_v25 }
 0xa60   :  { %12972 = vmatmul.msk.f32.gmra.mxu1 %vm5168_vm3, %v9512_v51  ;;  %10135 = vmatpush.msrb.mxu3 %v9953_v44  ;;  %v17495_v12 = vpop.f32.mrf.mxu0  ;;  %v10014_v44 = vld [vmem:[%s18910_s7 + $0xa0] sm:$0xff] }
 0xa61   :  { %v9949_v21 = vadd.f32 %v17350_v6, %v9418_v20  ;;  %v10002_v6 = vld [vmem:[%s18910_s7 + $0x40] sm:$0xff] }
 0xa62   :  { %10136 = vmatpush.msrb.mxu3 %v9952_v15  ;;  %10084 = vmatmul.f32.gmra.mxu2 %v10002_v6  ;;  %v10018_v15 = vld [vmem:[%s18910_s7 + $0xc0] sm:$0xff] }
 0xa64   :  { %10137 = vmatpush.msrb.mxu3 %v9951_v58  ;;  %v17530_v58 = vpop.f32.mrf.mxu3 }
 0xa65   :  { %v17463_v11 = vpop.f32.mrf.mxu1 }
 0xa66   :  { %10138 = vmatpush.msrb.mxu3 %v9950_v61  ;;  %v17525_v45 = vpop.f32.mrf.mxu2  ;;  %v9519_v61 = vld [vmem:[#allocation3 + $0x302] sm:$0xff] }
 0xa67   :  { %19363 = vst [vmem:[#allocation78_spill] sm:$0xff] %v17525_v45  ;;  %v19381_v45 = vld [vmem:[#allocation32_spill] sm:$0xff] }
 0xa68   :  { %12973 = vmatmul.msk.f32.gmra.mxu1 %vm5168_vm3, %v9513_v14  ;;  %10139 = vmatpush.msrb.mxu3 %v9949_v21  ;;  %v17507_v49 = vpop.f32.mrf.mxu0  ;;  %v9520_v14 = vld [vmem:[#allocation3 + $0x30a] sm:$0xff] }
 0xa6a   :  { %10140 = vmatpush.msrb.mxu3 %v9948_v37  ;;  %10087 = vmatmul.f32.gmra.mxu2 %v10006_v60 }
 0xa6c   :  { %10141 = vmatpush.msrb.mxu3 %v9947_v59  ;;  %v8814_v50 = vpop.f32.mrf.mxu3  ;;  %v10034_v59 = vld [vmem:[%s18910_s7 + $0x140] sm:$0xff] }
 0xa6d   :  { %v17483_v28 = vpop.f32.mrf.mxu1 }
 0xa6e   :  { %10142 = vmatpush.msrb.mxu3 %v9946_v54  ;;  %v17539_v20 = vpop.f32.mrf.mxu2  ;;  %v9522_v54 = vld [vmem:[#allocation3 + $0x322] sm:$0xff] }
 0xa6f   :  { %19364 = vst [vmem:[#allocation27_spill] sm:$0xff] %v17539_v20 }
 0xa70   :  { %12974 = vmatmul.msk.f32.gmra.mxu1 %vm5168_vm3, %v9514_v53  ;;  %v17520_v18 = vpop.f32.mrf.mxu0 }
 0xa72   :  { %10090 = vmatmul.f32.gmra.mxu2 %v10010_v9 }
 0xa74   :  { %v8817_v37 = vpop.f32.mrf.mxu3 }
 0xa75   :  { %v17493_v57 = vpop.f32.mrf.mxu1 }
 0xa76   :  { %v17550_v1 = vpop.f32.mrf.mxu2 }
 0xa77   :  { %19365 = vst [vmem:[#allocation51_spill] sm:$0xff] %v17550_v1  ;;  %v19382_v1 = vld [vmem:[#allocation104_spill] sm:$0xff] }
 0xa78   :  { %12975 = vmatmul.msk.f32.gmra.mxu1 %vm5168_vm3, %v9515_v16  ;;  %v17535_v31 = vpop.f32.mrf.mxu0  ;;  %v10038_v16 = vld [vmem:[%s18910_s7 + $0x160] sm:$0xff] }
 0xa7a   :  { %10093 = vmatmul.f32.gmra.mxu2 %v10014_v44  ;;  %v9523_v44 = vld [vmem:[#allocation3 + $0x332] sm:$0xff] }
 0xa7c   :  { %v17566_v53 = vpop.f32.mrf.mxu3 }
 0xa7d   :  { %v17503_v22 = vpop.f32.mrf.mxu1  ;;  %19367 = vst [vmem:[#allocation112_spill] sm:$0xff] %v17566_v53  ;;  %v19378_v53 = vld [vmem:[#allocation39_spill] sm:$0xff] }
 0xa7e   :  { %v17558_v17 = vpop.f32.mrf.mxu2 }
 0xa7f   :  { %19366 = vst [vmem:[#allocation87_spill] sm:$0xff] %v17558_v17 }
 0xa80   :  { %12976 = vmatmul.msk.f32.gmra.mxu1 %vm5168_vm3, %v9516_v5  ;;  %v17547_v21 = vpop.f32.mrf.mxu0 }
 0xa82   :  { %10096 = vmatmul.f32.gmra.mxu2 %v10018_v15  ;;  %v10042_v15 = vld [vmem:[%s18910_s7 + $0x180] sm:$0xff] }
 0xa85   :  { %v17515_v51 = vpop.f32.mrf.mxu1 }
 0xa86   :  { %v17573_v9 = vpop.f32.mrf.mxu2 }
 0xa87   :  { %19369 = vst [vmem:[#allocation111_spill] sm:$0xff] %v17573_v9 }
 0xa88   :  { %12977 = vmatmul.msk.f32.gmra.mxu1 %vm5168_vm3, %v9517_v27  ;;  %v9348_v48 = vpop.f32.mrf.mxu0  ;;  %v17578_v27 = vpop.f32.mrf.mxu3 }
 0xa89   :  { %19370 = vst [vmem:[#allocation84_spill] sm:$0xff] %v17578_v27 }
 0xa8a   :  { %10099 = vmatmul.f32.gmra.mxu2 %v10022_v41 }
 0xa8d   :  { %v17527_v34 = vpop.f32.mrf.mxu1 }
 0xa90   :  { %12978 = vmatmul.msk.f32.gmra.mxu1 %vm5168_vm3, %v9518_v8  ;;  %v17568_v60 = vpop.f32.mrf.mxu0 }
 0xa91   :  { %19368 = vst [vmem:[#allocation33_spill] sm:$0xff] %v17568_v60  ;;  %v19376_v60 = vld [vmem:[#allocation23_spill] sm:$0xff] }
 0xa92   :  { %10102 = vmatmul.f32.gmra.mxu2 %v10026_v26  ;;  %v9524_v26 = vld [vmem:[#allocation3 + $0x33a] sm:$0xff] }
 0xa95   :  { %v17537_v4 = vpop.f32.mrf.mxu1 }
 0xa98   :  { %12979 = vmatmul.msk.f32.gmra.mxu1 %vm5168_vm3, %v9519_v61  ;;  %v17583_v8 = vpop.f32.mrf.mxu0  ;;  %v17585_v61 = vpop.f32.mrf.mxu2 }
 0xa99   :  { %19371 = vst [vmem:[#allocation110_spill] sm:$0xff] %v17583_v8 }
 0xa9a   :  { %10105 = vmatmul.f32.gmra.mxu2 %v10030_v0  ;;  %19372 = vst [vmem:[#allocation82_spill] sm:$0xff] %v17585_v61  ;;  %v19373_v0 = vld [vmem:[#allocation66_spill] sm:$0xff]  ;;  %v19385_v61 = vld [vmem:[#allocation20_spill] sm:$0xff] }
 0xa9d   :  { %v17545_v30 = vpop.f32.mrf.mxu1 }
 0xaa0   :  { %12980 = vmatmul.msk.f32.gmra.mxu1 %vm5168_vm3, %v9520_v14  ;;  %v10046_v14 = vld [vmem:[%s18910_s7 + $0x1a0] sm:$0xff]  ;;  %v17598_v25 = vpop.f32.mrf.mxu0 }
 0xaa1   :  { %19379 = vst [vmem:[#allocation31_spill] sm:$0xff] %v17598_v25  ;;  %v19387_v25 = vld [vmem:[#allocation83_spill] sm:$0xff] }
 0xaa2   :  { %10108 = vmatmul.f32.gmra.mxu2 %v10034_v59 }
 0xaa5   :  { %v17555_v63 = vpop.f32.mrf.mxu1 }
 0xaa8   :  { %12981 = vmatmul.msk.f32.gmra.mxu1 %vm5168_vm3, %v9521_v46  ;;  %v19374_v46 = vld [vmem:[#allocation85_spill] sm:$0xff] }
 0xaa9   :  { %v7321_v59 = vadd.f32 %v19374_v46, %v19373_v0  ;;  %v19383_v0 = vld [vmem:[#allocation68_spill] sm:$0xff] }
 0xaaa   :  { %10111 = vmatmul.f32.gmra.mxu2 %v10038_v16  ;;  %v19384_v46 = vld [vmem:[#allocation56_spill] sm:$0xff] }
 0xaab   :  { %v7852_v27 = vadd.f32 %v19378_v53, %v7321_v59 }
 0xaad   :  { %v17563_v6 = vpop.f32.mrf.mxu1  ;;  %v8383_v9 = vadd.f32 %v17498_v39, %v7852_v27  ;;  %v19388_v39 = vld [vmem:[#allocation103_spill] sm:$0xff] }
 0xaaf   :  { %v8915_v59 = vadd.f32 %v8817_v37, %v8383_v9 }
 0xab0   :  { %12982 = vmatmul.msk.f32.gmra.mxu1 %vm5168_vm3, %v9522_v54  ;;  %v17593_v54 = vpop.f32.mrf.mxu3 }
 0xab1   :  { %19375 = vst [vmem:[#allocation109_spill] sm:$0xff] %v17593_v54  ;;  %v7318_v54 = vadd.f32 %v19384_v46, %v19383_v0  ;;  %v19390_v0 = vld [vmem:[#allocation55_spill] sm:$0xff] }
 0xab2   :  { %10114 = vmatmul.f32.gmra.mxu2 %v10042_v15  ;;  %v19377_v15 = vld [vmem:[#allocation57_spill] sm:$0xff] }
 0xab3   :  { %v7320_v8 = vadd.f32 %v19377_v15, %v19376_v60  ;;  %v19386_v15 = vld [vmem:[#allocation64_spill] sm:$0xff] }
 0xab4   :  { %v7317_v36 = vadd.f32 %v19387_v25, %v19386_v15 }
 0xab5   :  { %v17575_v5 = vpop.f32.mrf.mxu1  ;;  %v7851_v17 = vadd.f32 %v19382_v1, %v7320_v8  ;;  %v7849_v1 = vadd.f32 %v19388_v39, %v7318_v54  ;;  %v19396_v39 = vld [vmem:[#allocation11_spill] sm:$0xff] }
 0xab7   :  { %v8382_v53 = vadd.f32 %v17485_v40, %v7851_v17  ;;  %v9526_v17 = vld [vmem:[#allocation3 + $0x352] sm:$0xff]  ;;  %v8380_v25 = vadd.f32 %v17433_v55, %v7849_v1 }
 0xab8   :  { %12983 = vmatmul.msk.f32.gmra.mxu1 %vm5168_vm3, %v9523_v44  ;;  %v9525_v44 = vld [vmem:[#allocation3 + $0x34a] sm:$0xff] }
 0xab9   :  { %v8914_v8 = vadd.f32 %v8814_v50, %v8382_v53  ;;  %v19392_v50 = vld [vmem:[#allocation22_spill] sm:$0xff]  ;;  %v8912_v55 = vadd.f32 %v17518_v42, %v8380_v25  ;;  %v10054_v42 = vld [vmem:[%s18910_s7 + $0x1e0] sm:$0xff]  ;;  %v19401_v25 = vld [vmem:[#allocation9_spill] sm:$0xff] }
 0xaba   :  { %10117 = vmatmul.f32.gmra.mxu2 %v10046_v14  ;;  %v17605_v14 = vpop.f32.mrf.mxu2 }
 0xabb   :  { %v9445_v46 = vadd.f32 %v17547_v21, %v8914_v8  ;;  %v17635_v21 = vpop.f32.mrf.mxu0 }
 0xabc   :  { %19395 = vst [vmem:[#allocation108_spill] sm:$0xff] %v17635_v21  ;;  %v19430_v21 = vld [vmem:[#allocation62_spill] sm:$0xff] }
 0xabd   :  { %v9873_v41 = vpop.f32.mrf.mxu1 }
 0xac0   :  { %12984 = vmatmul.msk.f32.gmra.mxu1 %vm5168_vm3, %v9524_v26  ;;  %v19380_v26 = vld [vmem:[#allocation47_spill] sm:$0xff] }
 0xac1   :  { %v7319_v20 = vadd.f32 %v19381_v45, %v19380_v26  ;;  %v10050_v45 = vld [vmem:[%s18910_s7 + $0x1c0] sm:$0xff] }
 0xac2   :  { %10120 = vmatmul.f32.gmra.mxu2 %v10050_v45  ;;  %v19389_v26 = vld [vmem:[#allocation63_spill] sm:$0xff] }
 0xac3   :  { %v7850_v60 = vadd.f32 %v19385_v61, %v7319_v20  ;;  %v7316_v20 = vadd.f32 %v19390_v0, %v19389_v26  ;;  %v19391_v61 = vld [vmem:[#allocation101_spill] sm:$0xff]  ;;  %v17642_v26 = vpop.f32.mrf.mxu2 }
 0xac4   :  { %v7848_v40 = vadd.f32 %v19391_v61, %v7317_v36  ;;  %v19398_v61 = vld [vmem:[#allocation99_spill] sm:$0xff] }
 0xac5   :  { %v9876_v16 = vpop.f32.mrf.mxu1  ;;  %v8381_v27 = vadd.f32 %v17461_v47, %v7850_v60  ;;  %v9995_v47 = vld [vmem:[%s18910_s7 + $0x8] sm:$0xff] }
 0xac6   :  { %v19394_v60 = vld [vmem:[#allocation12_spill] sm:$0xff]  ;;  %v8379_v36 = vadd.f32 %v17420_v35, %v7848_v40  ;;  %10143 = vmatmul.f32.vlgmr.msrb.gmra.mxu3 %v9995_v47  ;;  %v9976_v45 = vadd.f32 %v9876_v16, %v9445_v46  ;;  %v9443_v35 = vadd.f32 %v17520_v18, %v8912_v55  ;;  %v17665_v40 = vpop.f32.mrf.mxu0  ;;  %v19402_v46 = vld [vmem:[#allocation95_spill] sm:$0xff] }
 0xac7   :  { %v8913_v9 = vadd.f32 %v17530_v58, %v8381_v27  ;;  %v7847_v53 = vadd.f32 %v19394_v60, %v7316_v20 }
 0xac8   :  { %12985 = vmatmul.msk.f32.gmra.mxu1 %vm5168_vm3, %v9525_v44  ;;  %v9446_v44 = vadd.f32 %v9348_v48, %v8915_v59  ;;  %v19393_v48 = vld [vmem:[#allocation80_spill] sm:$0xff]  ;;  %v17631_v59 = vpop.f32.mrf.mxu3  ;;  %v8911_v8 = vadd.f32 %v17505_v10, %v8379_v36 }
 0xac9   :  { %v7315_v54 = vadd.f32 %v19393_v48, %v19392_v50  ;;  %v9444_v58 = vadd.f32 %v17535_v31, %v8913_v9  ;;  %v8378_v27 = vadd.f32 %v17410_v29, %v7847_v53  ;;  %v9974_v29 = vadd.f32 %v17575_v5, %v9443_v35 }
 0xaca   :  { %v9442_v0 = vadd.f32 %v17507_v49, %v8911_v8  ;;  %10123 = vmatmul.f32.gmra.mxu2 %v10054_v42  ;;  %v9437_v9 = vadd.f32 %v17399_v2, %v19401_v25 }
 0xacb   :  { %v7846_v1 = vadd.f32 %v19396_v39, %v7315_v54  ;;  %v8910_v16 = vadd.f32 %v17491_v19, %v8378_v27 }
 0xacc   :  { %v9973_v20 = vadd.f32 %v17563_v6, %v9442_v0  ;;  %v19399_v6 = vld [vmem:[#allocation98_spill] sm:$0xff]  ;;  %v10004_v0 = vld [vmem:[%s18910_s7 + $0x50] sm:$0xff] }
 0xacd   :  { %v9879_v37 = vpop.f32.mrf.mxu1  ;;  %v8377_v31 = vadd.f32 %v17407_v24, %v7846_v1  ;;  %v9999_v24 = vld [vmem:[%s18910_s7 + $0x28] sm:$0xff]  ;;  %v9996_v1 = vld [vmem:[%s18910_s7 + $0x10] sm:$0xff] }
 0xace   :  { %v9977_v15 = vadd.f32 %v9879_v37, %v9446_v44  ;;  %v9975_v44 = vadd.f32 %v9873_v41, %v9444_v58  ;;  %v9441_v41 = vadd.f32 %v17495_v12, %v8910_v16  ;;  %10146 = vmatmul.f32.gmra.mxu3 %v9999_v24  ;;  %v9438_v37 = vadd.f32 %v17403_v13, %v19399_v6  ;;  %v17692_v60 = vpop.f32.mrf.mxu0  ;;  %v19408_v58 = vld [vmem:[#allocation59_spill] sm:$0xff]  ;;  %v10008_v24 = vld [vmem:[%s18910_s7 + $0x70] sm:$0xff] }
 0xacf   :  { %v8909_v18 = vadd.f32 %v17475_v38, %v8377_v31  ;;  %v9439_v38 = vadd.f32 %v17453_v52, %v19398_v61  ;;  %v9436_v13 = vadd.f32 %v17394_v7, %v19402_v46  ;;  %v10023_v61 = vld [vmem:[%s18910_s7 + $0xe8] sm:$0xff]  ;;  %v10012_v6 = vld [vmem:[%s18910_s7 + $0x90] sm:$0xff] }
 0xad0   :  { %12986 = vmatmul.msk.f32.gmra.mxu1 %vm5168_vm3, %v9526_v17  ;;  %10192 = vmatpush.msra.mxu2 %v9977_v15  ;;  %v9972_v49 = vadd.f32 %v17555_v63, %v9441_v41  ;;  %v17661_v5 = vpop.f32.mrf.mxu3  ;;  %v9969_v52 = vadd.f32 %v17527_v34, %v9438_v37  ;;  %v19403_v15 = vld [vmem:[#allocation94_spill] sm:$0xff]  ;;  %v19404_v34 = vld [vmem:[#allocation36_spill] sm:$0xff] }
 0xad1   :  { %v9440_v19 = vadd.f32 %v17481_v3, %v8909_v18  ;;  %v9970_v17 = vadd.f32 %v17537_v4, %v9439_v38  ;;  %v17671_v3 = vpop.f32.mrf.mxu2  ;;  %v9968_v4 = vadd.f32 %v17515_v51, %v9437_v9  ;;  %v9435_v47 = vadd.f32 %v17388_v56, %v19403_v15  ;;  %v19406_v51 = vld [vmem:[#allocation91_spill] sm:$0xff]  ;;  %v10019_v18 = vld [vmem:[%s18910_s7 + $0xc8] sm:$0xff]  ;;  %v10016_v9 = vld [vmem:[%s18910_s7 + $0xb0] sm:$0xff] }
 0xad2   :  { %10193 = vmatpush.msra.mxu2 %v9976_v45  ;;  %v9967_v50 = vadd.f32 %v17503_v22, %v9436_v13  ;;  %v9434_v48 = vadd.f32 %v17375_v33, %v19404_v34  ;;  %v9433_v53 = vadd.f32 %v17368_v62, %v19406_v51  ;;  %v10007_v22 = vld [vmem:[%s18910_s7 + $0x68] sm:$0xff]  ;;  %v19407_v33 = vld [vmem:[#allocation90_spill] sm:$0xff]  ;;  %v9431_v45 = vadd.f32 %v17353_v32, %v19408_v58  ;;  %v10020_v15 = vld [vmem:[%s18910_s7 + $0xd0] sm:$0xff] }
 0xad3   :  { %v9971_v12 = vadd.f32 %v17545_v30, %v9440_v19  ;;  %v10003_v30 = vld [vmem:[%s18910_s7 + $0x48] sm:$0xff]  ;;  %v9966_v54 = vadd.f32 %v17493_v57, %v9435_v47  ;;  %v9432_v57 = vadd.f32 %v17361_v43, %v19407_v33  ;;  %v10024_v51 = vld [vmem:[%s18910_s7 + $0xf0] sm:$0xff] }
 0xad4   :  { %10194 = vmatpush.msra.mxu2 %v9975_v44  ;;  %v9965_v56 = vadd.f32 %v17483_v28, %v9434_v48  ;;  %v9964_v55 = vadd.f32 %v17463_v11, %v9433_v53  ;;  %v19409_v28 = vld [vmem:[#allocation28_spill] sm:$0xff]  ;;  %v10000_v11 = vld [vmem:[%s18910_s7 + $0x30] sm:$0xff] }
 0xad5   :  { %v17651_v10 = vpop.f32.mrf.mxu1  ;;  %v9963_v62 = vadd.f32 %v17440_v23, %v9432_v57  ;;  %v9962_v39 = vadd.f32 %v19409_v28, %v9431_v45  ;;  %v10011_v32 = vld [vmem:[%s18910_s7 + $0x88] sm:$0xff] }
 0xad6   :  { %19397 = vst [vmem:[#allocation81_spill] sm:$0xff] %v17651_v10  ;;  %10195 = vmatpush.msra.mxu2 %v9974_v29  ;;  %10149 = vmatmul.f32.gmra.mxu3 %v10003_v30  ;;  %v17718_v43 = vpop.f32.mrf.mxu0  ;;  %v10015_v44 = vld [vmem:[%s18910_s7 + $0xa8] sm:$0xff] }
 0xad7   :  { %v10031_v13 = vld [vmem:[%s18910_s7 + $0x128] sm:$0xff] }
 0xad8   :  { %10196 = vmatpush.msra.mxu2 %v9973_v20  ;;  %v17687_v2 = vpop.f32.mrf.mxu3  ;;  %v10043_v45 = vld [vmem:[%s18910_s7 + $0x188] sm:$0xff] }
 0xad9   :  { %v17702_v36 = vpop.f32.mrf.mxu2 }
 0xada   :  { %10197 = vmatpush.msra.mxu2 %v9972_v49 }
 0xadc   :  { %10198 = vmatpush.msra.mxu2 %v9971_v12 }
 0xadd   :  { %v17673_v63 = vpop.f32.mrf.mxu1 }
 0xade   :  { %19400 = vst [vmem:[#allocation107_spill] sm:$0xff] %v17673_v63  ;;  %10199 = vmatpush.msra.mxu2 %v9970_v17  ;;  %10152 = vmatmul.f32.gmra.mxu3 %v10007_v22  ;;  %v17735_v31 = vpop.f32.mrf.mxu0  ;;  %v10027_v17 = vld [vmem:[%s18910_s7 + $0x108] sm:$0xff]  ;;  %v19425_v63 = vld [vmem:[#allocation50_spill] sm:$0xff] }
 0xae0   :  { %10200 = vmatpush.msra.mxu2 %v9969_v52  ;;  %v17714_v27 = vpop.f32.mrf.mxu3 }
 0xae1   :  { %v17723_v23 = vpop.f32.mrf.mxu2 }
 0xae2   :  { %10201 = vmatpush.msra.mxu2 %v9968_v4 }
 0xae4   :  { %10202 = vmatpush.msra.mxu2 %v9967_v50  ;;  %v10035_v50 = vld [vmem:[%s18910_s7 + $0x148] sm:$0xff] }
 0xae5   :  { %v17694_v7 = vpop.f32.mrf.mxu1 }
 0xae6   :  { %19405 = vst [vmem:[#allocation30_spill] sm:$0xff] %v17694_v7  ;;  %10203 = vmatpush.msra.mxu2 %v9966_v54  ;;  %10155 = vmatmul.f32.gmra.mxu3 %v10011_v32  ;;  %v17749_v20 = vpop.f32.mrf.mxu0 }
 0xae8   :  { %10204 = vmatpush.msra.mxu2 %v9965_v56  ;;  %v17733_v42 = vpop.f32.mrf.mxu3  ;;  %v10039_v56 = vld [vmem:[%s18910_s7 + $0x168] sm:$0xff] }
 0xae9   :  { %v17737_v16 = vpop.f32.mrf.mxu2 }
 0xaea   :  { %10205 = vmatpush.msra.mxu2 %v9964_v55  ;;  %v10028_v55 = vld [vmem:[%s18910_s7 + $0x110] sm:$0xff] }
 0xaec   :  { %10206 = vmatpush.msra.mxu2 %v9963_v62 }
 0xaed   :  { %v17716_v8 = vpop.f32.mrf.mxu1 }
 0xaee   :  { %19410 = vst [vmem:[#allocation106_spill] sm:$0xff] %v17716_v8  ;;  %10207 = vmatpush.msra.mxu2 %v9962_v39  ;;  %10158 = vmatmul.f32.gmra.mxu3 %v10015_v44  ;;  %v17763_v12 = vpop.f32.mrf.mxu0  ;;  %v10032_v39 = vld [vmem:[%s18910_s7 + $0x130] sm:$0xff] }
 0xaef   :  { %10208 = vmatmul.f32.vlgmr.msra.gmra.mxu2 %v9996_v1  ;;  %v10036_v44 = vld [vmem:[%s18910_s7 + $0x150] sm:$0xff] }
 0xaf0   :  { %v17747_v41 = vpop.f32.mrf.mxu3 }
 0xaf1   :  { %v17754_v19 = vpop.f32.mrf.mxu2 }
 0xaf5   :  { %v17728_v35 = vpop.f32.mrf.mxu1 }
 0xaf6   :  { %19411 = vst [vmem:[#allocation54_spill] sm:$0xff] %v17728_v35  ;;  %10161 = vmatmul.f32.gmra.mxu3 %v10019_v18  ;;  %v17782_v46 = vpop.f32.mrf.mxu0  ;;  %v19428_v35 = vld [vmem:[#allocation76_spill] sm:$0xff] }
 0xaf7   :  { %10211 = vmatmul.f32.gmra.mxu2 %v10000_v11  ;;  %v10047_v11 = vld [vmem:[%s18910_s7 + $0x1a8] sm:$0xff] }
 0xaf8   :  { %v17761_v38 = vpop.f32.mrf.mxu3 }
 0xaf9   :  { %v17773_v25 = vpop.f32.mrf.mxu2 }
 0xafd   :  { %v17742_v29 = vpop.f32.mrf.mxu1 }
 0xafe   :  { %19412 = vst [vmem:[#allocation105_spill] sm:$0xff] %v17742_v29  ;;  %10164 = vmatmul.f32.gmra.mxu3 %v10023_v61  ;;  %v17797_v48 = vpop.f32.mrf.mxu0 }
 0xaff   :  { %10214 = vmatmul.f32.gmra.mxu2 %v10004_v0 }
 0xb00   :  { %v17778_v52 = vpop.f32.mrf.mxu3 }
 0xb01   :  { %v8333_v4 = vpop.f32.mrf.mxu2 }
 0xb05   :  { %v17756_v49 = vpop.f32.mrf.mxu1 }
 0xb06   :  { %10167 = vmatmul.f32.gmra.mxu3 %v10027_v17  ;;  %v17809_v33 = vpop.f32.mrf.mxu0  ;;  %v19417_v17 = vld [vmem:[#allocation77_spill] sm:$0xff] }
 0xb07   :  { %10217 = vmatmul.f32.gmra.mxu2 %v10008_v24  ;;  %v10051_v24 = vld [vmem:[%s18910_s7 + $0x1c8] sm:$0xff] }
 0xb08   :  { %v17795_v34 = vpop.f32.mrf.mxu3 }
 0xb09   :  { %v17799_v54 = vpop.f32.mrf.mxu2 }
 0xb0a   :  { %19413 = vst [vmem:[#allocation79_spill] sm:$0xff] %v17799_v54 }
 0xb0d   :  { %v17768_v37 = vpop.f32.mrf.mxu1 }
 0xb0e   :  { %10170 = vmatmul.f32.gmra.mxu3 %v10031_v13  ;;  %v9390_v28 = vpop.f32.mrf.mxu0 }
 0xb0f   :  { %10220 = vmatmul.f32.gmra.mxu2 %v10012_v6 }
 0xb10   :  { %v8856_v22 = vpop.f32.mrf.mxu3 }
 0xb11   :  { %v17811_v57 = vpop.f32.mrf.mxu2 }
 0xb12   :  { %19414 = vst [vmem:[#allocation46_spill] sm:$0xff] %v17811_v57 }
 0xb15   :  { %v17780_v30 = vpop.f32.mrf.mxu1 }
 0xb16   :  { %10173 = vmatmul.f32.gmra.mxu3 %v10035_v50  ;;  %v9393_v61 = vpop.f32.mrf.mxu0 }
 0xb17   :  { %10223 = vmatmul.f32.gmra.mxu2 %v10016_v9  ;;  %v19418_v9 = vld [vmem:[#allocation102_spill] sm:$0xff] }
 0xb18   :  { %v8859_v62 = vpop.f32.mrf.mxu3  ;;  %v7337_v13 = vadd.f32 %v19418_v9, %v19417_v17  ;;  %v19424_v9 = vld [vmem:[#allocation21_spill] sm:$0xff] }
 0xb19   :  { %v17826_v32 = vpop.f32.mrf.mxu2 }
 0xb1a   :  { %19415 = vst [vmem:[#allocation29_spill] sm:$0xff] %v17826_v32 }
 0xb1d   :  { %v17790_v47 = vpop.f32.mrf.mxu1 }
 0xb1e   :  { %10176 = vmatmul.f32.gmra.mxu3 %v10039_v56  ;;  %v19420_v56 = vld [vmem:[#allocation13_spill] sm:$0xff]  ;;  %v9396_v54 = vpop.f32.mrf.mxu0 }
 0xb1f   :  { %10226 = vmatmul.f32.gmra.mxu2 %v10020_v15  ;;  %v10040_v15 = vld [vmem:[%s18910_s7 + $0x170] sm:$0xff] }
 0xb20   :  { %v8862_v0 = vpop.f32.mrf.mxu3 }
 0xb21   :  { %v17837_v6 = vpop.f32.mrf.mxu2 }
 0xb22   :  { %19416 = vst [vmem:[#allocation65_spill] sm:$0xff] %v17837_v6  ;;  %v19423_v6 = vld [vmem:[#allocation100_spill] sm:$0xff] }
 0xb25   :  { %v17804_v53 = vpop.f32.mrf.mxu1 }
 0xb26   :  { %10179 = vmatmul.f32.gmra.mxu3 %v10043_v45  ;;  %v19421_v45 = vld [vmem:[#allocation38_spill] sm:$0xff] }
 0xb27   :  { %10229 = vmatmul.f32.gmra.mxu2 %v10024_v51  ;;  %v19419_v51 = vld [vmem:[#allocation75_spill] sm:$0xff] }
 0xb29   :  { %v17853_v10 = vpop.f32.mrf.mxu2 }
 0xb2d   :  { %v17816_v58 = vpop.f32.mrf.mxu1 }
 0xb2e   :  { %10182 = vmatmul.f32.gmra.mxu3 %v10047_v11  ;;  %v10055_v11 = vld [vmem:[%s18910_s7 + $0x1e8] sm:$0xff] }
 0xb2f   :  { %10232 = vmatmul.f32.gmra.mxu2 %v10028_v55  ;;  %v7336_v55 = vadd.f32 %v19420_v56, %v19419_v51  ;;  %v19426_v51 = vld [vmem:[#allocation10_spill] sm:$0xff] }
 0xb30   :  { %v7334_v56 = vadd.f32 %v19426_v51, %v19425_v63  ;;  %v19432_v63 = vld [vmem:[#allocation96_spill] sm:$0xff] }
 0xb31   :  { %v7867_v32 = vadd.f32 %v19424_v9, %v7336_v55 }
 0xb32   :  { %v7865_v29 = vadd.f32 %v19430_v21, %v7334_v56  ;;  %v19434_v21 = vld [vmem:[#allocation72_spill] sm:$0xff] }
 0xb33   :  { %v8398_v7 = vadd.f32 %v17773_v25, %v7867_v32  ;;  %v19435_v56 = vld [vmem:[#allocation8_spill] sm:$0xff] }
 0xb35   :  { %v17824_v1 = vpop.f32.mrf.mxu1  ;;  %v8930_v55 = vadd.f32 %v8862_v0, %v8398_v7  ;;  %v19436_v7 = vld [vmem:[#allocation19_spill] sm:$0xff] }
 0xb36   :  { %10185 = vmatmul.f32.gmra.mxu3 %v10051_v24  ;;  %v8865_v24 = vpop.f32.mrf.mxu3 }
 0xb37   :  { %10235 = vmatmul.f32.gmra.mxu2 %v10032_v39  ;;  %v7868_v39 = vadd.f32 %v19421_v45, %v7337_v13  ;;  %v19427_v13 = vld [vmem:[#allocation45_spill] sm:$0xff] }
 0xb39   :  { %v8399_v57 = vadd.f32 %v8333_v4, %v7868_v39  ;;  %v10044_v39 = vld [vmem:[%s18910_s7 + $0x190] sm:$0xff] }
 0xb3b   :  { %v8931_v8 = vadd.f32 %v8865_v24, %v8399_v57  ;;  %v8396_v57 = vadd.f32 %v17737_v16, %v7865_v29 }
 0xb3d   :  { %v9921_v18 = vpop.f32.mrf.mxu1  ;;  %v9462_v4 = vadd.f32 %v9396_v54, %v8931_v8  ;;  %v8928_v0 = vadd.f32 %v8856_v22, %v8396_v57  ;;  %v19441_v22 = vld [vmem:[#allocation60_spill] sm:$0xff]  ;;  %v19445_v57 = vld [vmem:[#allocation43_spill] sm:$0xff] }
 0xb3e   :  { %10188 = vmatmul.f32.gmra.mxu3 %v10055_v11  ;;  %v19429_v11 = vld [vmem:[#allocation97_spill] sm:$0xff] }
 0xb3f   :  { %10238 = vmatmul.f32.gmra.mxu2 %v10036_v44  ;;  %v19422_v44 = vld [vmem:[#allocation26_spill] sm:$0xff] }
 0xb40   :  { %v7335_v17 = vadd.f32 %v19423_v6, %v19422_v44  ;;  %v19431_v44 = vld [vmem:[#allocation74_spill] sm:$0xff] }
 0xb41   :  { %v7332_v9 = vadd.f32 %v19432_v63, %v19431_v44  ;;  %v19439_v63 = vld [vmem:[#allocation44_spill] sm:$0xff] }
 0xb42   :  { %v7866_v45 = vadd.f32 %v19427_v13, %v7335_v17  ;;  %v19433_v17 = vld [vmem:[#allocation37_spill] sm:$0xff] }
 0xb43   :  { %v7863_v8 = vadd.f32 %v19436_v7, %v7332_v9 }
 0xb44   :  { %v8397_v6 = vadd.f32 %v17754_v19, %v7866_v45  ;;  %v7331_v19 = vadd.f32 %v19435_v56, %v19434_v21  ;;  %v19448_v56 = vld [vmem:[#allocation17_spill] sm:$0xff] }
 0xb45   :  { %v9924_v50 = vpop.f32.mrf.mxu1  ;;  %v8394_v29 = vadd.f32 %v17702_v36, %v7863_v8 }
 0xb46   :  { %v8929_v32 = vadd.f32 %v8859_v62, %v8397_v6  ;;  %v7862_v16 = vadd.f32 %v19439_v63, %v7331_v19  ;;  %v19454_v63 = vld [vmem:[#allocation89_spill] sm:$0xff] }
 0xb47   :  { %10241 = vmatmul.f32.gmra.mxu2 %v10040_v15  ;;  %v7333_v15 = vadd.f32 %v19429_v11, %v19428_v35  ;;  %v9461_v35 = vadd.f32 %v9393_v61, %v8930_v55  ;;  %v19437_v11 = vld [vmem:[#allocation25_spill] sm:$0xff]  ;;  %v9459_v61 = vadd.f32 %v17809_v33, %v8928_v0 }
 0xb48   :  { %v9460_v13 = vadd.f32 %v9390_v28, %v8929_v32  ;;  %v8393_v9 = vadd.f32 %v17671_v3, %v7862_v16  ;;  %v10048_v33 = vld [vmem:[%s18910_s7 + $0x1b0] sm:$0xff]  ;;  %v19455_v16 = vld [vmem:[#allocation16_spill] sm:$0xff] }
 0xb49   :  { %v7864_v51 = vadd.f32 %v19433_v17, %v7333_v15  ;;  %v9992_v45 = vadd.f32 %v9924_v50, %v9461_v35  ;;  %v19438_v15 = vld [vmem:[#allocation93_spill] sm:$0xff]  ;;  %v17880_v55 = vpop.f32.mrf.mxu3  ;;  %v19442_v50 = vld [vmem:[#allocation18_spill] sm:$0xff]  ;;  %v8926_v17 = vadd.f32 %v17778_v52, %v8394_v29  ;;  %v19456_v29 = vld [vmem:[#allocation111_spill] sm:$0xff] }
 0xb4a   :  { %v7330_v44 = vadd.f32 %v19438_v15, %v19437_v11  ;;  %v9991_v6 = vadd.f32 %v9921_v18, %v9460_v13  ;;  %v19443_v18 = vld [vmem:[#allocation73_spill] sm:$0xff]  ;;  %v8925_v3 = vadd.f32 %v17761_v38, %v8393_v9 }
 0xb4b   :  { %v8395_v54 = vadd.f32 %v17723_v23, %v7864_v51  ;;  %v19440_v23 = vld [vmem:[#allocation49_spill] sm:$0xff]  ;;  %v19444_v51 = vld [vmem:[#allocation92_spill] sm:$0xff]  ;;  %v9457_v52 = vadd.f32 %v17782_v46, %v8926_v17  ;;  %v19460_v17 = vld [vmem:[#allocation87_spill] sm:$0xff] }
 0xb4c   :  { %v7329_v28 = vadd.f32 %v19441_v22, %v19440_v23  ;;  %v19449_v38 = vld [vmem:[#allocation69_spill] sm:$0xff]  ;;  %v19450_v46 = vld [vmem:[#allocation88_spill] sm:$0xff]  ;;  %v19458_v22 = vld [vmem:[#allocation34_spill] sm:$0xff] }
 0xb4d   :  { %v9927_v25 = vpop.f32.mrf.mxu1  ;;  %v8927_v62 = vadd.f32 %v17795_v34, %v8395_v54  ;;  %v9990_v34 = vadd.f32 %v17824_v1, %v9459_v61  ;;  %v19446_v1 = vld [vmem:[#allocation71_spill] sm:$0xff]  ;;  %v9456_v54 = vadd.f32 %v17763_v12, %v8925_v3  ;;  %v7326_v0 = vadd.f32 %v19450_v46, %v19449_v38  ;;  %v19473_v46 = vld [vmem:[#allocation108_spill] sm:$0xff] }
 0xb4e   :  { %v9993_v24 = vadd.f32 %v9927_v25, %v9462_v4  ;;  %v7861_v4 = vadd.f32 %v19442_v50, %v7330_v44  ;;  %v7328_v25 = vadd.f32 %v19444_v51, %v19443_v18  ;;  %v7860_v32 = vadd.f32 %v19445_v57, %v7329_v28  ;;  %v19459_v50 = vld [vmem:[#allocation41_spill] sm:$0xff]  ;;  %v19463_v51 = vld [vmem:[#allocation15_spill] sm:$0xff] }
 0xb4f   :  { %10244 = vmatmul.f32.gmra.mxu2 %v10044_v39  ;;  %v17885_v39 = vpop.f32.mrf.mxu2  ;;  %v9458_v36 = vadd.f32 %v17797_v48, %v8927_v62  ;;  %v19464_v57 = vld [vmem:[#allocation51_spill] sm:$0xff] }
 0xb50   :  { %10257 = vmatpush.msra.mxu3 %v9993_v24  ;;  %v8392_v35 = vadd.f32 %v17642_v26, %v7861_v4  ;;  %v19447_v24 = vld [vmem:[#allocation35_spill] sm:$0xff]  ;;  %v7859_v19 = vadd.f32 %v19448_v56, %v7328_v25  ;;  %v8391_v7 = vadd.f32 %v17605_v14, %v7860_v32  ;;  %v9988_v26 = vadd.f32 %v17804_v53, %v9457_v52 }
 0xb51   :  { %v9989_v48 = vadd.f32 %v17816_v58, %v9458_v36  ;;  %v7327_v21 = vadd.f32 %v19447_v24, %v19446_v1  ;;  %v19451_v58 = vld [vmem:[#allocation42_spill] sm:$0xff]  ;;  %v9987_v14 = vadd.f32 %v17790_v47, %v9456_v54  ;;  %v7857_v53 = vadd.f32 %v19455_v16, %v7326_v0  ;;  %v19457_v47 = vld [vmem:[#allocation48_spill] sm:$0xff]  ;;  %v19468_v24 = vld [vmem:[#allocation27_spill] sm:$0xff] }
 0xb52   :  { %10258 = vmatpush.msra.mxu3 %v9992_v45  ;;  %v8924_v8 = vadd.f32 %v17747_v41, %v8392_v35  ;;  %v19452_v45 = vld [vmem:[#allocation82_spill] sm:$0xff]  ;;  %v8923_v15 = vadd.f32 %v17733_v42, %v8391_v7  ;;  %v19453_v41 = vld [vmem:[#allocation24_spill] sm:$0xff]  ;;  %v17922_v42 = vpop.f32.mrf.mxu3  ;;  %v7324_v28 = vadd.f32 %v19458_v22, %v19457_v47  ;;  %v19469_v7 = vld [vmem:[#allocation105_spill] sm:$0xff] }
 0xb53   :  { %v7858_v13 = vadd.f32 %v19451_v58, %v7327_v21  ;;  %v8390_v11 = vadd.f32 %v19452_v45, %v7859_v19  ;;  %v7325_v12 = vadd.f32 %v19454_v63, %v19453_v41  ;;  %v19474_v58 = vld [vmem:[#allocation54_spill] sm:$0xff]  ;;  %v19475_v45 = vld [vmem:[#allocation52_spill] sm:$0xff]  ;;  %v19483_v22 = vld [vmem:[#allocation107_spill] sm:$0xff] }
 0xb54   :  { %10259 = vmatpush.msra.mxu3 %v9991_v6  ;;  %v9455_v44 = vadd.f32 %v17749_v20, %v8924_v8  ;;  %v9454_v6 = vadd.f32 %v17735_v31, %v8923_v15  ;;  %v10052_v20 = vld [vmem:[%s18910_s7 + $0x1d0] sm:$0xff]  ;;  %v7855_v25 = vadd.f32 %v19463_v51, %v7324_v28  ;;  %v19478_v41 = vld [vmem:[#allocation106_spill] sm:$0xff] }
 0xb55   :  { %v8389_v62 = vadd.f32 %v19456_v29, %v7858_v13  ;;  %v8922_v61 = vadd.f32 %v17714_v27, %v8390_v11  ;;  %v7856_v4 = vadd.f32 %v19459_v50, %v7325_v12  ;;  %v8388_v27 = vadd.f32 %v19460_v17, %v7857_v53  ;;  %v19476_v11 = vld [vmem:[#allocation84_spill] sm:$0xff]  ;;  %v19484_v50 = vld [vmem:[#allocation81_spill] sm:$0xff]  ;;  %v9997_v17 = vld [vmem:[%s18910_s7 + $0x18] sm:$0xff] }
 0xb56   :  { %10260 = vmatpush.msra.mxu3 %v9990_v34  ;;  %v9986_v23 = vadd.f32 %v17780_v30, %v9455_v44  ;;  %v9985_v36 = vadd.f32 %v17768_v37, %v9454_v6  ;;  %v19461_v34 = vld [vmem:[#allocation70_spill] sm:$0xff]  ;;  %v19467_v37 = vld [vmem:[#allocation40_spill] sm:$0xff]  ;;  %v8386_v21 = vadd.f32 %v19468_v24, %v7855_v25  ;;  %v19477_v44 = vld [vmem:[#allocation31_spill] sm:$0xff] }
 0xb57   :  { %10247 = vmatmul.f32.gmra.mxu2 %v10048_v33  ;;  %v17930_v9 = vpop.f32.mrf.mxu2  ;;  %v8921_v31 = vadd.f32 %v17687_v2, %v8389_v62  ;;  %v9453_v30 = vadd.f32 %v17718_v43, %v8922_v61  ;;  %v19462_v33 = vld [vmem:[#allocation58_spill] sm:$0xff]  ;;  %v8387_v32 = vadd.f32 %v19464_v57, %v7856_v4  ;;  %v8920_v35 = vadd.f32 %v17661_v5, %v8388_v27  ;;  %v19465_v2 = vld [vmem:[#allocation67_spill] sm:$0xff]  ;;  %v19479_v53 = vld [vmem:[#allocation112_spill] sm:$0xff] }
 0xb58   :  { %10261 = vmatpush.msra.mxu3 %v9989_v48  ;;  %v7323_v18 = vadd.f32 %v19462_v33, %v19461_v34  ;;  %v19466_v43 = vld [vmem:[#allocation86_spill] sm:$0xff] }
 0xb59   :  { %v9452_v3 = vadd.f32 %v17692_v60, %v8921_v31  ;;  %v9984_v52 = vadd.f32 %v17756_v49, %v9453_v30  ;;  %v7322_v48 = vadd.f32 %v19466_v43, %v19465_v2  ;;  %v8919_v56 = vadd.f32 %v17631_v59, %v8387_v32  ;;  %v19470_v5 = vld [vmem:[#allocation14_spill] sm:$0xff]  ;;  %v19472_v49 = vld [vmem:[#allocation109_spill] sm:$0xff] }
 0xb5a   :  { %10262 = vmatpush.msra.mxu3 %v9988_v26  ;;  %v7854_v1 = vadd.f32 %v19467_v37, %v7323_v18  ;;  %v9451_v19 = vadd.f32 %v17665_v40, %v8920_v35  ;;  %v19471_v60 = vld [vmem:[#allocation78_spill] sm:$0xff]  ;;  %v8918_v38 = vadd.f32 %v19472_v49, %v8386_v21  ;;  %v10056_v59 = vld [vmem:[%s18910_s7 + $0x1f0] sm:$0xff]  ;;  %v17962_v12 = vpop.f32.mrf.mxu3 }
 0xb5b   :  { %v9983_v8 = vadd.f32 %v19469_v7, %v9452_v3  ;;  %v7853_v54 = vadd.f32 %v19470_v5, %v7322_v48  ;;  %v9450_v0 = vadd.f32 %v19473_v46, %v8919_v56  ;;  %v19480_v62 = vld [vmem:[#allocation110_spill] sm:$0xff]  ;;  %v13058_v5 = vld [vmem:[%s18906_s3 + $0x48] sm:$0xff] }
 0xb5c   :  { %10263 = vmatpush.msra.mxu3 %v9987_v14  ;;  %v8385_v26 = vadd.f32 %v19471_v60, %v7854_v1  ;;  %v9982_v13 = vadd.f32 %v19474_v58, %v9451_v19  ;;  %v9449_v14 = vadd.f32 %v19477_v44, %v8918_v38  ;;  %v19481_v6 = vld [vmem:[#allocation30_spill] sm:$0xff]  ;;  %11053 = vmatpush.msrb.mxu0 %v13058_v5  ;;  %v12987_v44 = vld [vmem:[%s18906_s3 + $0x10] sm:$0xff] }
 0xb5d   :  { %v8384_v40 = vadd.f32 %v19475_v45, %v7853_v54  ;;  %v9981_v63 = vadd.f32 %v19478_v41, %v9450_v0  ;;  %v10001_v31 = vld [vmem:[%s18910_s7 + $0x38] sm:$0xff] }
 0xb5e   :  { %10264 = vmatpush.msra.mxu3 %v9986_v23  ;;  %v8917_v15 = vadd.f32 %v19476_v11, %v8385_v26  ;;  %v9980_v23 = vadd.f32 %v19481_v6, %v9449_v14  ;;  %v10009_v33 = vld [vmem:[%s18910_s7 + $0x78] sm:$0xff]  ;;  %v10429_v14 = vld [vmem:[%s18906_s3] sm:$0xff] }
 0xb5f   :  { %10250 = vmatmul.f32.gmra.mxu2 %v10052_v20  ;;  %v17964_v16 = vpop.f32.mrf.mxu2  ;;  %v8916_v29 = vadd.f32 %v19479_v53, %v8384_v40  ;;  %v19482_v20 = vld [vmem:[#allocation33_spill] sm:$0xff]  ;;  %v10013_v25 = vld [vmem:[%s18910_s7 + $0x98] sm:$0xff]  ;;  %v19486_v6 = vld [vmem:[#allocation79_spill] sm:$0xff] }
 0xb60   :  { %10265 = vmatpush.msra.mxu3 %v9985_v36  ;;  %v9448_v61 = vadd.f32 %v19480_v62, %v8917_v15  ;;  %v10005_v36 = vld [vmem:[%s18910_s7 + $0x58] sm:$0xff]  ;;  %v10430_v15 = vld [vmem:[%s18906_s3 + $0x8] sm:$0xff] }
 0xb61   :  { %v9447_v47 = vadd.f32 %v19482_v20, %v8916_v29  ;;  %v10017_v32 = vld [vmem:[%s18910_s7 + $0xb8] sm:$0xff]  ;;  %v18109_v29 = vld [vmem:[%s18908_s5] ss:$0 sm:$0xff] }
 0xb62   :  { %10266 = vmatpush.msra.mxu3 %v9984_v52  ;;  %v9979_v28 = vadd.f32 %v19483_v22, %v9448_v61  ;;  %v17975_v27 = vpop.f32.mrf.mxu3  ;;  %v10021_v52 = vld [vmem:[%s18910_s7 + $0xd8] sm:$0xff]  ;;  %v13057_v20 = vld [vmem:[%s18906_s3 + $0x40] sm:$0xff] }
 0xb63   :  { %v9978_v4 = vadd.f32 %v19484_v50, %v9447_v47  ;;  %v10025_v48 = vld [vmem:[%s18910_s7 + $0xf8] sm:$0xff]  ;;  %v13075_v47 = vld [vmem:[%s18906_s3 + $0x50] sm:$0xff]  ;;  %11054 = vmatpush.msrb.mxu0 %v13057_v20 }
 0xb64   :  { %10267 = vmatpush.msra.mxu3 %v9983_v8  ;;  %v10029_v1 = vld [vmem:[%s18910_s7 + $0x118] sm:$0xff] }
 0xb65   :  { %v10033_v56 = vld [vmem:[%s18910_s7 + $0x138] sm:$0xff] }
 0xb66   :  { %10268 = vmatpush.msra.mxu3 %v9982_v13  ;;  %v10037_v7 = vld [vmem:[%s18910_s7 + $0x158] sm:$0xff]  ;;  %v19485_v13 = vmov 0.0  }
 0xb67   :  { %10253 = vmatmul.f32.gmra.mxu2 %v10056_v59  ;;  %v17985_v34 = vpop.f32.mrf.mxu2  ;;  %v10041_v60 = vld [vmem:[%s18910_s7 + $0x178] sm:$0xff]  ;;  %10358 = vst.msk [vmem:[#allocation4 + $0x10] sm:$0xff] %vm10354_vm5, %v19485_v13 }
 0xb68   :  { %10269 = vmatpush.msra.mxu3 %v9981_v63  ;;  %v10045_v38 = vld [vmem:[%s18910_s7 + $0x198] sm:$0xff]  ;;  %10359 = vst.msk [vmem:[#allocation4 + $0x18] sm:$0x3] %vm10356_vm6, %v19485_v13 }
 0xb69   :  { %v10049_v0 = vld [vmem:[%s18910_s7 + $0x1b8] sm:$0xff]  ;;  %10355 = vst.msk [vmem:[#allocation4] sm:$0xff] %vm10354_vm5, %v19485_v13 }
 0xb6a   :  { %10270 = vmatpush.msra.mxu3 %v9980_v23  ;;  %v17980_v30 = vpop.f32.mrf.mxu3  ;;  %10357 = vst.msk [vmem:[#allocation4 + $0x8] sm:$0x3] %vm10356_vm6, %v19485_v13  ;;  %v10053_v45 = vld [vmem:[%s18910_s7 + $0x1d8] sm:$0xff]  ;;  %v10080_v23 = vadd.f32 %v18109_v29, %v19486_v6 }
 0xb6b   :  { %10360 = vst.msk [vmem:[#allocation4 + $0x20] sm:$0xff] %vm10354_vm5, %v19485_v13  ;;  %v12988_v11 = vld [vmem:[%s18906_s3 + $0x18] sm:$0xff] }
 0xb6c   :  { %10271 = vmatpush.msra.mxu3 %v9979_v28  ;;  %10361 = vst.msk [vmem:[#allocation4 + $0x28] sm:$0x3] %vm10356_vm6, %v19485_v13  ;;  %10512 = vmatpush.msrb.mxu2 %v12988_v11  ;;  %v10057_v63 = vld [vmem:[%s18910_s7 + $0x1f8] sm:$0xff]  ;;  %v10145_v28 = vadd.f32 %v17880_v55, %v10080_v23  ;;  %v10092_v23 = vadd.f32 %v18109_v29, %v17853_v10 }
 0xb6d   :  { %10362 = vst.msk [vmem:[#allocation4 + $0x30] sm:$0xff] %vm10354_vm5, %v19485_v13  ;;  %v13076_v61 = vld [vmem:[%s18906_s3 + $0x58] sm:$0xff] }
 0xb6e   :  { %10272 = vmatpush.msra.mxu3 %v9978_v4  ;;  %10363 = vst.msk [vmem:[#allocation4 + $0x38] sm:$0x3] %vm10356_vm6, %v19485_v13  ;;  %10513 = vmatpush.msrb.mxu2 %v12987_v44  ;;  %v19487_v4 = vld [vmem:[#allocation46_spill] sm:$0xff]  ;;  %v10157_v10 = vadd.f32 %v17980_v30, %v10092_v23 }
 0xb6f   :  { %10273 = vmatmul.f32.vlgmr.msra.gmra.mxu3 %v9997_v17  ;;  %v17992_v51 = vpop.f32.mrf.mxu2  ;;  %10364 = vst.msk [vmem:[#allocation4 + $0x40] sm:$0xff] %vm10354_vm5, %v19485_v13  ;;  %11201 = vmatpush.msra.mxu1 %v13076_v61  ;;  %v10083_v17 = vadd.f32 %v18109_v29, %v19487_v4 }
 0xb70   :  { %10365 = vst.msk [vmem:[#allocation4 + $0x48] sm:$0x3] %vm10356_vm6, %v19485_v13  ;;  %10625 = vmatpush.msrb.mxu3 %v10430_v15  ;;  %v10413_v22 = vld [vmem:[#allocation4] sm:$0xff] }
 0xb71   :  { %10366 = vst.msk [vmem:[#allocation4 + $0x50] sm:$0xff] %vm10354_vm5, %v19485_v13  ;;  %v10431_v41 = vld [vmem:[#allocation4 + $0x1] sm:$0xff]  ;;  %11202 = vmatpush.msra.mxu1 %v13075_v47 }
 0xb72   :  { %v17990_v18 = vpop.f32.mrf.mxu3  ;;  %10367 = vst.msk [vmem:[#allocation4 + $0x58] sm:$0x3] %vm10356_vm6, %v19485_v13  ;;  %10626 = vmatpush.msrb.mxu3 %v10429_v14  ;;  %12989 = vmatmul.msk.f32.vlgmr.msrb.gmra.mxu2 %vm10354_vm5, %v10431_v41 }
 0xb73   :  { %10368 = vst.msk [vmem:[#allocation4 + $0x60] sm:$0xff] %vm10354_vm5, %v19485_v13 }
 0xb74   :  { %10369 = vst.msk [vmem:[#allocation4 + $0x68] sm:$0x3] %vm10356_vm6, %v19485_v13 }
 0xb75   :  { %10370 = vst.msk [vmem:[#allocation4 + $0x70] sm:$0xff] %vm10354_vm5, %v19485_v13 }
 0xb76   :  { %10371 = vst.msk [vmem:[#allocation4 + $0x78] sm:$0x3] %vm10356_vm6, %v19485_v13 }
 0xb77   :  { %10276 = vmatmul.f32.gmra.mxu3 %v10001_v31  ;;  %v18002_v35 = vpop.f32.mrf.mxu2  ;;  %10372 = vst.msk [vmem:[#allocation4 + $0x80] sm:$0xff] %vm10354_vm5, %v19485_v13 }
 0xb78   :  { %10373 = vst.msk [vmem:[#allocation4 + $0x88] sm:$0x3] %vm10356_vm6, %v19485_v13 }
 0xb79   :  { %10374 = vst.msk [vmem:[#allocation4 + $0x90] sm:$0xff] %vm10354_vm5, %v19485_v13 }
 0xb7a   :  { %v17997_v57 = vpop.f32.mrf.mxu3  ;;  %10375 = vst.msk [vmem:[#allocation4 + $0x98] sm:$0x3] %vm10356_vm6, %v19485_v13 }
 0xb7b   :  { %10376 = vst.msk [vmem:[#allocation4 + $0xa0] sm:$0xff] %vm10354_vm5, %v19485_v13 }
 0xb7c   :  { %10377 = vst.msk [vmem:[#allocation4 + $0xa8] sm:$0x3] %vm10356_vm6, %v19485_v13 }
 0xb7d   :  { %10378 = vst.msk [vmem:[#allocation4 + $0xb0] sm:$0xff] %vm10354_vm5, %v19485_v13 }
 0xb7e   :  { %10379 = vst.msk [vmem:[#allocation4 + $0xb8] sm:$0x3] %vm10356_vm6, %v19485_v13 }
 0xb7f   :  { %10279 = vmatmul.f32.gmra.mxu3 %v10005_v36  ;;  %v18009_v2 = vpop.f32.mrf.mxu2  ;;  %10380 = vst.msk [vmem:[#allocation4 + $0xc0] sm:$0xff] %vm10354_vm5, %v19485_v13 }
 0xb80   :  { %10381 = vst.msk [vmem:[#allocation4 + $0xc8] sm:$0x3] %vm10356_vm6, %v19485_v13 }
 0xb81   :  { %10382 = vst.msk [vmem:[#allocation4 + $0xd0] sm:$0xff] %vm10354_vm5, %v19485_v13 }
 0xb82   :  { %v18004_v3 = vpop.f32.mrf.mxu3  ;;  %10383 = vst.msk [vmem:[#allocation4 + $0xd8] sm:$0x3] %vm10356_vm6, %v19485_v13 }
 0xb83   :  { %10384 = vst.msk [vmem:[#allocation4 + $0xe0] sm:$0xff] %vm10354_vm5, %v19485_v13 }
 0xb84   :  { %10385 = vst.msk [vmem:[#allocation4 + $0xe8] sm:$0x3] %vm10356_vm6, %v19485_v13 }
 0xb85   :  { %10386 = vst.msk [vmem:[#allocation4 + $0xf0] sm:$0xff] %vm10354_vm5, %v19485_v13 }
 0xb86   :  { %10387 = vst.msk [vmem:[#allocation4 + $0xf8] sm:$0x3] %vm10356_vm6, %v19485_v13 }
 0xb87   :  { %10282 = vmatmul.f32.gmra.mxu3 %v10009_v33  ;;  %v18016_v37 = vpop.f32.mrf.mxu2  ;;  %v10148_v33 = vadd.f32 %v17922_v42, %v10083_v17  ;;  %10388 = vst.msk [vmem:[#allocation4 + $0x100] sm:$0xff] %vm10354_vm5, %v19485_v13 }
 0xb88   :  { %10389 = vst.msk [vmem:[#allocation4 + $0x108] sm:$0x3] %vm10356_vm6, %v19485_v13 }
 0xb89   :  { %10390 = vst.msk [vmem:[#allocation4 + $0x110] sm:$0xff] %vm10354_vm5, %v19485_v13 }
 0xb8a   :  { %v18011_v43 = vpop.f32.mrf.mxu3  ;;  %10391 = vst.msk [vmem:[#allocation4 + $0x118] sm:$0x3] %vm10356_vm6, %v19485_v13 }
 0xb8b   :  { %10392 = vst.msk [vmem:[#allocation4 + $0x120] sm:$0xff] %vm10354_vm5, %v19485_v13 }
 0xb8c   :  { %10393 = vst.msk [vmem:[#allocation4 + $0x128] sm:$0x3] %vm10356_vm6, %v19485_v13 }
 0xb8d   :  { %10394 = vst.msk [vmem:[#allocation4 + $0x130] sm:$0xff] %vm10354_vm5, %v19485_v13 }
 0xb8e   :  { %10395 = vst.msk [vmem:[#allocation4 + $0x138] sm:$0x3] %vm10356_vm6, %v19485_v13 }
 0xb8f   :  { %10285 = vmatmul.f32.gmra.mxu3 %v10013_v25  ;;  %v18023_v21 = vpop.f32.mrf.mxu2 }
 0xb92   :  { %v18021_v24 = vpop.f32.mrf.mxu3 }
 0xb97   :  { %10288 = vmatmul.f32.gmra.mxu3 %v10017_v32  ;;  %v18033_v8 = vpop.f32.mrf.mxu2 }
 0xb9a   :  { %v18028_v19 = vpop.f32.mrf.mxu3 }
 0xb9f   :  { %10291 = vmatmul.f32.gmra.mxu3 %v10021_v52  ;;  %v18043_v26 = vpop.f32.mrf.mxu2 }
 0xba2   :  { %v18038_v54 = vpop.f32.mrf.mxu3 }
 0xba7   :  { %10294 = vmatmul.f32.gmra.mxu3 %v10025_v48  ;;  %v10209_v46 = vpop.f32.mrf.mxu2  ;;  %v19488_v48 = vld [vmem:[#allocation29_spill] sm:$0xff] }
 0xba8   :  { %v10210_v31 = vadd.f32 %v10209_v46, %v10145_v28 }
 0xbaa   :  { %v18045_v49 = vpop.f32.mrf.mxu3 }
 0xbaf   :  { %10297 = vmatmul.f32.gmra.mxu3 %v10029_v1  ;;  %v18061_v59 = vpop.f32.mrf.mxu2  ;;  %v10086_v1 = vadd.f32 %v18109_v29, %v19488_v48 }
 0xbb0   :  { %v10213_v42 = vadd.f32 %v18061_v59, %v10148_v33 }
 0xbb1   :  { %v10151_v5 = vadd.f32 %v17962_v12, %v10086_v1  ;;  %v19489_v12 = vld [vmem:[#allocation65_spill] sm:$0xff] }
 0xbb2   :  { %v18053_v58 = vpop.f32.mrf.mxu3 }
 0xbb7   :  { %10300 = vmatmul.f32.gmra.mxu3 %v10033_v56  ;;  %v18104_v53 = vpop.f32.mrf.mxu2 }
 0xbb8   :  { %v10216_v11 = vadd.f32 %v18104_v53, %v10151_v5 }
 0xbba   :  { %v18072_v40 = vpop.f32.mrf.mxu3 }
 0xbbf   :  { %10303 = vmatmul.f32.gmra.mxu3 %v10037_v7  ;;  %v10218_v50 = vpop.f32.mrf.mxu2 }
 0xbc2   :  { %v18117_v62 = vpop.f32.mrf.mxu3 }
 0xbc7   :  { %10306 = vmatmul.f32.gmra.mxu3 %v10041_v60  ;;  %v10221_v52 = vpop.f32.mrf.mxu2 }
 0xbcf   :  { %10309 = vmatmul.f32.gmra.mxu3 %v10045_v38  ;;  %v10224_v13 = vpop.f32.mrf.mxu2 }
 0xbd7   :  { %10312 = vmatmul.f32.gmra.mxu3 %v10049_v0 }
 0xbdf   :  { %10315 = vmatmul.f32.gmra.mxu3 %v10053_v45  ;;  %v10089_v45 = vadd.f32 %v18109_v29, %v19489_v12 }
 0xbe1   :  { %v10154_v14 = vadd.f32 %v17975_v27, %v10089_v45 }
 0xbe3   :  { %v10219_v20 = vadd.f32 %v10218_v50, %v10154_v14 }
 0xbe7   :  { %10318 = vmatmul.f32.gmra.mxu3 %v10057_v63 }
 0xbef   :  { %13005 = vmatmul.msk.f32.vlgmr.msrb.gmra.mxu3 %vm10354_vm5, %v10413_v22  ;;  %v10227_v22 = vpop.f32.mrf.mxu2 }
 0xbf2   :  { %v10274_v55 = vpop.f32.mrf.mxu3 }
 0xbf3   :  { %v10275_v36 = vadd.f32 %v10274_v55, %v10210_v31  ;;  %v10095_v55 = vadd.f32 %v18109_v29, %v17885_v39 }
 0xbf5   :  { %v10322_v25 = vmul.f32 0.1, %v10275_v36 }
 0xbf7   :  { %v10338_v32 = vmax.f32 %v10275_v36, %v10322_v25  ;;  %v10222_v36 = vadd.f32 %v10221_v52, %v10157_v10  ;;  %v10160_v25 = vadd.f32 %v17990_v18, %v10095_v55 }
 0xbf9   :  { %10397 = vst.msk [vmem:[#allocation4 + $0x11] sm:$0xff] %vm10354_vm5, %v10338_v32  ;;  %v10230_v32 = vpop.f32.mrf.mxu2 }
 0xbfa   :  { %v10277_v56 = vpop.f32.mrf.mxu3 }
 0xbfb   :  { %v10278_v7 = vadd.f32 %v10277_v56, %v10213_v42  ;;  %v10098_v56 = vadd.f32 %v18109_v29, %v17930_v9 }
 0xbfd   :  { %v10323_v60 = vmul.f32 0.1, %v10278_v7 }
 0xbff   :  { %v10339_v38 = vmax.f32 %v10278_v7, %v10323_v60  ;;  %v10225_v7 = vadd.f32 %v10224_v13, %v10160_v25  ;;  %v10163_v60 = vadd.f32 %v17997_v57, %v10098_v56  ;;  %v10439_v56 = vld [vmem:[#allocation4 + $0xa1] sm:$0xff] }
 0xc00   :  { %v10432_v46 = vld [vmem:[#allocation4 + $0x11] sm:$0xff] }
 0xc01   :  { %v18188_v0 = vld [vmem:[#allocation4 + $0x10] sm:$0xff]  ;;  %10398 = vst.msk [vmem:[#allocation4 + $0x21] sm:$0xff] %vm10354_vm5, %v10339_v38  ;;  %12990 = vmatmul.msk.f32.gmra.mxu2 %vm10354_vm5, %v10432_v46  ;;  %13059 = vmatmul.msk.f32.vlgmr.msrb.gmra.mxu0 %vm10354_vm5, %v10432_v46  ;;  %v10233_v45 = vpop.f32.mrf.mxu2  ;;  %v10228_v13 = vadd.f32 %v10227_v22, %v10163_v60 }
 0xc02   :  { %v18190_v59 = vld [vmem:[#allocation4 + $0x12] sm:$0xff]  ;;  %13006 = vmatmul.msk.f32.gmra.mxu3 %vm10354_vm5, %v18188_v0  ;;  %v10280_v15 = vpop.f32.mrf.mxu3 }
 0xc03   :  { %13077 = vmatmul.msk.f32.vlgmr.msra.gmra.mxu1 %vm10354_vm5, %v18190_v59  ;;  %v10281_v44 = vadd.f32 %v10280_v15, %v10216_v11  ;;  %v10101_v15 = vadd.f32 %v18109_v29, %v17964_v16 }
 0xc05   :  { %v10324_v41 = vmul.f32 0.1, %v10281_v44  ;;  %v10166_v14 = vadd.f32 %v18004_v3, %v10101_v15 }
 0xc07   :  { %v10340_v63 = vmax.f32 %v10281_v44, %v10324_v41 }
 0xc08   :  { %v18203_v61 = vld [vmem:[#allocation4 + $0x21] sm:$0xff] }
 0xc09   :  { %v18205_v53 = vld [vmem:[#allocation4 + $0x20] sm:$0xff]  ;;  %10399 = vst.msk [vmem:[#allocation4 + $0x31] sm:$0xff] %vm10354_vm5, %v10340_v63  ;;  %12991 = vmatmul.msk.f32.gmra.mxu2 %vm10354_vm5, %v18203_v61  ;;  %13060 = vmatmul.msk.f32.gmra.mxu0 %vm10354_vm5, %v18203_v61  ;;  %v10236_v22 = vpop.f32.mrf.mxu2 }
 0xc0a   :  { %v18207_v6 = vld [vmem:[#allocation4 + $0x22] sm:$0xff]  ;;  %13007 = vmatmul.msk.f32.gmra.mxu3 %vm10354_vm5, %v18205_v53  ;;  %v10283_v27 = vpop.f32.mrf.mxu3 }
 0xc0b   :  { %13078 = vmatmul.msk.f32.gmra.mxu1 %vm10354_vm5, %v18207_v6  ;;  %v10284_v47 = vadd.f32 %v10283_v27, %v10219_v20  ;;  %v10104_v27 = vadd.f32 %v18109_v29, %v17985_v34 }
 0xc0d   :  { %v10325_v28 = vmul.f32 0.1, %v10284_v47  ;;  %v10169_v34 = vadd.f32 %v18011_v43, %v10104_v27 }
 0xc0f   :  { %v10341_v4 = vmax.f32 %v10284_v47, %v10325_v28  ;;  %v10231_v47 = vadd.f32 %v10230_v32, %v10166_v14  ;;  %v10234_v25 = vadd.f32 %v10233_v45, %v10169_v34 }
 0xc10   :  { %v18221_v50 = vld [vmem:[#allocation4 + $0x31] sm:$0xff] }
 0xc11   :  { %v18223_v17 = vld [vmem:[#allocation4 + $0x30] sm:$0xff]  ;;  %10400 = vst.msk [vmem:[#allocation4 + $0x41] sm:$0xff] %vm10354_vm5, %v10341_v4  ;;  %12992 = vmatmul.msk.f32.gmra.mxu2 %vm10354_vm5, %v18221_v50  ;;  %13061 = vmatmul.msk.f32.gmra.mxu0 %vm10354_vm5, %v18221_v50  ;;  %v10239_v32 = vpop.f32.mrf.mxu2 }
 0xc12   :  { %v18225_v31 = vld [vmem:[#allocation4 + $0x32] sm:$0xff]  ;;  %13008 = vmatmul.msk.f32.gmra.mxu3 %vm10354_vm5, %v18223_v17  ;;  %v10286_v30 = vpop.f32.mrf.mxu3 }
 0xc13   :  { %13079 = vmatmul.msk.f32.gmra.mxu1 %vm10354_vm5, %v18225_v31  ;;  %v10287_v33 = vadd.f32 %v10286_v30, %v10222_v36 }
 0xc15   :  { %v10326_v39 = vmul.f32 0.1, %v10287_v33 }
 0xc17   :  { %v10342_v48 = vmax.f32 %v10287_v33, %v10326_v39  ;;  %v10107_v33 = vadd.f32 %v18109_v29, %v17992_v51 }
 0xc18   :  { %v18239_v52 = vld [vmem:[#allocation4 + $0x41] sm:$0xff] }
 0xc19   :  { %v18241_v1 = vld [vmem:[#allocation4 + $0x40] sm:$0xff]  ;;  %10401 = vst.msk [vmem:[#allocation4 + $0x51] sm:$0xff] %vm10354_vm5, %v10342_v48  ;;  %12993 = vmatmul.msk.f32.gmra.mxu2 %vm10354_vm5, %v18239_v52  ;;  %13062 = vmatmul.msk.f32.gmra.mxu0 %vm10354_vm5, %v18239_v52  ;;  %v10172_v51 = vadd.f32 %v18021_v24, %v10107_v33  ;;  %v10116_v33 = vadd.f32 %v18109_v29, %v18016_v37 }
 0xc1a   :  { %v18243_v42 = vld [vmem:[#allocation4 + $0x42] sm:$0xff]  ;;  %13009 = vmatmul.msk.f32.gmra.mxu3 %vm10354_vm5, %v18241_v1  ;;  %v10289_v18 = vpop.f32.mrf.mxu3 }
 0xc1b   :  { %13080 = vmatmul.msk.f32.gmra.mxu1 %vm10354_vm5, %v18243_v42  ;;  %v10290_v5 = vadd.f32 %v10289_v18, %v10225_v7  ;;  %v10421_v7 = vld [vmem:[#allocation4 + $0xa0] sm:$0xff] }
 0xc1d   :  { %v10327_v9 = vmul.f32 0.1, %v10290_v5 }
 0xc1f   :  { %v10343_v38 = vmax.f32 %v10290_v5, %v10327_v9  ;;  %v10110_v9 = vadd.f32 %v18109_v29, %v18002_v35 }
 0xc20   :  { %v18257_v46 = vld [vmem:[#allocation4 + $0x51] sm:$0xff] }
 0xc21   :  { %v18259_v12 = vld [vmem:[#allocation4 + $0x50] sm:$0xff]  ;;  %10402 = vst.msk [vmem:[#allocation4 + $0x61] sm:$0xff] %vm10354_vm5, %v10343_v38  ;;  %12994 = vmatmul.msk.f32.gmra.mxu2 %vm10354_vm5, %v18257_v46  ;;  %13063 = vmatmul.msk.f32.gmra.mxu0 %vm10354_vm5, %v18257_v46  ;;  %v10237_v38 = vadd.f32 %v10236_v22, %v10172_v51  ;;  %v10175_v15 = vadd.f32 %v18028_v19, %v10110_v9  ;;  %v13040_v9 = vld [vmem:[%s18906_s3 + $0x38] sm:$0xff] }
 0xc22   :  { %v18261_v11 = vld [vmem:[#allocation4 + $0x52] sm:$0xff]  ;;  %13010 = vmatmul.msk.f32.gmra.mxu3 %vm10354_vm5, %v18259_v12  ;;  %v10292_v57 = vpop.f32.mrf.mxu3 }
 0xc23   :  { %13081 = vmatmul.msk.f32.gmra.mxu1 %vm10354_vm5, %v18261_v11  ;;  %v10293_v44 = vadd.f32 %v10292_v57, %v10228_v13  ;;  %v10242_v57 = vpop.f32.mrf.mxu2  ;;  %v10240_v27 = vadd.f32 %v10239_v32, %v10175_v15  ;;  %10905 = vmatpush.msra.mxu3 %v13040_v9 }
 0xc25   :  { %v10328_v16 = vmul.f32 0.1, %v10293_v44 }
 0xc27   :  { %v10344_v41 = vmax.f32 %v10293_v44, %v10328_v16 }
 0xc28   :  { %v18275_v63 = vld [vmem:[#allocation4 + $0x61] sm:$0xff] }
 0xc29   :  { %v18277_v23 = vld [vmem:[#allocation4 + $0x60] sm:$0xff]  ;;  %10403 = vst.msk [vmem:[#allocation4 + $0x71] sm:$0xff] %vm10354_vm5, %v10344_v41  ;;  %12995 = vmatmul.msk.f32.gmra.mxu2 %vm10354_vm5, %v18275_v63  ;;  %13064 = vmatmul.msk.f32.gmra.mxu0 %vm10354_vm5, %v18275_v63  ;;  %v10113_v41 = vadd.f32 %v18109_v29, %v18009_v2 }
 0xc2a   :  { %v18279_v20 = vld [vmem:[#allocation4 + $0x62] sm:$0xff]  ;;  %13011 = vmatmul.msk.f32.gmra.mxu3 %vm10354_vm5, %v18277_v23  ;;  %v10295_v3 = vpop.f32.mrf.mxu3 }
 0xc2b   :  { %13082 = vmatmul.msk.f32.gmra.mxu1 %vm10354_vm5, %v18279_v20  ;;  %v10296_v10 = vadd.f32 %v10295_v3, %v10231_v47  ;;  %v10178_v3 = vadd.f32 %v18038_v54, %v10113_v41 }
 0xc2d   :  { %v10329_v28 = vmul.f32 0.1, %v10296_v10 }
 0xc2f   :  { %v10345_v4 = vmax.f32 %v10296_v10, %v10329_v28  ;;  %v10245_v28 = vpop.f32.mrf.mxu2 }
 0xc30   :  { %v18293_v55 = vld [vmem:[#allocation4 + $0x71] sm:$0xff] }
 0xc31   :  { %v18295_v36 = vld [vmem:[#allocation4 + $0x70] sm:$0xff]  ;;  %10404 = vst.msk [vmem:[#allocation4 + $0x81] sm:$0xff] %vm10354_vm5, %v10345_v4  ;;  %12996 = vmatmul.msk.f32.gmra.mxu2 %vm10354_vm5, %v18293_v55  ;;  %13065 = vmatmul.msk.f32.gmra.mxu0 %vm10354_vm5, %v18293_v55 }
 0xc32   :  { %v18297_v30 = vld [vmem:[#allocation4 + $0x72] sm:$0xff]  ;;  %13012 = vmatmul.msk.f32.gmra.mxu3 %vm10354_vm5, %v18295_v36  ;;  %v10298_v43 = vpop.f32.mrf.mxu3 }
 0xc33   :  { %13083 = vmatmul.msk.f32.gmra.mxu1 %vm10354_vm5, %v18297_v30  ;;  %v10299_v39 = vadd.f32 %v10298_v43, %v10234_v25  ;;  %v10243_v25 = vadd.f32 %v10242_v57, %v10178_v3 }
 0xc35   :  { %v10330_v48 = vmul.f32 0.1, %v10299_v39 }
 0xc37   :  { %v10346_v18 = vmax.f32 %v10299_v39, %v10330_v48  ;;  %v10181_v39 = vadd.f32 %v18045_v49, %v10116_v33  ;;  %v13022_v49 = vld [vmem:[%s18906_s3 + $0x28] sm:$0xff] }
 0xc38   :  { %v18311_v5 = vld [vmem:[#allocation4 + $0x81] sm:$0xff]  ;;  %10757 = vmatpush.msra.mxu2 %v13022_v49 }
 0xc39   :  { %v18313_v60 = vld [vmem:[#allocation4 + $0x82] sm:$0xff]  ;;  %10405 = vst.msk [vmem:[#allocation4 + $0xb1] sm:$0xff] %vm10354_vm5, %v10346_v18  ;;  %12997 = vmatmul.msk.f32.gmra.mxu2 %vm10354_vm5, %v10439_v56  ;;  %13066 = vmatmul.msk.f32.gmra.mxu0 %vm10354_vm5, %v18311_v5  ;;  %v10246_v18 = vadd.f32 %v10245_v28, %v10181_v39 }
 0xc3a   :  { %13013 = vmatmul.msk.f32.gmra.mxu3 %vm10354_vm5, %v10421_v7  ;;  %v10301_v45 = vpop.f32.mrf.mxu3  ;;  %v10119_v7 = vadd.f32 %v18109_v29, %v18023_v21  ;;  %v13021_v21 = vld [vmem:[%s18906_s3 + $0x20] sm:$0xff] }
 0xc3b   :  { %13084 = vmatmul.msk.f32.gmra.mxu1 %vm10354_vm5, %v18313_v60  ;;  %v10302_v24 = vadd.f32 %v10301_v45, %v10237_v38  ;;  %v10248_v45 = vpop.f32.mrf.mxu2  ;;  %10758 = vmatpush.msra.mxu2 %v13021_v21 }
 0xc3d   :  { %v10331_v13 = vmul.f32 0.1, %v10302_v24 }
 0xc3f   :  { %v10347_v35 = vmax.f32 %v10302_v24, %v10331_v13  ;;  %v13039_v24 = vld [vmem:[%s18906_s3 + $0x30] sm:$0xff]  ;;  %v10184_v13 = vadd.f32 %v18053_v58, %v10119_v7 }
 0xc40   :  { %v10440_v44 = vld [vmem:[#allocation4 + $0xb1] sm:$0xff]  ;;  %10906 = vmatpush.msra.mxu3 %v13039_v24 }
 0xc41   :  { %v18325_v14 = vld [vmem:[#allocation4 + $0xb0] sm:$0xff]  ;;  %10406 = vst.msk [vmem:[#allocation4 + $0xc1] sm:$0xff] %vm10354_vm5, %v10347_v35  ;;  %12998 = vmatmul.msk.f32.gmra.mxu2 %vm10354_vm5, %v10440_v44  ;;  %13067 = vmatmul.msk.f32.gmra.mxu0 %vm10354_vm5, %v10440_v44 }
 0xc42   :  { %v18327_v16 = vld [vmem:[#allocation4 + $0xb2] sm:$0xff]  ;;  %13014 = vmatmul.msk.f32.gmra.mxu3 %vm10354_vm5, %v18325_v14  ;;  %v10304_v19 = vpop.f32.mrf.mxu3 }
 0xc43   :  { %13085 = vmatmul.msk.f32.gmra.mxu1 %vm10354_vm5, %v18327_v16  ;;  %v10305_v47 = vadd.f32 %v10304_v19, %v10240_v27  ;;  %v10122_v19 = vadd.f32 %v18109_v29, %v18033_v8 }
 0xc45   :  { %v10332_v22 = vmul.f32 0.1, %v10305_v47  ;;  %v10187_v8 = vadd.f32 %v18072_v40, %v10122_v19 }
 0xc47   :  { %v10348_v10 = vmax.f32 %v10305_v47, %v10332_v22  ;;  %v10249_v47 = vadd.f32 %v10248_v45, %v10184_v13  ;;  %v10251_v22 = vpop.f32.mrf.mxu2 }
 0xc48   :  { %v18339_v2 = vld [vmem:[#allocation4 + $0xc1] sm:$0xff]  ;;  %v10252_v39 = vadd.f32 %v10251_v22, %v10187_v8 }
 0xc49   :  { %v18341_v34 = vld [vmem:[#allocation4 + $0xc0] sm:$0xff]  ;;  %10407 = vst.msk [vmem:[#allocation4 + $0xd1] sm:$0xff] %vm10354_vm5, %v10348_v10  ;;  %12999 = vmatmul.msk.f32.gmra.mxu2 %vm10354_vm5, %v18339_v2  ;;  %13068 = vmatmul.msk.f32.gmra.mxu0 %vm10354_vm5, %v18339_v2 }
 0xc4a   :  { %v18343_v4 = vld [vmem:[#allocation4 + $0xc2] sm:$0xff]  ;;  %13015 = vmatmul.msk.f32.gmra.mxu3 %vm10354_vm5, %v18341_v34  ;;  %v10307_v54 = vpop.f32.mrf.mxu3 }
 0xc4b   :  { %13086 = vmatmul.msk.f32.gmra.mxu1 %vm10354_vm5, %v18343_v4  ;;  %v10308_v43 = vadd.f32 %v10307_v54, %v10243_v25 }
 0xc4d   :  { %v10333_v37 = vmul.f32 0.1, %v10308_v43 }
 0xc4f   :  { %v10349_v32 = vmax.f32 %v10308_v43, %v10333_v37  ;;  %v10125_v43 = vadd.f32 %v18109_v29, %v18043_v26  ;;  %v13130_v29 = vld [vmem:[%s18906_s3 + $0x88] sm:$0xff]  ;;  %v10254_v7 = vpop.f32.mrf.mxu2 }
 0xc50   :  { %v18357_v51 = vld [vmem:[#allocation4 + $0xd1] sm:$0xff]  ;;  %11646 = vmatpush.msra.mxu0 %v13130_v29 }
 0xc51   :  { %v18359_v48 = vld [vmem:[#allocation4 + $0xd0] sm:$0xff]  ;;  %10408 = vst.msk [vmem:[#allocation4 + $0xe1] sm:$0xff] %vm10354_vm5, %v10349_v32  ;;  %13000 = vmatmul.msk.f32.gmra.mxu2 %vm10354_vm5, %v18357_v51  ;;  %13069 = vmatmul.msk.f32.gmra.mxu0 %vm10354_vm5, %v18357_v51  ;;  %v10190_v32 = vadd.f32 %v18117_v62, %v10125_v43 }
 0xc52   :  { %v18361_v56 = vld [vmem:[#allocation4 + $0xd2] sm:$0xff]  ;;  %13016 = vmatmul.msk.f32.gmra.mxu3 %vm10354_vm5, %v18359_v48  ;;  %v10310_v38 = vpop.f32.mrf.mxu3 }
 0xc53   :  { %v10311_v15 = vadd.f32 %v10310_v38, %v10246_v18  ;;  %13087 = vmatmul.msk.f32.gmra.mxu1 %vm10354_vm5, %v18361_v56  ;;  %v10255_v62 = vadd.f32 %v10254_v7, %v10190_v32  ;;  %v13129_v38 = vld [vmem:[%s18906_s3 + $0x80] sm:$0xff] }
 0xc54   :  { %11647 = vmatpush.msra.mxu0 %v13129_v38  ;;  %v18522_v38 = vld [vmem:[#allocation4 + $0x80] sm:$0xff] }
 0xc55   :  { %v10334_v57 = vmul.f32 0.1, %v10311_v15 }
 0xc57   :  { %v10350_v35 = vmax.f32 %v10311_v15, %v10334_v57  ;;  %v18466_v22 = vpop.f32.mrf.mxu2 }
 0xc58   :  { %v18387_v44 = vld [vmem:[#allocation4 + $0xe1] sm:$0xff] }
 0xc59   :  { %v18389_v41 = vld [vmem:[#allocation4 + $0xe0] sm:$0xff]  ;;  %10409 = vst.msk [vmem:[#allocation4 + $0xf1] sm:$0xff] %vm10354_vm5, %v10350_v35  ;;  %13001 = vmatmul.msk.f32.gmra.mxu2 %vm10354_vm5, %v18387_v44  ;;  %13070 = vmatmul.msk.f32.gmra.mxu0 %vm10354_vm5, %v18387_v44 }
 0xc5a   :  { %v18391_v27 = vld [vmem:[#allocation4 + $0xe2] sm:$0xff]  ;;  %13017 = vmatmul.msk.f32.gmra.mxu3 %vm10354_vm5, %v18389_v41  ;;  %v10313_v58 = vpop.f32.mrf.mxu3 }
 0xc5b   :  { %v10314_v3 = vadd.f32 %v10313_v58, %v10249_v47  ;;  %13088 = vmatmul.msk.f32.gmra.mxu1 %vm10354_vm5, %v18391_v27  ;;  %v10676_v47 = vld [vmem:[#allocation4 + $0x2] sm:$0xff] }
 0xc5d   :  { %v10335_v10 = vmul.f32 0.1, %v10314_v3 }
 0xc5f   :  { %v10351_v28 = vmax.f32 %v10314_v3, %v10335_v10 }
 0xc60   :  { %v18405_v33 = vld [vmem:[#allocation4 + $0xf1] sm:$0xff] }
 0xc61   :  { %v18407_v25 = vld [vmem:[#allocation4 + $0xf0] sm:$0xff]  ;;  %10410 = vst.msk [vmem:[#allocation4 + $0x101] sm:$0xff] %vm10354_vm5, %v10351_v28  ;;  %13002 = vmatmul.msk.f32.gmra.mxu2 %vm10354_vm5, %v18405_v33  ;;  %13071 = vmatmul.msk.f32.gmra.mxu0 %vm10354_vm5, %v18405_v33 }
 0xc62   :  { %v18409_v54 = vld [vmem:[#allocation4 + $0xf2] sm:$0xff]  ;;  %13018 = vmatmul.msk.f32.gmra.mxu3 %vm10354_vm5, %v18407_v25  ;;  %v10316_v40 = vpop.f32.mrf.mxu3 }
 0xc63   :  { %v10317_v37 = vadd.f32 %v10316_v40, %v10252_v39  ;;  %13089 = vmatmul.msk.f32.gmra.mxu1 %vm10354_vm5, %v18409_v54 }
 0xc65   :  { %v10336_v26 = vmul.f32 0.1, %v10317_v37 }
 0xc67   :  { %v10352_v18 = vmax.f32 %v10317_v37, %v10336_v26 }
 0xc68   :  { %v18426_v49 = vld [vmem:[#allocation4 + $0x101] sm:$0xff] }
 0xc69   :  { %v18428_v9 = vld [vmem:[#allocation4 + $0x100] sm:$0xff]  ;;  %10411 = vst.msk [vmem:[#allocation4 + $0x111] sm:$0xff] %vm10354_vm5, %v10352_v18  ;;  %13003 = vmatmul.msk.f32.gmra.mxu2 %vm10354_vm5, %v18426_v49  ;;  %13072 = vmatmul.msk.f32.gmra.mxu0 %vm10354_vm5, %v18426_v49 }
 0xc6a   :  { %v18430_v21 = vld [vmem:[#allocation4 + $0x102] sm:$0xff]  ;;  %13019 = vmatmul.msk.f32.gmra.mxu3 %vm10354_vm5, %v18428_v9  ;;  %v10319_v45 = vpop.f32.mrf.mxu3 }
 0xc6b   :  { %v10320_v24 = vadd.f32 %v10319_v45, %v10255_v62  ;;  %13090 = vmatmul.msk.f32.gmra.mxu1 %vm10354_vm5, %v18430_v21 }
 0xc6d   :  { %v10337_v15 = vmul.f32 0.1, %v10320_v24 }
 0xc6f   :  { %v10353_v13 = vmax.f32 %v10320_v24, %v10337_v15 }
 0xc70   :  { %v18444_v57 = vld [vmem:[#allocation4 + $0x111] sm:$0xff] }
 0xc71   :  { %v18446_v35 = vld [vmem:[#allocation4 + $0x110] sm:$0xff]  ;;  %13004 = vmatmul.msk.f32.gmra.mxu2 %vm10354_vm5, %v18444_v57  ;;  %10412 = vst.msk [vmem:[#allocation4 + $0x121] sm:$0xff] %vm10354_vm5, %v10353_v13  ;;  %13073 = vmatmul.msk.f32.gmra.mxu0 %vm10354_vm5, %v18444_v57  ;;  %v10684_v13 = vld [vmem:[#allocation4 + $0xa2] sm:$0xff] }
 0xc72   :  { %v18448_v19 = vld [vmem:[#allocation4 + $0x112] sm:$0xff]  ;;  %13020 = vmatmul.msk.f32.gmra.mxu3 %vm10354_vm5, %v18446_v35  ;;  %v18468_v8 = vpop.f32.mrf.mxu3 }
 0xc73   :  { %13091 = vmatmul.msk.f32.gmra.mxu1 %vm10354_vm5, %v18448_v19 }
 0xc78   :  { %v18459_v58 = vld [vmem:[#allocation4 + $0x121] sm:$0xff] }
 0xc79   :  { %v18461_v3 = vld [vmem:[#allocation4 + $0x122] sm:$0xff]  ;;  %13023 = vmatmul.msk.f32.vlgmr.msra.gmra.mxu2 %vm10354_vm5, %v10676_v47  ;;  %13074 = vmatmul.msk.f32.gmra.mxu0 %vm10354_vm5, %v18459_v58  ;;  %v11572_v47 = vld [vmem:[#allocation4 + $0x92] sm:$0xff] }
 0xc7a   :  { %13041 = vmatmul.msk.f32.vlgmr.msra.gmra.mxu3 %vm10354_vm5, %v18188_v0 }
 0xc7b   :  { %13092 = vmatmul.msk.f32.gmra.mxu1 %vm10354_vm5, %v18461_v3 }
 0xc7e   :  { %v18530_v24 = vpop.f32.mrf.mxu0 }
 0xc81   :  { %13024 = vmatmul.msk.f32.gmra.mxu2 %vm10354_vm5, %v18190_v59  ;;  %13131 = vmatmul.msk.f32.vlgmr.msra.gmra.mxu0 %vm10354_vm5, %v18207_v6 }
 0xc82   :  { %13042 = vmatmul.msk.f32.gmra.mxu3 %vm10354_vm5, %v18205_v53 }
 0xc84   :  { %v10518_v0 = vpop.f32.mrf.mxu2 }
 0xc85   :  { %v10631_v10 = vpop.f32.mrf.mxu3 }
 0xc86   :  { %v18480_v28 = vadd.f32 %v10631_v10, %v10518_v0 }
 0xc89   :  { %13025 = vmatmul.msk.f32.gmra.mxu2 %vm10354_vm5, %v18207_v6  ;;  %13132 = vmatmul.msk.f32.gmra.mxu0 %vm10354_vm5, %v18225_v31 }
 0xc8a   :  { %13043 = vmatmul.msk.f32.gmra.mxu3 %vm10354_vm5, %v18223_v17 }
 0xc8c   :  { %v10521_v59 = vpop.f32.mrf.mxu2 }
 0xc8d   :  { %v10634_v43 = vpop.f32.mrf.mxu3 }
 0xc8e   :  { %v18488_v39 = vadd.f32 %v10634_v43, %v10521_v59 }
 0xc91   :  { %13026 = vmatmul.msk.f32.gmra.mxu2 %vm10354_vm5, %v18225_v31  ;;  %13133 = vmatmul.msk.f32.gmra.mxu0 %vm10354_vm5, %v18243_v42 }
 0xc92   :  { %13044 = vmatmul.msk.f32.gmra.mxu3 %vm10354_vm5, %v18241_v1 }
 0xc94   :  { %v10524_v6 = vpop.f32.mrf.mxu2 }
 0xc95   :  { %v10637_v40 = vpop.f32.mrf.mxu3 }
 0xc96   :  { %v18496_v37 = vadd.f32 %v10637_v40, %v10524_v6 }
 0xc99   :  { %13027 = vmatmul.msk.f32.gmra.mxu2 %vm10354_vm5, %v18243_v42  ;;  %13134 = vmatmul.msk.f32.gmra.mxu0 %vm10354_vm5, %v18261_v11 }
 0xc9a   :  { %13045 = vmatmul.msk.f32.gmra.mxu3 %vm10354_vm5, %v18259_v12 }
 0xc9c   :  { %v10527_v31 = vpop.f32.mrf.mxu2 }
 0xc9d   :  { %v10640_v32 = vpop.f32.mrf.mxu3 }
 0xc9e   :  { %v18504_v26 = vadd.f32 %v10640_v32, %v10527_v31 }
 0xca1   :  { %13028 = vmatmul.msk.f32.gmra.mxu2 %vm10354_vm5, %v18261_v11  ;;  %13135 = vmatmul.msk.f32.gmra.mxu0 %vm10354_vm5, %v18279_v20 }
 0xca2   :  { %13046 = vmatmul.msk.f32.gmra.mxu3 %vm10354_vm5, %v18277_v23 }
 0xca4   :  { %v10530_v42 = vpop.f32.mrf.mxu2 }
 0xca5   :  { %v10643_v29 = vpop.f32.mrf.mxu3 }
 0xca6   :  { %v18512_v7 = vadd.f32 %v10643_v29, %v10530_v42 }
 0xca9   :  { %13029 = vmatmul.msk.f32.gmra.mxu2 %vm10354_vm5, %v18279_v20  ;;  %13136 = vmatmul.msk.f32.gmra.mxu0 %vm10354_vm5, %v18297_v30 }
 0xcaa   :  { %13047 = vmatmul.msk.f32.gmra.mxu3 %vm10354_vm5, %v18295_v36 }
 0xcac   :  { %v10533_v11 = vpop.f32.mrf.mxu2 }
 0xcad   :  { %v10646_v18 = vpop.f32.mrf.mxu3 }
 0xcae   :  { %v18520_v62 = vadd.f32 %v10646_v18, %v10533_v11  ;;  %v13094_v11 = vld [vmem:[%s18906_s3 + $0x68] sm:$0xff]  ;;  %v13093_v18 = vld [vmem:[%s18906_s3 + $0x60] sm:$0xff] }
 0xcaf   :  { %11350 = vmatpush.msrb.mxu2 %v13094_v11 }
 0xcb1   :  { %13030 = vmatmul.msk.f32.gmra.mxu2 %vm10354_vm5, %v18297_v30  ;;  %13137 = vmatmul.msk.f32.gmra.mxu0 %vm10354_vm5, %v18313_v60  ;;  %v18540_v60 = vpop.f32.mrf.mxu0 }
 0xcb2   :  { %13048 = vmatmul.msk.f32.gmra.mxu3 %vm10354_vm5, %v18522_v38  ;;  %11351 = vmatpush.msrb.mxu2 %v13093_v18 }
 0xcb4   :  { %v10536_v20 = vpop.f32.mrf.mxu2 }
 0xcb5   :  { %v10649_v45 = vpop.f32.mrf.mxu3 }
 0xcb6   :  { %v18532_v15 = vadd.f32 %v10649_v45, %v10536_v20  ;;  %v13111_v20 = vld [vmem:[%s18906_s3 + $0x70] sm:$0xff] }
 0xcb9   :  { %13031 = vmatmul.msk.f32.gmra.mxu2 %vm10354_vm5, %v10684_v13  ;;  %13138 = vmatmul.msk.f32.gmra.mxu0 %vm10354_vm5, %v11572_v47  ;;  %v18550_v6 = vpop.f32.mrf.mxu0 }
 0xcba   :  { %13049 = vmatmul.msk.f32.gmra.mxu3 %vm10354_vm5, %v18325_v14 }
 0xcbc   :  { %v10539_v30 = vpop.f32.mrf.mxu2 }
 0xcbd   :  { %v10652_v0 = vpop.f32.mrf.mxu3 }
 0xcbe   :  { %v18538_v10 = vadd.f32 %v10652_v0, %v10539_v30 }
 0xcc1   :  { %13032 = vmatmul.msk.f32.gmra.mxu2 %vm10354_vm5, %v18327_v16  ;;  %13139 = vmatmul.msk.f32.gmra.mxu0 %vm10354_vm5, %v18343_v4 }
 0xcc2   :  { %13050 = vmatmul.msk.f32.gmra.mxu3 %vm10354_vm5, %v18341_v34 }
 0xcc4   :  { %v10542_v59 = vpop.f32.mrf.mxu2 }
 0xcc5   :  { %v10655_v43 = vpop.f32.mrf.mxu3 }
 0xcc6   :  { %v18548_v14 = vadd.f32 %v10655_v43, %v10542_v59 }
 0xcc9   :  { %13033 = vmatmul.msk.f32.gmra.mxu2 %vm10354_vm5, %v18343_v4  ;;  %13140 = vmatmul.msk.f32.gmra.mxu0 %vm10354_vm5, %v18361_v56  ;;  %v18566_v4 = vpop.f32.mrf.mxu0 }
 0xcca   :  { %13051 = vmatmul.msk.f32.gmra.mxu3 %vm10354_vm5, %v18359_v48 }
 0xccc   :  { %v10545_v16 = vpop.f32.mrf.mxu2 }
 0xccd   :  { %v10658_v40 = vpop.f32.mrf.mxu3 }
 0xcce   :  { %v18558_v31 = vadd.f32 %v10658_v40, %v10545_v16 }
 0xcd1   :  { %13034 = vmatmul.msk.f32.gmra.mxu2 %vm10354_vm5, %v18361_v56  ;;  %13141 = vmatmul.msk.f32.gmra.mxu0 %vm10354_vm5, %v18391_v27  ;;  %v13112_v56 = vld [vmem:[%s18906_s3 + $0x78] sm:$0xff]  ;;  %v18590_v30 = vpop.f32.mrf.mxu0 }
 0xcd2   :  { %13052 = vmatmul.msk.f32.gmra.mxu3 %vm10354_vm5, %v18389_v41 }
 0xcd3   :  { %11498 = vmatpush.msrb.mxu3 %v13112_v56 }
 0xcd4   :  { %v10548_v32 = vpop.f32.mrf.mxu2 }
 0xcd5   :  { %v10661_v42 = vpop.f32.mrf.mxu3  ;;  %11499 = vmatpush.msrb.mxu3 %v13111_v20 }
 0xcd6   :  { %v18568_v29 = vadd.f32 %v10661_v42, %v10548_v32  ;;  %v18610_v32 = vld [vmem:[#allocation4 + $0x120] sm:$0xff]  ;;  %v18616_v42 = vpop.f32.mrf.mxu1 }
 0xcd9   :  { %13035 = vmatmul.msk.f32.gmra.mxu2 %vm10354_vm5, %v18391_v27  ;;  %13142 = vmatmul.msk.f32.gmra.mxu0 %vm10354_vm5, %v18409_v54  ;;  %v18600_v43 = vpop.f32.mrf.mxu0 }
 0xcda   :  { %13053 = vmatmul.msk.f32.gmra.mxu3 %vm10354_vm5, %v18407_v25 }
 0xcdc   :  { %v10551_v45 = vpop.f32.mrf.mxu2 }
 0xcdd   :  { %v10664_v13 = vpop.f32.mrf.mxu3 }
 0xcde   :  { %v18588_v47 = vadd.f32 %v10664_v13, %v10551_v45  ;;  %v18630_v20 = vpop.f32.mrf.mxu1 }
 0xce1   :  { %13036 = vmatmul.msk.f32.gmra.mxu2 %vm10354_vm5, %v18409_v54  ;;  %13143 = vmatmul.msk.f32.gmra.mxu0 %vm10354_vm5, %v18430_v21 }
 0xce2   :  { %13054 = vmatmul.msk.f32.gmra.mxu3 %vm10354_vm5, %v18428_v9 }
 0xce4   :  { %v10554_v27 = vpop.f32.mrf.mxu2 }
 0xce5   :  { %v10667_v0 = vpop.f32.mrf.mxu3 }
 0xce6   :  { %v18598_v59 = vadd.f32 %v10667_v0, %v10554_v27 }
 0xce9   :  { %13037 = vmatmul.msk.f32.gmra.mxu2 %vm10354_vm5, %v18430_v21  ;;  %13144 = vmatmul.msk.f32.gmra.mxu0 %vm10354_vm5, %v18448_v19  ;;  %v18618_v21 = vpop.f32.mrf.mxu0 }
 0xcea   :  { %13055 = vmatmul.msk.f32.gmra.mxu3 %vm10354_vm5, %v18446_v35 }
 0xcec   :  { %v10557_v54 = vpop.f32.mrf.mxu2 }
 0xced   :  { %v10670_v16 = vpop.f32.mrf.mxu3 }
 0xcee   :  { %v18608_v40 = vadd.f32 %v10670_v16, %v10557_v54  ;;  %v18639_v54 = vpop.f32.mrf.mxu1 }
 0xcf1   :  { %13038 = vmatmul.msk.f32.gmra.mxu2 %vm10354_vm5, %v18448_v19  ;;  %13145 = vmatmul.msk.f32.gmra.mxu0 %vm10354_vm5, %v18461_v3  ;;  %v10629_v19 = vadd.f32 %v18468_v8, %v18466_v22  ;;  %v18641_v22 = vpop.f32.mrf.mxu0 }
 0xcf2   :  { %13056 = vmatmul.msk.f32.gmra.mxu3 %vm10354_vm5, %v18610_v32 }
 0xcf4   :  { %v10560_v11 = vpop.f32.mrf.mxu2 }
 0xcf5   :  { %v10673_v56 = vpop.f32.mrf.mxu3 }
 0xcf6   :  { %v18622_v18 = vadd.f32 %v10673_v56, %v10560_v11  ;;  %v18652_v56 = vpop.f32.mrf.mxu1 }
 0xcf9   :  { %13095 = vmatmul.msk.f32.vlgmr.msrb.gmra.mxu2 %vm10354_vm5, %v18205_v53 }
 0xcfa   :  { %13113 = vmatmul.msk.f32.vlgmr.msrb.gmra.mxu3 %vm10354_vm5, %v18203_v61 }
 0xcfc   :  { %v10760_v45 = vpop.f32.mrf.mxu2 }
 0xcfd   :  { %v10908_v13 = vpop.f32.mrf.mxu3  ;;  %v10808_v27 = vadd.f32 %v10760_v45, %v10629_v19 }
 0xcff   :  { %v18632_v0 = vadd.f32 %v10908_v13, %v10808_v27 }
 0xd01   :  { %13096 = vmatmul.msk.f32.gmra.mxu2 %vm10354_vm5, %v18223_v17 }
 0xd02   :  { %13114 = vmatmul.msk.f32.gmra.mxu3 %vm10354_vm5, %v18221_v50 }
 0xd04   :  { %v10763_v53 = vpop.f32.mrf.mxu2 }
 0xd05   :  { %v10911_v3 = vpop.f32.mrf.mxu3  ;;  %v10809_v61 = vadd.f32 %v10763_v53, %v18480_v28  ;;  %v11080_v28 = vpop.f32.mrf.mxu0 }
 0xd07   :  { %v18643_v8 = vadd.f32 %v10911_v3, %v10809_v61 }
 0xd09   :  { %13097 = vmatmul.msk.f32.gmra.mxu2 %vm10354_vm5, %v18241_v1 }
 0xd0a   :  { %13115 = vmatmul.msk.f32.gmra.mxu3 %vm10354_vm5, %v18239_v52 }
 0xd0c   :  { %v10766_v17 = vpop.f32.mrf.mxu2 }
 0xd0d   :  { %v10914_v16 = vpop.f32.mrf.mxu3  ;;  %v10810_v50 = vadd.f32 %v10766_v17, %v18488_v39  ;;  %v18665_v39 = vpop.f32.mrf.mxu1 }
 0xd0e   :  { %v18667_v13 = vpop.f32.mrf.mxu0 }
 0xd0f   :  { %v18650_v11 = vadd.f32 %v10914_v16, %v10810_v50  ;;  %v11276_v50 = vld [vmem:[#allocation4 + $0x90] sm:$0xff] }
 0xd11   :  { %13098 = vmatmul.msk.f32.gmra.mxu2 %vm10354_vm5, %v18259_v12 }
 0xd12   :  { %13116 = vmatmul.msk.f32.gmra.mxu3 %vm10354_vm5, %v18257_v46 }
 0xd14   :  { %v10769_v19 = vpop.f32.mrf.mxu2 }
 0xd15   :  { %v10917_v1 = vpop.f32.mrf.mxu3  ;;  %v10811_v45 = vadd.f32 %v10769_v19, %v18496_v37  ;;  %v11424_v19 = vld [vmem:[#allocation4 + $0x91] sm:$0xff] }
 0xd16   :  { %v18678_v3 = vpop.f32.mrf.mxu0 }
 0xd17   :  { %v18659_v52 = vadd.f32 %v10917_v1, %v10811_v45 }
 0xd19   :  { %13099 = vmatmul.msk.f32.gmra.mxu2 %vm10354_vm5, %v18277_v23  ;;  %v18676_v23 = vpop.f32.mrf.mxu1 }
 0xd1a   :  { %13117 = vmatmul.msk.f32.gmra.mxu3 %vm10354_vm5, %v18275_v63 }
 0xd1c   :  { %v10772_v12 = vpop.f32.mrf.mxu2 }
 0xd1d   :  { %v10920_v27 = vpop.f32.mrf.mxu3  ;;  %v10812_v46 = vadd.f32 %v10772_v12, %v18504_v26 }
 0xd1e   :  { %v18690_v1 = vpop.f32.mrf.mxu0 }
 0xd1f   :  { %v18670_v53 = vadd.f32 %v10920_v27, %v10812_v46 }
 0xd21   :  { %13100 = vmatmul.msk.f32.gmra.mxu2 %vm10354_vm5, %v18295_v36  ;;  %v18688_v16 = vpop.f32.mrf.mxu1 }
 0xd22   :  { %13118 = vmatmul.msk.f32.gmra.mxu3 %vm10354_vm5, %v18293_v55 }
 0xd24   :  { %v10775_v37 = vpop.f32.mrf.mxu2 }
 0xd25   :  { %v10923_v63 = vpop.f32.mrf.mxu3  ;;  %v10813_v61 = vadd.f32 %v10775_v37, %v18512_v7 }
 0xd27   :  { %v18681_v17 = vadd.f32 %v10923_v63, %v10813_v61 }
 0xd29   :  { %13101 = vmatmul.msk.f32.gmra.mxu2 %vm10354_vm5, %v18522_v38  ;;  %v18699_v27 = vpop.f32.mrf.mxu1 }
 0xd2a   :  { %13119 = vmatmul.msk.f32.gmra.mxu3 %vm10354_vm5, %v18311_v5 }
 0xd2c   :  { %v10778_v36 = vpop.f32.mrf.mxu2 }
 0xd2d   :  { %v10926_v26 = vpop.f32.mrf.mxu3  ;;  %v10814_v55 = vadd.f32 %v10778_v36, %v18520_v62  ;;  %v18701_v62 = vpop.f32.mrf.mxu0 }
 0xd2f   :  { %v18692_v45 = vadd.f32 %v10926_v26, %v10814_v55 }
 0xd31   :  { %13102 = vmatmul.msk.f32.gmra.mxu2 %vm10354_vm5, %v11276_v50 }
 0xd32   :  { %13120 = vmatmul.msk.f32.gmra.mxu3 %vm10354_vm5, %v11424_v19 }
 0xd34   :  { %v10781_v7 = vpop.f32.mrf.mxu2 }
 0xd35   :  { %v10929_v38 = vpop.f32.mrf.mxu3  ;;  %v10815_v5 = vadd.f32 %v10781_v7, %v18532_v15  ;;  %v11228_v15 = vpop.f32.mrf.mxu1 }
 0xd36   :  { %v18712_v26 = vpop.f32.mrf.mxu0 }
 0xd37   :  { %v18697_v12 = vadd.f32 %v10929_v38, %v10815_v5 }
 0xd39   :  { %13103 = vmatmul.msk.f32.gmra.mxu2 %vm10354_vm5, %v18341_v34 }
 0xd3a   :  { %13121 = vmatmul.msk.f32.gmra.mxu3 %vm10354_vm5, %v18339_v2 }
 0xd3c   :  { %v10784_v46 = vpop.f32.mrf.mxu2 }
 0xd3d   :  { %v10932_v37 = vpop.f32.mrf.mxu3  ;;  %v10816_v63 = vadd.f32 %v10784_v46, %v18538_v10 }
 0xd3f   :  { %v10964_v61 = vadd.f32 %v10932_v37, %v10816_v63 }
 0xd41   :  { %v11112_v36 = vadd.f32 %v11080_v28, %v10964_v61  ;;  %13104 = vmatmul.msk.f32.gmra.mxu2 %vm10354_vm5, %v18359_v48 }
 0xd42   :  { %13122 = vmatmul.msk.f32.gmra.mxu3 %vm10354_vm5, %v18357_v51  ;;  %v18723_v51 = vpop.f32.mrf.mxu0 }
 0xd43   :  { %v18714_v55 = vadd.f32 %v11228_v15, %v11112_v36 }
 0xd44   :  { %v10787_v34 = vpop.f32.mrf.mxu2 }
 0xd45   :  { %v10935_v50 = vpop.f32.mrf.mxu3  ;;  %v10817_v2 = vadd.f32 %v10787_v34, %v18548_v14  ;;  %v11284_v34 = vld [vmem:[#allocation4 + $0x130] sm:$0xff] }
 0xd47   :  { %v18717_v19 = vadd.f32 %v10935_v50, %v10817_v2 }
 0xd49   :  { %13105 = vmatmul.msk.f32.gmra.mxu2 %vm10354_vm5, %v18389_v41 }
 0xd4a   :  { %13123 = vmatmul.msk.f32.gmra.mxu3 %vm10354_vm5, %v18387_v44  ;;  %v18733_v5 = vpop.f32.mrf.mxu0 }
 0xd4c   :  { %v10790_v48 = vpop.f32.mrf.mxu2 }
 0xd4d   :  { %v10938_v10 = vpop.f32.mrf.mxu3  ;;  %v10818_v28 = vadd.f32 %v10790_v48, %v18558_v31  ;;  %v11580_v31 = vld [vmem:[#allocation4 + $0x132] sm:$0xff]  ;;  %v11104_v48 = vadd.f32 %v18530_v24, %v18632_v0  ;;  %v11106_v24 = vadd.f32 %v18550_v6, %v18650_v11 }
 0xd4e   :  { %13146 = vmatmul.msk.f32.gmra.mxu0 %vm10354_vm5, %v11580_v31 }
 0xd4f   :  { %v18726_v7 = vadd.f32 %v10938_v10, %v10818_v28 }
 0xd51   :  { %13106 = vmatmul.msk.f32.gmra.mxu2 %vm10354_vm5, %v18407_v25 }
 0xd52   :  { %13124 = vmatmul.msk.f32.gmra.mxu3 %vm10354_vm5, %v18405_v33 }
 0xd54   :  { %v10793_v14 = vpop.f32.mrf.mxu2 }
 0xd55   :  { %v10941_v38 = vpop.f32.mrf.mxu3  ;;  %v10819_v41 = vadd.f32 %v10793_v14, %v18568_v29  ;;  %v18745_v29 = vpop.f32.mrf.mxu0 }
 0xd56   :  { %19490 = vst [vmem:[#allocation53_spill] sm:$0xff] %v18745_v29 }
 0xd57   :  { %v18735_v44 = vadd.f32 %v10941_v38, %v10819_v41  ;;  %v11105_v41 = vadd.f32 %v18540_v60, %v18643_v8 }
 0xd59   :  { %13107 = vmatmul.msk.f32.gmra.mxu2 %vm10354_vm5, %v18428_v9 }
 0xd5a   :  { %13125 = vmatmul.msk.f32.gmra.mxu3 %vm10354_vm5, %v18426_v49 }
 0xd5c   :  { %v10796_v46 = vpop.f32.mrf.mxu2 }
 0xd5d   :  { %v10944_v25 = vpop.f32.mrf.mxu3  ;;  %v10820_v33 = vadd.f32 %v10796_v46, %v18588_v47  ;;  %v18758_v47 = vpop.f32.mrf.mxu0 }
 0xd5e   :  { %19491 = vst [vmem:[#allocation61_spill] sm:$0xff] %v18758_v47 }
 0xd5f   :  { %v18743_v37 = vadd.f32 %v10944_v25, %v10820_v33  ;;  %v11253_v25 = vadd.f32 %v18630_v20, %v11105_v41 }
 0xd61   :  { %13108 = vmatmul.msk.f32.gmra.mxu2 %vm10354_vm5, %v18446_v35 }
 0xd62   :  { %13126 = vmatmul.msk.f32.gmra.mxu3 %vm10354_vm5, %v18444_v57  ;;  %v11432_v57 = vld [vmem:[#allocation4 + $0x131] sm:$0xff] }
 0xd64   :  { %v10799_v9 = vpop.f32.mrf.mxu2 }
 0xd65   :  { %v10947_v63 = vpop.f32.mrf.mxu3  ;;  %v10821_v49 = vadd.f32 %v10799_v9, %v18598_v59 }
 0xd67   :  { %v18752_v61 = vadd.f32 %v10947_v63, %v10821_v49  ;;  %v11254_v63 = vadd.f32 %v18639_v54, %v11106_v24 }
 0xd69   :  { %13109 = vmatmul.msk.f32.gmra.mxu2 %vm10354_vm5, %v18610_v32  ;;  %v18765_v32 = vpop.f32.mrf.mxu0 }
 0xd6a   :  { %13127 = vmatmul.msk.f32.gmra.mxu3 %vm10354_vm5, %v18459_v58 }
 0xd6c   :  { %v10802_v36 = vpop.f32.mrf.mxu2 }
 0xd6d   :  { %v10950_v15 = vpop.f32.mrf.mxu3  ;;  %v10822_v35 = vadd.f32 %v10802_v36, %v18608_v40  ;;  %v11252_v40 = vadd.f32 %v18616_v42, %v11104_v48  ;;  %v11107_v36 = vadd.f32 %v18566_v4, %v18659_v52 }
 0xd6f   :  { %v18761_v50 = vadd.f32 %v10950_v15, %v10822_v35  ;;  %v11255_v20 = vadd.f32 %v18652_v56, %v11107_v36  ;;  %v11109_v56 = vadd.f32 %v18600_v43, %v18681_v17  ;;  %v11111_v43 = vadd.f32 %v18641_v22, %v18697_v12 }
 0xd71   :  { %13110 = vmatmul.msk.f32.gmra.mxu2 %vm10354_vm5, %v11284_v34  ;;  %v18775_v31 = vpop.f32.mrf.mxu0 }
 0xd72   :  { %13128 = vmatmul.msk.f32.gmra.mxu3 %vm10354_vm5, %v11432_v57  ;;  %v11108_v57 = vadd.f32 %v18590_v30, %v18670_v53  ;;  %v11110_v30 = vadd.f32 %v18618_v21, %v18692_v45  ;;  %v11231_v21 = vpop.f32.mrf.mxu1 }
 0xd74   :  { %v10805_v59 = vpop.f32.mrf.mxu2  ;;  %v11256_v54 = vadd.f32 %v18665_v39, %v11108_v57  ;;  %v11258_v41 = vadd.f32 %v18688_v16, %v11110_v30 }
 0xd75   :  { %v10953_v2 = vpop.f32.mrf.mxu3  ;;  %v10823_v58 = vadd.f32 %v10805_v59, %v18622_v18 }
 0xd77   :  { %v18770_v10 = vadd.f32 %v10953_v2, %v10823_v58 }
 0xd79   :  { %v18784_v42 = vpop.f32.mrf.mxu0 }
 0xd7c   :  { %v11353_v28 = vpop.f32.mrf.mxu2 }
 0xd7d   :  { %v11501_v14 = vpop.f32.mrf.mxu3  ;;  %v11401_v38 = vadd.f32 %v11353_v28, %v11252_v40  ;;  %v11257_v40 = vadd.f32 %v18676_v23, %v11109_v56 }
 0xd7f   :  { %v18777_v46 = vadd.f32 %v11501_v14, %v11401_v38 }
 0xd81   :  { %19492 = vst [vmem:[#allocation66_spill] sm:$0xff] %v18777_v46  ;;  %v18792_v35 = vpop.f32.mrf.mxu0 }
 0xd84   :  { %v11356_v18 = vpop.f32.mrf.mxu2 }
 0xd85   :  { %v11504_v33 = vpop.f32.mrf.mxu3  ;;  %v11402_v9 = vadd.f32 %v11356_v18, %v11253_v25 }
 0xd87   :  { %v18782_v0 = vadd.f32 %v11504_v33, %v11402_v9  ;;  %v11259_v9 = vadd.f32 %v18699_v27, %v11111_v43  ;;  %v11118_v43 = vadd.f32 %v18723_v51, %v18761_v50  ;;  %v11114_v50 = vadd.f32 %v18678_v3, %v18726_v7  ;;  %v11761_v3 = vld [vmem:[%s18912_s9 + $0x18] sm:$0xff] }
 0xd88   :  { %11791 = vmatpush.msra.mxu2 %v11761_v3 }
 0xd89   :  { %v18799_v48 = vpop.f32.mrf.mxu0 }
 0xd8c   :  { %v11359_v49 = vpop.f32.mrf.mxu2 }
 0xd8d   :  { %v11507_v60 = vpop.f32.mrf.mxu3  ;;  %v11403_v8 = vadd.f32 %v11359_v49, %v11254_v63 }
 0xd8f   :  { %v18789_v15 = vadd.f32 %v11507_v60, %v11403_v8 }
 0xd91   :  { %v18808_v53 = vpop.f32.mrf.mxu0 }
 0xd94   :  { %v11362_v34 = vpop.f32.mrf.mxu2 }
 0xd95   :  { %v11510_v6 = vpop.f32.mrf.mxu3  ;;  %v11404_v11 = vadd.f32 %v11362_v34, %v11255_v20  ;;  %v11234_v20 = vpop.f32.mrf.mxu1 }
 0xd97   :  { %v18796_v59 = vadd.f32 %v11510_v6, %v11404_v11 }
 0xd99   :  { %v11673_v23 = vpop.f32.mrf.mxu0 }
 0xd9c   :  { %v11365_v2 = vpop.f32.mrf.mxu2 }
 0xd9d   :  { %v11513_v58 = vpop.f32.mrf.mxu3  ;;  %v11405_v4 = vadd.f32 %v11365_v2, %v11256_v54  ;;  %v11237_v27 = vpop.f32.mrf.mxu1 }
 0xd9f   :  { %v18803_v52 = vadd.f32 %v11513_v58, %v11405_v4 }
 0xda1   :  { %v18820_v60 = vpop.f32.mrf.mxu0 }
 0xda4   :  { %v11368_v28 = vpop.f32.mrf.mxu2 }
 0xda5   :  { %v11516_v14 = vpop.f32.mrf.mxu3  ;;  %v11406_v38 = vadd.f32 %v11368_v28, %v11257_v40  ;;  %v11240_v58 = vpop.f32.mrf.mxu1 }
 0xda7   :  { %v18810_v39 = vadd.f32 %v11516_v14, %v11406_v38 }
 0xda9   :  { %v11679_v11 = vpop.f32.mrf.mxu0 }
 0xdac   :  { %v11371_v25 = vpop.f32.mrf.mxu2 }
 0xdad   :  { %v11519_v18 = vpop.f32.mrf.mxu3  ;;  %v11407_v33 = vadd.f32 %v11371_v25, %v11258_v41  ;;  %v11243_v38 = vpop.f32.mrf.mxu1 }
 0xdaf   :  { %v18815_v17 = vadd.f32 %v11519_v18, %v11407_v33 }
 0xdb1   :  { %v11682_v2 = vpop.f32.mrf.mxu0 }
 0xdb4   :  { %v11374_v24 = vpop.f32.mrf.mxu2 }
 0xdb5   :  { %v11522_v63 = vpop.f32.mrf.mxu3  ;;  %v11408_v45 = vadd.f32 %v11374_v24, %v11259_v9  ;;  %v11246_v25 = vpop.f32.mrf.mxu1  ;;  %v11117_v9 = vadd.f32 %v18712_v26, %v18752_v61  ;;  %v11119_v24 = vadd.f32 %v18733_v5, %v18770_v10  ;;  %v11113_v5 = vadd.f32 %v18667_v13, %v18717_v19 }
 0xdb7   :  { %v18818_v49 = vadd.f32 %v11522_v63, %v11408_v45  ;;  %v11116_v63 = vadd.f32 %v18701_v62, %v18743_v37  ;;  %v11266_v45 = vadd.f32 %v11246_v25, %v11118_v43 }
 0xdb9   :  { %v11685_v40 = vpop.f32.mrf.mxu0  ;;  %v11264_v26 = vadd.f32 %v11240_v58, %v11116_v63 }
 0xdbc   :  { %v11377_v16 = vpop.f32.mrf.mxu2 }
 0xdbd   :  { %v11525_v8 = vpop.f32.mrf.mxu3  ;;  %v11409_v36 = vadd.f32 %v11377_v16, %v18714_v55  ;;  %v11249_v16 = vpop.f32.mrf.mxu1 }
 0xdbf   :  { %v11557_v34 = vadd.f32 %v11525_v8, %v11409_v36  ;;  %v11115_v8 = vadd.f32 %v18690_v1, %v18735_v44  ;;  %v11265_v36 = vadd.f32 %v11243_v38, %v11117_v9  ;;  %v11262_v1 = vadd.f32 %v11234_v20, %v11114_v50 }
 0xdc0   :  { %v11261_v9 = vadd.f32 %v11231_v21, %v11113_v5 }
 0xdc1   :  { %v18823_v22 = vadd.f32 %v11673_v23, %v11557_v34  ;;  %v11688_v30 = vpop.f32.mrf.mxu0  ;;  %v11267_v34 = vadd.f32 %v11249_v16, %v11119_v24  ;;  %v11263_v37 = vadd.f32 %v11237_v27, %v11115_v8 }
 0xdc4   :  { %v11380_v12 = vpop.f32.mrf.mxu2 }
 0xdc5   :  { %v11528_v6 = vpop.f32.mrf.mxu3  ;;  %v11410_v13 = vadd.f32 %v11380_v12, %v11261_v9  ;;  %v11703_v12 = vadd.f32 %v18799_v48, %v18815_v17  ;;  %v11759_v48 = vld [vmem:[%s18912_s9 + $0x8] sm:$0xff] }
 0xdc7   :  { %v11558_v20 = vadd.f32 %v11528_v6, %v11410_v13  ;;  %v11702_v6 = vadd.f32 %v18792_v35, %v18810_v39  ;;  %v11699_v35 = vadd.f32 %v18765_v32, %v18789_v15  ;;  %v19495_v39 = vld [vmem:[#allocation53_spill] sm:$0xff]  ;;  %v11714_v32 = vld [vmem:[%s18911_s8 + $0x8] sm:$0xff]  ;;  %v11716_v15 = vld [vmem:[%s18911_s8 + $0x18] sm:$0xff] }
 0xdc9   :  { %v11691_v23 = vpop.f32.mrf.mxu0 }
 0xdcc   :  { %v11383_v57 = vpop.f32.mrf.mxu2 }
 0xdcd   :  { %v11531_v54 = vpop.f32.mrf.mxu3  ;;  %v11411_v7 = vadd.f32 %v11383_v57, %v11262_v1  ;;  %v11704_v57 = vadd.f32 %v18808_v53, %v18818_v49  ;;  %v11760_v53 = vld [vmem:[%s18912_s9 + $0x10] sm:$0xff]  ;;  %v11713_v49 = vld [vmem:[%s18911_s8] sm:$0xff] }
 0xdce   :  { %11792 = vmatpush.msra.mxu2 %v11760_v53 }
 0xdd0   :  { %11793 = vmatpush.msra.mxu2 %v11759_v48 }
 0xdd1   :  { %v11694_v62 = vpop.f32.mrf.mxu0 }
 0xdd4   :  { %v11386_v4 = vpop.f32.mrf.mxu2 }
 0xdd5   :  { %v11534_v56 = vpop.f32.mrf.mxu3  ;;  %v11412_v44 = vadd.f32 %v11386_v4, %v11263_v37 }
 0xdd7   :  { %v11560_v19 = vadd.f32 %v11534_v56, %v11412_v44 }
 0xdd9   :  { %v11708_v4 = vadd.f32 %v11682_v2, %v11560_v19 }
 0xddc   :  { %v11389_v28 = vpop.f32.mrf.mxu2 }
 0xddd   :  { %v11537_v14 = vpop.f32.mrf.mxu3  ;;  %v11413_v10 = vadd.f32 %v11389_v28, %v11264_v26  ;;  %v11706_v28 = vadd.f32 %v18820_v60, %v11558_v20  ;;  %v11700_v60 = vadd.f32 %v18775_v31, %v18796_v59  ;;  %v19493_v31 = vld [vmem:[#allocation61_spill] sm:$0xff] }
 0xdde   :  { %v11698_v59 = vadd.f32 %v19493_v31, %v18782_v0  ;;  %v11715_v0 = vld [vmem:[%s18911_s8 + $0x10] sm:$0xff] }
 0xddf   :  { %v11561_v58 = vadd.f32 %v11537_v14, %v11413_v10 }
 0xde4   :  { %v11392_v55 = vpop.f32.mrf.mxu2 }
 0xde5   :  { %v11540_v41 = vpop.f32.mrf.mxu3  ;;  %v11414_v61 = vadd.f32 %v11392_v55, %v11265_v36 }
 0xde7   :  { %v11562_v38 = vadd.f32 %v11540_v41, %v11414_v61 }
 0xde9   :  { %v11710_v27 = vadd.f32 %v11688_v30, %v11562_v38 }
 0xdec   :  { %v11395_v18 = vpop.f32.mrf.mxu2 }
 0xded   :  { %v11543_v33 = vpop.f32.mrf.mxu3  ;;  %v11415_v29 = vadd.f32 %v11395_v18, %v11266_v45 }
 0xdef   :  { %v11563_v25 = vadd.f32 %v11543_v33, %v11415_v29  ;;  %v11559_v29 = vadd.f32 %v11531_v54, %v11411_v7 }
 0xdf1   :  { %v11707_v21 = vadd.f32 %v11679_v11, %v11559_v29  ;;  %v11701_v11 = vadd.f32 %v18784_v42, %v18803_v52  ;;  %v11758_v42 = vld [vmem:[%s18912_s9] sm:$0xff]  ;;  %v19494_v52 = vld [vmem:[#allocation66_spill] sm:$0xff] }
 0xdf2   :  { %v11697_v17 = vadd.f32 %v19495_v39, %v19494_v52  ;;  %11794 = vmatpush.msra.mxu2 %v11758_v42 }
 0xdf4   :  { %v11398_v46 = vpop.f32.mrf.mxu2 }
 0xdf5   :  { %v11546_v51 = vpop.f32.mrf.mxu3  ;;  %v11416_v47 = vadd.f32 %v11398_v46, %v11267_v34  ;;  %v11711_v46 = vadd.f32 %v11691_v23, %v11563_v25  ;;  %v13161_v34 = vld [vmem:[%s18913_s10] ss:$0 sm:$0xff] }
 0xdf7   :  { %v11564_v43 = vadd.f32 %v11546_v51, %v11416_v47  ;;  %v11709_v47 = vadd.f32 %v11685_v40, %v11561_v58 }
 0xdf9   :  { %v11712_v18 = vadd.f32 %v11694_v62, %v11564_v43 }
 0xdfb   :  { %11721 = vmatpush.msrb.mxu1 %v11712_v18 }
 0xdfd   :  { %11722 = vmatpush.msrb.mxu1 %v11711_v46 }
 0xdff   :  { %11723 = vmatpush.msrb.mxu1 %v11710_v27 }
 0xe01   :  { %11724 = vmatpush.msrb.mxu1 %v11709_v47 }
 0xe03   :  { %11725 = vmatpush.msrb.mxu1 %v11708_v4 }
 0xe05   :  { %11726 = vmatpush.msrb.mxu1 %v11707_v21 }
 0xe07   :  { %11727 = vmatpush.msrb.mxu1 %v11706_v28 }
 0xe09   :  { %11728 = vmatpush.msrb.mxu1 %v18823_v22  ;;  %v13160_v22 = vld [vmem:[%s18909_s6] ss:$0 sm:$0xff] }
 0xe0b   :  { %11729 = vmatpush.msrb.mxu1 %v11704_v57 }
 0xe0d   :  { %11730 = vmatpush.msrb.mxu1 %v11703_v12 }
 0xe0f   :  { %11731 = vmatpush.msrb.mxu1 %v11702_v6 }
 0xe11   :  { %11732 = vmatpush.msrb.mxu1 %v11701_v11 }
 0xe13   :  { %11733 = vmatpush.msrb.mxu1 %v11700_v60 }
 0xe15   :  { %11734 = vmatpush.msrb.mxu1 %v11699_v35 }
 0xe17   :  { %11735 = vmatpush.msrb.mxu1 %v11698_v59 }
 0xe19   :  { %11736 = vmatpush.msrb.mxu1 %v11697_v17 }
 0xe1a   :  { %11737 = vmatmul.f32.vlgmr.msrb.gmra.mxu1 %v11713_v49 }
 0xe22   :  { %11740 = vmatmul.f32.gmra.mxu1 %v11714_v32 }
 0xe2a   :  { %11743 = vmatmul.f32.gmra.mxu1 %v11715_v0 }
 0xe32   :  { %11746 = vmatmul.f32.gmra.mxu1 %v11716_v15 }
 0xe97   :  { %v11738_v54 = vpop.f32.mrf.mxu1 }
 0xe98   :  { %v11739_v2 = vadd.f32 %v13160_v22, %v11738_v54 }
 0xe9a   :  { %v11750_v56 = vmul.f32 0.1, %v11739_v2 }
 0xe9c   :  { %v11754_v40 = vmax.f32 %v11739_v2, %v11750_v56 }
 0xe9e   :  { %13147 = vmatmul.msk.f32.vlgmr.msra.gmra.mxu2 %vm11766_vm7, %v11754_v40 }
 0xe9f   :  { %v11741_v14 = vpop.f32.mrf.mxu1 }
 0xea0   :  { %v11742_v30 = vadd.f32 %v13160_v22, %v11741_v14 }
 0xea2   :  { %v11751_v55 = vmul.f32 0.1, %v11742_v30 }
 0xea4   :  { %v11755_v41 = vmax.f32 %v11742_v30, %v11751_v55 }
 0xea6   :  { %13148 = vmatmul.msk.f32.gmra.mxu2 %vm11766_vm7, %v11755_v41 }
 0xea7   :  { %v11744_v33 = vpop.f32.mrf.mxu1 }
 0xea8   :  { %v11745_v23 = vadd.f32 %v13160_v22, %v11744_v33 }
 0xeaa   :  { %v11752_v24 = vmul.f32 0.1, %v11745_v23 }
 0xeac   :  { %v11756_v63 = vmax.f32 %v11745_v23, %v11752_v24 }
 0xeae   :  { %13149 = vmatmul.msk.f32.gmra.mxu2 %vm11766_vm7, %v11756_v63 }
 0xeaf   :  { %v11747_v45 = vpop.f32.mrf.mxu1 }
 0xeb0   :  { %v11748_v16 = vadd.f32 %v13160_v22, %v11747_v45 }
 0xeb2   :  { %v11753_v8 = vmul.f32 0.1, %v11748_v16 }
 0xeb4   :  { %v11757_v36 = vmax.f32 %v11748_v16, %v11753_v8 }
 0xeb6   :  { %13150 = vmatmul.msk.f32.gmra.mxu2 %vm11766_vm7, %v11757_v36 }
 0xf21   :  { %v11796_v51 = vpop.f32.mrf.mxu2 }
 0xf22   :  { %v11797_v50 = vadd.f32 %v13161_v34, %v11796_v51 }
 0xf24   :  { %11809 = vst.msk [vmem:[%s18914_s11] sm:$0xff] %vm11808_vm8, %v11797_v50 }
 0xf29   :  { %v11799_v26 = vpop.f32.mrf.mxu2 }
 0xf2a   :  { %v11800_v61 = vadd.f32 %v13161_v34, %v11799_v26 }
 0xf2c   :  { %11810 = vst.msk [vmem:[%s18914_s11 + $0x8] sm:$0xff] %vm11808_vm8, %v11800_v61 }
 0xf31   :  { %v11802_v5 = vpop.f32.mrf.mxu2 }
 0xf32   :  { %v11803_v62 = vadd.f32 %v13161_v34, %v11802_v5 }
 0xf34   :  { %11811 = vst.msk [vmem:[%s18914_s11 + $0x10] sm:$0xff] %vm11808_vm8, %v11803_v62 }
 0xf39   :  { %v11805_v37 = vpop.f32.mrf.mxu2 }
 0xf3a   :  { %v11806_v10 = vadd.f32 %v13161_v34, %v11805_v37 }
 0xf3c   :  { %11812 = vst.msk [vmem:[%s18914_s11 + $0x18] sm:$0xff] %vm11808_vm8, %v11806_v10 }
 0xf3d   :  { %11817 = vsyncpa [#allocation6], 1 }

</bundles_post_ra>
